<compile_context>
chip_gen: v7x
topology: tpu7x:2x2x1
jax: 0.10.0
libtpu: 0.0.40
codegen_flags: <defaults>
</compile_context>

<pallas_src>
import functools
import numpy as np

import jax
import jax.numpy as jnp
from jax.experimental import pallas as pl
from jax.experimental.pallas import tpu as pltpu

TM = 128     # M-tile (rows = flattened N*H*W pixels)
LANE = 128   # channel padding target (lane width)


def _round_up(x, m):
    return ((x + m - 1) // m) * m


# ----------------------------------------------------------------------------
# Pallas kernels
# ----------------------------------------------------------------------------
def _apply_act(acc, activation):
    if activation == "relu":
        return jnp.maximum(acc, 0.0)
    if activation == "tanh":
        return jnp.tanh(acc)
    return acc


def _mm_kernel(a_ref, w_ref, b_ref, o_ref, *, activation):
    # bf16 operands -> MXU, f32 accumulation + epilogue, bf16 store.
    acc = jnp.dot(a_ref[...], w_ref[...], preferred_element_type=jnp.float32)
    acc = acc + b_ref[...]
    o_ref[...] = _apply_act(acc, activation).astype(o_ref.dtype)


def _resblock_kernel(p_ref, w1_ref, b1_ref, w2_ref, b2_ref, x_ref, o_ref):
    # Fused ResBlock: relu(conv1x1(relu(conv3x3(x))) + x); the intermediate
    # activation h stays in VMEM / vregs (never written to HBM).
    h = jnp.dot(p_ref[...], w1_ref[...], preferred_element_type=jnp.float32)
    h = jnp.maximum(h + b1_ref[...], 0.0)
    acc = jnp.dot(h.astype(w2_ref.dtype), w2_ref[...],
                  preferred_element_type=jnp.float32)
    acc = acc + b2_ref[...] + x_ref[...].astype(jnp.float32)
    o_ref[...] = jnp.maximum(acc, 0.0).astype(o_ref.dtype)


# ----------------------------------------------------------------------------
# pallas_call wrappers
# ----------------------------------------------------------------------------
def matmul_bias_act(a, w, bias, activation="none"):
    """act(a @ w + bias).  a: (M, K) bf16, w: (K, N) bf16, bias: (1, N) f32."""
    M, K = a.shape
    N = w.shape[1]
    tm = M if M <= TM else TM          # no M padding; full block for tiny M
    return pl.pallas_call(
        functools.partial(_mm_kernel, activation=activation),
        out_shape=jax.ShapeDtypeStruct((M, N), jnp.bfloat16),
        grid_spec=pltpu.PrefetchScalarGridSpec(
            num_scalar_prefetch=0,
            grid=(pl.cdiv(M, tm),),
            in_specs=[pl.BlockSpec((tm, K), lambda i: (i, 0)),
                      pl.BlockSpec((K, N), lambda i: (0, 0)),
                      pl.BlockSpec((1, N), lambda i: (0, 0))],
            out_specs=pl.BlockSpec((tm, N), lambda i: (i, 0))),
        compiler_params=pltpu.CompilerParams(
            dimension_semantics=("parallel",)),
    )(a, w, bias)


def fused_resblock(patches, w1, b1, w2, b2, x_flat):
    """One pallas_call per ResBlock: relu(W2 @ relu(W1 @ patches + b1) + b2 + x)."""
    M, K1 = patches.shape
    C = x_flat.shape[1]
    tm = M if M <= TM else TM
    return pl.pallas_call(
        _resblock_kernel,
        out_shape=jax.ShapeDtypeStruct((M, C), jnp.bfloat16),
        grid_spec=pltpu.PrefetchScalarGridSpec(
            num_scalar_prefetch=0,
            grid=(pl.cdiv(M, tm),),
            in_specs=[pl.BlockSpec((tm, K1), lambda i: (i, 0)),
                      pl.BlockSpec((K1, C), lambda i: (0, 0)),
                      pl.BlockSpec((1, C), lambda i: (0, 0)),
                      pl.BlockSpec((C, C), lambda i: (0, 0)),
                      pl.BlockSpec((1, C), lambda i: (0, 0)),
                      pl.BlockSpec((tm, C), lambda i: (i, 0))],
            out_specs=pl.BlockSpec((tm, C), lambda i: (i, 0))),
        compiler_params=pltpu.CompilerParams(
            dimension_semantics=("parallel",)),
    )(patches, w1, b1, w2, b2, x_flat)


# ----------------------------------------------------------------------------
# Conv layers (im2col glue in XLA + Pallas matmul kernels)
# ----------------------------------------------------------------------------
# TODO(synk): fuse the im2col patch extraction into the Pallas kernel (tap
# reduction grid axis + VMEM accumulator) to avoid materializing the patch
# matrix in HBM at large image sizes; at these toy sizes XLA fuses it cheaply.
def im2col(x, kh, kw, stride, pad):
    """x: (B, H, W, C) -> (B*Ho*Wo, kh*kw*C) patches (same dtype as x)."""
    B, H, W, C = x.shape
    xp = jnp.pad(x, ((0, 0), (pad, pad), (pad, pad), (0, 0))) if pad else x
    Ho = (H + 2 * pad - kh) // stride + 1
    Wo = (W + 2 * pad - kw) // stride + 1
    cols = []
    for i in range(kh):
        for j in range(kw):
            cols.append(xp[:, i:i + stride * (Ho - 1) + 1:stride,
                           j:j + stride * (Wo - 1) + 1:stride, :])
    patches = jnp.concatenate(cols, axis=-1).reshape(B * Ho * Wo, kh * kw * C)
    return patches, Ho, Wo


def conv2d(x, wmat, bias, k, stride, pad, activation="none"):
    """x NHWC (channel-padded bf16); wmat: (k*k*Cp, Cp) bf16; bias: (1, Cp) f32."""
    B = x.shape[0]
    if k == 1 and stride == 1 and pad == 0:
        patches, Ho, Wo = x.reshape(-1, x.shape[-1]), x.shape[1], x.shape[2]
    else:
        patches, Ho, Wo = im2col(x, k, k, stride, pad)
    out = matmul_bias_act(patches, wmat, bias, activation=activation)
    return out.reshape(B, Ho, Wo, out.shape[-1])


def conv_transpose_subpixel(x, wmat, bias, activation):
    """PyTorch ConvTranspose2d(k=4, s=2, p=1) as one 3x3 conv that produces all
    4 output-pixel parities at once (weights pre-arranged in prepare_params)."""
    B, H, W, C = x.shape
    patches, _, _ = im2col(x, 3, 3, stride=1, pad=1)
    out = matmul_bias_act(patches, wmat, bias, activation=activation)  # (B*H*W, 4*C)
    out = out.reshape(B, H, W, 2, 2, C)
    out = jnp.transpose(out, (0, 1, 3, 2, 4, 5)).reshape(B, 2 * H, 2 * W, C)
    return out


def resblock(x, rp):
    B, H, W, C = x.shape
    patches, _, _ = im2col(x, 3, 3, stride=1, pad=1)
    out = fused_resblock(patches, rp["w1"], rp["b1"], rp["w2"], rp["b2"],
                         x.reshape(B * H * W, C))
    return out.reshape(B, H, W, C)


# ----------------------------------------------------------------------------
# Raw parameter init (deterministic, PyTorch-like uniform fan-in scaling)
# ----------------------------------------------------------------------------
def init_params(key, input_channels=3, n_hid=16, n_downsamples=3, n_bottlenecks=2,
                codebook_size=16, code_size=32, num_codebooks=4):
    keys = iter(jax.random.split(key, 64))

    def conv_p(c_in, c_out, k):
        s = 1.0 / np.sqrt(c_in * k * k)
        return {"w": jax.random.uniform(next(keys), (c_out, c_in, k, k), jnp.float32, -s, s),
                "b": jax.random.uniform(next(keys), (c_out,), jnp.float32, -s, s)}

    def convT_p(c_in, c_out, k):
        s = 1.0 / np.sqrt(c_out * k * k)
        return {"w": jax.random.uniform(next(keys), (c_in, c_out, k, k), jnp.float32, -s, s),
                "b": jax.random.uniform(next(keys), (c_out,), jnp.float32, -s, s)}

    def res_p(c):
        return {"c1": conv_p(c, c // 4, 3), "c2": conv_p(c // 4, c, 1)}

    enc_down, c_in, c_out = [], input_channels, n_hid
    for _ in range(n_downsamples):
        enc_down.append(conv_p(c_in, c_out, 4))
        c_in, c_out = c_out, 2 * c_out
    enc_out_channels = c_in
    enc = {"down": enc_down,
           "pre": conv_p(enc_out_channels, enc_out_channels, 3),
           "res": [res_p(enc_out_channels) for _ in range(n_bottlenecks)]}

    quant = {"proj": conv_p(enc_out_channels, num_codebooks * codebook_size, 1),
             "embed_w": jax.random.normal(next(keys),
                                          (num_codebooks * codebook_size, code_size),
                                          jnp.float32)}

    out_ch = n_hid * 2 ** (n_downsamples - 1)
    dec_first = conv_p(code_size, out_ch, 3)
    dec_res = [res_p(out_ch) for _ in range(n_bottlenecks)]
    ups, c_in, c_out = [], out_ch, out_ch // 2
    for i in range(n_downsamples):
        ups.append(convT_p(c_in, c_out, 4))
        c_in, c_out = c_out, c_out // 2
        if i == n_downsamples - 2:
            c_out = input_channels
    dec = {"first": dec_first, "res": dec_res, "ups": ups}

    return {"enc": enc, "quant": quant, "dec": dec}


# ----------------------------------------------------------------------------
# One-time (outside jit) conversion to matmul-layout, channel-padded bf16 weights
# ----------------------------------------------------------------------------
def _prep_conv(w, b, cp_in, cp_out):
    """PyTorch Conv2d weight (C_out, C_in, kh, kw) -> (kh*kw*cp_in, cp_out) bf16."""
    w = np.asarray(jax.device_get(w)); b = np.asarray(jax.device_get(b))
    c_out, c_in, kh, kw = w.shape
    wp = np.zeros((kh, kw, cp_in, cp_out), np.float32)
    wp[:, :, :c_in, :c_out] = np.transpose(w, (2, 3, 1, 0))
    bp = np.zeros((1, cp_out), np.float32)
    bp[0, :c_out] = b
    return {"w": jnp.asarray(wp.reshape(kh * kw * cp_in, cp_out), dtype=jnp.bfloat16),
            "b": jnp.asarray(bp)}


# (output y-parity a, 3x3 conv tap r) -> ConvTranspose kernel index ky.
# Derived from y = 2*i - 1 + ky:  even y uses ky {3,1} at rows {Y-1, Y};
#                                 odd  y uses ky {2,0} at rows {Y, Y+1}.
_SUBPIXEL_TAPS = {(0, 0): 3, (0, 1): 1, (1, 1): 2, (1, 2): 0}


def _prep_convT(w_t, b, cp_in, cp_out):
    """ConvTranspose2d(k=4,s=2,p=1) weight (C_in, C_out, 4, 4) -> combined 3x3
    sub-pixel weight (9*cp_in, 4*cp_out) producing the 4 output parities."""
    w_t = np.asarray(jax.device_get(w_t)); b = np.asarray(jax.device_get(b))
    c_in, c_out = w_t.shape[0], w_t.shape[1]
    wc = np.zeros((3, 3, cp_in, 2, 2, cp_out), np.float32)
    for (a, r), ky in _SUBPIXEL_TAPS.items():
        for (c, s), kx in _SUBPIXEL_TAPS.items():
            wc[r, s, :c_in, a, c, :c_out] = w_t[:, :, ky, kx]
    bc = np.zeros((1, 2, 2, cp_out), np.float32)
    bc[0, :, :, :c_out] = b
    return {"w": jnp.asarray(wc.reshape(9 * cp_in, 4 * cp_out), dtype=jnp.bfloat16),
            "b": jnp.asarray(bc.reshape(1, 4 * cp_out))}


def _prep_resblock(rb, cp):
    c1 = _prep_conv(rb["c1"]["w"], rb["c1"]["b"], cp, cp)   # 3x3: (9*cp, cp)
    c2 = _prep_conv(rb["c2"]["w"], rb["c2"]["b"], cp, cp)   # 1x1: (cp, cp)
    return {"w1": c1["w"], "b1": c1["b"], "w2": c2["w"], "b2": c2["b"]}


def _prep_embed(embed_w, cp):
    e = np.asarray(jax.device_get(embed_w))
    nb, d = e.shape
    ep = np.zeros((nb, cp), np.float32)
    ep[:, :d] = e
    return {"w": jnp.asarray(ep, dtype=jnp.bfloat16),
            "b": jnp.zeros((1, cp), jnp.float32)}


def prepare_params(raw, cp):
    enc, dec, quant = raw["enc"], raw["dec"], raw["quant"]
    p_enc = {"down": [_prep_conv(l["w"], l["b"], cp, cp) for l in enc["down"]],
             "pre": _prep_conv(enc["pre"]["w"], enc["pre"]["b"], cp, cp),
             "res": [_prep_resblock(rb, cp) for rb in enc["res"]]}
    p_quant = {"proj": _prep_conv(quant["proj"]["w"], quant["proj"]["b"], cp, cp),
               "embed": _prep_embed(quant["embed_w"], cp)}
    p_dec = {"first": _prep_conv(dec["first"]["w"], dec["first"]["b"], cp, cp),
             "res": [_prep_resblock(rb, cp) for rb in dec["res"]],
             "ups": [_prep_convT(u["w"], u["b"], cp, cp) for u in dec["ups"]]}
    return {"enc": p_enc, "quant": p_quant, "dec": p_dec}


# ----------------------------------------------------------------------------
# Forward pass
# ----------------------------------------------------------------------------
def encoder_forward(x, p):
    for layer in p["down"]:
        x = conv2d(x, layer["w"], layer["b"], k=4, stride=2, pad=1, activation="relu")
    x = conv2d(x, p["pre"]["w"], p["pre"]["b"], k=3, stride=1, pad=1, activation="relu")
    for rb in p["res"]:
        x = resblock(x, rb)
    return x


def gumbel_quantize(z, qp, key, tau, n_embed, num_codebooks, target_density=0.1):
    kld_scale = 0.0005
    B, H, W, C = z.shape
    M = B * H * W

    # 1x1 projection to codebook logits (Pallas matmul, lane-dense output).
    logits_pad = matmul_bias_act(z.reshape(M, C), qp["proj"]["w"], qp["proj"]["b"])
    nb = num_codebooks * n_embed
    logits = logits_pad[:, :nb].astype(jnp.float32).reshape(B, H, W, num_codebooks, n_embed)

    # Gumbel-softmax (hard=True) over the codebook-entry axis -- plain JAX glue.
    g = jax.random.gumbel(key, logits.shape, dtype=jnp.float32)
    y_soft = jax.nn.softmax((logits + g) / tau, axis=-1)
    idx = jnp.argmax(y_soft, axis=-1)
    y_hard = jax.nn.one_hot(idx, n_embed, dtype=jnp.float32)
    soft_one_hot = y_hard + y_soft - jax.lax.stop_gradient(y_soft)   # == y_hard fwd

    # z_q = einsum('b n h w, n d -> b d h w') as a Pallas matmul (d padded to cp).
    one_hot_flat = soft_one_hot.reshape(M, nb).astype(jnp.bfloat16)
    zq_flat = matmul_bias_act(one_hot_flat, qp["embed"]["w"], qp["embed"]["b"])
    z_q = zq_flat.reshape(B, H, W, zq_flat.shape[-1])

    # KL / density statistics (tiny scalar reductions, f32 JAX glue).
    qy = jax.nn.softmax(logits, axis=-1)
    diff = kld_scale * jnp.mean(jnp.sum(qy * jnp.log(qy * (n_embed - 1) + 1e-10), axis=-1))
    qy_log = jax.nn.log_softmax(logits, axis=-1)
    total_patches = B * H * W
    log_denominator = np.log(total_patches * num_codebooks)
    logp_zero = jax.scipy.special.logsumexp(qy_log[..., 0].reshape(-1)) - log_denominator
    logp_nonzero = jax.scipy.special.logsumexp(qy_log[..., 1:].reshape(-1)) - log_denominator
    kl_p0 = -((1.0 - target_density) * logp_zero + target_density * logp_nonzero)
    return z_q, diff, kl_p0


def decoder_forward(x, p):
    x = conv2d(x, p["first"]["w"], p["first"]["b"], k=3, stride=1, pad=1, activation="relu")
    for rb in p["res"]:
        x = resblock(x, rb)
    n_up = len(p["ups"])
    for i, up in enumerate(p["ups"]):
        act = "tanh" if i == n_up - 1 else "relu"
        x = conv_transpose_subpixel(x, up["w"], up["b"], activation=act)
    return x


def vqvae_forward(params, x_nchw, gumbel_key, *, cfg, tau=1.0):
    cp = cfg["cp"]
    x = jnp.transpose(x_nchw, (0, 2, 3, 1))                           # NCHW -> NHWC
    x = jnp.pad(x, ((0, 0), (0, 0), (0, 0), (0, cp - x.shape[-1])))   # channel pad (once)
    x = x.astype(jnp.bfloat16)
    z = encoder_forward(x, params["enc"])
    z_q, diff, kl_p0 = gumbel_quantize(z, params["quant"], gumbel_key, tau,
                                       n_embed=cfg["codebook_size"],
                                       num_codebooks=cfg["num_codebooks"])
    x_hat = decoder_forward(z_q, params["dec"])
    x_hat = x_hat[..., :cfg["input_channels"]].astype(jnp.float32)    # drop channel pad
    return jnp.transpose(x_hat, (0, 3, 1, 2)), diff, kl_p0            # NHWC -> NCHW


# ----------------------------------------------------------------------------
if __name__ == "__main__":
    root = jax.random.PRNGKey(0)
    k_params, k_x, k_gumbel = jax.random.split(root, 3)

    # Small config: input_channels=3, n_hid=16, 3 downsamples, 2 bottlenecks,
    # codebook_size=16, code_size=32, num_codebooks=4.  Input (2, 3, 16, 16).
    model_cfg = dict(input_channels=3, n_hid=16, n_downsamples=3, n_bottlenecks=2,
                     codebook_size=16, code_size=32, num_codebooks=4)
    raw_params = init_params(k_params, **model_cfg)

    max_c = max(model_cfg["input_channels"],
                model_cfg["n_hid"] * 2 ** (model_cfg["n_downsamples"] - 1),
                model_cfg["num_codebooks"] * model_cfg["codebook_size"],
                model_cfg["code_size"])
    cp = _round_up(max_c, LANE)

    # Matmul-layout, channel-padded, bf16 weights -- built once, outside jit.
    params = prepare_params(raw_params, cp)

    # Static config bound via partial (NOT traced) -> concrete ints for reshapes.
    cfg = dict(codebook_size=model_cfg["codebook_size"],
               num_codebooks=model_cfg["num_codebooks"],
               input_channels=model_cfg["input_channels"],
               cp=cp)

    x = jax.random.normal(k_x, (2, 3, 16, 16), jnp.float32)

    fwd = jax.jit(functools.partial(vqvae_forward, cfg=cfg, tau=1.0))
    x_hat, latent_loss, kl_p0 = fwd(params, x, k_gumbel)
    jax.block_until_ready((x_hat, latent_loss, kl_p0))

    assert x_hat.shape == x.shape, x_hat.shape
    assert latent_loss.shape == () and kl_p0.shape == ()
    assert bool(jnp.all(jnp.isfinite(x_hat)))
    assert bool(jnp.isfinite(latent_loss)) and bool(jnp.isfinite(kl_p0))
    print("KERNEL_OK")
</pallas_src>

<mosaic_0001>
module attributes {stable_mosaic.version = 11 : i64} {
  func.func @_mm_kernel(%arg0: i32, %arg1: memref<128x2048xbf16, #tpu.memory_space<vmem>>, %arg2: memref<2048x128xbf16, #tpu.memory_space<vmem>>, %arg3: memref<1x128xf32, #tpu.memory_space<vmem>>, %arg4: memref<128x128xbf16, #tpu.memory_space<vmem>>) attributes {dimension_semantics = [#tpu.dimension_semantics<parallel>], iteration_bounds = array<i64: 1>, scalar_prefetch = 0 : i64, scratch_operands = 0 : i64, tpu.core_type = #tpu.core_type<tc>, window_params = [{transform_indices = @transform_0, window_bounds = array<i64: 128, 2048>}, {pipeline_mode = #tpu.pipeline_mode<synchronous>, transform_indices = @transform_1, window_bounds = array<i64: 2048, 128>}, {pipeline_mode = #tpu.pipeline_mode<synchronous>, transform_indices = @transform_2, window_bounds = array<i64: 1, 128>}, {transform_indices = @transform_3, window_bounds = array<i64: 128, 128>}]} {
    %c0 = arith.constant 0 : index
    %c0_0 = arith.constant 0 : index
    %0 = vector.load %arg1[%c0, %c0_0] : memref<128x2048xbf16, #tpu.memory_space<vmem>>, vector<128x2048xbf16>
    %c0_1 = arith.constant 0 : index
    %c0_2 = arith.constant 0 : index
    %1 = vector.load %arg2[%c0_1, %c0_2] : memref<2048x128xbf16, #tpu.memory_space<vmem>>, vector<2048x128xbf16>
    %cst = arith.constant dense<0.000000e+00> : vector<128x128xf32>
    %2 = tpu.matmul %0, %1, %cst {dimension_numbers = #tpu.dot_dimension_numbers<[1], [0], [0], [1], [0, 0, 1, 1], [], []>} : vector<128x2048xbf16>, vector<2048x128xbf16>, vector<128x128xf32> -> vector<128x128xf32>
    %c0_3 = arith.constant 0 : index
    %c0_4 = arith.constant 0 : index
    %3 = vector.load %arg3[%c0_3, %c0_4] : memref<1x128xf32, #tpu.memory_space<vmem>>, vector<1x128xf32>
    %4 = vector.broadcast %3 : vector<1x128xf32> to vector<128x128xf32>
    %5 = arith.addf %2, %4 : vector<128x128xf32>
    %cst_5 = arith.constant 0.000000e+00 : f32
    %6 = vector.broadcast %cst_5 : f32 to vector<128x128xf32>
    %7 = arith.maximumf %5, %6 : vector<128x128xf32>
    %8 = arith.truncf %7 : vector<128x128xf32> to vector<128x128xbf16>
    %c0_6 = arith.constant 0 : index
    %c0_7 = arith.constant 0 : index
    %9 = vector.load %arg4[%c0_6, %c0_7] : memref<128x128xbf16, #tpu.memory_space<vmem>>, vector<128x128xbf16>
    tpu.vector_store %arg4[%c0_6, %c0_7], %8 {strides = array<i32>} : memref<128x128xbf16, #tpu.memory_space<vmem>>, vector<128x128xbf16>,
    return
  }
  func.func @transform_0(%arg0: i32) -> (i32, i32) {
    %c0_i32 = arith.constant 0 : i32
    %c0_i32_0 = arith.constant 0 : i32
    return %arg0, %c0_i32 : i32, i32
  }
  func.func @transform_1(%arg0: i32) -> (i32, i32) {
    %c0_i32 = arith.constant 0 : i32
    %c0_i32_0 = arith.constant 0 : i32
    %c0_i32_1 = arith.constant 0 : i32
    return %c0_i32, %c0_i32_0 : i32, i32
  }
  func.func @transform_2(%arg0: i32) -> (i32, i32) {
    %c0_i32 = arith.constant 0 : i32
    %c0_i32_0 = arith.constant 0 : i32
    %c0_i32_1 = arith.constant 0 : i32
    return %c0_i32, %c0_i32_0 : i32, i32
  }
  func.func @transform_3(%arg0: i32) -> (i32, i32) {
    %c0_i32 = arith.constant 0 : i32
    %c0_i32_0 = arith.constant 0 : i32
    return %arg0, %c0_i32 : i32, i32
  }
}

module attributes {stable_mosaic.version = 11 : i64} {
  func.func @_mm_kernel(%arg0: i32, %arg1: memref<32x2048xbf16, #tpu.memory_space<vmem>>, %arg2: memref<2048x128xbf16, #tpu.memory_space<vmem>>, %arg3: memref<1x128xf32, #tpu.memory_space<vmem>>, %arg4: memref<32x128xbf16, #tpu.memory_space<vmem>>) attributes {dimension_semantics = [#tpu.dimension_semantics<parallel>], iteration_bounds = array<i64: 1>, scalar_prefetch = 0 : i64, scratch_operands = 0 : i64, tpu.core_type = #tpu.core_type<tc>, window_params = [{transform_indices = @transform_0, window_bounds = array<i64: 32, 2048>}, {pipeline_mode = #tpu.pipeline_mode<synchronous>, transform_indices = @transform_1, window_bounds = array<i64: 2048, 128>}, {pipeline_mode = #tpu.pipeline_mode<synchronous>, transform_indices = @transform_2, window_bounds = array<i64: 1, 128>}, {transform_indices = @transform_3, window_bounds = array<i64: 32, 128>}]} {
    %c0 = arith.constant 0 : index
    %c0_0 = arith.constant 0 : index
    %0 = vector.load %arg1[%c0, %c0_0] : memref<32x2048xbf16, #tpu.memory_space<vmem>>, vector<32x2048xbf16>
    %c0_1 = arith.constant 0 : index
    %c0_2 = arith.constant 0 : index
    %1 = vector.load %arg2[%c0_1, %c0_2] : memref<2048x128xbf16, #tpu.memory_space<vmem>>, vector<2048x128xbf16>
    %cst = arith.constant dense<0.000000e+00> : vector<32x128xf32>
    %2 = tpu.matmul %0, %1, %cst {dimension_numbers = #tpu.dot_dimension_numbers<[1], [0], [0], [1], [0, 0, 1, 1], [], []>} : vector<32x2048xbf16>, vector<2048x128xbf16>, vector<32x128xf32> -> vector<32x128xf32>
    %c0_3 = arith.constant 0 : index
    %c0_4 = arith.constant 0 : index
    %3 = vector.load %arg3[%c0_3, %c0_4] : memref<1x128xf32, #tpu.memory_space<vmem>>, vector<1x128xf32>
    %4 = vector.broadcast %3 : vector<1x128xf32> to vector<32x128xf32>
    %5 = arith.addf %2, %4 : vector<32x128xf32>
    %cst_5 = arith.constant 0.000000e+00 : f32
    %6 = vector.broadcast %cst_5 : f32 to vector<32x128xf32>
    %7 = arith.maximumf %5, %6 : vector<32x128xf32>
    %8 = arith.truncf %7 : vector<32x128xf32> to vector<32x128xbf16>
    %c0_6 = arith.constant 0 : index
    %c0_7 = arith.constant 0 : index
    %9 = vector.load %arg4[%c0_6, %c0_7] : memref<32x128xbf16, #tpu.memory_space<vmem>>, vector<32x128xbf16>
    tpu.vector_store %arg4[%c0_6, %c0_7], %8 {strides = array<i32>} : memref<32x128xbf16, #tpu.memory_space<vmem>>, vector<32x128xbf16>,
    return
  }
  func.func @transform_0(%arg0: i32) -> (i32, i32) {
    %c0_i32 = arith.constant 0 : i32
    %c0_i32_0 = arith.constant 0 : i32
    return %arg0, %c0_i32 : i32, i32
  }
  func.func @transform_1(%arg0: i32) -> (i32, i32) {
    %c0_i32 = arith.constant 0 : i32
    %c0_i32_0 = arith.constant 0 : i32
    %c0_i32_1 = arith.constant 0 : i32
    return %c0_i32, %c0_i32_0 : i32, i32
  }
  func.func @transform_2(%arg0: i32) -> (i32, i32) {
    %c0_i32 = arith.constant 0 : i32
    %c0_i32_0 = arith.constant 0 : i32
    %c0_i32_1 = arith.constant 0 : i32
    return %c0_i32, %c0_i32_0 : i32, i32
  }
  func.func @transform_3(%arg0: i32) -> (i32, i32) {
    %c0_i32 = arith.constant 0 : i32
    %c0_i32_0 = arith.constant 0 : i32
    return %arg0, %c0_i32 : i32, i32
  }
}

module attributes {stable_mosaic.version = 11 : i64} {
  func.func @_mm_kernel(%arg0: i32, %arg1: memref<8x1152xbf16, #tpu.memory_space<vmem>>, %arg2: memref<1152x128xbf16, #tpu.memory_space<vmem>>, %arg3: memref<1x128xf32, #tpu.memory_space<vmem>>, %arg4: memref<8x128xbf16, #tpu.memory_space<vmem>>) attributes {dimension_semantics = [#tpu.dimension_semantics<parallel>], iteration_bounds = array<i64: 1>, scalar_prefetch = 0 : i64, scratch_operands = 0 : i64, tpu.core_type = #tpu.core_type<tc>, window_params = [{transform_indices = @transform_0, window_bounds = array<i64: 8, 1152>}, {pipeline_mode = #tpu.pipeline_mode<synchronous>, transform_indices = @transform_1, window_bounds = array<i64: 1152, 128>}, {pipeline_mode = #tpu.pipeline_mode<synchronous>, transform_indices = @transform_2, window_bounds = array<i64: 1, 128>}, {transform_indices = @transform_3, window_bounds = array<i64: 8, 128>}]} {
    %c0 = arith.constant 0 : index
    %c0_0 = arith.constant 0 : index
    %0 = vector.load %arg1[%c0, %c0_0] : memref<8x1152xbf16, #tpu.memory_space<vmem>>, vector<8x1152xbf16>
    %c0_1 = arith.constant 0 : index
    %c0_2 = arith.constant 0 : index
    %1 = vector.load %arg2[%c0_1, %c0_2] : memref<1152x128xbf16, #tpu.memory_space<vmem>>, vector<1152x128xbf16>
    %cst = arith.constant dense<0.000000e+00> : vector<8x128xf32>
    %2 = tpu.matmul %0, %1, %cst {dimension_numbers = #tpu.dot_dimension_numbers<[1], [0], [0], [1], [0, 0, 1, 1], [], []>} : vector<8x1152xbf16>, vector<1152x128xbf16>, vector<8x128xf32> -> vector<8x128xf32>
    %c0_3 = arith.constant 0 : index
    %c0_4 = arith.constant 0 : index
    %3 = vector.load %arg3[%c0_3, %c0_4] : memref<1x128xf32, #tpu.memory_space<vmem>>, vector<1x128xf32>
    %4 = vector.broadcast %3 : vector<1x128xf32> to vector<8x128xf32>
    %5 = arith.addf %2, %4 : vector<8x128xf32>
    %cst_5 = arith.constant 0.000000e+00 : f32
    %6 = vector.broadcast %cst_5 : f32 to vector<8x128xf32>
    %7 = arith.maximumf %5, %6 : vector<8x128xf32>
    %8 = arith.truncf %7 : vector<8x128xf32> to vector<8x128xbf16>
    %c0_6 = arith.constant 0 : index
    %c0_7 = arith.constant 0 : index
    %9 = vector.load %arg4[%c0_6, %c0_7] : memref<8x128xbf16, #tpu.memory_space<vmem>>, vector<8x128xbf16>
    tpu.vector_store %arg4[%c0_6, %c0_7], %8 {strides = array<i32>} : memref<8x128xbf16, #tpu.memory_space<vmem>>, vector<8x128xbf16>,
    return
  }
  func.func @transform_0(%arg0: i32) -> (i32, i32) {
    %c0_i32 = arith.constant 0 : i32
    %c0_i32_0 = arith.constant 0 : i32
    return %arg0, %c0_i32 : i32, i32
  }
  func.func @transform_1(%arg0: i32) -> (i32, i32) {
    %c0_i32 = arith.constant 0 : i32
    %c0_i32_0 = arith.constant 0 : i32
    %c0_i32_1 = arith.constant 0 : i32
    return %c0_i32, %c0_i32_0 : i32, i32
  }
  func.func @transform_2(%arg0: i32) -> (i32, i32) {
    %c0_i32 = arith.constant 0 : i32
    %c0_i32_0 = arith.constant 0 : i32
    %c0_i32_1 = arith.constant 0 : i32
    return %c0_i32, %c0_i32_0 : i32, i32
  }
  func.func @transform_3(%arg0: i32) -> (i32, i32) {
    %c0_i32 = arith.constant 0 : i32
    %c0_i32_0 = arith.constant 0 : i32
    return %arg0, %c0_i32 : i32, i32
  }
}

module attributes {stable_mosaic.version = 11 : i64} {
  func.func @_mm_kernel(%arg0: i32, %arg1: memref<8x128xbf16, #tpu.memory_space<vmem>>, %arg2: memref<128x128xbf16, #tpu.memory_space<vmem>>, %arg3: memref<1x128xf32, #tpu.memory_space<vmem>>, %arg4: memref<8x128xbf16, #tpu.memory_space<vmem>>) attributes {dimension_semantics = [#tpu.dimension_semantics<parallel>], iteration_bounds = array<i64: 1>, scalar_prefetch = 0 : i64, scratch_operands = 0 : i64, tpu.core_type = #tpu.core_type<tc>, window_params = [{transform_indices = @transform_0, window_bounds = array<i64: 8, 128>}, {pipeline_mode = #tpu.pipeline_mode<synchronous>, transform_indices = @transform_1, window_bounds = array<i64: 128, 128>}, {pipeline_mode = #tpu.pipeline_mode<synchronous>, transform_indices = @transform_2, window_bounds = array<i64: 1, 128>}, {transform_indices = @transform_3, window_bounds = array<i64: 8, 128>}]} {
    %c0 = arith.constant 0 : index
    %c0_0 = arith.constant 0 : index
    %0 = vector.load %arg1[%c0, %c0_0] : memref<8x128xbf16, #tpu.memory_space<vmem>>, vector<8x128xbf16>
    %c0_1 = arith.constant 0 : index
    %c0_2 = arith.constant 0 : index
    %1 = vector.load %arg2[%c0_1, %c0_2] : memref<128x128xbf16, #tpu.memory_space<vmem>>, vector<128x128xbf16>
    %cst = arith.constant dense<0.000000e+00> : vector<8x128xf32>
    %2 = tpu.matmul %0, %1, %cst {dimension_numbers = #tpu.dot_dimension_numbers<[1], [0], [0], [1], [0, 0, 1, 1], [], []>} : vector<8x128xbf16>, vector<128x128xbf16>, vector<8x128xf32> -> vector<8x128xf32>
    %c0_3 = arith.constant 0 : index
    %c0_4 = arith.constant 0 : index
    %3 = vector.load %arg3[%c0_3, %c0_4] : memref<1x128xf32, #tpu.memory_space<vmem>>, vector<1x128xf32>
    %4 = vector.broadcast %3 : vector<1x128xf32> to vector<8x128xf32>
    %5 = arith.addf %2, %4 : vector<8x128xf32>
    %6 = arith.truncf %5 : vector<8x128xf32> to vector<8x128xbf16>
    %c0_5 = arith.constant 0 : index
    %c0_6 = arith.constant 0 : index
    %7 = vector.load %arg4[%c0_5, %c0_6] : memref<8x128xbf16, #tpu.memory_space<vmem>>, vector<8x128xbf16>
    tpu.vector_store %arg4[%c0_5, %c0_6], %6 {strides = array<i32>} : memref<8x128xbf16, #tpu.memory_space<vmem>>, vector<8x128xbf16>,
    return
  }
  func.func @transform_0(%arg0: i32) -> (i32, i32) {
    %c0_i32 = arith.constant 0 : i32
    %c0_i32_0 = arith.constant 0 : i32
    return %arg0, %c0_i32 : i32, i32
  }
  func.func @transform_1(%arg0: i32) -> (i32, i32) {
    %c0_i32 = arith.constant 0 : i32
    %c0_i32_0 = arith.constant 0 : i32
    %c0_i32_1 = arith.constant 0 : i32
    return %c0_i32, %c0_i32_0 : i32, i32
  }
  func.func @transform_2(%arg0: i32) -> (i32, i32) {
    %c0_i32 = arith.constant 0 : i32
    %c0_i32_0 = arith.constant 0 : i32
    %c0_i32_1 = arith.constant 0 : i32
    return %c0_i32, %c0_i32_0 : i32, i32
  }
  func.func @transform_3(%arg0: i32) -> (i32, i32) {
    %c0_i32 = arith.constant 0 : i32
    %c0_i32_0 = arith.constant 0 : i32
    return %arg0, %c0_i32 : i32, i32
  }
}

module attributes {stable_mosaic.version = 11 : i64} {
  func.func @_mm_kernel(%arg0: i32, %arg1: memref<8x2048xbf16, #tpu.memory_space<vmem>>, %arg2: memref<2048x128xbf16, #tpu.memory_space<vmem>>, %arg3: memref<1x128xf32, #tpu.memory_space<vmem>>, %arg4: memref<8x128xbf16, #tpu.memory_space<vmem>>) attributes {dimension_semantics = [#tpu.dimension_semantics<parallel>], iteration_bounds = array<i64: 1>, scalar_prefetch = 0 : i64, scratch_operands = 0 : i64, tpu.core_type = #tpu.core_type<tc>, window_params = [{transform_indices = @transform_0, window_bounds = array<i64: 8, 2048>}, {pipeline_mode = #tpu.pipeline_mode<synchronous>, transform_indices = @transform_1, window_bounds = array<i64: 2048, 128>}, {pipeline_mode = #tpu.pipeline_mode<synchronous>, transform_indices = @transform_2, window_bounds = array<i64: 1, 128>}, {transform_indices = @transform_3, window_bounds = array<i64: 8, 128>}]} {
    %c0 = arith.constant 0 : index
    %c0_0 = arith.constant 0 : index
    %0 = vector.load %arg1[%c0, %c0_0] : memref<8x2048xbf16, #tpu.memory_space<vmem>>, vector<8x2048xbf16>
    %c0_1 = arith.constant 0 : index
    %c0_2 = arith.constant 0 : index
    %1 = vector.load %arg2[%c0_1, %c0_2] : memref<2048x128xbf16, #tpu.memory_space<vmem>>, vector<2048x128xbf16>
    %cst = arith.constant dense<0.000000e+00> : vector<8x128xf32>
    %2 = tpu.matmul %0, %1, %cst {dimension_numbers = #tpu.dot_dimension_numbers<[1], [0], [0], [1], [0, 0, 1, 1], [], []>} : vector<8x2048xbf16>, vector<2048x128xbf16>, vector<8x128xf32> -> vector<8x128xf32>
    %c0_3 = arith.constant 0 : index
    %c0_4 = arith.constant 0 : index
    %3 = vector.load %arg3[%c0_3, %c0_4] : memref<1x128xf32, #tpu.memory_space<vmem>>, vector<1x128xf32>
    %4 = vector.broadcast %3 : vector<1x128xf32> to vector<8x128xf32>
    %5 = arith.addf %2, %4 : vector<8x128xf32>
    %cst_5 = arith.constant 0.000000e+00 : f32
    %6 = vector.broadcast %cst_5 : f32 to vector<8x128xf32>
    %7 = arith.maximumf %5, %6 : vector<8x128xf32>
    %8 = arith.truncf %7 : vector<8x128xf32> to vector<8x128xbf16>
    %c0_6 = arith.constant 0 : index
    %c0_7 = arith.constant 0 : index
    %9 = vector.load %arg4[%c0_6, %c0_7] : memref<8x128xbf16, #tpu.memory_space<vmem>>, vector<8x128xbf16>
    tpu.vector_store %arg4[%c0_6, %c0_7], %8 {strides = array<i32>} : memref<8x128xbf16, #tpu.memory_space<vmem>>, vector<8x128xbf16>,
    return
  }
  func.func @transform_0(%arg0: i32) -> (i32, i32) {
    %c0_i32 = arith.constant 0 : i32
    %c0_i32_0 = arith.constant 0 : i32
    return %arg0, %c0_i32 : i32, i32
  }
  func.func @transform_1(%arg0: i32) -> (i32, i32) {
    %c0_i32 = arith.constant 0 : i32
    %c0_i32_0 = arith.constant 0 : i32
    %c0_i32_1 = arith.constant 0 : i32
    return %c0_i32, %c0_i32_0 : i32, i32
  }
  func.func @transform_2(%arg0: i32) -> (i32, i32) {
    %c0_i32 = arith.constant 0 : i32
    %c0_i32_0 = arith.constant 0 : i32
    %c0_i32_1 = arith.constant 0 : i32
    return %c0_i32, %c0_i32_0 : i32, i32
  }
  func.func @transform_3(%arg0: i32) -> (i32, i32) {
    %c0_i32 = arith.constant 0 : i32
    %c0_i32_0 = arith.constant 0 : i32
    return %arg0, %c0_i32 : i32, i32
  }
}

module attributes {stable_mosaic.version = 11 : i64} {
  func.func @_resblock_kernel(%arg0: i32, %arg1: memref<8x1152xbf16, #tpu.memory_space<vmem>>, %arg2: memref<1152x128xbf16, #tpu.memory_space<vmem>>, %arg3: memref<1x128xf32, #tpu.memory_space<vmem>>, %arg4: memref<128x128xbf16, #tpu.memory_space<vmem>>, %arg5: memref<1x128xf32, #tpu.memory_space<vmem>>, %arg6: memref<8x128xbf16, #tpu.memory_space<vmem>>, %arg7: memref<8x128xbf16, #tpu.memory_space<vmem>>) attributes {dimension_semantics = [#tpu.dimension_semantics<parallel>], iteration_bounds = array<i64: 1>, scalar_prefetch = 0 : i64, scratch_operands = 0 : i64, tpu.core_type = #tpu.core_type<tc>, window_params = [{transform_indices = @transform_0, window_bounds = array<i64: 8, 1152>}, {pipeline_mode = #tpu.pipeline_mode<synchronous>, transform_indices = @transform_1, window_bounds = array<i64: 1152, 128>}, {pipeline_mode = #tpu.pipeline_mode<synchronous>, transform_indices = @transform_2, window_bounds = array<i64: 1, 128>}, {pipeline_mode = #tpu.pipeline_mode<synchronous>, transform_indices = @transform_3, window_bounds = array<i64: 128, 128>}, {pipeline_mode = #tpu.pipeline_mode<synchronous>, transform_indices = @transform_4, window_bounds = array<i64: 1, 128>}, {transform_indices = @transform_5, window_bounds = array<i64: 8, 128>}, {transform_indices = @transform_6, window_bounds = array<i64: 8, 128>}]} {
    %c0 = arith.constant 0 : index
    %c0_0 = arith.constant 0 : index
    %0 = vector.load %arg1[%c0, %c0_0] : memref<8x1152xbf16, #tpu.memory_space<vmem>>, vector<8x1152xbf16>
    %c0_1 = arith.constant 0 : index
    %c0_2 = arith.constant 0 : index
    %1 = vector.load %arg2[%c0_1, %c0_2] : memref<1152x128xbf16, #tpu.memory_space<vmem>>, vector<1152x128xbf16>
    %cst = arith.constant dense<0.000000e+00> : vector<8x128xf32>
    %2 = tpu.matmul %0, %1, %cst {dimension_numbers = #tpu.dot_dimension_numbers<[1], [0], [0], [1], [0, 0, 1, 1], [], []>} : vector<8x1152xbf16>, vector<1152x128xbf16>, vector<8x128xf32> -> vector<8x128xf32>
    %c0_3 = arith.constant 0 : index
    %c0_4 = arith.constant 0 : index
    %3 = vector.load %arg3[%c0_3, %c0_4] : memref<1x128xf32, #tpu.memory_space<vmem>>, vector<1x128xf32>
    %4 = vector.broadcast %3 : vector<1x128xf32> to vector<8x128xf32>
    %5 = arith.addf %2, %4 : vector<8x128xf32>
    %cst_5 = arith.constant 0.000000e+00 : f32
    %6 = vector.broadcast %cst_5 : f32 to vector<8x128xf32>
    %7 = arith.maximumf %5, %6 : vector<8x128xf32>
    %8 = arith.truncf %7 : vector<8x128xf32> to vector<8x128xbf16>
    %c0_6 = arith.constant 0 : index
    %c0_7 = arith.constant 0 : index
    %9 = vector.load %arg4[%c0_6, %c0_7] : memref<128x128xbf16, #tpu.memory_space<vmem>>, vector<128x128xbf16>
    %cst_8 = arith.constant dense<0.000000e+00> : vector<8x128xf32>
    %10 = tpu.matmul %8, %9, %cst_8 {dimension_numbers = #tpu.dot_dimension_numbers<[1], [0], [0], [1], [0, 0, 1, 1], [], []>} : vector<8x128xbf16>, vector<128x128xbf16>, vector<8x128xf32> -> vector<8x128xf32>
    %c0_9 = arith.constant 0 : index
    %c0_10 = arith.constant 0 : index
    %11 = vector.load %arg5[%c0_9, %c0_10] : memref<1x128xf32, #tpu.memory_space<vmem>>, vector<1x128xf32>
    %12 = vector.broadcast %11 : vector<1x128xf32> to vector<8x128xf32>
    %13 = arith.addf %10, %12 : vector<8x128xf32>
    %c0_11 = arith.constant 0 : index
    %c0_12 = arith.constant 0 : index
    %14 = vector.load %arg6[%c0_11, %c0_12] : memref<8x128xbf16, #tpu.memory_space<vmem>>, vector<8x128xbf16>
    %15 = arith.extf %14 : vector<8x128xbf16> to vector<8x128xf32>
    %16 = arith.addf %13, %15 : vector<8x128xf32>
    %cst_13 = arith.constant 0.000000e+00 : f32
    %17 = vector.broadcast %cst_13 : f32 to vector<8x128xf32>
    %18 = arith.maximumf %16, %17 : vector<8x128xf32>
    %19 = arith.truncf %18 : vector<8x128xf32> to vector<8x128xbf16>
    %c0_14 = arith.constant 0 : index
    %c0_15 = arith.constant 0 : index
    %20 = vector.load %arg7[%c0_14, %c0_15] : memref<8x128xbf16, #tpu.memory_space<vmem>>, vector<8x128xbf16>
    tpu.vector_store %arg7[%c0_14, %c0_15], %19 {strides = array<i32>} : memref<8x128xbf16, #tpu.memory_space<vmem>>, vector<8x128xbf16>,
    return
  }
  func.func @transform_0(%arg0: i32) -> (i32, i32) {
    %c0_i32 = arith.constant 0 : i32
    %c0_i32_0 = arith.constant 0 : i32
    return %arg0, %c0_i32 : i32, i32
  }
  func.func @transform_1(%arg0: i32) -> (i32, i32) {
    %c0_i32 = arith.constant 0 : i32
    %c0_i32_0 = arith.constant 0 : i32
    %c0_i32_1 = arith.constant 0 : i32
    return %c0_i32, %c0_i32_0 : i32, i32
  }
  func.func @transform_2(%arg0: i32) -> (i32, i32) {
    %c0_i32 = arith.constant 0 : i32
    %c0_i32_0 = arith.constant 0 : i32
    %c0_i32_1 = arith.constant 0 : i32
    return %c0_i32, %c0_i32_0 : i32, i32
  }
  func.func @transform_3(%arg0: i32) -> (i32, i32) {
    %c0_i32 = arith.constant 0 : i32
    %c0_i32_0 = arith.constant 0 : i32
    %c0_i32_1 = arith.constant 0 : i32
    return %c0_i32, %c0_i32_0 : i32, i32
  }
  func.func @transform_4(%arg0: i32) -> (i32, i32) {
    %c0_i32 = arith.constant 0 : i32
    %c0_i32_0 = arith.constant 0 : i32
    %c0_i32_1 = arith.constant 0 : i32
    return %c0_i32, %c0_i32_0 : i32, i32
  }
  func.func @transform_5(%arg0: i32) -> (i32, i32) {
    %c0_i32 = arith.constant 0 : i32
    %c0_i32_0 = arith.constant 0 : i32
    return %arg0, %c0_i32 : i32, i32
  }
  func.func @transform_6(%arg0: i32) -> (i32, i32) {
    %c0_i32 = arith.constant 0 : i32
    %c0_i32_0 = arith.constant 0 : i32
    return %arg0, %c0_i32 : i32, i32
  }
}

module attributes {stable_mosaic.version = 11 : i64} {
  func.func @_mm_kernel(%arg0: i32, %arg1: memref<8x1152xbf16, #tpu.memory_space<vmem>>, %arg2: memref<1152x512xbf16, #tpu.memory_space<vmem>>, %arg3: memref<1x512xf32, #tpu.memory_space<vmem>>, %arg4: memref<8x512xbf16, #tpu.memory_space<vmem>>) attributes {dimension_semantics = [#tpu.dimension_semantics<parallel>], iteration_bounds = array<i64: 1>, scalar_prefetch = 0 : i64, scratch_operands = 0 : i64, tpu.core_type = #tpu.core_type<tc>, window_params = [{transform_indices = @transform_0, window_bounds = array<i64: 8, 1152>}, {pipeline_mode = #tpu.pipeline_mode<synchronous>, transform_indices = @transform_1, window_bounds = array<i64: 1152, 512>}, {pipeline_mode = #tpu.pipeline_mode<synchronous>, transform_indices = @transform_2, window_bounds = array<i64: 1, 512>}, {transform_indices = @transform_3, window_bounds = array<i64: 8, 512>}]} {
    %c0 = arith.constant 0 : index
    %c0_0 = arith.constant 0 : index
    %0 = vector.load %arg1[%c0, %c0_0] : memref<8x1152xbf16, #tpu.memory_space<vmem>>, vector<8x1152xbf16>
    %c0_1 = arith.constant 0 : index
    %c0_2 = arith.constant 0 : index
    %1 = vector.load %arg2[%c0_1, %c0_2] : memref<1152x512xbf16, #tpu.memory_space<vmem>>, vector<1152x512xbf16>
    %cst = arith.constant dense<0.000000e+00> : vector<8x512xf32>
    %2 = tpu.matmul %0, %1, %cst {dimension_numbers = #tpu.dot_dimension_numbers<[1], [0], [0], [1], [0, 0, 1, 1], [], []>} : vector<8x1152xbf16>, vector<1152x512xbf16>, vector<8x512xf32> -> vector<8x512xf32>
    %c0_3 = arith.constant 0 : index
    %c0_4 = arith.constant 0 : index
    %3 = vector.load %arg3[%c0_3, %c0_4] : memref<1x512xf32, #tpu.memory_space<vmem>>, vector<1x512xf32>
    %4 = vector.broadcast %3 : vector<1x512xf32> to vector<8x512xf32>
    %5 = arith.addf %2, %4 : vector<8x512xf32>
    %cst_5 = arith.constant 0.000000e+00 : f32
    %6 = vector.broadcast %cst_5 : f32 to vector<8x512xf32>
    %7 = arith.maximumf %5, %6 : vector<8x512xf32>
    %8 = arith.truncf %7 : vector<8x512xf32> to vector<8x512xbf16>
    %c0_6 = arith.constant 0 : index
    %c0_7 = arith.constant 0 : index
    %9 = vector.load %arg4[%c0_6, %c0_7] : memref<8x512xbf16, #tpu.memory_space<vmem>>, vector<8x512xbf16>
    tpu.vector_store %arg4[%c0_6, %c0_7], %8 {strides = array<i32>} : memref<8x512xbf16, #tpu.memory_space<vmem>>, vector<8x512xbf16>,
    return
  }
  func.func @transform_0(%arg0: i32) -> (i32, i32) {
    %c0_i32 = arith.constant 0 : i32
    %c0_i32_0 = arith.constant 0 : i32
    return %arg0, %c0_i32 : i32, i32
  }
  func.func @transform_1(%arg0: i32) -> (i32, i32) {
    %c0_i32 = arith.constant 0 : i32
    %c0_i32_0 = arith.constant 0 : i32
    %c0_i32_1 = arith.constant 0 : i32
    return %c0_i32, %c0_i32_0 : i32, i32
  }
  func.func @transform_2(%arg0: i32) -> (i32, i32) {
    %c0_i32 = arith.constant 0 : i32
    %c0_i32_0 = arith.constant 0 : i32
    %c0_i32_1 = arith.constant 0 : i32
    return %c0_i32, %c0_i32_0 : i32, i32
  }
  func.func @transform_3(%arg0: i32) -> (i32, i32) {
    %c0_i32 = arith.constant 0 : i32
    %c0_i32_0 = arith.constant 0 : i32
    return %arg0, %c0_i32 : i32, i32
  }
}

module attributes {stable_mosaic.version = 11 : i64} {
  func.func @_mm_kernel(%arg0: i32, %arg1: memref<8x64xbf16, #tpu.memory_space<vmem>>, %arg2: memref<64x128xbf16, #tpu.memory_space<vmem>>, %arg3: memref<1x128xf32, #tpu.memory_space<vmem>>, %arg4: memref<8x128xbf16, #tpu.memory_space<vmem>>) attributes {dimension_semantics = [#tpu.dimension_semantics<parallel>], iteration_bounds = array<i64: 1>, scalar_prefetch = 0 : i64, scratch_operands = 0 : i64, tpu.core_type = #tpu.core_type<tc>, window_params = [{transform_indices = @transform_0, window_bounds = array<i64: 8, 64>}, {pipeline_mode = #tpu.pipeline_mode<synchronous>, transform_indices = @transform_1, window_bounds = array<i64: 64, 128>}, {pipeline_mode = #tpu.pipeline_mode<synchronous>, transform_indices = @transform_2, window_bounds = array<i64: 1, 128>}, {transform_indices = @transform_3, window_bounds = array<i64: 8, 128>}]} {
    %c0 = arith.constant 0 : index
    %c0_0 = arith.constant 0 : index
    %0 = vector.load %arg1[%c0, %c0_0] : memref<8x64xbf16, #tpu.memory_space<vmem>>, vector<8x64xbf16>
    %c0_1 = arith.constant 0 : index
    %c0_2 = arith.constant 0 : index
    %1 = vector.load %arg2[%c0_1, %c0_2] : memref<64x128xbf16, #tpu.memory_space<vmem>>, vector<64x128xbf16>
    %cst = arith.constant dense<0.000000e+00> : vector<8x128xf32>
    %2 = tpu.matmul %0, %1, %cst {dimension_numbers = #tpu.dot_dimension_numbers<[1], [0], [0], [1], [0, 0, 1, 1], [], []>} : vector<8x64xbf16>, vector<64x128xbf16>, vector<8x128xf32> -> vector<8x128xf32>
    %c0_3 = arith.constant 0 : index
    %c0_4 = arith.constant 0 : index
    %3 = vector.load %arg3[%c0_3, %c0_4] : memref<1x128xf32, #tpu.memory_space<vmem>>, vector<1x128xf32>
    %4 = vector.broadcast %3 : vector<1x128xf32> to vector<8x128xf32>
    %5 = arith.addf %2, %4 : vector<8x128xf32>
    %6 = arith.truncf %5 : vector<8x128xf32> to vector<8x128xbf16>
    %c0_5 = arith.constant 0 : index
    %c0_6 = arith.constant 0 : index
    %7 = vector.load %arg4[%c0_5, %c0_6] : memref<8x128xbf16, #tpu.memory_space<vmem>>, vector<8x128xbf16>
    tpu.vector_store %arg4[%c0_5, %c0_6], %6 {strides = array<i32>} : memref<8x128xbf16, #tpu.memory_space<vmem>>, vector<8x128xbf16>,
    return
  }
  func.func @transform_0(%arg0: i32) -> (i32, i32) {
    %c0_i32 = arith.constant 0 : i32
    %c0_i32_0 = arith.constant 0 : i32
    return %arg0, %c0_i32 : i32, i32
  }
  func.func @transform_1(%arg0: i32) -> (i32, i32) {
    %c0_i32 = arith.constant 0 : i32
    %c0_i32_0 = arith.constant 0 : i32
    %c0_i32_1 = arith.constant 0 : i32
    return %c0_i32, %c0_i32_0 : i32, i32
  }
  func.func @transform_2(%arg0: i32) -> (i32, i32) {
    %c0_i32 = arith.constant 0 : i32
    %c0_i32_0 = arith.constant 0 : i32
    %c0_i32_1 = arith.constant 0 : i32
    return %c0_i32, %c0_i32_0 : i32, i32
  }
  func.func @transform_3(%arg0: i32) -> (i32, i32) {
    %c0_i32 = arith.constant 0 : i32
    %c0_i32_0 = arith.constant 0 : i32
    return %arg0, %c0_i32 : i32, i32
  }
}

module attributes {stable_mosaic.version = 11 : i64} {
  func.func @_mm_kernel(%arg0: i32, %arg1: memref<32x1152xbf16, #tpu.memory_space<vmem>>, %arg2: memref<1152x512xbf16, #tpu.memory_space<vmem>>, %arg3: memref<1x512xf32, #tpu.memory_space<vmem>>, %arg4: memref<32x512xbf16, #tpu.memory_space<vmem>>) attributes {dimension_semantics = [#tpu.dimension_semantics<parallel>], iteration_bounds = array<i64: 1>, scalar_prefetch = 0 : i64, scratch_operands = 0 : i64, tpu.core_type = #tpu.core_type<tc>, window_params = [{transform_indices = @transform_0, window_bounds = array<i64: 32, 1152>}, {pipeline_mode = #tpu.pipeline_mode<synchronous>, transform_indices = @transform_1, window_bounds = array<i64: 1152, 512>}, {pipeline_mode = #tpu.pipeline_mode<synchronous>, transform_indices = @transform_2, window_bounds = array<i64: 1, 512>}, {transform_indices = @transform_3, window_bounds = array<i64: 32, 512>}]} {
    %c0 = arith.constant 0 : index
    %c0_0 = arith.constant 0 : index
    %0 = vector.load %arg1[%c0, %c0_0] : memref<32x1152xbf16, #tpu.memory_space<vmem>>, vector<32x1152xbf16>
    %c0_1 = arith.constant 0 : index
    %c0_2 = arith.constant 0 : index
    %1 = vector.load %arg2[%c0_1, %c0_2] : memref<1152x512xbf16, #tpu.memory_space<vmem>>, vector<1152x512xbf16>
    %cst = arith.constant dense<0.000000e+00> : vector<32x512xf32>
    %2 = tpu.matmul %0, %1, %cst {dimension_numbers = #tpu.dot_dimension_numbers<[1], [0], [0], [1], [0, 0, 1, 1], [], []>} : vector<32x1152xbf16>, vector<1152x512xbf16>, vector<32x512xf32> -> vector<32x512xf32>
    %c0_3 = arith.constant 0 : index
    %c0_4 = arith.constant 0 : index
    %3 = vector.load %arg3[%c0_3, %c0_4] : memref<1x512xf32, #tpu.memory_space<vmem>>, vector<1x512xf32>
    %4 = vector.broadcast %3 : vector<1x512xf32> to vector<32x512xf32>
    %5 = arith.addf %2, %4 : vector<32x512xf32>
    %cst_5 = arith.constant 0.000000e+00 : f32
    %6 = vector.broadcast %cst_5 : f32 to vector<32x512xf32>
    %7 = arith.maximumf %5, %6 : vector<32x512xf32>
    %8 = arith.truncf %7 : vector<32x512xf32> to vector<32x512xbf16>
    %c0_6 = arith.constant 0 : index
    %c0_7 = arith.constant 0 : index
    %9 = vector.load %arg4[%c0_6, %c0_7] : memref<32x512xbf16, #tpu.memory_space<vmem>>, vector<32x512xbf16>
    tpu.vector_store %arg4[%c0_6, %c0_7], %8 {strides = array<i32>} : memref<32x512xbf16, #tpu.memory_space<vmem>>, vector<32x512xbf16>,
    return
  }
  func.func @transform_0(%arg0: i32) -> (i32, i32) {
    %c0_i32 = arith.constant 0 : i32
    %c0_i32_0 = arith.constant 0 : i32
    return %arg0, %c0_i32 : i32, i32
  }
  func.func @transform_1(%arg0: i32) -> (i32, i32) {
    %c0_i32 = arith.constant 0 : i32
    %c0_i32_0 = arith.constant 0 : i32
    %c0_i32_1 = arith.constant 0 : i32
    return %c0_i32, %c0_i32_0 : i32, i32
  }
  func.func @transform_2(%arg0: i32) -> (i32, i32) {
    %c0_i32 = arith.constant 0 : i32
    %c0_i32_0 = arith.constant 0 : i32
    %c0_i32_1 = arith.constant 0 : i32
    return %c0_i32, %c0_i32_0 : i32, i32
  }
  func.func @transform_3(%arg0: i32) -> (i32, i32) {
    %c0_i32 = arith.constant 0 : i32
    %c0_i32_0 = arith.constant 0 : i32
    return %arg0, %c0_i32 : i32, i32
  }
}

module attributes {stable_mosaic.version = 11 : i64} {
  func.func @_mm_kernel(%arg0: i32, %arg1: memref<128x1152xbf16, #tpu.memory_space<vmem>>, %arg2: memref<1152x512xbf16, #tpu.memory_space<vmem>>, %arg3: memref<1x512xf32, #tpu.memory_space<vmem>>, %arg4: memref<128x512xbf16, #tpu.memory_space<vmem>>) attributes {dimension_semantics = [#tpu.dimension_semantics<parallel>], iteration_bounds = array<i64: 1>, scalar_prefetch = 0 : i64, scratch_operands = 0 : i64, tpu.core_type = #tpu.core_type<tc>, window_params = [{transform_indices = @transform_0, window_bounds = array<i64: 128, 1152>}, {pipeline_mode = #tpu.pipeline_mode<synchronous>, transform_indices = @transform_1, window_bounds = array<i64: 1152, 512>}, {pipeline_mode = #tpu.pipeline_mode<synchronous>, transform_indices = @transform_2, window_bounds = array<i64: 1, 512>}, {transform_indices = @transform_3, window_bounds = array<i64: 128, 512>}]} {
    %c0 = arith.constant 0 : index
    %c0_0 = arith.constant 0 : index
    %0 = vector.load %arg1[%c0, %c0_0] : memref<128x1152xbf16, #tpu.memory_space<vmem>>, vector<128x1152xbf16>
    %c0_1 = arith.constant 0 : index
    %c0_2 = arith.constant 0 : index
    %1 = vector.load %arg2[%c0_1, %c0_2] : memref<1152x512xbf16, #tpu.memory_space<vmem>>, vector<1152x512xbf16>
    %cst = arith.constant dense<0.000000e+00> : vector<128x512xf32>
    %2 = tpu.matmul %0, %1, %cst {dimension_numbers = #tpu.dot_dimension_numbers<[1], [0], [0], [1], [0, 0, 1, 1], [], []>} : vector<128x1152xbf16>, vector<1152x512xbf16>, vector<128x512xf32> -> vector<128x512xf32>
    %c0_3 = arith.constant 0 : index
    %c0_4 = arith.constant 0 : index
    %3 = vector.load %arg3[%c0_3, %c0_4] : memref<1x512xf32, #tpu.memory_space<vmem>>, vector<1x512xf32>
    %4 = vector.broadcast %3 : vector<1x512xf32> to vector<128x512xf32>
    %5 = arith.addf %2, %4 : vector<128x512xf32>
    %6 = math.tanh %5 : vector<128x512xf32>
    %7 = arith.truncf %6 : vector<128x512xf32> to vector<128x512xbf16>
    %c0_5 = arith.constant 0 : index
    %c0_6 = arith.constant 0 : index
    %8 = vector.load %arg4[%c0_5, %c0_6] : memref<128x512xbf16, #tpu.memory_space<vmem>>, vector<128x512xbf16>
    tpu.vector_store %arg4[%c0_5, %c0_6], %7 {strides = array<i32>} : memref<128x512xbf16, #tpu.memory_space<vmem>>, vector<128x512xbf16>,
    return
  }
  func.func @transform_0(%arg0: i32) -> (i32, i32) {
    %c0_i32 = arith.constant 0 : i32
    %c0_i32_0 = arith.constant 0 : i32
    return %arg0, %c0_i32 : i32, i32
  }
  func.func @transform_1(%arg0: i32) -> (i32, i32) {
    %c0_i32 = arith.constant 0 : i32
    %c0_i32_0 = arith.constant 0 : i32
    %c0_i32_1 = arith.constant 0 : i32
    return %c0_i32, %c0_i32_0 : i32, i32
  }
  func.func @transform_2(%arg0: i32) -> (i32, i32) {
    %c0_i32 = arith.constant 0 : i32
    %c0_i32_0 = arith.constant 0 : i32
    %c0_i32_1 = arith.constant 0 : i32
    return %c0_i32, %c0_i32_0 : i32, i32
  }
  func.func @transform_3(%arg0: i32) -> (i32, i32) {
    %c0_i32 = arith.constant 0 : i32
    %c0_i32_0 = arith.constant 0 : i32
    return %arg0, %c0_i32 : i32, i32
  }
}

</mosaic_0001>

<bundles_post_ra>
// kernel: vqvae_forward.14
= control target key start
LH: loop header
LB: loop body
LE: loop exit
PB: predicated region body
PF: predicated region fallthrough
CT: control target
= control target key end

     0   :  { %s4643_s1 = inlined_call_operand.vmem [shape: bf16[2048,128], index: 1, kind: input, shape index: {}]   ;;  %s4644_s0 = inlined_call_operand.vmem [shape: bf16[128,2048], index: 0, kind: input, shape index: {}]   ;;  %s4645_s2 = inlined_call_operand.vmem [shape: f32[1,128], index: 2, kind: input, shape index: {}]   ;;  %s4646_s3 = inlined_call_operand.vmem [shape: bf16[128,128], index: 3, kind: output, shape index: {}]  }
   0x1   :  { %v3538_v0 = vld [vmem:[%s4643_s1 + $0x40] sm:$0xff]   ;;  %v3542_v4 = vld [vmem:[%s4643_s1 + $0x48] sm:$0xff]   ;;  %v3546_v8 = vld [vmem:[%s4643_s1 + $0x50] sm:$0xff]  }
   0x2   :  { %v3539_v1 = vld [vmem:[%s4643_s1 + $0xc0] sm:$0xff]   ;;  %3026 = vmatprep.subr.bf16.mxu0 %v3538_v0  ;;  %v3543_v5 = vld [vmem:[%s4643_s1 + $0xc8] sm:$0xff]   ;;  %v3547_v9 = vld [vmem:[%s4643_s1 + $0xd0] sm:$0xff]  }
   0x3   :  { %v3540_v2 = vld [vmem:[%s4643_s1] sm:$0xff]   ;;  %3090 = vmatprep.subr.bf16.mxu1 %v3539_v1  ;;  %v3544_v6 = vld [vmem:[%s4643_s1 + $0x8] sm:$0xff]   ;;  %v3548_v10 = vld [vmem:[%s4643_s1 + $0x10] sm:$0xff]  }
   0x4   :  { %v3541_v3 = vld [vmem:[%s4643_s1 + $0x80] sm:$0xff]   ;;  %3027 = vmatpush3.bf16.msra.mxu0 %v3540_v2  ;;  %v3545_v7 = vld [vmem:[%s4643_s1 + $0x88] sm:$0xff]   ;;  %v3549_v11 = vld [vmem:[%s4643_s1 + $0x90] sm:$0xff]  }
   0x5   :  { %3091 = vmatpush3.bf16.msra.mxu1 %v3541_v3  ;;  %3028 = vmatprep.subr.bf16.mxu0 %v3542_v4  ;;  %v3550_v12 = vld [vmem:[%s4643_s1 + $0x58] sm:$0xff]   ;;  %v3554_v16 = vld [vmem:[%s4643_s1 + $0x60] sm:$0xff]   ;;  %v3558_v20 = vld [vmem:[%s4643_s1 + $0x68] sm:$0xff]  }
   0x6   :  { %3092 = vmatprep.subr.bf16.mxu1 %v3543_v5  ;;  %v3551_v13 = vld [vmem:[%s4643_s1 + $0xd8] sm:$0xff]   ;;  %v3555_v17 = vld [vmem:[%s4643_s1 + $0xe0] sm:$0xff]   ;;  %v3559_v21 = vld [vmem:[%s4643_s1 + $0xe8] sm:$0xff]  }
   0x7   :  { %v3552_v14 = vld [vmem:[%s4643_s1 + $0x18] sm:$0xff]   ;;  %v3556_v18 = vld [vmem:[%s4643_s1 + $0x20] sm:$0xff]   ;;  %v3560_v22 = vld [vmem:[%s4643_s1 + $0x28] sm:$0xff]  }
   0x8   :  { %3029 = vmatpush3.bf16.msra.mxu0 %v3544_v6  ;;  %v3553_v15 = vld [vmem:[%s4643_s1 + $0x98] sm:$0xff]   ;;  %v3557_v19 = vld [vmem:[%s4643_s1 + $0xa0] sm:$0xff]   ;;  %v3561_v23 = vld [vmem:[%s4643_s1 + $0xa8] sm:$0xff]  }
   0x9   :  { %3093 = vmatpush3.bf16.msra.mxu1 %v3545_v7  ;;  %3030 = vmatprep.subr.bf16.mxu0 %v3546_v8  ;;  %v3562_v24 = vld [vmem:[%s4643_s1 + $0x70] sm:$0xff]   ;;  %v3566_v28 = vld [vmem:[%s4643_s1 + $0x78] sm:$0xff]   ;;  %v15_v32 = vld [vmem:[%s4644_s0] sm:$0xff] }
   0xa   :  { %3094 = vmatprep.subr.bf16.mxu1 %v3547_v9  ;;  %v3563_v25 = vld [vmem:[%s4643_s1 + $0xf0] sm:$0xff]   ;;  %v3567_v29 = vld [vmem:[%s4643_s1 + $0xf8] sm:$0xff]   ;;  %v23_v33 = vld [vmem:[%s4644_s0 + $0x40] sm:$0xff] }
   0xb   :  { %v3564_v26 = vld [vmem:[%s4643_s1 + $0x30] sm:$0xff]   ;;  %v3568_v30 = vld [vmem:[%s4643_s1 + $0x38] sm:$0xff]   ;;  %v16_v34 = vld [vmem:[%s4644_s0 + $0x8] sm:$0xff]  ;;  %v2691_v35 = vcombine.low %v15_v32, %v23_v33  ;;  %v2692_v36 = vcombine.high %v15_v32, %v23_v33 }
   0xc   :  { %3031 = vmatpush3.bf16.msra.mxu0 %v3548_v10  ;;  %v3565_v27 = vld [vmem:[%s4643_s1 + $0xb0] sm:$0xff]   ;;  %v3569_v31 = vld [vmem:[%s4643_s1 + $0xb8] sm:$0xff]   ;;  %v24_v37 = vld [vmem:[%s4644_s0 + $0x48] sm:$0xff] }
   0xd   :  { %3095 = vmatpush3.bf16.msra.mxu1 %v3549_v11  ;;  %3032 = vmatprep.subr.bf16.mxu0 %v3550_v12  ;;  %v2693_v38 = vcombine.low %v16_v34, %v24_v37  ;;  %v2694_v39 = vcombine.high %v16_v34, %v24_v37  ;;  %v3570_v40 = vld [vmem:[%s4643_s1 + $0x140] sm:$0xff]   ;;  %v32_v47 = vld [vmem:[%s4644_s0 + $0x88] sm:$0xff]  ;;  %v3578_v62 = vld [vmem:[%s4643_s1 + $0x150] sm:$0xff]  }
   0xe   :  { %3096 = vmatprep.subr.bf16.mxu1 %v3551_v13  ;;  %1846 = vmatprep.mubr.bf16.mxu0 %v2692_v36  ;;  %v3571_v41 = vld [vmem:[%s4643_s1 + $0x100] sm:$0xff]   ;;  %v40_v48 = vld [vmem:[%s4644_s0 + $0xc8] sm:$0xff]  ;;  %v3579_v63 = vld [vmem:[%s4643_s1 + $0x110] sm:$0xff]  }
   0xf   :  { %1943 = vmatprep.mubr.bf16.mxu1 %v2694_v39  ;;  %v3572_v42 = vld [vmem:[%s4643_s1 + $0x1c0] sm:$0xff]   ;;  %v2710_v49 = vcombine.high %v32_v47, %v40_v48  ;;  %v3574_v50 = vld [vmem:[%s4643_s1 + $0x148] sm:$0xff]   ;;  %v2709_v53 = vcombine.low %v32_v47, %v40_v48  ;;  %v3580_v0 = vld [vmem:[%s4643_s1 + $0x1d0] sm:$0xff]  }
  0x10   :  { %3033 = vmatpush3.bf16.msra.mxu0 %v3552_v14  ;;  %v3573_v43 = vld [vmem:[%s4643_s1 + $0x180] sm:$0xff]   ;;  %v3575_v52 = vld [vmem:[%s4643_s1 + $0x108] sm:$0xff]   ;;  %v3581_v1 = vld [vmem:[%s4643_s1 + $0x190] sm:$0xff]  }
  0x11   :  { %3097 = vmatpush3.bf16.msra.mxu1 %v3553_v15  ;;  %3034 = vmatprep.subr.bf16.mxu0 %v3554_v16  ;;  %v31_v44 = vld [vmem:[%s4644_s0 + $0x80] sm:$0xff]  ;;  %v3576_v54 = vld [vmem:[%s4643_s1 + $0x1c8] sm:$0xff]   ;;  %v3582_v10 = vld [vmem:[%s4643_s1 + $0x158] sm:$0xff]  }
  0x12   :  { %3098 = vmatprep.subr.bf16.mxu1 %v3555_v17  ;;  %v39_v45 = vld [vmem:[%s4644_s0 + $0xc0] sm:$0xff]  ;;  %v3577_v55 = vld [vmem:[%s4643_s1 + $0x188] sm:$0xff]   ;;  %v3583_v11 = vld [vmem:[%s4643_s1 + $0x118] sm:$0xff]  }
  0x13   :  { %v2708_v46 = vcombine.high %v31_v44, %v39_v45  ;;  %v2707_v51 = vcombine.low %v31_v44, %v39_v45  ;;  %v47_v56 = vld [vmem:[%s4644_s0 + $0x100] sm:$0xff]  ;;  %v48_v58 = vld [vmem:[%s4644_s0 + $0x108] sm:$0xff]  ;;  %v3584_v12 = vld [vmem:[%s4643_s1 + $0x1d8] sm:$0xff]  }
  0x14   :  { %3035 = vmatpush3.bf16.msra.mxu0 %v3556_v18  ;;  %v55_v57 = vld [vmem:[%s4644_s0 + $0x140] sm:$0xff]  ;;  %v56_v59 = vld [vmem:[%s4644_s0 + $0x148] sm:$0xff]  ;;  %v3585_v13 = vld [vmem:[%s4643_s1 + $0x198] sm:$0xff]  }
  0x15   :  { %3099 = vmatpush3.bf16.msra.mxu1 %v3557_v19  ;;  %3036 = vmatprep.subr.bf16.mxu0 %v3558_v20  ;;  %v2724_v60 = vcombine.high %v47_v56, %v55_v57  ;;  %v2726_v61 = vcombine.high %v48_v58, %v56_v59  ;;  %v2723_v2 = vcombine.low %v47_v56, %v55_v57  ;;  %v63_v3 = vld [vmem:[%s4644_s0 + $0x180] sm:$0xff]  ;;  %v64_v5 = vld [vmem:[%s4644_s0 + $0x188] sm:$0xff]  ;;  %v3595_v39 = vld [vmem:[%s4643_s1 + $0x130] sm:$0xff]  }
  0x16   :  { %3100 = vmatprep.subr.bf16.mxu1 %v3559_v21  ;;  %v71_v4 = vld [vmem:[%s4644_s0 + $0x1c0] sm:$0xff]  ;;  %v2725_v6 = vcombine.low %v48_v58, %v56_v59  ;;  %v72_v8 = vld [vmem:[%s4644_s0 + $0x1c8] sm:$0xff]  ;;  %v3599_v48 = vld [vmem:[%s4643_s1 + $0x138] sm:$0xff]  }
  0x17   :  { %v2740_v7 = vcombine.high %v63_v3, %v71_v4  ;;  %v2742_v9 = vcombine.high %v64_v5, %v72_v8  ;;  %v79_v14 = vld [vmem:[%s4644_s0 + $0x200] sm:$0xff]  ;;  %v80_v16 = vld [vmem:[%s4644_s0 + $0x208] sm:$0xff]  ;;  %v2739_v19 = vcombine.low %v63_v3, %v71_v4  ;;  %v2741_v21 = vcombine.low %v64_v5, %v72_v8  ;;  %v26_v3 = vld [vmem:[%s4644_s0 + $0x58] sm:$0xff] }
  0x18   :  { %3037 = vmatpush3.bf16.msra.mxu0 %v3560_v22  ;;  %v87_v15 = vld [vmem:[%s4644_s0 + $0x240] sm:$0xff]  ;;  %v88_v17 = vld [vmem:[%s4644_s0 + $0x248] sm:$0xff]  ;;  %v33_v8 = vld [vmem:[%s4644_s0 + $0x90] sm:$0xff] }
  0x19   :  { %3101 = vmatpush3.bf16.msra.mxu1 %v3561_v23  ;;  %3038 = vmatprep.subr.bf16.mxu0 %v3562_v24  ;;  %v3586_v18 = vld [vmem:[%s4643_s1 + $0x160] sm:$0xff]   ;;  %v2756_v22 = vcombine.high %v79_v14, %v87_v15  ;;  %v2758_v24 = vcombine.high %v80_v16, %v88_v17  ;;  %v3592_v32 = vld [vmem:[%s4643_s1 + $0x1e8] sm:$0xff]   ;;  %v2755_v34 = vcombine.low %v79_v14, %v87_v15 }
  0x1a   :  { %3102 = vmatprep.subr.bf16.mxu1 %v3563_v25  ;;  %v3587_v20 = vld [vmem:[%s4643_s1 + $0x120] sm:$0xff]   ;;  %v3593_v33 = vld [vmem:[%s4643_s1 + $0x1a8] sm:$0xff]  }
  0x1b   :  { %v3588_v23 = vld [vmem:[%s4643_s1 + $0x1e0] sm:$0xff]   ;;  %v112_v44 = vld [vmem:[%s4644_s0 + $0x308] sm:$0xff] }
  0x1c   :  { %3039 = vmatpush3.bf16.msra.mxu0 %v3564_v26  ;;  %v3589_v25 = vld [vmem:[%s4643_s1 + $0x1a0] sm:$0xff]   ;;  %v120_v45 = vld [vmem:[%s4644_s0 + $0x348] sm:$0xff] }
  0x1d   :  { %3103 = vmatpush3.bf16.msra.mxu1 %v3565_v27  ;;  %3040 = vmatprep.subr.bf16.mxu0 %v3566_v28  ;;  %v95_v26 = vld [vmem:[%s4644_s0 + $0x280] sm:$0xff]  ;;  %v3590_v28 = vld [vmem:[%s4643_s1 + $0x168] sm:$0xff]  }
  0x1e   :  { %3104 = vmatprep.subr.bf16.mxu1 %v3567_v29  ;;  %v103_v27 = vld [vmem:[%s4644_s0 + $0x2c0] sm:$0xff]  ;;  %v96_v29 = vld [vmem:[%s4644_s0 + $0x288] sm:$0xff] }
  0x1f   :  { %v2772_v36 = vcombine.high %v95_v26, %v103_v27  ;;  %v2771_v47 = vcombine.low %v95_v26, %v103_v27  ;;  %v3602_v56 = vld [vmem:[%s4643_s1 + $0x240] sm:$0xff]   ;;  %v128_v57 = vld [vmem:[%s4644_s0 + $0x388] sm:$0xff]  ;;  %v3610_v26 = vld [vmem:[%s4643_s1 + $0x250] sm:$0xff]  }
  0x20   :  { %3041 = vmatpush3.bf16.msra.mxu0 %v3568_v30  ;;  %v104_v30 = vld [vmem:[%s4644_s0 + $0x2c8] sm:$0xff]  ;;  %v3604_v58 = vld [vmem:[%s4643_s1 + $0x2c0] sm:$0xff]   ;;  %v3612_v27 = vld [vmem:[%s4643_s1 + $0x2d0] sm:$0xff]  }
  0x21   :  { %3105 = vmatpush3.bf16.msra.mxu1 %v3569_v31  ;;  %3154 = vmatprep.subr.bf16.mxu0 %v3570_v40  ;;  %v3591_v31 = vld [vmem:[%s4643_s1 + $0x128] sm:$0xff]   ;;  %v2774_v37 = vcombine.high %v96_v29, %v104_v30  ;;  %v3596_v40 = vld [vmem:[%s4643_s1 + $0x1f0] sm:$0xff]   ;;  %v3605_v15 = vld [vmem:[%s4643_s1 + $0x280] sm:$0xff]  }
  0x22   :  { %3218 = vmatprep.subr.bf16.mxu1 %v3572_v42  ;;  %v119_v42 = vld [vmem:[%s4644_s0 + $0x340] sm:$0xff]  ;;  %v136_v59 = vld [vmem:[%s4644_s0 + $0x3c8] sm:$0xff] }
  0x23   :  { %1847 = vmatmul.mubr.bf16.vlgmr.msra.gmra.mrb[0].mxu0 %v2691_v35  ;;  %v2757_v35 = vcombine.low %v80_v16, %v88_v17  ;;  %v2805_v5 = vcombine.low %v128_v57, %v136_v59  ;;  %v3606_v17 = vld [vmem:[%s4643_s1 + $0x248] sm:$0xff]  }
  0x24   :  { %1944 = vmatmul.mubr.bf16.vlgmr.msra.gmra.mrb[0].mxu1 %v2693_v38  ;;  %3155 = vmatpush3.bf16.msra.mxu0 %v3571_v41  ;;  %v3594_v38 = vld [vmem:[%s4643_s1 + $0x170] sm:$0xff]   ;;  %v111_v41 = vld [vmem:[%s4644_s0 + $0x300] sm:$0xff] }
  0x25   :  { %3219 = vmatpush3.bf16.msra.mxu1 %v3573_v43  ;;  %1854 = vmatprep.mubr.bf16.mxu0 %v2708_v46  ;;  %v3597_v43 = vld [vmem:[%s4643_s1 + $0x1b0] sm:$0xff]   ;;  %v3598_v46 = vld [vmem:[%s4643_s1 + $0x178] sm:$0xff]  }
  0x26   :  { %1951 = vmatprep.mubr.bf16.mxu1 %v2710_v49  ;;  %3156 = vmatprep.subr.bf16.mxu0 %v3574_v50  ;;  %v2773_v49 = vcombine.low %v96_v29, %v104_v30  ;;  %v2788_v50 = vcombine.high %v111_v41, %v119_v42 }
  0x27   :  { %3220 = vmatprep.subr.bf16.mxu1 %v3576_v54  ;;  %v127_v54 = vld [vmem:[%s4644_s0 + $0x380] sm:$0xff] }
  0x28   :  { %3157 = vmatpush3.bf16.msra.mxu0 %v3575_v52  ;;  %v2790_v52 = vcombine.high %v112_v44, %v120_v45 }
  0x29   :  { %3221 = vmatpush3.bf16.msra.mxu1 %v3577_v55  ;;  %3158 = vmatprep.subr.bf16.mxu0 %v3578_v62  ;;  %v135_v55 = vld [vmem:[%s4644_s0 + $0x3c0] sm:$0xff] }
  0x2a   :  { %3222 = vmatprep.subr.bf16.mxu1 %v3580_v0  ;;  %v2804_v62 = vcombine.high %v127_v54, %v135_v55  ;;  %v17_v0 = vld [vmem:[%s4644_s0 + $0x10] sm:$0xff]  ;;  %v2803_v4 = vcombine.low %v127_v54, %v135_v55  ;;  %v82_v54 = vld [vmem:[%s4644_s0 + $0x218] sm:$0xff] }
  0x2b   :  { %1855 = vmatmul.mubr.bf16.gmra.mrb[4].mxu0 %v2707_v51  ;;  %v3600_v51 = vld [vmem:[%s4643_s1 + $0x1f8] sm:$0xff]  }
  0x2c   :  { %1952 = vmatmul.mubr.bf16.gmra.mrb[4].mxu1 %v2709_v53  ;;  %1862 = vmatprep.mubr.bf16.mxu0 %v2724_v60  ;;  %v3601_v53 = vld [vmem:[%s4643_s1 + $0x1b8] sm:$0xff]   ;;  %v2787_v60 = vcombine.low %v111_v41, %v119_v42  ;;  %v3618_v42 = vld [vmem:[%s4643_s1 + $0x260] sm:$0xff]  }
  0x2d   :  { %1959 = vmatprep.mubr.bf16.mxu1 %v2726_v61  ;;  %3159 = vmatpush3.bf16.msra.mxu0 %v3579_v63  ;;  %v2789_v61 = vcombine.low %v112_v44, %v120_v45  ;;  %v2806_v63 = vcombine.high %v128_v57, %v136_v59  ;;  %v3617_v41 = vld [vmem:[%s4643_s1 + $0x298] sm:$0xff]   ;;  %v3620_v44 = vld [vmem:[%s4643_s1 + $0x2e0] sm:$0xff]   ;;  %v3625_v57 = vld [vmem:[%s4643_s1 + $0x2a8] sm:$0xff]  }
  0x2e   :  { %3223 = vmatpush3.bf16.msra.mxu1 %v3581_v1  ;;  %3160 = vmatprep.subr.bf16.mxu0 %v3582_v10  ;;  %v25_v1 = vld [vmem:[%s4644_s0 + $0x50] sm:$0xff]  ;;  %v90_v55 = vld [vmem:[%s4644_s0 + $0x258] sm:$0xff] }
  0x2f   :  { %3224 = vmatprep.subr.bf16.mxu1 %v3584_v12  ;;  %v2695_v10 = vcombine.low %v17_v0, %v25_v1  ;;  %v34_v12 = vld [vmem:[%s4644_s0 + $0x98] sm:$0xff] }
  0x31   :  { %3161 = vmatpush3.bf16.msra.mxu0 %v3583_v11  ;;  %v3603_v11 = vld [vmem:[%s4643_s1 + $0x200] sm:$0xff]  }
  0x32   :  { %3225 = vmatpush3.bf16.msra.mxu1 %v3585_v13  ;;  %3162 = vmatprep.subr.bf16.mxu0 %v3586_v18  ;;  %v42_v13 = vld [vmem:[%s4644_s0 + $0xd8] sm:$0xff] }
  0x33   :  { %1863 = vmatmul.mubr.bf16.gmra.mrb[8].mxu0 %v2723_v2  ;;  %3226 = vmatprep.subr.bf16.mxu1 %v3588_v23  ;;  %v18_v2 = vld [vmem:[%s4644_s0 + $0x18] sm:$0xff]  ;;  %v2714_v18 = vcombine.high %v34_v12, %v42_v13  ;;  %v57_v23 = vld [vmem:[%s4644_s0 + $0x150] sm:$0xff]  ;;  %v2713_v29 = vcombine.low %v34_v12, %v42_v13  ;;  %v3636_v12 = vld [vmem:[%s4643_s1 + $0x3c0] sm:$0xff]   ;;  %v2761_v13 = vcombine.low %v82_v54, %v90_v55 }
  0x34   :  { %1960 = vmatmul.mubr.bf16.gmra.mrb[8].mxu1 %v2725_v6  ;;  %1870 = vmatprep.mubr.bf16.mxu0 %v2740_v7  ;;  %v2696_v6 = vcombine.high %v17_v0, %v25_v1  ;;  %v2698_v7 = vcombine.high %v18_v2, %v26_v3  ;;  %v2697_v14 = vcombine.low %v18_v2, %v26_v3  ;;  %v3627_v0 = vld [vmem:[%s4643_s1 + $0x230] sm:$0xff]   ;;  %v3630_v2 = vld [vmem:[%s4643_s1 + $0x278] sm:$0xff]  }
  0x35   :  { %1967 = vmatprep.mubr.bf16.mxu1 %v2742_v9  ;;  %3163 = vmatpush3.bf16.msra.mxu0 %v3587_v20  ;;  %v41_v9 = vld [vmem:[%s4644_s0 + $0xd0] sm:$0xff]  ;;  %v3608_v20 = vld [vmem:[%s4643_s1 + $0x2c8] sm:$0xff]  }
  0x36   :  { %3227 = vmatpush3.bf16.msra.mxu1 %v3589_v25  ;;  %3164 = vmatprep.subr.bf16.mxu0 %v3590_v28  ;;  %v2712_v16 = vcombine.high %v33_v8, %v41_v9  ;;  %v58_v25 = vld [vmem:[%s4644_s0 + $0x158] sm:$0xff]  ;;  %v2711_v28 = vcombine.low %v33_v8, %v41_v9  ;;  %v3629_v1 = vld [vmem:[%s4643_s1 + $0x2b0] sm:$0xff]  }
  0x37   :  { %3228 = vmatprep.subr.bf16.mxu1 %v3592_v32  ;;  %v3611_v32 = vld [vmem:[%s4643_s1 + $0x210] sm:$0xff]   ;;  %v3631_v8 = vld [vmem:[%s4643_s1 + $0x238] sm:$0xff]  }
  0x38   :  { %v97_v3 = vld [vmem:[%s4644_s0 + $0x290] sm:$0xff]  ;;  %v3633_v9 = vld [vmem:[%s4643_s1 + $0x2b8] sm:$0xff]  }
  0x39   :  { %3165 = vmatpush3.bf16.msra.mxu0 %v3591_v31 }
  0x3a   :  { %3229 = vmatpush3.bf16.msra.mxu1 %v3593_v33  ;;  %3166 = vmatprep.subr.bf16.mxu0 %v3594_v38  ;;  %v3613_v33 = vld [vmem:[%s4643_s1 + $0x290] sm:$0xff]   ;;  %v66_v38 = vld [vmem:[%s4644_s0 + $0x198] sm:$0xff] }
  0x3b   :  { %1871 = vmatmul.mubr.bf16.gmra.mrb[12].mxu0 %v2739_v19  ;;  %3230 = vmatprep.subr.bf16.mxu1 %v3596_v40  ;;  %v3607_v19 = vld [vmem:[%s4643_s1 + $0x208] sm:$0xff]   ;;  %v3615_v40 = vld [vmem:[%s4643_s1 + $0x218] sm:$0xff]  }
  0x3c   :  { %1968 = vmatmul.mubr.bf16.gmra.mrb[12].mxu1 %v2741_v21  ;;  %1878 = vmatprep.mubr.bf16.mxu0 %v2756_v22  ;;  %v3609_v21 = vld [vmem:[%s4643_s1 + $0x288] sm:$0xff]   ;;  %v49_v22 = vld [vmem:[%s4644_s0 + $0x110] sm:$0xff] }
  0x3d   :  { %1975 = vmatprep.mubr.bf16.mxu1 %v2758_v24  ;;  %3167 = vmatpush3.bf16.msra.mxu0 %v3595_v39  ;;  %v50_v24 = vld [vmem:[%s4644_s0 + $0x118] sm:$0xff]  ;;  %v2728_v30 = vcombine.high %v49_v22, %v57_v23 }
  0x3e   :  { %3231 = vmatpush3.bf16.msra.mxu1 %v3597_v43  ;;  %3168 = vmatprep.subr.bf16.mxu0 %v3598_v46  ;;  %v2730_v31 = vcombine.high %v50_v24, %v58_v25  ;;  %v74_v39 = vld [vmem:[%s4644_s0 + $0x1d8] sm:$0xff]  ;;  %v2727_v43 = vcombine.low %v49_v22, %v57_v23  ;;  %v2729_v45 = vcombine.low %v50_v24, %v58_v25  ;;  %v129_v24 = vld [vmem:[%s4644_s0 + $0x390] sm:$0xff] }
  0x3f   :  { %3232 = vmatprep.subr.bf16.mxu1 %v3600_v51  ;;  %v81_v51 = vld [vmem:[%s4644_s0 + $0x210] sm:$0xff] }
  0x40   :  { %v137_v25 = vld [vmem:[%s4644_s0 + $0x3d0] sm:$0xff] }
  0x41   :  { %3169 = vmatpush3.bf16.msra.mxu0 %v3599_v48  ;;  %v2746_v48 = vcombine.high %v66_v38, %v74_v39 }
  0x42   :  { %3233 = vmatpush3.bf16.msra.mxu1 %v3601_v53  ;;  %3282 = vmatprep.subr.bf16.mxu0 %v3602_v56  ;;  %v89_v53 = vld [vmem:[%s4644_s0 + $0x250] sm:$0xff]  ;;  %v3623_v56 = vld [vmem:[%s4643_s1 + $0x228] sm:$0xff]  }
  0x43   :  { %1879 = vmatmul.mubr.bf16.gmra.mrb[16].mxu0 %v2755_v34  ;;  %3346 = vmatprep.subr.bf16.mxu1 %v3604_v58  ;;  %v3614_v34 = vld [vmem:[%s4643_s1 + $0x258] sm:$0xff]   ;;  %v3626_v58 = vld [vmem:[%s4643_s1 + $0x270] sm:$0xff]  }
  0x44   :  { %1976 = vmatmul.mubr.bf16.gmra.mrb[16].mxu1 %v2757_v35  ;;  %1886 = vmatprep.mubr.bf16.mxu0 %v2772_v36  ;;  %v65_v35 = vld [vmem:[%s4644_s0 + $0x190] sm:$0xff] }
  0x45   :  { %1983 = vmatprep.mubr.bf16.mxu1 %v2774_v37  ;;  %v73_v36 = vld [vmem:[%s4644_s0 + $0x1d0] sm:$0xff]  ;;  %v3616_v37 = vld [vmem:[%s4643_s1 + $0x2d8] sm:$0xff]  }
  0x46   :  { %v2744_v46 = vcombine.high %v65_v35, %v73_v36  ;;  %v2743_v59 = vcombine.low %v65_v35, %v73_v36  ;;  %v28_v35 = vld [vmem:[%s4644_s0 + $0x68] sm:$0xff]  ;;  %v2807_v36 = vcombine.low %v129_v24, %v137_v25 }
  0x4b   :  { %1887 = vmatmul.mubr.bf16.gmra.mrb[20].mxu0 %v2771_v47  ;;  %v3619_v47 = vld [vmem:[%s4643_s1 + $0x220] sm:$0xff]  }
  0x4c   :  { %1984 = vmatmul.mubr.bf16.gmra.mrb[20].mxu1 %v2773_v49  ;;  %1894 = vmatprep.mubr.bf16.mxu0 %v2788_v50  ;;  %v3621_v49 = vld [vmem:[%s4643_s1 + $0x2a0] sm:$0xff]   ;;  %v3622_v50 = vld [vmem:[%s4643_s1 + $0x268] sm:$0xff]  }
  0x4d   :  { %1991 = vmatprep.mubr.bf16.mxu1 %v2790_v52  ;;  %v3624_v52 = vld [vmem:[%s4643_s1 + $0x2e8] sm:$0xff]  }
  0x53   :  { %1895 = vmatmul.mubr.bf16.gmra.mrb[24].mxu0 %v2787_v60  ;;  %v3628_v60 = vld [vmem:[%s4643_s1 + $0x2f0] sm:$0xff]  }
  0x54   :  { %1992 = vmatmul.mubr.bf16.gmra.mrb[24].mxu1 %v2789_v61  ;;  %1902 = vmatprep.mubr.bf16.mxu0 %v2804_v62  ;;  %v2745_v61 = vcombine.low %v66_v38, %v74_v39  ;;  %v2760_v62 = vcombine.high %v81_v51, %v89_v53 }
  0x55   :  { %1999 = vmatprep.mubr.bf16.mxu1 %v2806_v63  ;;  %v2762_v63 = vcombine.high %v82_v54, %v90_v55  ;;  %v51_v54 = vld [vmem:[%s4644_s0 + $0x120] sm:$0xff] }
  0x56   :  { %v59_v55 = vld [vmem:[%s4644_s0 + $0x160] sm:$0xff] }
  0x5b   :  { %1903 = vmatmul.mubr.bf16.gmra.mrb[28].mxu0 %v2803_v4  ;;  %v105_v4 = vld [vmem:[%s4644_s0 + $0x2d0] sm:$0xff] }
  0x5c   :  { %2000 = vmatmul.mubr.bf16.gmra.mrb[28].mxu1 %v2805_v5  ;;  %2040 = vmatprep.mubr.bf16.mxu0 %v2696_v6  ;;  %v3632_v5 = vld [vmem:[%s4643_s1 + $0x2f8] sm:$0xff]  }
  0x5d   :  { %2137 = vmatprep.mubr.bf16.mxu1 %v2698_v7  ;;  %v98_v6 = vld [vmem:[%s4644_s0 + $0x298] sm:$0xff] }
  0x5e   :  { %v106_v7 = vld [vmem:[%s4644_s0 + $0x2d8] sm:$0xff] }
  0x63   :  { %2041 = vmatmul.mubr.bf16.vlgmr.msra.gmra.mrb[32].mxu0 %v2695_v10  ;;  %v3634_v10 = vld [vmem:[%s4643_s1 + $0x340] sm:$0xff]  }
  0x64   :  { %2138 = vmatmul.mubr.bf16.vlgmr.msra.gmra.mrb[32].mxu1 %v2697_v14  ;;  %3283 = vmatpush3.bf16.msra.mxu0 %v3603_v11  ;;  %v2759_v11 = vcombine.low %v81_v51, %v89_v53  ;;  %v2776_v14 = vcombine.high %v97_v3, %v105_v4  ;;  %v3640_v51 = vld [vmem:[%s4643_s1 + $0x3c8] sm:$0xff]  }
  0x65   :  { %3347 = vmatpush3.bf16.msra.mxu1 %v3605_v15  ;;  %2048 = vmatprep.mubr.bf16.mxu0 %v2712_v16  ;;  %v2778_v15 = vcombine.high %v98_v6, %v106_v7  ;;  %v113_v16 = vld [vmem:[%s4644_s0 + $0x310] sm:$0xff]  ;;  %v3641_v53 = vld [vmem:[%s4643_s1 + $0x388] sm:$0xff]  }
  0x66   :  { %2145 = vmatprep.mubr.bf16.mxu1 %v2714_v18  ;;  %3284 = vmatprep.subr.bf16.mxu0 %v3606_v17  ;;  %v121_v17 = vld [vmem:[%s4644_s0 + $0x350] sm:$0xff]  ;;  %v114_v18 = vld [vmem:[%s4644_s0 + $0x318] sm:$0xff] }
  0x67   :  { %3348 = vmatprep.subr.bf16.mxu1 %v3608_v20  ;;  %v2775_v20 = vcombine.low %v97_v3, %v105_v4  ;;  %v2792_v22 = vcombine.high %v113_v16, %v121_v17  ;;  %v3648_v3 = vld [vmem:[%s4643_s1 + $0x3d8] sm:$0xff]   ;;  %v67_v4 = vld [vmem:[%s4644_s0 + $0x1a0] sm:$0xff] }
  0x68   :  { %3285 = vmatpush3.bf16.msra.mxu0 %v3607_v19  ;;  %v122_v19 = vld [vmem:[%s4644_s0 + $0x358] sm:$0xff] }
  0x69   :  { %3349 = vmatpush3.bf16.msra.mxu1 %v3609_v21  ;;  %3286 = vmatprep.subr.bf16.mxu0 %v3610_v26  ;;  %v2777_v21 = vcombine.low %v98_v6, %v106_v7  ;;  %v2794_v23 = vcombine.high %v114_v18, %v122_v19  ;;  %v130_v26 = vld [vmem:[%s4644_s0 + $0x398] sm:$0xff]  ;;  %v68_v6 = vld [vmem:[%s4644_s0 + $0x1a8] sm:$0xff] }
  0x6a   :  { %3350 = vmatprep.subr.bf16.mxu1 %v3612_v27  ;;  %v138_v27 = vld [vmem:[%s4644_s0 + $0x3d8] sm:$0xff] }
  0x6b   :  { %2049 = vmatmul.mubr.bf16.gmra.mrb[36].mxu0 %v2711_v28  ;;  %v2791_v28 = vcombine.low %v113_v16, %v121_v17  ;;  %v3647_v7 = vld [vmem:[%s4643_s1 + $0x318] sm:$0xff]   ;;  %v3651_v16 = vld [vmem:[%s4643_s1 + $0x320] sm:$0xff]  }
  0x6c   :  { %2146 = vmatmul.mubr.bf16.gmra.mrb[36].mxu1 %v2713_v29  ;;  %2056 = vmatprep.mubr.bf16.mxu0 %v2728_v30  ;;  %v2793_v29 = vcombine.low %v114_v18, %v122_v19  ;;  %v2808_v30 = vcombine.high %v129_v24, %v137_v25  ;;  %v3653_v17 = vld [vmem:[%s4643_s1 + $0x3a0] sm:$0xff]   ;;  %v3654_v18 = vld [vmem:[%s4643_s1 + $0x368] sm:$0xff]  }
  0x6d   :  { %2153 = vmatprep.mubr.bf16.mxu1 %v2730_v31  ;;  %3287 = vmatpush3.bf16.msra.mxu0 %v3611_v32  ;;  %v2810_v31 = vcombine.high %v130_v26, %v138_v27  ;;  %v19_v32 = vld [vmem:[%s4644_s0 + $0x20] sm:$0xff]  ;;  %v3656_v19 = vld [vmem:[%s4643_s1 + $0x3e8] sm:$0xff]  }
  0x6e   :  { %3351 = vmatpush3.bf16.msra.mxu1 %v3613_v33  ;;  %3288 = vmatprep.subr.bf16.mxu0 %v3614_v34  ;;  %v27_v33 = vld [vmem:[%s4644_s0 + $0x60] sm:$0xff]  ;;  %v20_v34 = vld [vmem:[%s4644_s0 + $0x28] sm:$0xff] }
  0x6f   :  { %3352 = vmatprep.subr.bf16.mxu1 %v3616_v37  ;;  %v2809_v37 = vcombine.low %v130_v26, %v138_v27  ;;  %v2700_v38 = vcombine.high %v19_v32, %v27_v33  ;;  %v2702_v39 = vcombine.high %v20_v34, %v28_v35  ;;  %v92_v24 = vld [vmem:[%s4644_s0 + $0x268] sm:$0xff]  ;;  %v3658_v26 = vld [vmem:[%s4643_s1 + $0x370] sm:$0xff]  }
  0x70   :  { %v3657_v25 = vld [vmem:[%s4643_s1 + $0x3a8] sm:$0xff]  }
  0x71   :  { %3289 = vmatpush3.bf16.msra.mxu0 %v3615_v40  ;;  %v35_v40 = vld [vmem:[%s4644_s0 + $0xa0] sm:$0xff] }
  0x72   :  { %3353 = vmatpush3.bf16.msra.mxu1 %v3617_v41  ;;  %3290 = vmatprep.subr.bf16.mxu0 %v3618_v42  ;;  %v43_v41 = vld [vmem:[%s4644_s0 + $0xe0] sm:$0xff]  ;;  %v2699_v42 = vcombine.low %v19_v32, %v27_v33  ;;  %v3659_v32 = vld [vmem:[%s4643_s1 + $0x330] sm:$0xff]  }
  0x73   :  { %2057 = vmatmul.mubr.bf16.gmra.mrb[40].mxu0 %v2727_v43  ;;  %3354 = vmatprep.subr.bf16.mxu1 %v3620_v44  ;;  %v36_v43 = vld [vmem:[%s4644_s0 + $0xa8] sm:$0xff]  ;;  %v3661_v33 = vld [vmem:[%s4643_s1 + $0x3b0] sm:$0xff]  }
  0x74   :  { %2154 = vmatmul.mubr.bf16.gmra.mrb[40].mxu1 %v2729_v45  ;;  %2064 = vmatprep.mubr.bf16.mxu0 %v2744_v46  ;;  %v44_v44 = vld [vmem:[%s4644_s0 + $0xe8] sm:$0xff]  ;;  %v2701_v45 = vcombine.low %v20_v34, %v28_v35  ;;  %v3635_v46 = vld [vmem:[%s4643_s1 + $0x300] sm:$0xff]   ;;  %v3662_v34 = vld [vmem:[%s4643_s1 + $0x378] sm:$0xff]  }
  0x75   :  { %2161 = vmatprep.mubr.bf16.mxu1 %v2746_v48  ;;  %3291 = vmatpush3.bf16.msra.mxu0 %v3619_v47  ;;  %v3637_v47 = vld [vmem:[%s4643_s1 + $0x380] sm:$0xff]   ;;  %v2716_v48 = vcombine.high %v35_v40, %v43_v41  ;;  %v3664_v35 = vld [vmem:[%s4643_s1 + $0x3f8] sm:$0xff]  }
  0x76   :  { %3355 = vmatpush3.bf16.msra.mxu1 %v3621_v49  ;;  %3292 = vmatprep.subr.bf16.mxu0 %v3622_v50  ;;  %v2718_v49 = vcombine.high %v36_v43, %v44_v44  ;;  %v3638_v50 = vld [vmem:[%s4643_s1 + $0x348] sm:$0xff]  }
  0x77   :  { %3356 = vmatprep.subr.bf16.mxu1 %v3624_v52  ;;  %v3639_v52 = vld [vmem:[%s4643_s1 + $0x308] sm:$0xff]  }
  0x79   :  { %3293 = vmatpush3.bf16.msra.mxu0 %v3623_v56  ;;  %v3642_v56 = vld [vmem:[%s4643_s1 + $0x350] sm:$0xff]  }
  0x7a   :  { %3357 = vmatpush3.bf16.msra.mxu1 %v3625_v57  ;;  %3294 = vmatprep.subr.bf16.mxu0 %v3626_v58  ;;  %v52_v57 = vld [vmem:[%s4644_s0 + $0x128] sm:$0xff] }
  0x7b   :  { %2065 = vmatmul.mubr.bf16.gmra.mrb[44].mxu0 %v2743_v59  ;;  %3358 = vmatprep.subr.bf16.mxu1 %v3628_v60  ;;  %v60_v58 = vld [vmem:[%s4644_s0 + $0x168] sm:$0xff]  ;;  %v3644_v59 = vld [vmem:[%s4643_s1 + $0x3d0] sm:$0xff]   ;;  %v2715_v60 = vcombine.low %v35_v40, %v43_v41  ;;  %v3665_v41 = vld [vmem:[%s4643_s1 + $0x3b8] sm:$0xff]  }
  0x7c   :  { %2162 = vmatmul.mubr.bf16.gmra.mrb[44].mxu1 %v2745_v61  ;;  %2072 = vmatprep.mubr.bf16.mxu0 %v2760_v62  ;;  %v2717_v61 = vcombine.low %v36_v43, %v44_v44  ;;  %v2732_v62 = vcombine.high %v51_v54, %v59_v55  ;;  %v108_v40 = vld [vmem:[%s4644_s0 + $0x2e8] sm:$0xff] }
  0x7d   :  { %2169 = vmatprep.mubr.bf16.mxu1 %v2762_v63  ;;  %3295 = vmatpush3.bf16.msra.mxu0 %v3627_v0  ;;  %v2734_v63 = vcombine.high %v52_v57, %v60_v58  ;;  %v3643_v0 = vld [vmem:[%s4643_s1 + $0x310] sm:$0xff]  }
  0x7e   :  { %3359 = vmatpush3.bf16.msra.mxu1 %v3629_v1  ;;  %3296 = vmatprep.subr.bf16.mxu0 %v3630_v2  ;;  %v3645_v1 = vld [vmem:[%s4643_s1 + $0x390] sm:$0xff]   ;;  %v3646_v2 = vld [vmem:[%s4643_s1 + $0x358] sm:$0xff]  }
  0x7f   :  { %3360 = vmatprep.subr.bf16.mxu1 %v3632_v5  ;;  %v75_v5 = vld [vmem:[%s4644_s0 + $0x1e0] sm:$0xff] }
  0x80   :  { %v2747_v27 = vcombine.low %v67_v4, %v75_v5 }
  0x81   :  { %3297 = vmatpush3.bf16.msra.mxu0 %v3631_v8  ;;  %v76_v8 = vld [vmem:[%s4644_s0 + $0x1e8] sm:$0xff] }
  0x82   :  { %3361 = vmatpush3.bf16.msra.mxu1 %v3633_v9  ;;  %3410 = vmatprep.subr.bf16.mxu0 %v3634_v10  ;;  %v3649_v9 = vld [vmem:[%s4643_s1 + $0x398] sm:$0xff]   ;;  %v3650_v10 = vld [vmem:[%s4643_s1 + $0x360] sm:$0xff]  }
  0x83   :  { %2073 = vmatmul.mubr.bf16.gmra.mrb[48].mxu0 %v2759_v11  ;;  %3474 = vmatprep.subr.bf16.mxu1 %v3636_v12  ;;  %v2731_v11 = vcombine.low %v51_v54, %v59_v55  ;;  %v3652_v12 = vld [vmem:[%s4643_s1 + $0x3e0] sm:$0xff]  }
  0x84   :  { %2170 = vmatmul.mubr.bf16.gmra.mrb[48].mxu1 %v2761_v13  ;;  %2080 = vmatprep.mubr.bf16.mxu0 %v2776_v14  ;;  %v2733_v13 = vcombine.low %v52_v57, %v60_v58  ;;  %v2748_v14 = vcombine.high %v67_v4, %v75_v5  ;;  %v131_v54 = vld [vmem:[%s4644_s0 + $0x3a0] sm:$0xff]  ;;  %v140_v57 = vld [vmem:[%s4644_s0 + $0x3e8] sm:$0xff] }
  0x85   :  { %2177 = vmatprep.mubr.bf16.mxu1 %v2778_v15  ;;  %v2750_v15 = vcombine.high %v68_v6, %v76_v8  ;;  %v139_v55 = vld [vmem:[%s4644_s0 + $0x3e0] sm:$0xff] }
  0x8b   :  { %2081 = vmatmul.mubr.bf16.gmra.mrb[52].mxu0 %v2775_v20  ;;  %v83_v20 = vld [vmem:[%s4644_s0 + $0x220] sm:$0xff] }
  0x8c   :  { %2178 = vmatmul.mubr.bf16.gmra.mrb[52].mxu1 %v2777_v21  ;;  %2088 = vmatprep.mubr.bf16.mxu0 %v2792_v22  ;;  %v91_v21 = vld [vmem:[%s4644_s0 + $0x260] sm:$0xff]  ;;  %v84_v22 = vld [vmem:[%s4644_s0 + $0x228] sm:$0xff] }
  0x8d   :  { %2185 = vmatprep.mubr.bf16.mxu1 %v2794_v23  ;;  %v3655_v23 = vld [vmem:[%s4643_s1 + $0x328] sm:$0xff]   ;;  %v2765_v43 = vcombine.low %v84_v22, %v92_v24 }
  0x93   :  { %2089 = vmatmul.mubr.bf16.gmra.mrb[56].mxu0 %v2791_v28  ;;  %v3660_v28 = vld [vmem:[%s4643_s1 + $0x3f0] sm:$0xff]  }
  0x94   :  { %2186 = vmatmul.mubr.bf16.gmra.mrb[56].mxu1 %v2793_v29  ;;  %2096 = vmatprep.mubr.bf16.mxu0 %v2808_v30  ;;  %v2749_v29 = vcombine.low %v68_v6, %v76_v8  ;;  %v2764_v30 = vcombine.high %v83_v20, %v91_v21  ;;  %v37_v6 = vld [vmem:[%s4644_s0 + $0xb0] sm:$0xff]  ;;  %v38_v8 = vld [vmem:[%s4644_s0 + $0xb8] sm:$0xff] }
  0x95   :  { %2193 = vmatprep.mubr.bf16.mxu1 %v2810_v31  ;;  %v2766_v31 = vcombine.high %v84_v22, %v92_v24  ;;  %v69_v22 = vld [vmem:[%s4644_s0 + $0x1b0] sm:$0xff]  ;;  %v70_v24 = vld [vmem:[%s4644_s0 + $0x1b8] sm:$0xff] }
  0x9b   :  { %2097 = vmatmul.mubr.bf16.gmra.mrb[60].mxu0 %v2807_v36  ;;  %v99_v36 = vld [vmem:[%s4644_s0 + $0x2a0] sm:$0xff] }
  0x9c   :  { %2194 = vmatmul.mubr.bf16.gmra.mrb[60].mxu1 %v2809_v37  ;;  %2234 = vmatprep.mubr.bf16.mxu0 %v2700_v38  ;;  %v107_v37 = vld [vmem:[%s4644_s0 + $0x2e0] sm:$0xff]  ;;  %v3663_v38 = vld [vmem:[%s4643_s1 + $0x338] sm:$0xff]  }
  0x9d   :  { %2331 = vmatprep.mubr.bf16.mxu1 %v2702_v39  ;;  %v100_v39 = vld [vmem:[%s4644_s0 + $0x2a8] sm:$0xff]  ;;  %v2780_v44 = vcombine.high %v99_v36, %v107_v37 }
  0xa3   :  { %2235 = vmatmul.mubr.bf16.vlgmr.msra.gmra.mrb[64].mxu0 %v2699_v42  ;;  %v2763_v42 = vcombine.low %v83_v20, %v91_v21 }
  0xa4   :  { %2332 = vmatmul.mubr.bf16.vlgmr.msra.gmra.mrb[64].mxu1 %v2701_v45  ;;  %3411 = vmatpush3.bf16.msra.mxu0 %v3635_v46  ;;  %v2782_v45 = vcombine.high %v100_v39, %v108_v40  ;;  %v115_v46 = vld [vmem:[%s4644_s0 + $0x320] sm:$0xff] }
  0xa5   :  { %3475 = vmatpush3.bf16.msra.mxu1 %v3637_v47  ;;  %2242 = vmatprep.mubr.bf16.mxu0 %v2716_v48  ;;  %v123_v47 = vld [vmem:[%s4644_s0 + $0x360] sm:$0xff]  ;;  %v116_v48 = vld [vmem:[%s4644_s0 + $0x328] sm:$0xff] }
  0xa6   :  { %2339 = vmatprep.mubr.bf16.mxu1 %v2718_v49  ;;  %3412 = vmatprep.subr.bf16.mxu0 %v3638_v50  ;;  %v124_v49 = vld [vmem:[%s4644_s0 + $0x368] sm:$0xff]  ;;  %v2779_v50 = vcombine.low %v99_v36, %v107_v37  ;;  %v2795_v58 = vcombine.low %v115_v46, %v123_v47  ;;  %v4421_v36 = vld [vmem:[%s4645_s2] ss:$0 sm:$0xff] }
  0xa7   :  { %3476 = vmatprep.subr.bf16.mxu1 %v3640_v51  ;;  %v2781_v51 = vcombine.low %v100_v39, %v108_v40 }
  0xa8   :  { %3413 = vmatpush3.bf16.msra.mxu0 %v3639_v52  ;;  %v2796_v52 = vcombine.high %v115_v46, %v123_v47 }
  0xa9   :  { %3477 = vmatpush3.bf16.msra.mxu1 %v3641_v53  ;;  %3414 = vmatprep.subr.bf16.mxu0 %v3642_v56  ;;  %v2798_v53 = vcombine.high %v116_v48, %v124_v49  ;;  %v132_v56 = vld [vmem:[%s4644_s0 + $0x3a8] sm:$0xff] }
  0xaa   :  { %3478 = vmatprep.subr.bf16.mxu1 %v3644_v59  ;;  %v2797_v59 = vcombine.low %v116_v48, %v124_v49 }
  0xab   :  { %2243 = vmatmul.mubr.bf16.gmra.mrb[68].mxu0 %v2715_v60  ;;  %v2812_v60 = vcombine.high %v131_v54, %v139_v55 }
  0xac   :  { %2340 = vmatmul.mubr.bf16.gmra.mrb[68].mxu1 %v2717_v61  ;;  %2250 = vmatprep.mubr.bf16.mxu0 %v2732_v62  ;;  %v2814_v61 = vcombine.high %v132_v56, %v140_v57  ;;  %v21_v62 = vld [vmem:[%s4644_s0 + $0x30] sm:$0xff] }
  0xad   :  { %2347 = vmatprep.mubr.bf16.mxu1 %v2734_v63  ;;  %3415 = vmatpush3.bf16.msra.mxu0 %v3643_v0  ;;  %v29_v63 = vld [vmem:[%s4644_s0 + $0x70] sm:$0xff]  ;;  %v22_v0 = vld [vmem:[%s4644_s0 + $0x38] sm:$0xff] }
  0xae   :  { %3479 = vmatpush3.bf16.msra.mxu1 %v3645_v1  ;;  %3416 = vmatprep.subr.bf16.mxu0 %v3646_v2  ;;  %v30_v1 = vld [vmem:[%s4644_s0 + $0x78] sm:$0xff]  ;;  %v2811_v2 = vcombine.low %v131_v54, %v139_v55  ;;  %v2704_v4 = vcombine.high %v21_v62, %v29_v63  ;;  %v101_v54 = vld [vmem:[%s4644_s0 + $0x2b0] sm:$0xff] }
  0xaf   :  { %3480 = vmatprep.subr.bf16.mxu1 %v3648_v3  ;;  %v2813_v3 = vcombine.low %v132_v56, %v140_v57  ;;  %v2706_v5 = vcombine.high %v22_v0, %v30_v1  ;;  %v109_v55 = vld [vmem:[%s4644_s0 + $0x2f0] sm:$0xff] }
  0xb1   :  { %3417 = vmatpush3.bf16.msra.mxu0 %v3647_v7  ;;  %v45_v7 = vld [vmem:[%s4644_s0 + $0xf0] sm:$0xff] }
  0xb2   :  { %3481 = vmatpush3.bf16.msra.mxu1 %v3649_v9  ;;  %3418 = vmatprep.subr.bf16.mxu0 %v3650_v10  ;;  %v46_v9 = vld [vmem:[%s4644_s0 + $0xf8] sm:$0xff]  ;;  %v2703_v10 = vcombine.low %v21_v62, %v29_v63 }
  0xb3   :  { %2251 = vmatmul.mubr.bf16.gmra.mrb[72].mxu0 %v2731_v11  ;;  %3482 = vmatprep.subr.bf16.mxu1 %v3652_v12  ;;  %v2705_v11 = vcombine.low %v22_v0, %v30_v1  ;;  %v2720_v12 = vcombine.high %v37_v6, %v45_v7 }
  0xb4   :  { %2348 = vmatmul.mubr.bf16.gmra.mrb[72].mxu1 %v2733_v13  ;;  %2258 = vmatprep.mubr.bf16.mxu0 %v2748_v14  ;;  %v2722_v13 = vcombine.high %v38_v8, %v46_v9  ;;  %v53_v14 = vld [vmem:[%s4644_s0 + $0x130] sm:$0xff] }
  0xb5   :  { %2355 = vmatprep.mubr.bf16.mxu1 %v2750_v15  ;;  %3419 = vmatpush3.bf16.msra.mxu0 %v3651_v16  ;;  %v61_v15 = vld [vmem:[%s4644_s0 + $0x170] sm:$0xff]  ;;  %v54_v16 = vld [vmem:[%s4644_s0 + $0x138] sm:$0xff] }
  0xb6   :  { %3483 = vmatpush3.bf16.msra.mxu1 %v3653_v17  ;;  %3420 = vmatprep.subr.bf16.mxu0 %v3654_v18  ;;  %v62_v17 = vld [vmem:[%s4644_s0 + $0x178] sm:$0xff]  ;;  %v2719_v18 = vcombine.low %v37_v6, %v45_v7  ;;  %v2736_v20 = vcombine.high %v53_v14, %v61_v15 }
  0xb7   :  { %3484 = vmatprep.subr.bf16.mxu1 %v3656_v19  ;;  %v2721_v19 = vcombine.low %v38_v8, %v46_v9  ;;  %v2738_v21 = vcombine.high %v54_v16, %v62_v17 }
  0xb9   :  { %3421 = vmatpush3.bf16.msra.mxu0 %v3655_v23  ;;  %v77_v23 = vld [vmem:[%s4644_s0 + $0x1f0] sm:$0xff] }
  0xba   :  { %3485 = vmatpush3.bf16.msra.mxu1 %v3657_v25  ;;  %3422 = vmatprep.subr.bf16.mxu0 %v3658_v26  ;;  %v78_v25 = vld [vmem:[%s4644_s0 + $0x1f8] sm:$0xff]  ;;  %v2735_v26 = vcombine.low %v53_v14, %v61_v15  ;;  %v117_v14 = vld [vmem:[%s4644_s0 + $0x330] sm:$0xff] }
  0xbb   :  { %2259 = vmatmul.mubr.bf16.gmra.mrb[76].mxu0 %v2747_v27  ;;  %3486 = vmatprep.subr.bf16.mxu1 %v3660_v28  ;;  %v2737_v27 = vcombine.low %v54_v16, %v62_v17  ;;  %v2752_v28 = vcombine.high %v69_v22, %v77_v23  ;;  %v125_v15 = vld [vmem:[%s4644_s0 + $0x370] sm:$0xff] }
  0xbc   :  { %2356 = vmatmul.mubr.bf16.gmra.mrb[76].mxu1 %v2749_v29  ;;  %2266 = vmatprep.mubr.bf16.mxu0 %v2764_v30  ;;  %v2754_v29 = vcombine.high %v70_v24, %v78_v25  ;;  %v85_v30 = vld [vmem:[%s4644_s0 + $0x230] sm:$0xff] }
  0xbd   :  { %2363 = vmatprep.mubr.bf16.mxu1 %v2766_v31  ;;  %3423 = vmatpush3.bf16.msra.mxu0 %v3659_v32  ;;  %v93_v31 = vld [vmem:[%s4644_s0 + $0x270] sm:$0xff] }
  0xbe   :  { %3487 = vmatpush3.bf16.msra.mxu1 %v3661_v33  ;;  %3424 = vmatprep.subr.bf16.mxu0 %v3662_v34  ;;  %v86_v33 = vld [vmem:[%s4644_s0 + $0x238] sm:$0xff]  ;;  %v2767_v62 = vcombine.low %v85_v30, %v93_v31 }
  0xbf   :  { %3488 = vmatprep.subr.bf16.mxu1 %v3664_v35  ;;  %v94_v34 = vld [vmem:[%s4644_s0 + $0x278] sm:$0xff] }
  0xc0   :  { %v2770_v47 = vcombine.high %v86_v33, %v94_v34 }
  0xc1   :  { %3425 = vmatpush3.bf16.msra.mxu0 %v3663_v38  ;;  %v2751_v38 = vcombine.low %v69_v22, %v77_v23  ;;  %v2783_v22 = vcombine.low %v101_v54, %v109_v55 }
  0xc2   :  { %3489 = vmatpush3.bf16.msra.mxu1 %v3665_v41 }
  0xc3   :  { %2267 = vmatmul.mubr.bf16.gmra.mrb[80].mxu0 %v2763_v42  ;;  %v2753_v42 = vcombine.low %v70_v24, %v78_v25 }
  0xc4   :  { %2364 = vmatmul.mubr.bf16.gmra.mrb[80].mxu1 %v2765_v43  ;;  %2274 = vmatprep.mubr.bf16.mxu0 %v2780_v44  ;;  %v2768_v43 = vcombine.high %v85_v30, %v93_v31 }
  0xc5   :  { %2371 = vmatprep.mubr.bf16.mxu1 %v2782_v45 }
  0xcb   :  { %2275 = vmatmul.mubr.bf16.gmra.mrb[84].mxu0 %v2779_v50 }
  0xcc   :  { %2372 = vmatmul.mubr.bf16.gmra.mrb[84].mxu1 %v2781_v51  ;;  %2282 = vmatprep.mubr.bf16.mxu0 %v2796_v52 }
  0xcd   :  { %2379 = vmatprep.mubr.bf16.mxu1 %v2798_v53 }
  0xd3   :  { %2283 = vmatmul.mubr.bf16.gmra.mrb[88].mxu0 %v2795_v58  ;;  %v102_v58 = vld [vmem:[%s4644_s0 + $0x2b8] sm:$0xff] }
  0xd4   :  { %2380 = vmatmul.mubr.bf16.gmra.mrb[88].mxu1 %v2797_v59  ;;  %2290 = vmatprep.mubr.bf16.mxu0 %v2812_v60  ;;  %v110_v59 = vld [vmem:[%s4644_s0 + $0x2f8] sm:$0xff] }
  0xd5   :  { %2387 = vmatprep.mubr.bf16.mxu1 %v2814_v61  ;;  %v2786_v7 = vcombine.high %v102_v58, %v110_v59 }
  0xdb   :  { %2291 = vmatmul.mubr.bf16.gmra.mrb[92].mxu0 %v2811_v2  ;;  %v2769_v2 = vcombine.low %v86_v33, %v94_v34 }
  0xdc   :  { %2388 = vmatmul.mubr.bf16.gmra.mrb[92].mxu1 %v2813_v3  ;;  %2428 = vmatprep.mubr.bf16.mxu0 %v2704_v4  ;;  %v2784_v3 = vcombine.high %v101_v54, %v109_v55 }
  0xdd   :  { %2525 = vmatprep.mubr.bf16.mxu1 %v2706_v5 }
  0xe3   :  { %2429 = vmatmul.mubr.bf16.vlgmr.msra.gmra.mrb[96].mxu0 %v2703_v10 }
  0xe4   :  { %2526 = vmatmul.mubr.bf16.vlgmr.msra.gmra.mrb[96].mxu1 %v2705_v11  ;;  %2436 = vmatprep.mubr.bf16.mxu0 %v2720_v12 }
  0xe5   :  { %2533 = vmatprep.mubr.bf16.mxu1 %v2722_v13 }
  0xeb   :  { %2437 = vmatmul.mubr.bf16.gmra.mrb[100].mxu0 %v2719_v18  ;;  %v118_v18 = vld [vmem:[%s4644_s0 + $0x338] sm:$0xff] }
  0xec   :  { %2534 = vmatmul.mubr.bf16.gmra.mrb[100].mxu1 %v2721_v19  ;;  %2444 = vmatprep.mubr.bf16.mxu0 %v2736_v20  ;;  %v126_v19 = vld [vmem:[%s4644_s0 + $0x378] sm:$0xff] }
  0xed   :  { %2541 = vmatprep.mubr.bf16.mxu1 %v2738_v21  ;;  %v2802_v31 = vcombine.high %v118_v18, %v126_v19 }
  0xf3   :  { %2445 = vmatmul.mubr.bf16.gmra.mrb[104].mxu0 %v2735_v26  ;;  %v2785_v26 = vcombine.low %v102_v58, %v110_v59 }
  0xf4   :  { %2542 = vmatmul.mubr.bf16.gmra.mrb[104].mxu1 %v2737_v27  ;;  %2452 = vmatprep.mubr.bf16.mxu0 %v2752_v28  ;;  %v2800_v27 = vcombine.high %v117_v14, %v125_v15 }
  0xf5   :  { %2549 = vmatprep.mubr.bf16.mxu1 %v2754_v29 }
  0xf6   :  { %v3042_v32 = vpop.f32.mrb[0].mxu0 }
  0xf7   :  { %v3106_v35 = vpop.f32.mrb[0].mxu1  ;;  %v3043_v37 = vpop.f32.mrb[1].mxu0 }
  0xf8   :  { %v3044_v39 = vadd.f32 %v3043_v37, %v3042_v32  ;;  %v3107_v40 = vpop.f32.mrb[1].mxu1  ;;  %v3045_v41 = vpop.f32.mrb[2].mxu0 }
  0xf9   :  { %v3108_v44 = vadd.f32 %v3107_v40, %v3106_v35  ;;  %v3109_v45 = vpop.f32.mrb[2].mxu1  ;;  %v3046_v46 = vpop.f32.mrb[3].mxu0  ;;  %v141_v40 = vld [vmem:[%s4644_s0 + $0x3f0] sm:$0xff] }
  0xfa   :  { %v1849_v48 = vadd.f32 %v3044_v39, %v4421_v36  ;;  %v3047_v49 = vadd.f32 %v3046_v46, %v3045_v41  ;;  %v3110_v50 = vpop.f32.mrb[3].mxu1  ;;  %v133_v39 = vld [vmem:[%s4644_s0 + $0x3b0] sm:$0xff] }
  0xfb   :  { %v3111_v51 = vadd.f32 %v3110_v50, %v3109_v45  ;;  %2453 = vmatmul.mubr.bf16.gmra.mrb[108].mxu0 %v2751_v38 }
  0xfc   :  { %v4424_v52 = vadd.f32 %v3108_v44, %v1849_v48  ;;  %v1852_v53 = vadd.f32 %v3047_v49, %v4421_v36  ;;  %2550 = vmatmul.mubr.bf16.gmra.mrb[108].mxu1 %v2753_v42  ;;  %2460 = vmatprep.mubr.bf16.mxu0 %v2768_v43  ;;  %v134_v43 = vld [vmem:[%s4644_s0 + $0x3b8] sm:$0xff] }
  0xfd   :  { %2557 = vmatprep.mubr.bf16.mxu1 %v2770_v47  ;;  %v142_v44 = vld [vmem:[%s4644_s0 + $0x3f8] sm:$0xff]  ;;  %v2799_v47 = vcombine.low %v117_v14, %v125_v15 }
  0xfe   :  { %v4433_v56 = vadd.f32 %v3111_v51, %v1852_v53  ;;  %v3048_v57 = vpop.f32.mrb[4].mxu0  ;;  %v2801_v51 = vcombine.low %v118_v18, %v126_v19  ;;  %v2816_v53 = vcombine.high %v133_v39, %v141_v40  ;;  %v2818_v58 = vcombine.high %v134_v43, %v142_v44 }
  0xff   :  { %v3112_v60 = vpop.f32.mrb[4].mxu1  ;;  %v3049_v61 = vpop.f32.mrb[5].mxu0 }
 0x100   :  { %v3050_v63 = vadd.f32 %v3049_v61, %v3048_v57  ;;  %v3113_v0 = vpop.f32.mrb[5].mxu1  ;;  %v3051_v1 = vpop.f32.mrb[6].mxu0 }
 0x101   :  { %v3114_v4 = vadd.f32 %v3113_v0, %v3112_v60  ;;  %v3115_v5 = vpop.f32.mrb[6].mxu1  ;;  %v3052_v6 = vpop.f32.mrb[7].mxu0 }
 0x102   :  { %v1857_v8 = vadd.f32 %v3050_v63, %v4421_v36  ;;  %v3053_v9 = vadd.f32 %v3052_v6, %v3051_v1  ;;  %v3116_v10 = vpop.f32.mrb[7].mxu1 }
 0x103   :  { %v3117_v11 = vadd.f32 %v3116_v10, %v3115_v5  ;;  %2461 = vmatmul.mubr.bf16.gmra.mrb[112].mxu0 %v2767_v62  ;;  %v2815_v5 = vcombine.low %v133_v39, %v141_v40 }
 0x104   :  { %v4442_v12 = vadd.f32 %v3114_v4, %v1857_v8  ;;  %v1860_v13 = vadd.f32 %v3053_v9, %v4421_v36  ;;  %2558 = vmatmul.mubr.bf16.gmra.mrb[112].mxu1 %v2769_v2  ;;  %2468 = vmatprep.mubr.bf16.mxu0 %v2784_v3  ;;  %v2817_v9 = vcombine.low %v134_v43, %v142_v44 }
 0x105   :  { %2565 = vmatprep.mubr.bf16.mxu1 %v2786_v7 }
 0x106   :  { %v4451_v16 = vadd.f32 %v3117_v11, %v1860_v13  ;;  %v3054_v17 = vpop.f32.mrb[8].mxu0 }
 0x107   :  { %v3118_v20 = vpop.f32.mrb[8].mxu1  ;;  %v3055_v21 = vpop.f32.mrb[9].mxu0 }
 0x108   :  { %v3056_v23 = vadd.f32 %v3055_v21, %v3054_v17  ;;  %v3119_v24 = vpop.f32.mrb[9].mxu1  ;;  %v3057_v25 = vpop.f32.mrb[10].mxu0 }
 0x109   :  { %v3120_v28 = vadd.f32 %v3119_v24, %v3118_v20  ;;  %v3121_v29 = vpop.f32.mrb[10].mxu1  ;;  %v3058_v30 = vpop.f32.mrb[11].mxu0 }
 0x10a   :  { %v1865_v32 = vadd.f32 %v3056_v23, %v4421_v36  ;;  %v3059_v33 = vadd.f32 %v3058_v30, %v3057_v25  ;;  %v3122_v34 = vpop.f32.mrb[11].mxu1 }
 0x10b   :  { %v3123_v35 = vadd.f32 %v3122_v34, %v3121_v29  ;;  %2469 = vmatmul.mubr.bf16.gmra.mrb[116].mxu0 %v2783_v22 }
 0x10c   :  { %v4460_v37 = vadd.f32 %v3120_v28, %v1865_v32  ;;  %v1868_v38 = vadd.f32 %v3059_v33, %v4421_v36  ;;  %2566 = vmatmul.mubr.bf16.gmra.mrb[116].mxu1 %v2785_v26  ;;  %2476 = vmatprep.mubr.bf16.mxu0 %v2800_v27 }
 0x10d   :  { %2573 = vmatprep.mubr.bf16.mxu1 %v2802_v31 }
 0x10e   :  { %v4469_v41 = vadd.f32 %v3123_v35, %v1868_v38  ;;  %v3060_v42 = vpop.f32.mrb[12].mxu0 }
 0x10f   :  { %v3124_v45 = vpop.f32.mrb[12].mxu1  ;;  %v3061_v46 = vpop.f32.mrb[13].mxu0 }
 0x110   :  { %v3062_v48 = vadd.f32 %v3061_v46, %v3060_v42  ;;  %v3125_v49 = vpop.f32.mrb[13].mxu1  ;;  %v3063_v50 = vpop.f32.mrb[14].mxu0 }
 0x111   :  { %v3126_v54 = vadd.f32 %v3125_v49, %v3124_v45  ;;  %v3127_v55 = vpop.f32.mrb[14].mxu1  ;;  %v3064_v57 = vpop.f32.mrb[15].mxu0 }
 0x112   :  { %v1873_v59 = vadd.f32 %v3062_v48, %v4421_v36  ;;  %v3065_v60 = vadd.f32 %v3064_v57, %v3063_v50  ;;  %v3128_v61 = vpop.f32.mrb[15].mxu1 }
 0x113   :  { %v3129_v62 = vadd.f32 %v3128_v61, %v3127_v55  ;;  %2477 = vmatmul.mubr.bf16.gmra.mrb[120].mxu0 %v2799_v47 }
 0x114   :  { %v4478_v63 = vadd.f32 %v3126_v54, %v1873_v59  ;;  %v1876_v0 = vadd.f32 %v3065_v60, %v4421_v36  ;;  %2574 = vmatmul.mubr.bf16.gmra.mrb[120].mxu1 %v2801_v51  ;;  %2484 = vmatprep.mubr.bf16.mxu0 %v2816_v53 }
 0x115   :  { %2581 = vmatprep.mubr.bf16.mxu1 %v2818_v58 }
 0x116   :  { %v4481_v1 = vadd.f32 %v3129_v62, %v1876_v0  ;;  %v3066_v2 = vpop.f32.mrb[16].mxu0 }
 0x117   :  { %v3130_v3 = vpop.f32.mrb[16].mxu1  ;;  %v3067_v4 = vpop.f32.mrb[17].mxu0 }
 0x118   :  { %v3068_v6 = vadd.f32 %v3067_v4, %v3066_v2  ;;  %v3131_v7 = vpop.f32.mrb[17].mxu1  ;;  %v3069_v8 = vpop.f32.mrb[18].mxu0 }
 0x119   :  { %v3132_v10 = vadd.f32 %v3131_v7, %v3130_v3  ;;  %v3133_v11 = vpop.f32.mrb[18].mxu1  ;;  %v3070_v13 = vpop.f32.mrb[19].mxu0 }
 0x11a   :  { %v1881_v14 = vadd.f32 %v3068_v6, %v4421_v36  ;;  %v3071_v15 = vadd.f32 %v3070_v13, %v3069_v8  ;;  %v3134_v17 = vpop.f32.mrb[19].mxu1 }
 0x11b   :  { %v3135_v18 = vadd.f32 %v3134_v17, %v3133_v11  ;;  %2485 = vmatmul.mubr.bf16.gmra.mrb[124].mxu0 %v2815_v5 }
 0x11c   :  { %v4484_v19 = vadd.f32 %v3132_v10, %v1881_v14  ;;  %v1884_v20 = vadd.f32 %v3071_v15, %v4421_v36  ;;  %2582 = vmatmul.mubr.bf16.gmra.mrb[124].mxu1 %v2817_v9 }
 0x11e   :  { %v4487_v21 = vadd.f32 %v3135_v18, %v1884_v20  ;;  %v3072_v22 = vpop.f32.mrb[20].mxu0 }
 0x11f   :  { %v3136_v23 = vpop.f32.mrb[20].mxu1  ;;  %v3073_v24 = vpop.f32.mrb[21].mxu0 }
 0x120   :  { %v3074_v25 = vadd.f32 %v3073_v24, %v3072_v22  ;;  %v3137_v26 = vpop.f32.mrb[21].mxu1  ;;  %v3075_v27 = vpop.f32.mrb[22].mxu0 }
 0x121   :  { %v3138_v28 = vadd.f32 %v3137_v26, %v3136_v23  ;;  %v3139_v29 = vpop.f32.mrb[22].mxu1  ;;  %v3076_v30 = vpop.f32.mrb[23].mxu0 }
 0x122   :  { %v1889_v31 = vadd.f32 %v3074_v25, %v4421_v36  ;;  %v3077_v32 = vadd.f32 %v3076_v30, %v3075_v27  ;;  %v3140_v33 = vpop.f32.mrb[23].mxu1 }
 0x123   :  { %v3141_v34 = vadd.f32 %v3140_v33, %v3139_v29 }
 0x124   :  { %v4490_v35 = vadd.f32 %v3138_v28, %v1889_v31  ;;  %v1892_v38 = vadd.f32 %v3077_v32, %v4421_v36 }
 0x126   :  { %v4493_v39 = vadd.f32 %v3141_v34, %v1892_v38  ;;  %v3078_v40 = vpop.f32.mrb[24].mxu0 }
 0x127   :  { %v3142_v42 = vpop.f32.mrb[24].mxu1  ;;  %v3079_v43 = vpop.f32.mrb[25].mxu0 }
 0x128   :  { %v3080_v44 = vadd.f32 %v3079_v43, %v3078_v40  ;;  %v3143_v45 = vpop.f32.mrb[25].mxu1  ;;  %v3081_v46 = vpop.f32.mrb[26].mxu0 }
 0x129   :  { %v3144_v47 = vadd.f32 %v3143_v45, %v3142_v42  ;;  %v3145_v48 = vpop.f32.mrb[26].mxu1  ;;  %v3082_v49 = vpop.f32.mrb[27].mxu0 }
 0x12a   :  { %v1897_v50 = vadd.f32 %v3080_v44, %v4421_v36  ;;  %v3083_v51 = vadd.f32 %v3082_v49, %v3081_v46  ;;  %v3146_v53 = vpop.f32.mrb[27].mxu1 }
 0x12b   :  { %v3147_v54 = vadd.f32 %v3146_v53, %v3145_v48 }
 0x12c   :  { %v4496_v55 = vadd.f32 %v3144_v47, %v1897_v50  ;;  %v1900_v57 = vadd.f32 %v3083_v51, %v4421_v36 }
 0x12e   :  { %v4499_v58 = vadd.f32 %v3147_v54, %v1900_v57  ;;  %v3084_v59 = vpop.f32.mrb[28].mxu0 }
 0x12f   :  { %v3148_v60 = vpop.f32.mrb[28].mxu1  ;;  %v3085_v61 = vpop.f32.mrb[29].mxu0 }
 0x130   :  { %v3086_v62 = vadd.f32 %v3085_v61, %v3084_v59  ;;  %v3149_v0 = vpop.f32.mrb[29].mxu1  ;;  %v3087_v2 = vpop.f32.mrb[30].mxu0 }
 0x131   :  { %v3150_v3 = vadd.f32 %v3149_v0, %v3148_v60  ;;  %v3151_v4 = vpop.f32.mrb[30].mxu1  ;;  %v3088_v5 = vpop.f32.mrb[31].mxu0 }
 0x132   :  { %v1905_v6 = vadd.f32 %v3086_v62, %v4421_v36  ;;  %v3089_v7 = vadd.f32 %v3088_v5, %v3087_v2  ;;  %v3152_v8 = vpop.f32.mrb[31].mxu1 }
 0x133   :  { %v3153_v9 = vadd.f32 %v3152_v8, %v3151_v4 }
 0x134   :  { %v4502_v10 = vadd.f32 %v3150_v3, %v1905_v6  ;;  %v1908_v11 = vadd.f32 %v3089_v7, %v4421_v36 }
 0x136   :  { %v4505_v13 = vadd.f32 %v3153_v9, %v1908_v11  ;;  %v3170_v14 = vpop.f32.mrb[32].mxu0 }
 0x137   :  { %v3234_v15 = vpop.f32.mrb[32].mxu1  ;;  %v3171_v17 = vpop.f32.mrb[33].mxu0 }
 0x138   :  { %v3172_v18 = vadd.f32 %v3171_v17, %v3170_v14  ;;  %v3235_v20 = vpop.f32.mrb[33].mxu1  ;;  %v3173_v22 = vpop.f32.mrb[34].mxu0 }
 0x139   :  { %v3236_v23 = vadd.f32 %v3235_v20, %v3234_v15  ;;  %v3237_v24 = vpop.f32.mrb[34].mxu1  ;;  %v3174_v25 = vpop.f32.mrb[35].mxu0 }
 0x13a   :  { %v2043_v26 = vadd.f32 %v3172_v18, %v4424_v52  ;;  %v3175_v27 = vadd.f32 %v3174_v25, %v3173_v22  ;;  %v3238_v28 = vpop.f32.mrb[35].mxu1 }
 0x13b   :  { %v3239_v29 = vadd.f32 %v3238_v28, %v3237_v24 }
 0x13c   :  { %v4508_v30 = vadd.f32 %v3236_v23, %v2043_v26  ;;  %v2046_v36 = vadd.f32 %v3175_v27, %v4433_v56 }
 0x13e   :  { %v4511_v31 = vadd.f32 %v3239_v29, %v2046_v36  ;;  %v3176_v32 = vpop.f32.mrb[36].mxu0 }
 0x13f   :  { %v3240_v33 = vpop.f32.mrb[36].mxu1  ;;  %v3177_v34 = vpop.f32.mrb[37].mxu0 }
 0x140   :  { %v3178_v38 = vadd.f32 %v3177_v34, %v3176_v32  ;;  %v3241_v40 = vpop.f32.mrb[37].mxu1  ;;  %v3179_v42 = vpop.f32.mrb[38].mxu0 }
 0x141   :  { %v3242_v43 = vadd.f32 %v3241_v40, %v3240_v33  ;;  %v3243_v44 = vpop.f32.mrb[38].mxu1  ;;  %v3180_v45 = vpop.f32.mrb[39].mxu0 }
 0x142   :  { %v2051_v52 = vadd.f32 %v3178_v38, %v4442_v12  ;;  %v3181_v46 = vadd.f32 %v3180_v45, %v3179_v42  ;;  %v3244_v47 = vpop.f32.mrb[39].mxu1 }
 0x143   :  { %v3245_v48 = vadd.f32 %v3244_v47, %v3243_v44 }
 0x144   :  { %v4514_v49 = vadd.f32 %v3242_v43, %v2051_v52  ;;  %v2054_v56 = vadd.f32 %v3181_v46, %v4451_v16 }
 0x146   :  { %v4517_v50 = vadd.f32 %v3245_v48, %v2054_v56  ;;  %v3182_v51 = vpop.f32.mrb[40].mxu0 }
 0x147   :  { %v3246_v53 = vpop.f32.mrb[40].mxu1  ;;  %v3183_v54 = vpop.f32.mrb[41].mxu0 }
 0x148   :  { %v3184_v57 = vadd.f32 %v3183_v54, %v3182_v51  ;;  %v3247_v59 = vpop.f32.mrb[41].mxu1  ;;  %v3185_v60 = vpop.f32.mrb[42].mxu0 }
 0x149   :  { %v3248_v61 = vadd.f32 %v3247_v59, %v3246_v53  ;;  %v3249_v62 = vpop.f32.mrb[42].mxu1  ;;  %v3186_v0 = vpop.f32.mrb[43].mxu0 }
 0x14a   :  { %v2059_v12 = vadd.f32 %v3184_v57, %v4460_v37  ;;  %v3187_v2 = vadd.f32 %v3186_v0, %v3185_v60  ;;  %v3250_v3 = vpop.f32.mrb[43].mxu1 }
 0x14b   :  { %v3251_v4 = vadd.f32 %v3250_v3, %v3249_v62 }
 0x14c   :  { %v4520_v5 = vadd.f32 %v3248_v61, %v2059_v12  ;;  %v2062_v16 = vadd.f32 %v3187_v2, %v4469_v41 }
 0x14e   :  { %v4523_v6 = vadd.f32 %v3251_v4, %v2062_v16  ;;  %v3188_v7 = vpop.f32.mrb[44].mxu0 }
 0x14f   :  { %v3252_v8 = vpop.f32.mrb[44].mxu1  ;;  %v3189_v9 = vpop.f32.mrb[45].mxu0 }
 0x150   :  { %v3190_v11 = vadd.f32 %v3189_v9, %v3188_v7  ;;  %v3253_v14 = vpop.f32.mrb[45].mxu1  ;;  %v3191_v15 = vpop.f32.mrb[46].mxu0 }
 0x151   :  { %v3254_v17 = vadd.f32 %v3253_v14, %v3252_v8  ;;  %v3255_v18 = vpop.f32.mrb[46].mxu1  ;;  %v3192_v20 = vpop.f32.mrb[47].mxu0 }
 0x152   :  { %v2067_v37 = vadd.f32 %v3190_v11, %v4478_v63  ;;  %v3193_v22 = vadd.f32 %v3192_v20, %v3191_v15  ;;  %v3256_v23 = vpop.f32.mrb[47].mxu1 }
 0x153   :  { %v3257_v24 = vadd.f32 %v3256_v23, %v3255_v18 }
 0x154   :  { %v4526_v25 = vadd.f32 %v3254_v17, %v2067_v37  ;;  %v2070_v41 = vadd.f32 %v3193_v22, %v4481_v1 }
 0x156   :  { %v4529_v26 = vadd.f32 %v3257_v24, %v2070_v41  ;;  %v3194_v27 = vpop.f32.mrb[48].mxu0 }
 0x157   :  { %v3258_v28 = vpop.f32.mrb[48].mxu1  ;;  %v3195_v29 = vpop.f32.mrb[49].mxu0 }
 0x158   :  { %v3196_v36 = vadd.f32 %v3195_v29, %v3194_v27  ;;  %v3259_v32 = vpop.f32.mrb[49].mxu1  ;;  %v3197_v33 = vpop.f32.mrb[50].mxu0 }
 0x159   :  { %v3260_v34 = vadd.f32 %v3259_v32, %v3258_v28  ;;  %v3261_v38 = vpop.f32.mrb[50].mxu1  ;;  %v3198_v40 = vpop.f32.mrb[51].mxu0 }
 0x15a   :  { %v2075_v63 = vadd.f32 %v3196_v36, %v4484_v19  ;;  %v3199_v42 = vadd.f32 %v3198_v40, %v3197_v33  ;;  %v3262_v43 = vpop.f32.mrb[51].mxu1 }
 0x15b   :  { %v3263_v44 = vadd.f32 %v3262_v43, %v3261_v38 }
 0x15c   :  { %v4532_v45 = vadd.f32 %v3260_v34, %v2075_v63  ;;  %v2078_v1 = vadd.f32 %v3199_v42, %v4487_v21 }
 0x15e   :  { %v4535_v52 = vadd.f32 %v3263_v44, %v2078_v1  ;;  %v3200_v46 = vpop.f32.mrb[52].mxu0 }
 0x15f   :  { %v3264_v47 = vpop.f32.mrb[52].mxu1  ;;  %v3201_v48 = vpop.f32.mrb[53].mxu0 }
 0x160   :  { %v3202_v56 = vadd.f32 %v3201_v48, %v3200_v46  ;;  %v3265_v51 = vpop.f32.mrb[53].mxu1  ;;  %v3203_v53 = vpop.f32.mrb[54].mxu0 }
 0x161   :  { %v3266_v54 = vadd.f32 %v3265_v51, %v3264_v47  ;;  %v3267_v57 = vpop.f32.mrb[54].mxu1  ;;  %v3204_v59 = vpop.f32.mrb[55].mxu0 }
 0x162   :  { %v2083_v19 = vadd.f32 %v3202_v56, %v4490_v35  ;;  %v3205_v60 = vadd.f32 %v3204_v59, %v3203_v53  ;;  %v3268_v61 = vpop.f32.mrb[55].mxu1 }
 0x163   :  { %v3269_v62 = vadd.f32 %v3268_v61, %v3267_v57 }
 0x164   :  { %v4538_v0 = vadd.f32 %v3266_v54, %v2083_v19  ;;  %v2086_v21 = vadd.f32 %v3205_v60, %v4493_v39 }
 0x166   :  { %v4541_v12 = vadd.f32 %v3269_v62, %v2086_v21  ;;  %v3206_v2 = vpop.f32.mrb[56].mxu0 }
 0x167   :  { %v3270_v3 = vpop.f32.mrb[56].mxu1  ;;  %v3207_v4 = vpop.f32.mrb[57].mxu0 }
 0x168   :  { %v3208_v16 = vadd.f32 %v3207_v4, %v3206_v2  ;;  %v3271_v7 = vpop.f32.mrb[57].mxu1  ;;  %v3209_v8 = vpop.f32.mrb[58].mxu0 }
 0x169   :  { %v3272_v9 = vadd.f32 %v3271_v7, %v3270_v3  ;;  %v3273_v11 = vpop.f32.mrb[58].mxu1  ;;  %v3210_v14 = vpop.f32.mrb[59].mxu0 }
 0x16a   :  { %v2091_v35 = vadd.f32 %v3208_v16, %v4496_v55  ;;  %v3211_v15 = vadd.f32 %v3210_v14, %v3209_v8  ;;  %v3274_v17 = vpop.f32.mrb[59].mxu1 }
 0x16b   :  { %v3275_v18 = vadd.f32 %v3274_v17, %v3273_v11 }
 0x16c   :  { %v4544_v20 = vadd.f32 %v3272_v9, %v2091_v35  ;;  %v2094_v39 = vadd.f32 %v3211_v15, %v4499_v58 }
 0x16e   :  { %v4547_v37 = vadd.f32 %v3275_v18, %v2094_v39  ;;  %v3212_v22 = vpop.f32.mrb[60].mxu0 }
 0x16f   :  { %v3276_v23 = vpop.f32.mrb[60].mxu1  ;;  %v3213_v24 = vpop.f32.mrb[61].mxu0 }
 0x170   :  { %v3214_v41 = vadd.f32 %v3213_v24, %v3212_v22  ;;  %v3277_v27 = vpop.f32.mrb[61].mxu1  ;;  %v3215_v28 = vpop.f32.mrb[62].mxu0 }
 0x171   :  { %v3278_v29 = vadd.f32 %v3277_v27, %v3276_v23  ;;  %v3279_v36 = vpop.f32.mrb[62].mxu1  ;;  %v3216_v32 = vpop.f32.mrb[63].mxu0 }
 0x172   :  { %v2099_v55 = vadd.f32 %v3214_v41, %v4502_v10  ;;  %v3217_v33 = vadd.f32 %v3216_v32, %v3215_v28  ;;  %v3280_v34 = vpop.f32.mrb[63].mxu1 }
 0x173   :  { %v3281_v38 = vadd.f32 %v3280_v34, %v3279_v36 }
 0x174   :  { %v4550_v40 = vadd.f32 %v3278_v29, %v2099_v55  ;;  %v2102_v58 = vadd.f32 %v3217_v33, %v4505_v13 }
 0x176   :  { %v4553_v63 = vadd.f32 %v3281_v38, %v2102_v58  ;;  %v3298_v42 = vpop.f32.mrb[64].mxu0 }
 0x177   :  { %v3362_v43 = vpop.f32.mrb[64].mxu1  ;;  %v3299_v44 = vpop.f32.mrb[65].mxu0 }
 0x178   :  { %v3300_v1 = vadd.f32 %v3299_v44, %v3298_v42  ;;  %v3363_v46 = vpop.f32.mrb[65].mxu1  ;;  %v3301_v47 = vpop.f32.mrb[66].mxu0 }
 0x179   :  { %v3364_v48 = vadd.f32 %v3363_v46, %v3362_v43  ;;  %v3365_v56 = vpop.f32.mrb[66].mxu1  ;;  %v3302_v51 = vpop.f32.mrb[67].mxu0 }
 0x17a   :  { %v2237_v10 = vadd.f32 %v3300_v1, %v4508_v30  ;;  %v3303_v53 = vadd.f32 %v3302_v51, %v3301_v47  ;;  %v3366_v54 = vpop.f32.mrb[67].mxu1 }
 0x17b   :  { %v3367_v57 = vadd.f32 %v3366_v54, %v3365_v56 }
 0x17c   :  { %v4556_v59 = vadd.f32 %v3364_v48, %v2237_v10  ;;  %v2240_v13 = vadd.f32 %v3303_v53, %v4511_v31 }
 0x17e   :  { %v4559_v19 = vadd.f32 %v3367_v57, %v2240_v13  ;;  %v3304_v60 = vpop.f32.mrb[68].mxu0 }
 0x17f   :  { %v3368_v61 = vpop.f32.mrb[68].mxu1  ;;  %v3305_v62 = vpop.f32.mrb[69].mxu0 }
 0x180   :  { %v3306_v21 = vadd.f32 %v3305_v62, %v3304_v60  ;;  %v3369_v2 = vpop.f32.mrb[69].mxu1  ;;  %v3307_v3 = vpop.f32.mrb[70].mxu0 }
 0x181   :  { %v3370_v4 = vadd.f32 %v3369_v2, %v3368_v61  ;;  %v3371_v16 = vpop.f32.mrb[70].mxu1  ;;  %v3308_v7 = vpop.f32.mrb[71].mxu0 }
 0x182   :  { %v2245_v30 = vadd.f32 %v3306_v21, %v4514_v49  ;;  %v3309_v8 = vadd.f32 %v3308_v7, %v3307_v3  ;;  %v3372_v9 = vpop.f32.mrb[71].mxu1 }
 0x183   :  { %v3373_v11 = vadd.f32 %v3372_v9, %v3371_v16 }
 0x184   :  { %v4562_v14 = vadd.f32 %v3370_v4, %v2245_v30  ;;  %v2248_v31 = vadd.f32 %v3309_v8, %v4517_v50 }
 0x186   :  { %v4565_v35 = vadd.f32 %v3373_v11, %v2248_v31  ;;  %v3310_v15 = vpop.f32.mrb[72].mxu0 }
 0x187   :  { %v3374_v17 = vpop.f32.mrb[72].mxu1  ;;  %v3311_v18 = vpop.f32.mrb[73].mxu0 }
 0x188   :  { %v3312_v39 = vadd.f32 %v3311_v18, %v3310_v15  ;;  %v3375_v22 = vpop.f32.mrb[73].mxu1  ;;  %v3313_v23 = vpop.f32.mrb[74].mxu0 }
 0x189   :  { %v3376_v24 = vadd.f32 %v3375_v22, %v3374_v17  ;;  %v3377_v41 = vpop.f32.mrb[74].mxu1  ;;  %v3314_v27 = vpop.f32.mrb[75].mxu0 }
 0x18a   :  { %v2253_v49 = vadd.f32 %v3312_v39, %v4520_v5  ;;  %v3315_v28 = vadd.f32 %v3314_v27, %v3313_v23  ;;  %v3378_v29 = vpop.f32.mrb[75].mxu1 }
 0x18b   :  { %v3379_v36 = vadd.f32 %v3378_v29, %v3377_v41 }
 0x18c   :  { %v4568_v32 = vadd.f32 %v3376_v24, %v2253_v49  ;;  %v2256_v50 = vadd.f32 %v3315_v28, %v4523_v6 }
 0x18e   :  { %v4571_v55 = vadd.f32 %v3379_v36, %v2256_v50  ;;  %v3316_v33 = vpop.f32.mrb[76].mxu0 }
 0x18f   :  { %v3380_v34 = vpop.f32.mrb[76].mxu1  ;;  %v3317_v38 = vpop.f32.mrb[77].mxu0 }
 0x190   :  { %v3318_v58 = vadd.f32 %v3317_v38, %v3316_v33  ;;  %v3381_v42 = vpop.f32.mrb[77].mxu1  ;;  %v3319_v43 = vpop.f32.mrb[78].mxu0 }
 0x191   :  { %v3382_v44 = vadd.f32 %v3381_v42, %v3380_v34  ;;  %v3383_v1 = vpop.f32.mrb[78].mxu1  ;;  %v3320_v46 = vpop.f32.mrb[79].mxu0 }
 0x192   :  { %v2261_v5 = vadd.f32 %v3318_v58, %v4526_v25  ;;  %v3321_v47 = vadd.f32 %v3320_v46, %v3319_v43  ;;  %v3384_v48 = vpop.f32.mrb[79].mxu1 }
 0x193   :  { %v3385_v56 = vadd.f32 %v3384_v48, %v3383_v1 }
 0x194   :  { %v4574_v51 = vadd.f32 %v3382_v44, %v2261_v5  ;;  %v2264_v6 = vadd.f32 %v3321_v47, %v4529_v26 }
 0x196   :  { %v4577_v10 = vadd.f32 %v3385_v56, %v2264_v6  ;;  %v3322_v53 = vpop.f32.mrb[80].mxu0 }
 0x197   :  { %v3386_v54 = vpop.f32.mrb[80].mxu1  ;;  %v3323_v57 = vpop.f32.mrb[81].mxu0 }
 0x198   :  { %v3324_v13 = vadd.f32 %v3323_v57, %v3322_v53  ;;  %v3387_v60 = vpop.f32.mrb[81].mxu1  ;;  %v3325_v61 = vpop.f32.mrb[82].mxu0 }
 0x199   :  { %v3388_v62 = vadd.f32 %v3387_v60, %v3386_v54  ;;  %v3389_v21 = vpop.f32.mrb[82].mxu1  ;;  %v3326_v2 = vpop.f32.mrb[83].mxu0 }
 0x19a   :  { %v2269_v25 = vadd.f32 %v3324_v13, %v4532_v45  ;;  %v3327_v3 = vadd.f32 %v3326_v2, %v3325_v61  ;;  %v3390_v4 = vpop.f32.mrb[83].mxu1 }
 0x19b   :  { %v3391_v16 = vadd.f32 %v3390_v4, %v3389_v21 }
 0x19c   :  { %v4580_v7 = vadd.f32 %v3388_v62, %v2269_v25  ;;  %v2272_v26 = vadd.f32 %v3327_v3, %v4535_v52 }
 0x19e   :  { %v4583_v30 = vadd.f32 %v3391_v16, %v2272_v26  ;;  %v3328_v8 = vpop.f32.mrb[84].mxu0 }
 0x19f   :  { %v3392_v9 = vpop.f32.mrb[84].mxu1  ;;  %v3329_v11 = vpop.f32.mrb[85].mxu0 }
 0x1a0   :  { %v3330_v31 = vadd.f32 %v3329_v11, %v3328_v8  ;;  %v3393_v15 = vpop.f32.mrb[85].mxu1  ;;  %v3331_v17 = vpop.f32.mrb[86].mxu0 }
 0x1a1   :  { %v3394_v18 = vadd.f32 %v3393_v15, %v3392_v9  ;;  %v3395_v39 = vpop.f32.mrb[86].mxu1  ;;  %v3332_v22 = vpop.f32.mrb[87].mxu0 }
 0x1a2   :  { %v2277_v45 = vadd.f32 %v3330_v31, %v4538_v0  ;;  %v3333_v23 = vadd.f32 %v3332_v22, %v3331_v17  ;;  %v3396_v24 = vpop.f32.mrb[87].mxu1 }
 0x1a3   :  { %v3397_v41 = vadd.f32 %v3396_v24, %v3395_v39 }
 0x1a4   :  { %v4586_v27 = vadd.f32 %v3394_v18, %v2277_v45  ;;  %v2280_v52 = vadd.f32 %v3333_v23, %v4541_v12 }
 0x1a6   :  { %v4589_v49 = vadd.f32 %v3397_v41, %v2280_v52  ;;  %v3334_v28 = vpop.f32.mrb[88].mxu0 }
 0x1a7   :  { %v3398_v29 = vpop.f32.mrb[88].mxu1  ;;  %v3335_v36 = vpop.f32.mrb[89].mxu0 }
 0x1a8   :  { %v3336_v50 = vadd.f32 %v3335_v36, %v3334_v28  ;;  %v3399_v33 = vpop.f32.mrb[89].mxu1  ;;  %v3337_v34 = vpop.f32.mrb[90].mxu0 }
 0x1a9   :  { %v3400_v38 = vadd.f32 %v3399_v33, %v3398_v29  ;;  %v3401_v58 = vpop.f32.mrb[90].mxu1  ;;  %v3338_v42 = vpop.f32.mrb[91].mxu0 }
 0x1aa   :  { %v2285_v0 = vadd.f32 %v3336_v50, %v4544_v20  ;;  %v3339_v43 = vadd.f32 %v3338_v42, %v3337_v34  ;;  %v3402_v44 = vpop.f32.mrb[91].mxu1 }
 0x1ab   :  { %v3403_v1 = vadd.f32 %v3402_v44, %v3401_v58 }
 0x1ac   :  { %v4592_v46 = vadd.f32 %v3400_v38, %v2285_v0  ;;  %v2288_v12 = vadd.f32 %v3339_v43, %v4547_v37 }
 0x1ae   :  { %v4595_v5 = vadd.f32 %v3403_v1, %v2288_v12  ;;  %v3340_v47 = vpop.f32.mrb[92].mxu0 }
 0x1af   :  { %v3404_v48 = vpop.f32.mrb[92].mxu1  ;;  %v3341_v56 = vpop.f32.mrb[93].mxu0 }
 0x1b0   :  { %v3342_v6 = vadd.f32 %v3341_v56, %v3340_v47  ;;  %v3405_v53 = vpop.f32.mrb[93].mxu1  ;;  %v3343_v54 = vpop.f32.mrb[94].mxu0 }
 0x1b1   :  { %v3406_v57 = vadd.f32 %v3405_v53, %v3404_v48  ;;  %v3407_v13 = vpop.f32.mrb[94].mxu1  ;;  %v3344_v60 = vpop.f32.mrb[95].mxu0 }
 0x1b2   :  { %v2293_v20 = vadd.f32 %v3342_v6, %v4550_v40  ;;  %v3345_v61 = vadd.f32 %v3344_v60, %v3343_v54  ;;  %v3408_v62 = vpop.f32.mrb[95].mxu1 }
 0x1b3   :  { %v3409_v21 = vadd.f32 %v3408_v62, %v3407_v13 }
 0x1b4   :  { %v4598_v2 = vadd.f32 %v3406_v57, %v2293_v20  ;;  %v2296_v37 = vadd.f32 %v3345_v61, %v4553_v63 }
 0x1b6   :  { %v4601_v25 = vadd.f32 %v3409_v21, %v2296_v37  ;;  %v3426_v3 = vpop.f32.mrb[96].mxu0 }
 0x1b7   :  { %v3490_v4 = vpop.f32.mrb[96].mxu1  ;;  %v3427_v16 = vpop.f32.mrb[97].mxu0 }
 0x1b8   :  { %v3428_v26 = vadd.f32 %v3427_v16, %v3426_v3  ;;  %v3491_v8 = vpop.f32.mrb[97].mxu1  ;;  %v3429_v9 = vpop.f32.mrb[98].mxu0 }
 0x1b9   :  { %v3492_v11 = vadd.f32 %v3491_v8, %v3490_v4  ;;  %v3493_v31 = vpop.f32.mrb[98].mxu1  ;;  %v3430_v15 = vpop.f32.mrb[99].mxu0 }
 0x1ba   :  { %v2431_v40 = vadd.f32 %v3428_v26, %v4556_v59  ;;  %v3431_v17 = vadd.f32 %v3430_v15, %v3429_v9  ;;  %v3494_v18 = vpop.f32.mrb[99].mxu1 }
 0x1bb   :  { %v3495_v39 = vadd.f32 %v3494_v18, %v3493_v31 }
 0x1bc   :  { %v2528_v22 = vadd.f32 %v3492_v11, %v2431_v40  ;;  %v2434_v45 = vadd.f32 %v3431_v17, %v4559_v19 }
 0x1be   :  { %v2531_v63 = vadd.f32 %v3495_v39, %v2434_v45  ;;  %v3432_v23 = vpop.f32.mrb[100].mxu0  ;;  %v2590_v52 = vmax.f32 %v2528_v22, 0.0 }
 0x1bf   :  { %v3496_v24 = vpop.f32.mrb[100].mxu1  ;;  %v3433_v41 = vpop.f32.mrb[101].mxu0 }
 0x1c0   :  { %v2591_v28 = vmax.f32 %v2531_v63, 0.0  ;;  %v3434_v29 = vadd.f32 %v3433_v41, %v3432_v23  ;;  %v3497_v36 = vpop.f32.mrb[101].mxu1  ;;  %v3435_v50 = vpop.f32.mrb[102].mxu0 }
 0x1c1   :  { %v3498_v33 = vadd.f32 %v3497_v36, %v3496_v24  ;;  %v3499_v34 = vpop.f32.mrb[102].mxu1  ;;  %v3436_v38 = vpop.f32.mrb[103].mxu0 }
 0x1c2   :  { %v2982_v58 = vpack.c.bf16 %v2591_v28, %v2590_v52  ;;  %v2439_v59 = vadd.f32 %v3434_v29, %v4562_v14  ;;  %v3437_v42 = vadd.f32 %v3436_v38, %v3435_v50  ;;  %v3500_v0 = vpop.f32.mrb[103].mxu1 }
 0x1c3   :  { %v3501_v43 = vadd.f32 %v3500_v0, %v3499_v34 }
 0x1c4   :  { %2983 = vst [vmem:[%s4646_s3] sm:$0xff] %v2982_v58   ;;  %v2536_v19 = vadd.f32 %v3498_v33, %v2439_v59  ;;  %v2442_v44 = vadd.f32 %v3437_v42, %v4565_v35 }
 0x1c6   :  { %v2539_v1 = vadd.f32 %v3501_v43, %v2442_v44  ;;  %v3438_v12 = vpop.f32.mrb[104].mxu0  ;;  %v2592_v56 = vmax.f32 %v2536_v19, 0.0 }
 0x1c7   :  { %v3502_v47 = vpop.f32.mrb[104].mxu1  ;;  %v3439_v48 = vpop.f32.mrb[105].mxu0 }
 0x1c8   :  { %v2593_v6 = vmax.f32 %v2539_v1, 0.0  ;;  %v3440_v53 = vadd.f32 %v3439_v48, %v3438_v12  ;;  %v3503_v54 = vpop.f32.mrb[105].mxu1  ;;  %v3441_v57 = vpop.f32.mrb[106].mxu0 }
 0x1c9   :  { %v3504_v14 = vadd.f32 %v3503_v54, %v3502_v47  ;;  %v3505_v13 = vpop.f32.mrb[106].mxu1  ;;  %v3442_v60 = vpop.f32.mrb[107].mxu0 }
 0x1ca   :  { %v2987_v20 = vpack.c.bf16 %v2593_v6, %v2592_v56  ;;  %v2447_v61 = vadd.f32 %v3440_v53, %v4568_v32  ;;  %v3443_v62 = vadd.f32 %v3442_v60, %v3441_v57  ;;  %v3506_v21 = vpop.f32.mrb[107].mxu1 }
 0x1cb   :  { %v3507_v37 = vadd.f32 %v3506_v21, %v3505_v13 }
 0x1cc   :  { %3019 = vst [vmem:[%s4646_s3 + $0x8] sm:$0xff] %v2987_v20   ;;  %v2544_v35 = vadd.f32 %v3504_v14, %v2447_v61  ;;  %v2450_v3 = vadd.f32 %v3443_v62, %v4571_v55 }
 0x1ce   :  { %v2547_v4 = vadd.f32 %v3507_v37, %v2450_v3  ;;  %v3444_v16 = vpop.f32.mrb[108].mxu0  ;;  %v2594_v9 = vmax.f32 %v2544_v35, 0.0 }
 0x1cf   :  { %v3508_v26 = vpop.f32.mrb[108].mxu1  ;;  %v3445_v8 = vpop.f32.mrb[109].mxu0 }
 0x1d0   :  { %v2595_v11 = vmax.f32 %v2547_v4, 0.0  ;;  %v3446_v31 = vadd.f32 %v3445_v8, %v3444_v16  ;;  %v3509_v15 = vpop.f32.mrb[109].mxu1  ;;  %v3447_v40 = vpop.f32.mrb[110].mxu0 }
 0x1d1   :  { %v3510_v32 = vadd.f32 %v3509_v15, %v3508_v26  ;;  %v3511_v17 = vpop.f32.mrb[110].mxu1  ;;  %v3448_v18 = vpop.f32.mrb[111].mxu0 }
 0x1d2   :  { %v2992_v39 = vpack.c.bf16 %v2595_v11, %v2594_v9  ;;  %v2455_v22 = vadd.f32 %v3446_v31, %v4574_v51  ;;  %v3449_v45 = vadd.f32 %v3448_v18, %v3447_v40  ;;  %v3512_v63 = vpop.f32.mrb[111].mxu1 }
 0x1d3   :  { %v3513_v23 = vadd.f32 %v3512_v63, %v3511_v17 }
 0x1d4   :  { %3020 = vst [vmem:[%s4646_s3 + $0x10] sm:$0xff] %v2992_v39   ;;  %v2552_v55 = vadd.f32 %v3510_v32, %v2455_v22  ;;  %v2458_v24 = vadd.f32 %v3449_v45, %v4577_v10 }
 0x1d6   :  { %v2555_v41 = vadd.f32 %v3513_v23, %v2458_v24  ;;  %v3450_v52 = vpop.f32.mrb[112].mxu0  ;;  %v2596_v36 = vmax.f32 %v2552_v55, 0.0 }
 0x1d7   :  { %v3514_v28 = vpop.f32.mrb[112].mxu1  ;;  %v3451_v29 = vpop.f32.mrb[113].mxu0 }
 0x1d8   :  { %v2597_v50 = vmax.f32 %v2555_v41, 0.0  ;;  %v3452_v33 = vadd.f32 %v3451_v29, %v3450_v52  ;;  %v3515_v34 = vpop.f32.mrb[113].mxu1  ;;  %v3453_v38 = vpop.f32.mrb[114].mxu0 }
 0x1d9   :  { %v3516_v51 = vadd.f32 %v3515_v34, %v3514_v28  ;;  %v3517_v58 = vpop.f32.mrb[114].mxu1  ;;  %v3454_v59 = vpop.f32.mrb[115].mxu0 }
 0x1da   :  { %v2997_v42 = vpack.c.bf16 %v2597_v50, %v2596_v36  ;;  %v2463_v0 = vadd.f32 %v3452_v33, %v4580_v7  ;;  %v3455_v43 = vadd.f32 %v3454_v59, %v3453_v38  ;;  %v3518_v19 = vpop.f32.mrb[115].mxu1 }
 0x1db   :  { %v3519_v44 = vadd.f32 %v3518_v19, %v3517_v58 }
 0x1dc   :  { %3021 = vst [vmem:[%s4646_s3 + $0x18] sm:$0xff] %v2997_v42   ;;  %v2560_v10 = vadd.f32 %v3516_v51, %v2463_v0  ;;  %v2466_v1 = vadd.f32 %v3455_v43, %v4583_v30 }
 0x1de   :  { %v2563_v12 = vadd.f32 %v3519_v44, %v2466_v1  ;;  %v3456_v47 = vpop.f32.mrb[116].mxu0  ;;  %v2598_v6 = vmax.f32 %v2560_v10, 0.0 }
 0x1df   :  { %v3520_v48 = vpop.f32.mrb[116].mxu1  ;;  %v3457_v56 = vpop.f32.mrb[117].mxu0 }
 0x1e0   :  { %v2599_v53 = vmax.f32 %v2563_v12, 0.0  ;;  %v3458_v54 = vadd.f32 %v3457_v56, %v3456_v47  ;;  %v3521_v57 = vpop.f32.mrb[117].mxu1  ;;  %v3459_v14 = vpop.f32.mrb[118].mxu0 }
 0x1e1   :  { %v3522_v7 = vadd.f32 %v3521_v57, %v3520_v48  ;;  %v3523_v13 = vpop.f32.mrb[118].mxu1  ;;  %v3460_v60 = vpop.f32.mrb[119].mxu0 }
 0x1e2   :  { %v3002_v20 = vpack.c.bf16 %v2599_v53, %v2598_v6  ;;  %v2471_v61 = vadd.f32 %v3458_v54, %v4586_v27  ;;  %v3461_v62 = vadd.f32 %v3460_v60, %v3459_v14  ;;  %v3524_v21 = vpop.f32.mrb[119].mxu1 }
 0x1e3   :  { %v3525_v37 = vadd.f32 %v3524_v21, %v3523_v13 }
 0x1e4   :  { %3022 = vst [vmem:[%s4646_s3 + $0x20] sm:$0xff] %v3002_v20   ;;  %v2568_v30 = vadd.f32 %v3522_v7, %v2471_v61  ;;  %v2474_v35 = vadd.f32 %v3461_v62, %v4589_v49 }
 0x1e6   :  { %v2571_v3 = vadd.f32 %v3525_v37, %v2474_v35  ;;  %v3462_v4 = vpop.f32.mrb[120].mxu0  ;;  %v2600_v8 = vmax.f32 %v2568_v30, 0.0 }
 0x1e7   :  { %v3526_v16 = vpop.f32.mrb[120].mxu1  ;;  %v3463_v26 = vpop.f32.mrb[121].mxu0 }
 0x1e8   :  { %v2601_v9 = vmax.f32 %v2571_v3, 0.0  ;;  %v3464_v11 = vadd.f32 %v3463_v26, %v3462_v4  ;;  %v3527_v31 = vpop.f32.mrb[121].mxu1  ;;  %v3465_v15 = vpop.f32.mrb[122].mxu0 }
 0x1e9   :  { %v3528_v27 = vadd.f32 %v3527_v31, %v3526_v16  ;;  %v3529_v40 = vpop.f32.mrb[122].mxu1  ;;  %v3466_v32 = vpop.f32.mrb[123].mxu0 }
 0x1ea   :  { %v3007_v17 = vpack.c.bf16 %v2601_v9, %v2600_v8  ;;  %v2479_v18 = vadd.f32 %v3464_v11, %v4592_v46  ;;  %v3467_v39 = vadd.f32 %v3466_v32, %v3465_v15  ;;  %v3530_v22 = vpop.f32.mrb[123].mxu1 }
 0x1eb   :  { %v3531_v45 = vadd.f32 %v3530_v22, %v3529_v40 }
 0x1ec   :  { %3023 = vst [vmem:[%s4646_s3 + $0x28] sm:$0xff] %v3007_v17   ;;  %v2576_v49 = vadd.f32 %v3528_v27, %v2479_v18  ;;  %v2482_v63 = vadd.f32 %v3467_v39, %v4595_v5 }
 0x1ee   :  { %v2579_v23 = vadd.f32 %v3531_v45, %v2482_v63  ;;  %v3468_v55 = vpop.f32.mrb[124].mxu0  ;;  %v2602_v52 = vmax.f32 %v2576_v49, 0.0 }
 0x1ef   :  { %v3532_v24 = vpop.f32.mrb[124].mxu1  ;;  %v3469_v41 = vpop.f32.mrb[125].mxu0 }
 0x1f0   :  { %v2603_v28 = vmax.f32 %v2579_v23, 0.0  ;;  %v3470_v29 = vadd.f32 %v3469_v41, %v3468_v55  ;;  %v3533_v36 = vpop.f32.mrb[125].mxu1  ;;  %v3471_v50 = vpop.f32.mrb[126].mxu0 }
 0x1f1   :  { %v3534_v46 = vadd.f32 %v3533_v36, %v3532_v24  ;;  %v3535_v33 = vpop.f32.mrb[126].mxu1  ;;  %v3472_v34 = vpop.f32.mrb[127].mxu0 }
 0x1f2   :  { %v3012_v38 = vpack.c.bf16 %v2603_v28, %v2602_v52  ;;  %v2487_v51 = vadd.f32 %v3470_v29, %v4598_v2  ;;  %v3473_v58 = vadd.f32 %v3472_v34, %v3471_v50  ;;  %v3536_v59 = vpop.f32.mrb[127].mxu1 }
 0x1f3   :  { %v3537_v42 = vadd.f32 %v3536_v59, %v3535_v33 }
 0x1f4   :  { %3024 = vst [vmem:[%s4646_s3 + $0x30] sm:$0xff] %v3012_v38   ;;  %v2584_v5 = vadd.f32 %v3534_v46, %v2487_v51  ;;  %v2490_v0 = vadd.f32 %v3473_v58, %v4601_v25 }
 0x1f6   :  { %v2587_v43 = vadd.f32 %v3537_v42, %v2490_v0  ;;  %v2604_v19 = vmax.f32 %v2584_v5, 0.0 }
 0x1f8   :  { %v2605_v44 = vmax.f32 %v2587_v43, 0.0 }
 0x1fa   :  { %v3017_v10 = vpack.c.bf16 %v2605_v44, %v2604_v19 }
 0x1fc   :  { %3025 = vst [vmem:[%s4646_s3 + $0x38] sm:$0xff] %v3017_v10  }

// kernel: vqvae_forward.15
= control target key start
LH: loop header
LB: loop body
LE: loop exit
PB: predicated region body
PF: predicated region fallthrough
CT: control target
= control target key end

     0   :  { %s2699_s1 = inlined_call_operand.vmem [shape: bf16[2048,128], index: 1, kind: input, shape index: {}]   ;;  %s2700_s0 = inlined_call_operand.vmem [shape: bf16[32,2048], index: 0, kind: input, shape index: {}]   ;;  %s2701_s2 = inlined_call_operand.vmem [shape: f32[1,128], index: 2, kind: input, shape index: {}]   ;;  %s2702_s3 = inlined_call_operand.vmem [shape: bf16[32,128], index: 3, kind: output, shape index: {}]  }
   0x1   :  { %v2062_v0 = vld [vmem:[%s2699_s1 + $0x40] sm:$0xff]   ;;  %v2066_v4 = vld [vmem:[%s2699_s1 + $0x48] sm:$0xff]   ;;  %v2070_v8 = vld [vmem:[%s2699_s1 + $0x50] sm:$0xff]  }
   0x2   :  { %v2063_v1 = vld [vmem:[%s2699_s1 + $0xc0] sm:$0xff]   ;;  %1838 = vmatprep.subr.bf16.mxu0 %v2062_v0  ;;  %v2067_v5 = vld [vmem:[%s2699_s1 + $0xc8] sm:$0xff]   ;;  %v2071_v9 = vld [vmem:[%s2699_s1 + $0xd0] sm:$0xff]  }
   0x3   :  { %v2064_v2 = vld [vmem:[%s2699_s1] sm:$0xff]   ;;  %1866 = vmatprep.subr.bf16.mxu1 %v2063_v1  ;;  %v2068_v6 = vld [vmem:[%s2699_s1 + $0x8] sm:$0xff]   ;;  %v2072_v10 = vld [vmem:[%s2699_s1 + $0x10] sm:$0xff]  }
   0x4   :  { %v2065_v3 = vld [vmem:[%s2699_s1 + $0x80] sm:$0xff]   ;;  %1839 = vmatpush3.bf16.msra.mxu0 %v2064_v2  ;;  %v2069_v7 = vld [vmem:[%s2699_s1 + $0x88] sm:$0xff]   ;;  %v2073_v11 = vld [vmem:[%s2699_s1 + $0x90] sm:$0xff]  }
   0x5   :  { %1867 = vmatpush3.bf16.msra.mxu1 %v2065_v3  ;;  %1840 = vmatprep.subr.bf16.mxu0 %v2066_v4  ;;  %v2074_v12 = vld [vmem:[%s2699_s1 + $0x58] sm:$0xff]   ;;  %v2078_v16 = vld [vmem:[%s2699_s1 + $0x60] sm:$0xff]   ;;  %v2082_v20 = vld [vmem:[%s2699_s1 + $0x68] sm:$0xff]  }
   0x6   :  { %1868 = vmatprep.subr.bf16.mxu1 %v2067_v5  ;;  %v2075_v13 = vld [vmem:[%s2699_s1 + $0xd8] sm:$0xff]   ;;  %v2079_v17 = vld [vmem:[%s2699_s1 + $0xe0] sm:$0xff]   ;;  %v2083_v21 = vld [vmem:[%s2699_s1 + $0xe8] sm:$0xff]  }
   0x7   :  { %v2076_v14 = vld [vmem:[%s2699_s1 + $0x18] sm:$0xff]   ;;  %v2080_v18 = vld [vmem:[%s2699_s1 + $0x20] sm:$0xff]   ;;  %v2084_v22 = vld [vmem:[%s2699_s1 + $0x28] sm:$0xff]  }
   0x8   :  { %1841 = vmatpush3.bf16.msra.mxu0 %v2068_v6  ;;  %v2077_v15 = vld [vmem:[%s2699_s1 + $0x98] sm:$0xff]   ;;  %v2081_v19 = vld [vmem:[%s2699_s1 + $0xa0] sm:$0xff]   ;;  %v2085_v23 = vld [vmem:[%s2699_s1 + $0xa8] sm:$0xff]  }
   0x9   :  { %1869 = vmatpush3.bf16.msra.mxu1 %v2069_v7  ;;  %1842 = vmatprep.subr.bf16.mxu0 %v2070_v8  ;;  %v2086_v24 = vld [vmem:[%s2699_s1 + $0x70] sm:$0xff]   ;;  %v2090_v28 = vld [vmem:[%s2699_s1 + $0x78] sm:$0xff]   ;;  %v15_v32 = vld [vmem:[%s2700_s0] sm:$0xff] }
   0xa   :  { %1870 = vmatprep.subr.bf16.mxu1 %v2071_v9  ;;  %v2087_v25 = vld [vmem:[%s2699_s1 + $0xf0] sm:$0xff]   ;;  %v2091_v29 = vld [vmem:[%s2699_s1 + $0xf8] sm:$0xff]   ;;  %v23_v33 = vld [vmem:[%s2700_s0 + $0x40] sm:$0xff] }
   0xb   :  { %v2088_v26 = vld [vmem:[%s2699_s1 + $0x30] sm:$0xff]   ;;  %v2092_v30 = vld [vmem:[%s2699_s1 + $0x38] sm:$0xff]   ;;  %v16_v34 = vld [vmem:[%s2700_s0 + $0x8] sm:$0xff]  ;;  %v1659_v35 = vcombine.low %v15_v32, %v23_v33  ;;  %v1660_v36 = vcombine.high %v15_v32, %v23_v33 }
   0xc   :  { %1843 = vmatpush3.bf16.msra.mxu0 %v2072_v10  ;;  %v2089_v27 = vld [vmem:[%s2699_s1 + $0xb0] sm:$0xff]   ;;  %v2093_v31 = vld [vmem:[%s2699_s1 + $0xb8] sm:$0xff]   ;;  %v24_v37 = vld [vmem:[%s2700_s0 + $0x48] sm:$0xff] }
   0xd   :  { %1871 = vmatpush3.bf16.msra.mxu1 %v2073_v11  ;;  %1844 = vmatprep.subr.bf16.mxu0 %v2074_v12  ;;  %v1661_v38 = vcombine.low %v16_v34, %v24_v37  ;;  %v1662_v39 = vcombine.high %v16_v34, %v24_v37  ;;  %v2094_v40 = vld [vmem:[%s2699_s1 + $0x140] sm:$0xff]   ;;  %v2098_v44 = vld [vmem:[%s2699_s1 + $0x148] sm:$0xff]   ;;  %v2102_v48 = vld [vmem:[%s2699_s1 + $0x150] sm:$0xff]  }
   0xe   :  { %1872 = vmatprep.subr.bf16.mxu1 %v2075_v13  ;;  %1270 = vmatprep.mubr.bf16.mxu0 %v1660_v36  ;;  %v2095_v41 = vld [vmem:[%s2699_s1 + $0x1c0] sm:$0xff]   ;;  %v2099_v45 = vld [vmem:[%s2699_s1 + $0x1c8] sm:$0xff]   ;;  %v2103_v49 = vld [vmem:[%s2699_s1 + $0x1d0] sm:$0xff]  }
   0xf   :  { %1319 = vmatprep.mubr.bf16.mxu1 %v1662_v39  ;;  %v2096_v42 = vld [vmem:[%s2699_s1 + $0x100] sm:$0xff]   ;;  %v2100_v46 = vld [vmem:[%s2699_s1 + $0x108] sm:$0xff]   ;;  %v2104_v50 = vld [vmem:[%s2699_s1 + $0x110] sm:$0xff]  }
  0x10   :  { %1845 = vmatpush3.bf16.msra.mxu0 %v2076_v14  ;;  %v2097_v43 = vld [vmem:[%s2699_s1 + $0x180] sm:$0xff]   ;;  %v2101_v47 = vld [vmem:[%s2699_s1 + $0x188] sm:$0xff]   ;;  %v2105_v51 = vld [vmem:[%s2699_s1 + $0x190] sm:$0xff]  }
  0x11   :  { %1873 = vmatpush3.bf16.msra.mxu1 %v2077_v15  ;;  %1846 = vmatprep.subr.bf16.mxu0 %v2078_v16  ;;  %v2106_v52 = vld [vmem:[%s2699_s1 + $0x158] sm:$0xff]   ;;  %v2110_v56 = vld [vmem:[%s2699_s1 + $0x160] sm:$0xff]   ;;  %v2114_v60 = vld [vmem:[%s2699_s1 + $0x168] sm:$0xff]  }
  0x12   :  { %1874 = vmatprep.subr.bf16.mxu1 %v2079_v17  ;;  %v2107_v53 = vld [vmem:[%s2699_s1 + $0x1d8] sm:$0xff]   ;;  %v2111_v57 = vld [vmem:[%s2699_s1 + $0x1e0] sm:$0xff]   ;;  %v2115_v61 = vld [vmem:[%s2699_s1 + $0x1e8] sm:$0xff]  }
  0x13   :  { %v2108_v54 = vld [vmem:[%s2699_s1 + $0x118] sm:$0xff]   ;;  %v2112_v58 = vld [vmem:[%s2699_s1 + $0x120] sm:$0xff]   ;;  %v2116_v1 = vld [vmem:[%s2699_s1 + $0x128] sm:$0xff]  }
  0x14   :  { %1847 = vmatpush3.bf16.msra.mxu0 %v2080_v18  ;;  %v2109_v55 = vld [vmem:[%s2699_s1 + $0x198] sm:$0xff]   ;;  %v2113_v59 = vld [vmem:[%s2699_s1 + $0x1a0] sm:$0xff]   ;;  %v2117_v3 = vld [vmem:[%s2699_s1 + $0x1a8] sm:$0xff]  }
  0x15   :  { %1875 = vmatpush3.bf16.msra.mxu1 %v2081_v19  ;;  %1848 = vmatprep.subr.bf16.mxu0 %v2082_v20  ;;  %v31_v62 = vld [vmem:[%s2700_s0 + $0x80] sm:$0xff]  ;;  %v32_v4 = vld [vmem:[%s2700_s0 + $0x88] sm:$0xff]  ;;  %v2118_v8 = vld [vmem:[%s2699_s1 + $0x170] sm:$0xff]  }
  0x16   :  { %1876 = vmatprep.subr.bf16.mxu1 %v2083_v21  ;;  %v39_v63 = vld [vmem:[%s2700_s0 + $0xc0] sm:$0xff]  ;;  %v40_v5 = vld [vmem:[%s2700_s0 + $0xc8] sm:$0xff]  ;;  %v2119_v9 = vld [vmem:[%s2699_s1 + $0x1f0] sm:$0xff]  }
  0x17   :  { %v1676_v0 = vcombine.high %v31_v62, %v39_v63  ;;  %v1675_v2 = vcombine.low %v31_v62, %v39_v63  ;;  %v1678_v6 = vcombine.high %v32_v4, %v40_v5  ;;  %v1677_v7 = vcombine.low %v32_v4, %v40_v5  ;;  %v2120_v10 = vld [vmem:[%s2699_s1 + $0x130] sm:$0xff]   ;;  %v2122_v12 = vld [vmem:[%s2699_s1 + $0x178] sm:$0xff]   ;;  %v20_v4 = vld [vmem:[%s2700_s0 + $0x28] sm:$0xff] }
  0x18   :  { %1849 = vmatpush3.bf16.msra.mxu0 %v2084_v22  ;;  %v2121_v11 = vld [vmem:[%s2699_s1 + $0x1b0] sm:$0xff]   ;;  %v2123_v13 = vld [vmem:[%s2699_s1 + $0x1f8] sm:$0xff]   ;;  %v28_v5 = vld [vmem:[%s2700_s0 + $0x68] sm:$0xff] }
  0x19   :  { %1877 = vmatpush3.bf16.msra.mxu1 %v2085_v23  ;;  %1850 = vmatprep.subr.bf16.mxu0 %v2086_v24  ;;  %v2124_v14 = vld [vmem:[%s2699_s1 + $0x138] sm:$0xff]   ;;  %v17_v16 = vld [vmem:[%s2700_s0 + $0x10] sm:$0xff]  ;;  %v2126_v24 = vld [vmem:[%s2699_s1 + $0x240] sm:$0xff]  }
  0x1a   :  { %1878 = vmatprep.subr.bf16.mxu1 %v2087_v25  ;;  %v2125_v15 = vld [vmem:[%s2699_s1 + $0x1b8] sm:$0xff]   ;;  %v25_v17 = vld [vmem:[%s2700_s0 + $0x50] sm:$0xff]  ;;  %v2127_v25 = vld [vmem:[%s2699_s1 + $0x2c0] sm:$0xff]  }
  0x1b   :  { %v18_v18 = vld [vmem:[%s2700_s0 + $0x18] sm:$0xff]  ;;  %v1663_v20 = vcombine.low %v17_v16, %v25_v17  ;;  %v1664_v21 = vcombine.high %v17_v16, %v25_v17  ;;  %v33_v32 = vld [vmem:[%s2700_s0 + $0x90] sm:$0xff]  ;;  %v35_v16 = vld [vmem:[%s2700_s0 + $0xa0] sm:$0xff] }
  0x1c   :  { %1851 = vmatpush3.bf16.msra.mxu0 %v2088_v26  ;;  %v26_v19 = vld [vmem:[%s2700_s0 + $0x58] sm:$0xff]  ;;  %v2128_v26 = vld [vmem:[%s2699_s1 + $0x200] sm:$0xff]   ;;  %v41_v33 = vld [vmem:[%s2700_s0 + $0xd0] sm:$0xff] }
  0x1d   :  { %1879 = vmatpush3.bf16.msra.mxu1 %v2089_v27  ;;  %1852 = vmatprep.subr.bf16.mxu0 %v2090_v28  ;;  %v1665_v22 = vcombine.low %v18_v18, %v26_v19  ;;  %v1666_v23 = vcombine.high %v18_v18, %v26_v19  ;;  %v2129_v27 = vld [vmem:[%s2699_s1 + $0x280] sm:$0xff]   ;;  %v2130_v28 = vld [vmem:[%s2699_s1 + $0x248] sm:$0xff]   ;;  %v1680_v34 = vcombine.high %v33_v32, %v41_v33  ;;  %v2134_v36 = vld [vmem:[%s2699_s1 + $0x250] sm:$0xff]  }
  0x1e   :  { %1880 = vmatprep.subr.bf16.mxu1 %v2091_v29  ;;  %v2131_v29 = vld [vmem:[%s2699_s1 + $0x2c8] sm:$0xff]   ;;  %v2135_v37 = vld [vmem:[%s2699_s1 + $0x2d0] sm:$0xff]   ;;  %v42_v39 = vld [vmem:[%s2700_s0 + $0xd8] sm:$0xff] }
  0x1f   :  { %v2156_v62 = vld [vmem:[%s2699_s1 + $0x238] sm:$0xff]   ;;  %v43_v17 = vld [vmem:[%s2700_s0 + $0xe0] sm:$0xff] }
  0x20   :  { %1853 = vmatpush3.bf16.msra.mxu0 %v2092_v30  ;;  %v2132_v30 = vld [vmem:[%s2699_s1 + $0x208] sm:$0xff]   ;;  %v2157_v63 = vld [vmem:[%s2699_s1 + $0x2b8] sm:$0xff]   ;;  %v1684_v18 = vcombine.high %v35_v16, %v43_v17  ;;  %v1683_v19 = vcombine.low %v35_v16, %v43_v17 }
  0x21   :  { %1881 = vmatpush3.bf16.msra.mxu1 %v2093_v31  ;;  %1894 = vmatprep.subr.bf16.mxu0 %v2094_v40  ;;  %v2133_v31 = vld [vmem:[%s2699_s1 + $0x288] sm:$0xff]  }
  0x22   :  { %1922 = vmatprep.subr.bf16.mxu1 %v2095_v41  ;;  %v2136_v41 = vld [vmem:[%s2699_s1 + $0x210] sm:$0xff]  }
  0x23   :  { %1271 = vmatmul.mubr.bf16.vlgmr.msra.gmra.mrb[0].mxu0 %v1659_v35  ;;  %v1679_v35 = vcombine.low %v33_v32, %v41_v33  ;;  %v2174_v32 = vld [vmem:[%s2699_s1 + $0x360] sm:$0xff]  }
  0x24   :  { %1320 = vmatmul.mubr.bf16.vlgmr.msra.gmra.mrb[0].mxu1 %v1661_v38  ;;  %1895 = vmatpush3.bf16.msra.mxu0 %v2096_v42  ;;  %v34_v38 = vld [vmem:[%s2700_s0 + $0x98] sm:$0xff]  ;;  %v2175_v33 = vld [vmem:[%s2699_s1 + $0x3e0] sm:$0xff]  }
  0x25   :  { %1923 = vmatpush3.bf16.msra.mxu1 %v2097_v43  ;;  %1896 = vmatprep.subr.bf16.mxu0 %v2098_v44  ;;  %v1682_v40 = vcombine.high %v34_v38, %v42_v39  ;;  %v1681_v42 = vcombine.low %v34_v38, %v42_v39  ;;  %v2137_v43 = vld [vmem:[%s2699_s1 + $0x290] sm:$0xff]   ;;  %v2138_v44 = vld [vmem:[%s2699_s1 + $0x258] sm:$0xff]   ;;  %v2180_v38 = vld [vmem:[%s2699_s1 + $0x328] sm:$0xff]  }
  0x26   :  { %1924 = vmatprep.subr.bf16.mxu1 %v2099_v45  ;;  %1278 = vmatprep.mubr.bf16.mxu0 %v1676_v0  ;;  %v2139_v45 = vld [vmem:[%s2699_s1 + $0x2d8] sm:$0xff]   ;;  %v19_v0 = vld [vmem:[%s2700_s0 + $0x20] sm:$0xff]  ;;  %v2181_v39 = vld [vmem:[%s2699_s1 + $0x3a8] sm:$0xff]  }
  0x27   :  { %1327 = vmatprep.mubr.bf16.mxu1 %v1678_v6  ;;  %v1669_v6 = vcombine.low %v20_v4, %v28_v5 }
  0x28   :  { %1897 = vmatpush3.bf16.msra.mxu0 %v2100_v46  ;;  %v2140_v46 = vld [vmem:[%s2699_s1 + $0x218] sm:$0xff]  }
  0x29   :  { %1925 = vmatpush3.bf16.msra.mxu1 %v2101_v47  ;;  %1898 = vmatprep.subr.bf16.mxu0 %v2102_v48  ;;  %v2141_v47 = vld [vmem:[%s2699_s1 + $0x298] sm:$0xff]   ;;  %v2142_v48 = vld [vmem:[%s2699_s1 + $0x260] sm:$0xff]  }
  0x2a   :  { %1926 = vmatprep.subr.bf16.mxu1 %v2103_v49  ;;  %v2143_v49 = vld [vmem:[%s2699_s1 + $0x2e0] sm:$0xff]  }
  0x2b   :  { %1279 = vmatmul.mubr.bf16.gmra.mrb[4].mxu0 %v1675_v2 }
  0x2c   :  { %1899 = vmatpush3.bf16.msra.mxu0 %v2104_v50  ;;  %1328 = vmatmul.mubr.bf16.gmra.mrb[4].mxu1 %v1677_v7  ;;  %v2144_v50 = vld [vmem:[%s2699_s1 + $0x220] sm:$0xff]   ;;  %v1670_v7 = vcombine.high %v20_v4, %v28_v5 }
  0x2d   :  { %1927 = vmatpush3.bf16.msra.mxu1 %v2105_v51  ;;  %1900 = vmatprep.subr.bf16.mxu0 %v2106_v52  ;;  %v2145_v51 = vld [vmem:[%s2699_s1 + $0x2a0] sm:$0xff]   ;;  %v2146_v52 = vld [vmem:[%s2699_s1 + $0x268] sm:$0xff]  }
  0x2e   :  { %1928 = vmatprep.subr.bf16.mxu1 %v2107_v53  ;;  %1368 = vmatprep.mubr.bf16.mxu0 %v1664_v21  ;;  %v2147_v53 = vld [vmem:[%s2699_s1 + $0x2e8] sm:$0xff]   ;;  %v2167_v21 = vld [vmem:[%s2699_s1 + $0x3d0] sm:$0xff]  }
  0x2f   :  { %1417 = vmatprep.mubr.bf16.mxu1 %v1666_v23  ;;  %v44_v23 = vld [vmem:[%s2700_s0 + $0xe8] sm:$0xff] }
  0x30   :  { %1901 = vmatpush3.bf16.msra.mxu0 %v2108_v54  ;;  %v2148_v54 = vld [vmem:[%s2699_s1 + $0x228] sm:$0xff]  }
  0x31   :  { %1929 = vmatpush3.bf16.msra.mxu1 %v2109_v55  ;;  %1902 = vmatprep.subr.bf16.mxu0 %v2110_v56  ;;  %v2149_v55 = vld [vmem:[%s2699_s1 + $0x2a8] sm:$0xff]   ;;  %v2150_v56 = vld [vmem:[%s2699_s1 + $0x270] sm:$0xff]  }
  0x32   :  { %1930 = vmatprep.subr.bf16.mxu1 %v2111_v57  ;;  %v2151_v57 = vld [vmem:[%s2699_s1 + $0x2f0] sm:$0xff]  }
  0x34   :  { %1903 = vmatpush3.bf16.msra.mxu0 %v2112_v58  ;;  %v2152_v58 = vld [vmem:[%s2699_s1 + $0x230] sm:$0xff]  }
  0x35   :  { %1931 = vmatpush3.bf16.msra.mxu1 %v2113_v59  ;;  %1904 = vmatprep.subr.bf16.mxu0 %v2114_v60  ;;  %v2153_v59 = vld [vmem:[%s2699_s1 + $0x2b0] sm:$0xff]   ;;  %v2154_v60 = vld [vmem:[%s2699_s1 + $0x278] sm:$0xff]  }
  0x36   :  { %1932 = vmatprep.subr.bf16.mxu1 %v2115_v61  ;;  %v2155_v61 = vld [vmem:[%s2699_s1 + $0x2f8] sm:$0xff]  }
  0x38   :  { %1905 = vmatpush3.bf16.msra.mxu0 %v2116_v1  ;;  %v27_v1 = vld [vmem:[%s2700_s0 + $0x60] sm:$0xff] }
  0x39   :  { %1933 = vmatpush3.bf16.msra.mxu1 %v2117_v3  ;;  %1906 = vmatprep.subr.bf16.mxu0 %v2118_v8  ;;  %v1667_v2 = vcombine.low %v19_v0, %v27_v1  ;;  %v1668_v3 = vcombine.high %v19_v0, %v27_v1  ;;  %v2158_v8 = vld [vmem:[%s2699_s1 + $0x340] sm:$0xff]  }
  0x3a   :  { %1934 = vmatprep.subr.bf16.mxu1 %v2119_v9  ;;  %v2159_v9 = vld [vmem:[%s2699_s1 + $0x3c0] sm:$0xff]  }
  0x3c   :  { %1907 = vmatpush3.bf16.msra.mxu0 %v2120_v10  ;;  %v2160_v10 = vld [vmem:[%s2699_s1 + $0x300] sm:$0xff]  }
  0x3d   :  { %1935 = vmatpush3.bf16.msra.mxu1 %v2121_v11  ;;  %1908 = vmatprep.subr.bf16.mxu0 %v2122_v12  ;;  %v2161_v11 = vld [vmem:[%s2699_s1 + $0x380] sm:$0xff]   ;;  %v2162_v12 = vld [vmem:[%s2699_s1 + $0x348] sm:$0xff]  }
  0x3e   :  { %1936 = vmatprep.subr.bf16.mxu1 %v2123_v13  ;;  %v2163_v13 = vld [vmem:[%s2699_s1 + $0x3c8] sm:$0xff]  }
  0x40   :  { %1909 = vmatpush3.bf16.msra.mxu0 %v2124_v14  ;;  %v2164_v14 = vld [vmem:[%s2699_s1 + $0x308] sm:$0xff]  }
  0x41   :  { %1937 = vmatpush3.bf16.msra.mxu1 %v2125_v15  ;;  %1950 = vmatprep.subr.bf16.mxu0 %v2126_v24  ;;  %v2165_v15 = vld [vmem:[%s2699_s1 + $0x388] sm:$0xff]  }
  0x42   :  { %1978 = vmatprep.subr.bf16.mxu1 %v2127_v25  ;;  %v2168_v25 = vld [vmem:[%s2699_s1 + $0x310] sm:$0xff]  }
  0x43   :  { %1369 = vmatmul.mubr.bf16.vlgmr.msra.gmra.mrb[8].mxu0 %v1663_v20  ;;  %v2166_v20 = vld [vmem:[%s2699_s1 + $0x350] sm:$0xff]  }
  0x44   :  { %1418 = vmatmul.mubr.bf16.vlgmr.msra.gmra.mrb[8].mxu1 %v1665_v22  ;;  %1951 = vmatpush3.bf16.msra.mxu0 %v2128_v26  ;;  %v36_v22 = vld [vmem:[%s2700_s0 + $0xa8] sm:$0xff] }
  0x45   :  { %1979 = vmatpush3.bf16.msra.mxu1 %v2129_v27  ;;  %1952 = vmatprep.subr.bf16.mxu0 %v2130_v28  ;;  %v1686_v24 = vcombine.high %v36_v22, %v44_v23  ;;  %v1685_v26 = vcombine.low %v36_v22, %v44_v23  ;;  %v2169_v27 = vld [vmem:[%s2699_s1 + $0x390] sm:$0xff]   ;;  %v2170_v28 = vld [vmem:[%s2699_s1 + $0x358] sm:$0xff]  }
  0x46   :  { %1980 = vmatprep.subr.bf16.mxu1 %v2131_v29  ;;  %1376 = vmatprep.mubr.bf16.mxu0 %v1680_v34  ;;  %v2171_v29 = vld [vmem:[%s2699_s1 + $0x3d8] sm:$0xff]   ;;  %v2176_v34 = vld [vmem:[%s2699_s1 + $0x320] sm:$0xff]  }
  0x47   :  { %1425 = vmatprep.mubr.bf16.mxu1 %v1682_v40  ;;  %v2182_v40 = vld [vmem:[%s2699_s1 + $0x370] sm:$0xff]  }
  0x48   :  { %1953 = vmatpush3.bf16.msra.mxu0 %v2132_v30  ;;  %v2172_v30 = vld [vmem:[%s2699_s1 + $0x318] sm:$0xff]  }
  0x49   :  { %1981 = vmatpush3.bf16.msra.mxu1 %v2133_v31  ;;  %1954 = vmatprep.subr.bf16.mxu0 %v2134_v36  ;;  %v2173_v31 = vld [vmem:[%s2699_s1 + $0x398] sm:$0xff]   ;;  %v2178_v36 = vld [vmem:[%s2699_s1 + $0x368] sm:$0xff]  }
  0x4a   :  { %1982 = vmatprep.subr.bf16.mxu1 %v2135_v37  ;;  %v2179_v37 = vld [vmem:[%s2699_s1 + $0x3e8] sm:$0xff]  }
  0x4b   :  { %1377 = vmatmul.mubr.bf16.gmra.mrb[12].mxu0 %v1679_v35  ;;  %v2177_v35 = vld [vmem:[%s2699_s1 + $0x3a0] sm:$0xff]  }
  0x4c   :  { %1955 = vmatpush3.bf16.msra.mxu0 %v2136_v41  ;;  %1426 = vmatmul.mubr.bf16.gmra.mrb[12].mxu1 %v1681_v42  ;;  %v2183_v41 = vld [vmem:[%s2699_s1 + $0x3f0] sm:$0xff]  }
  0x4d   :  { %1983 = vmatpush3.bf16.msra.mxu1 %v2137_v43  ;;  %1956 = vmatprep.subr.bf16.mxu0 %v2138_v44  ;;  %v2184_v42 = vld [vmem:[%s2699_s1 + $0x330] sm:$0xff]   ;;  %v2186_v44 = vld [vmem:[%s2699_s1 + $0x378] sm:$0xff]  }
  0x4e   :  { %1984 = vmatprep.subr.bf16.mxu1 %v2139_v45  ;;  %1466 = vmatprep.mubr.bf16.mxu0 %v1668_v3  ;;  %v2185_v43 = vld [vmem:[%s2699_s1 + $0x3b0] sm:$0xff]   ;;  %v2187_v45 = vld [vmem:[%s2699_s1 + $0x3f8] sm:$0xff]  }
  0x4f   :  { %1515 = vmatprep.mubr.bf16.mxu1 %v1670_v7 }
  0x50   :  { %1957 = vmatpush3.bf16.msra.mxu0 %v2140_v46  ;;  %v2188_v46 = vld [vmem:[%s2699_s1 + $0x338] sm:$0xff]  }
  0x51   :  { %1985 = vmatpush3.bf16.msra.mxu1 %v2141_v47  ;;  %1958 = vmatprep.subr.bf16.mxu0 %v2142_v48  ;;  %v2189_v47 = vld [vmem:[%s2699_s1 + $0x3b8] sm:$0xff]   ;;  %v21_v48 = vld [vmem:[%s2700_s0 + $0x30] sm:$0xff] }
  0x52   :  { %1986 = vmatprep.subr.bf16.mxu1 %v2143_v49  ;;  %v29_v49 = vld [vmem:[%s2700_s0 + $0x70] sm:$0xff] }
  0x54   :  { %1959 = vmatpush3.bf16.msra.mxu0 %v2144_v50  ;;  %v22_v50 = vld [vmem:[%s2700_s0 + $0x38] sm:$0xff] }
  0x55   :  { %1987 = vmatpush3.bf16.msra.mxu1 %v2145_v51  ;;  %1960 = vmatprep.subr.bf16.mxu0 %v2146_v52  ;;  %v1671_v51 = vcombine.low %v21_v48, %v29_v49  ;;  %v1672_v52 = vcombine.high %v21_v48, %v29_v49 }
  0x56   :  { %1988 = vmatprep.subr.bf16.mxu1 %v2147_v53  ;;  %v30_v53 = vld [vmem:[%s2700_s0 + $0x78] sm:$0xff] }
  0x58   :  { %1961 = vmatpush3.bf16.msra.mxu0 %v2148_v54  ;;  %v37_v54 = vld [vmem:[%s2700_s0 + $0xb0] sm:$0xff] }
  0x59   :  { %1989 = vmatpush3.bf16.msra.mxu1 %v2149_v55  ;;  %1962 = vmatprep.subr.bf16.mxu0 %v2150_v56  ;;  %v45_v55 = vld [vmem:[%s2700_s0 + $0xf0] sm:$0xff]  ;;  %v1673_v56 = vcombine.low %v22_v50, %v30_v53 }
  0x5a   :  { %1990 = vmatprep.subr.bf16.mxu1 %v2151_v57  ;;  %v1674_v57 = vcombine.high %v22_v50, %v30_v53 }
  0x5c   :  { %1963 = vmatpush3.bf16.msra.mxu0 %v2152_v58  ;;  %v1688_v58 = vcombine.high %v37_v54, %v45_v55 }
  0x5d   :  { %1991 = vmatpush3.bf16.msra.mxu1 %v2153_v59  ;;  %1964 = vmatprep.subr.bf16.mxu0 %v2154_v60  ;;  %v38_v59 = vld [vmem:[%s2700_s0 + $0xb8] sm:$0xff] }
  0x5e   :  { %1992 = vmatprep.subr.bf16.mxu1 %v2155_v61  ;;  %v46_v60 = vld [vmem:[%s2700_s0 + $0xf8] sm:$0xff] }
  0x5f   :  { %v1690_v61 = vcombine.high %v38_v59, %v46_v60 }
  0x60   :  { %1965 = vmatpush3.bf16.msra.mxu0 %v2156_v62  ;;  %v1687_v62 = vcombine.low %v37_v54, %v45_v55 }
  0x61   :  { %1993 = vmatpush3.bf16.msra.mxu1 %v2157_v63  ;;  %2006 = vmatprep.subr.bf16.mxu0 %v2158_v8  ;;  %v1689_v63 = vcombine.low %v38_v59, %v46_v60 }
  0x62   :  { %2034 = vmatprep.subr.bf16.mxu1 %v2159_v9 }
  0x63   :  { %1467 = vmatmul.mubr.bf16.vlgmr.msra.gmra.mrb[16].mxu0 %v1667_v2  ;;  %v1658_v2 = vld [vmem:[%s2701_s2] ss:$0 sm:$0xff] }
  0x64   :  { %1516 = vmatmul.mubr.bf16.vlgmr.msra.gmra.mrb[16].mxu1 %v1669_v6  ;;  %2007 = vmatpush3.bf16.msra.mxu0 %v2160_v10 }
  0x65   :  { %2035 = vmatpush3.bf16.msra.mxu1 %v2161_v11  ;;  %2008 = vmatprep.subr.bf16.mxu0 %v2162_v12 }
  0x66   :  { %2036 = vmatprep.subr.bf16.mxu1 %v2163_v13  ;;  %1474 = vmatprep.mubr.bf16.mxu0 %v1684_v18 }
  0x67   :  { %1523 = vmatprep.mubr.bf16.mxu1 %v1686_v24 }
  0x68   :  { %2009 = vmatpush3.bf16.msra.mxu0 %v2164_v14 }
  0x69   :  { %2037 = vmatpush3.bf16.msra.mxu1 %v2165_v15  ;;  %2010 = vmatprep.subr.bf16.mxu0 %v2166_v20 }
  0x6a   :  { %2038 = vmatprep.subr.bf16.mxu1 %v2167_v21 }
  0x6b   :  { %1475 = vmatmul.mubr.bf16.gmra.mrb[20].mxu0 %v1683_v19 }
  0x6c   :  { %2011 = vmatpush3.bf16.msra.mxu0 %v2168_v25  ;;  %1524 = vmatmul.mubr.bf16.gmra.mrb[20].mxu1 %v1685_v26 }
  0x6d   :  { %2039 = vmatpush3.bf16.msra.mxu1 %v2169_v27  ;;  %2012 = vmatprep.subr.bf16.mxu0 %v2170_v28 }
  0x6e   :  { %2040 = vmatprep.subr.bf16.mxu1 %v2171_v29  ;;  %1564 = vmatprep.mubr.bf16.mxu0 %v1672_v52 }
  0x6f   :  { %1613 = vmatprep.mubr.bf16.mxu1 %v1674_v57 }
  0x70   :  { %2013 = vmatpush3.bf16.msra.mxu0 %v2172_v30 }
  0x71   :  { %2041 = vmatpush3.bf16.msra.mxu1 %v2173_v31  ;;  %2014 = vmatprep.subr.bf16.mxu0 %v2174_v32 }
  0x72   :  { %2042 = vmatprep.subr.bf16.mxu1 %v2175_v33 }
  0x74   :  { %2015 = vmatpush3.bf16.msra.mxu0 %v2176_v34 }
  0x75   :  { %2043 = vmatpush3.bf16.msra.mxu1 %v2177_v35  ;;  %2016 = vmatprep.subr.bf16.mxu0 %v2178_v36 }
  0x76   :  { %2044 = vmatprep.subr.bf16.mxu1 %v2179_v37 }
  0x78   :  { %2017 = vmatpush3.bf16.msra.mxu0 %v2180_v38 }
  0x79   :  { %2045 = vmatpush3.bf16.msra.mxu1 %v2181_v39  ;;  %2018 = vmatprep.subr.bf16.mxu0 %v2182_v40 }
  0x7a   :  { %2046 = vmatprep.subr.bf16.mxu1 %v2183_v41 }
  0x7c   :  { %2019 = vmatpush3.bf16.msra.mxu0 %v2184_v42 }
  0x7d   :  { %2047 = vmatpush3.bf16.msra.mxu1 %v2185_v43  ;;  %2020 = vmatprep.subr.bf16.mxu0 %v2186_v44 }
  0x7e   :  { %2048 = vmatprep.subr.bf16.mxu1 %v2187_v45 }
  0x80   :  { %2021 = vmatpush3.bf16.msra.mxu0 %v2188_v46 }
  0x81   :  { %2049 = vmatpush3.bf16.msra.mxu1 %v2189_v47 }
  0x83   :  { %1565 = vmatmul.mubr.bf16.vlgmr.msra.gmra.mrb[24].mxu0 %v1671_v51 }
  0x84   :  { %1614 = vmatmul.mubr.bf16.vlgmr.msra.gmra.mrb[24].mxu1 %v1673_v56  ;;  %1572 = vmatprep.mubr.bf16.mxu0 %v1688_v58 }
  0x85   :  { %1621 = vmatprep.mubr.bf16.mxu1 %v1690_v61 }
  0x8b   :  { %1573 = vmatmul.mubr.bf16.gmra.mrb[28].mxu0 %v1687_v62 }
  0x8c   :  { %1622 = vmatmul.mubr.bf16.gmra.mrb[28].mxu1 %v1689_v63 }
  0xf6   :  { %v1854_v0 = vpop.f32.mrb[0].mxu0 }
  0xf7   :  { %v1882_v1 = vpop.f32.mrb[0].mxu1  ;;  %v1855_v3 = vpop.f32.mrb[1].mxu0 }
  0xf8   :  { %v1856_v4 = vadd.f32 %v1855_v3, %v1854_v0  ;;  %v1883_v5 = vpop.f32.mrb[1].mxu1  ;;  %v1857_v6 = vpop.f32.mrb[2].mxu0 }
  0xf9   :  { %v1884_v7 = vadd.f32 %v1883_v5, %v1882_v1  ;;  %v1885_v8 = vpop.f32.mrb[2].mxu1  ;;  %v1858_v9 = vpop.f32.mrb[3].mxu0 }
  0xfa   :  { %v1273_v10 = vadd.f32 %v1856_v4, %v1658_v2  ;;  %v1859_v11 = vadd.f32 %v1858_v9, %v1857_v6  ;;  %v1886_v12 = vpop.f32.mrb[3].mxu1 }
  0xfb   :  { %v1887_v13 = vadd.f32 %v1886_v12, %v1885_v8 }
  0xfc   :  { %v1322_v14 = vadd.f32 %v1884_v7, %v1273_v10  ;;  %v1276_v15 = vadd.f32 %v1859_v11, %v1658_v2 }
  0xfe   :  { %v1325_v16 = vadd.f32 %v1887_v13, %v1276_v15  ;;  %v1860_v17 = vpop.f32.mrb[4].mxu0 }
  0xff   :  { %v1861_v18 = vpop.f32.mrb[5].mxu0  ;;  %v1888_v21 = vpop.f32.mrb[4].mxu1 }
 0x100   :  { %v1862_v19 = vadd.f32 %v1861_v18, %v1860_v17  ;;  %v1863_v20 = vpop.f32.mrb[6].mxu0  ;;  %v1889_v25 = vpop.f32.mrb[5].mxu1 }
 0x101   :  { %v1864_v22 = vpop.f32.mrb[7].mxu0  ;;  %v1890_v26 = vadd.f32 %v1889_v25, %v1888_v21  ;;  %v1891_v27 = vpop.f32.mrb[6].mxu1 }
 0x102   :  { %v1281_v23 = vadd.f32 %v1862_v19, %v1658_v2  ;;  %v1865_v24 = vadd.f32 %v1864_v22, %v1863_v20  ;;  %v1892_v29 = vpop.f32.mrb[7].mxu1 }
 0x103   :  { %v1893_v31 = vadd.f32 %v1892_v29, %v1891_v27 }
 0x104   :  { %v1284_v28 = vadd.f32 %v1865_v24, %v1658_v2  ;;  %v1330_v30 = vadd.f32 %v1890_v26, %v1281_v23 }
 0x106   :  { %v1333_v32 = vadd.f32 %v1893_v31, %v1284_v28 }
 0x116   :  { %v1910_v33 = vpop.f32.mrb[8].mxu0 }
 0x117   :  { %v1938_v34 = vpop.f32.mrb[8].mxu1  ;;  %v1911_v35 = vpop.f32.mrb[9].mxu0 }
 0x118   :  { %v1939_v36 = vpop.f32.mrb[9].mxu1  ;;  %v1912_v37 = vadd.f32 %v1911_v35, %v1910_v33  ;;  %v1913_v39 = vpop.f32.mrb[10].mxu0 }
 0x119   :  { %v1940_v38 = vadd.f32 %v1939_v36, %v1938_v34  ;;  %v1941_v40 = vpop.f32.mrb[10].mxu1  ;;  %v1914_v41 = vpop.f32.mrb[11].mxu0 }
 0x11a   :  { %v1942_v42 = vpop.f32.mrb[11].mxu1  ;;  %v1371_v43 = vadd.f32 %v1912_v37, %v1322_v14  ;;  %v1915_v44 = vadd.f32 %v1914_v41, %v1913_v39 }
 0x11b   :  { %v1943_v45 = vadd.f32 %v1942_v42, %v1941_v40 }
 0x11c   :  { %v1420_v46 = vadd.f32 %v1940_v38, %v1371_v43  ;;  %v1374_v47 = vadd.f32 %v1915_v44, %v1325_v16 }
 0x11e   :  { %v1423_v48 = vadd.f32 %v1943_v45, %v1374_v47  ;;  %v1916_v49 = vpop.f32.mrb[12].mxu0 }
 0x11f   :  { %v1917_v50 = vpop.f32.mrb[13].mxu0  ;;  %v1944_v55 = vpop.f32.mrb[12].mxu1 }
 0x120   :  { %v1918_v51 = vadd.f32 %v1917_v50, %v1916_v49  ;;  %v1919_v52 = vpop.f32.mrb[14].mxu0  ;;  %v1945_v57 = vpop.f32.mrb[13].mxu1 }
 0x121   :  { %v1920_v53 = vpop.f32.mrb[15].mxu0  ;;  %v1946_v59 = vadd.f32 %v1945_v57, %v1944_v55  ;;  %v1947_v60 = vpop.f32.mrb[14].mxu1 }
 0x122   :  { %v1379_v54 = vadd.f32 %v1918_v51, %v1330_v30  ;;  %v1921_v56 = vadd.f32 %v1920_v53, %v1919_v52  ;;  %v1948_v61 = vpop.f32.mrb[15].mxu1 }
 0x123   :  { %v1949_v63 = vadd.f32 %v1948_v61, %v1947_v60 }
 0x124   :  { %v1382_v58 = vadd.f32 %v1921_v56, %v1333_v32  ;;  %v1428_v62 = vadd.f32 %v1946_v59, %v1379_v54 }
 0x126   :  { %v1431_v0 = vadd.f32 %v1949_v63, %v1382_v58 }
 0x136   :  { %v1966_v1 = vpop.f32.mrb[16].mxu0 }
 0x137   :  { %v1994_v2 = vpop.f32.mrb[16].mxu1  ;;  %v1967_v3 = vpop.f32.mrb[17].mxu0 }
 0x138   :  { %v1968_v4 = vadd.f32 %v1967_v3, %v1966_v1  ;;  %v1995_v5 = vpop.f32.mrb[17].mxu1  ;;  %v1969_v6 = vpop.f32.mrb[18].mxu0 }
 0x139   :  { %v1996_v7 = vadd.f32 %v1995_v5, %v1994_v2  ;;  %v1997_v8 = vpop.f32.mrb[18].mxu1  ;;  %v1970_v9 = vpop.f32.mrb[19].mxu0 }
 0x13a   :  { %v1469_v10 = vadd.f32 %v1968_v4, %v1420_v46  ;;  %v1971_v11 = vadd.f32 %v1970_v9, %v1969_v6  ;;  %v1998_v12 = vpop.f32.mrb[19].mxu1 }
 0x13b   :  { %v1999_v13 = vadd.f32 %v1998_v12, %v1997_v8 }
 0x13c   :  { %v1518_v14 = vadd.f32 %v1996_v7, %v1469_v10  ;;  %v1472_v15 = vadd.f32 %v1971_v11, %v1423_v48 }
 0x13e   :  { %v1521_v16 = vadd.f32 %v1999_v13, %v1472_v15  ;;  %v1972_v17 = vpop.f32.mrb[20].mxu0 }
 0x13f   :  { %v1973_v18 = vpop.f32.mrb[21].mxu0  ;;  %v2000_v21 = vpop.f32.mrb[20].mxu1 }
 0x140   :  { %v1974_v19 = vadd.f32 %v1973_v18, %v1972_v17  ;;  %v1975_v20 = vpop.f32.mrb[22].mxu0  ;;  %v2001_v25 = vpop.f32.mrb[21].mxu1 }
 0x141   :  { %v1976_v22 = vpop.f32.mrb[23].mxu0  ;;  %v2002_v26 = vadd.f32 %v2001_v25, %v2000_v21  ;;  %v2003_v27 = vpop.f32.mrb[22].mxu1 }
 0x142   :  { %v1477_v23 = vadd.f32 %v1974_v19, %v1428_v62  ;;  %v1977_v24 = vadd.f32 %v1976_v22, %v1975_v20  ;;  %v2004_v29 = vpop.f32.mrb[23].mxu1 }
 0x143   :  { %v2005_v31 = vadd.f32 %v2004_v29, %v2003_v27 }
 0x144   :  { %v1480_v28 = vadd.f32 %v1977_v24, %v1431_v0  ;;  %v1526_v30 = vadd.f32 %v2002_v26, %v1477_v23 }
 0x146   :  { %v1529_v32 = vadd.f32 %v2005_v31, %v1480_v28 }
 0x156   :  { %v2022_v33 = vpop.f32.mrb[24].mxu0 }
 0x157   :  { %v2050_v34 = vpop.f32.mrb[24].mxu1  ;;  %v2023_v35 = vpop.f32.mrb[25].mxu0 }
 0x158   :  { %v2024_v36 = vadd.f32 %v2023_v35, %v2022_v33  ;;  %v2051_v37 = vpop.f32.mrb[25].mxu1  ;;  %v2025_v38 = vpop.f32.mrb[26].mxu0 }
 0x159   :  { %v2052_v39 = vadd.f32 %v2051_v37, %v2050_v34  ;;  %v2053_v40 = vpop.f32.mrb[26].mxu1  ;;  %v2026_v41 = vpop.f32.mrb[27].mxu0 }
 0x15a   :  { %v1567_v42 = vadd.f32 %v2024_v36, %v1518_v14  ;;  %v2027_v43 = vadd.f32 %v2026_v41, %v2025_v38  ;;  %v2054_v44 = vpop.f32.mrb[27].mxu1 }
 0x15b   :  { %v2055_v45 = vadd.f32 %v2054_v44, %v2053_v40 }
 0x15c   :  { %v1616_v46 = vadd.f32 %v2052_v39, %v1567_v42  ;;  %v1570_v47 = vadd.f32 %v2027_v43, %v1521_v16 }
 0x15e   :  { %v1619_v48 = vadd.f32 %v2055_v45, %v1570_v47  ;;  %v2028_v49 = vpop.f32.mrb[28].mxu0  ;;  %v1630_v52 = vmax.f32 %v1616_v46, 0.0 }
 0x15f   :  { %v2056_v50 = vpop.f32.mrb[28].mxu1  ;;  %v2029_v51 = vpop.f32.mrb[29].mxu0 }
 0x160   :  { %v1631_v53 = vmax.f32 %v1619_v48, 0.0  ;;  %v2030_v54 = vadd.f32 %v2029_v51, %v2028_v49  ;;  %v2057_v55 = vpop.f32.mrb[29].mxu1  ;;  %v2031_v56 = vpop.f32.mrb[30].mxu0 }
 0x161   :  { %v2058_v57 = vadd.f32 %v2057_v55, %v2056_v50  ;;  %v2059_v58 = vpop.f32.mrb[30].mxu1  ;;  %v2032_v59 = vpop.f32.mrb[31].mxu0 }
 0x162   :  { %v1830_v60 = vpack.c.bf16 %v1631_v53, %v1630_v52  ;;  %v1575_v61 = vadd.f32 %v2030_v54, %v1526_v30  ;;  %v2033_v62 = vadd.f32 %v2032_v59, %v2031_v56  ;;  %v2060_v63 = vpop.f32.mrb[31].mxu1 }
 0x163   :  { %v2061_v0 = vadd.f32 %v2060_v63, %v2059_v58 }
 0x164   :  { %1831 = vst [vmem:[%s2702_s3] sm:$0xff] %v1830_v60   ;;  %v1624_v1 = vadd.f32 %v2058_v57, %v1575_v61  ;;  %v1578_v2 = vadd.f32 %v2033_v62, %v1529_v32 }
 0x166   :  { %v1627_v3 = vadd.f32 %v2061_v0, %v1578_v2  ;;  %v1632_v4 = vmax.f32 %v1624_v1, 0.0 }
 0x168   :  { %v1633_v5 = vmax.f32 %v1627_v3, 0.0 }
 0x16a   :  { %v1835_v6 = vpack.c.bf16 %v1633_v5, %v1632_v4 }
 0x16c   :  { %1837 = vst [vmem:[%s2702_s3 + $0x8] sm:$0xff] %v1835_v6  }

// kernel: vqvae_forward.20
= control target key start
LH: loop header
LB: loop body
LE: loop exit
PB: predicated region body
PF: predicated region fallthrough
CT: control target
= control target key end

     0   :  { %v181_v0 = vmov 0.0   ;;  %vm182_vm0 = vmmov 0   ;;  %s236_s1 = inlined_call_operand.vmem [shape: bf16[128,128], index: 1, kind: input, shape index: {}]   ;;  %s237_s0 = inlined_call_operand.vmem [shape: bf16[8,128], index: 0, kind: input, shape index: {}]   ;;  %s238_s2 = inlined_call_operand.vmem [shape: f32[1,128], index: 2, kind: input, shape index: {}]   ;;  %s239_s3 = inlined_call_operand.vmem [shape: bf16[8,128], index: 3, kind: output, shape index: {}]  }
   0x1   :  { %151 = vmatprep.subr.bf16.mxu0 %v181_v0  ;;  %v173_v1 = vld [vmem:[%s236_s1] sm:$0xff]   ;;  %167 = vmatprep.mubr.msk.bf16.mxu0 %vm182_vm0, %v181_v0  ;;  %v174_v2 = vld [vmem:[%s236_s1 + $0x8] sm:$0xff]   ;;  %v175_v3 = vld [vmem:[%s236_s1 + $0x10] sm:$0xff]  }
   0x2   :  { %152 = vmatpush3.bf16.msra.mxu0 %v173_v1  ;;  %v176_v4 = vld [vmem:[%s236_s1 + $0x18] sm:$0xff]   ;;  %v177_v5 = vld [vmem:[%s236_s1 + $0x20] sm:$0xff]   ;;  %v178_v6 = vld [vmem:[%s236_s1 + $0x28] sm:$0xff]  }
   0x3   :  { %153 = vmatprep.subr.bf16.mxu0 %v181_v0  ;;  %v179_v7 = vld [vmem:[%s236_s1 + $0x30] sm:$0xff]   ;;  %v180_v8 = vld [vmem:[%s236_s1 + $0x38] sm:$0xff]   ;;  %v15_v9 = vld [vmem:[%s237_s0] sm:$0xf] }
   0x4   :  { %v133_v10 = vld [vmem:[%s238_s2] ss:$0 sm:$0xff] }
   0x6   :  { %154 = vmatpush3.bf16.msra.mxu0 %v174_v2 }
   0x7   :  { %155 = vmatprep.subr.bf16.mxu0 %v181_v0 }
   0xa   :  { %156 = vmatpush3.bf16.msra.mxu0 %v175_v3 }
   0xb   :  { %157 = vmatprep.subr.bf16.mxu0 %v181_v0 }
   0xe   :  { %158 = vmatpush3.bf16.msra.mxu0 %v176_v4 }
   0xf   :  { %159 = vmatprep.subr.bf16.mxu0 %v181_v0 }
  0x12   :  { %160 = vmatpush3.bf16.msra.mxu0 %v177_v5 }
  0x13   :  { %161 = vmatprep.subr.bf16.mxu0 %v181_v0 }
  0x16   :  { %162 = vmatpush3.bf16.msra.mxu0 %v178_v6 }
  0x17   :  { %163 = vmatprep.subr.bf16.mxu0 %v181_v0 }
  0x1a   :  { %164 = vmatpush3.bf16.msra.mxu0 %v179_v7 }
  0x1b   :  { %165 = vmatprep.subr.bf16.mxu0 %v181_v0 }
  0x1e   :  { %166 = vmatpush3.bf16.msra.mxu0 %v180_v8 }
  0x21   :  { %168 = vmatmul.mubr.bf16.vlgmr.msra.gmra.mrb[0].mxu0 %v15_v9 }
  0xf4   :  { %v121_v11 = vpop.f32.mrb[0].mxu0 }
  0xf5   :  { %v122_v12 = vadd.f32 %v133_v10, %v121_v11  ;;  %v169_v13 = vpop.f32.mrb[1].mxu0 }
  0xf6   :  { %v124_v14 = vpop.f32.mrb[2].mxu0 }
  0xf7   :  { %v127_v15 = vpack.c.bf16 %v122_v12, %v122_v12  ;;  %v170_v16 = vpop.f32.mrb[3].mxu0 }
  0xf9   :  { %128 = vst [vmem:[%s239_s3] sm:$0xf] %v127_v15 }

// kernel: vqvae_forward.17
= control target key start
LH: loop header
LB: loop body
LE: loop exit
PB: predicated region body
PF: predicated region fallthrough
CT: control target
= control target key end

     0   :  { %vm1125_vm0 = vmmov 0   ;;  %s1383_s1 = inlined_call_operand.vmem [shape: bf16[1152,128], index: 1, kind: input, shape index: {}]   ;;  %s1384_s0 = inlined_call_operand.vmem [shape: bf16[8,1152], index: 0, kind: input, shape index: {}]   ;;  %s1385_s2 = inlined_call_operand.vmem [shape: f32[1,128], index: 2, kind: input, shape index: {}]   ;;  %s1386_s3 = inlined_call_operand.vmem [shape: bf16[8,128], index: 3, kind: output, shape index: {}]  }
   0x1   :  { %v1043_v0 = vld [vmem:[%s1383_s1 + $0x40] sm:$0xff]   ;;  %v1047_v4 = vld [vmem:[%s1383_s1 + $0x48] sm:$0xff]   ;;  %v1051_v8 = vld [vmem:[%s1383_s1 + $0x50] sm:$0xff]  }
   0x2   :  { %v1044_v1 = vld [vmem:[%s1383_s1] sm:$0xff]   ;;  %924 = vmatprep.subr.bf16.mxu0 %v1043_v0  ;;  %v1048_v5 = vld [vmem:[%s1383_s1 + $0x8] sm:$0xff]   ;;  %v1052_v9 = vld [vmem:[%s1383_s1 + $0x10] sm:$0xff]  }
   0x3   :  { %v1045_v2 = vld [vmem:[%s1383_s1 + $0xc0] sm:$0xff]   ;;  %925 = vmatpush3.bf16.msra.mxu0 %v1044_v1  ;;  %v1049_v6 = vld [vmem:[%s1383_s1 + $0xc8] sm:$0xff]   ;;  %v1053_v10 = vld [vmem:[%s1383_s1 + $0xd0] sm:$0xff]  }
   0x4   :  { %v1046_v3 = vld [vmem:[%s1383_s1 + $0x80] sm:$0xff]   ;;  %946 = vmatprep.subr.bf16.mxu1 %v1045_v2  ;;  %926 = vmatprep.subr.bf16.mxu0 %v1047_v4  ;;  %v1050_v7 = vld [vmem:[%s1383_s1 + $0x88] sm:$0xff]   ;;  %v1054_v11 = vld [vmem:[%s1383_s1 + $0x90] sm:$0xff]  }
   0x5   :  { %947 = vmatpush3.bf16.msra.mxu1 %v1046_v3  ;;  %v1055_v12 = vld [vmem:[%s1383_s1 + $0x58] sm:$0xff]   ;;  %v1059_v16 = vld [vmem:[%s1383_s1 + $0x60] sm:$0xff]   ;;  %v1063_v20 = vld [vmem:[%s1383_s1 + $0x68] sm:$0xff]  }
   0x6   :  { %948 = vmatprep.subr.bf16.mxu1 %v1049_v6  ;;  %v1056_v13 = vld [vmem:[%s1383_s1 + $0x18] sm:$0xff]   ;;  %v1060_v17 = vld [vmem:[%s1383_s1 + $0x20] sm:$0xff]   ;;  %v1064_v21 = vld [vmem:[%s1383_s1 + $0x28] sm:$0xff]  }
   0x7   :  { %927 = vmatpush3.bf16.msra.mxu0 %v1048_v5  ;;  %v1057_v14 = vld [vmem:[%s1383_s1 + $0xd8] sm:$0xff]   ;;  %v1061_v18 = vld [vmem:[%s1383_s1 + $0xe0] sm:$0xff]   ;;  %v1065_v22 = vld [vmem:[%s1383_s1 + $0xe8] sm:$0xff]  }
   0x8   :  { %928 = vmatprep.subr.bf16.mxu0 %v1051_v8  ;;  %v1058_v15 = vld [vmem:[%s1383_s1 + $0x98] sm:$0xff]   ;;  %v1062_v19 = vld [vmem:[%s1383_s1 + $0xa0] sm:$0xff]   ;;  %v1066_v23 = vld [vmem:[%s1383_s1 + $0xa8] sm:$0xff]  }
   0x9   :  { %949 = vmatpush3.bf16.msra.mxu1 %v1050_v7  ;;  %v1067_v24 = vld [vmem:[%s1383_s1 + $0x70] sm:$0xff]   ;;  %v1071_v28 = vld [vmem:[%s1383_s1 + $0x78] sm:$0xff]   ;;  %v15_v31 = vld [vmem:[%s1384_s0] sm:$0xff] }
   0xa   :  { %950 = vmatprep.subr.bf16.mxu1 %v1053_v10  ;;  %v1068_v25 = vld [vmem:[%s1383_s1 + $0x30] sm:$0xff]   ;;  %v1072_v29 = vld [vmem:[%s1383_s1 + $0x38] sm:$0xff]   ;;  %v843_v32 = vcombine.low %v15_v31, %v15_v31  ;;  %v844_v33 = vcombine.high %v15_v31, %v15_v31  ;;  %v1077_v35 = vld [vmem:[%s1383_s1 + $0x140] sm:$0xff]  }
   0xb   :  { %929 = vmatpush3.bf16.msra.mxu0 %v1052_v9  ;;  %v1069_v26 = vld [vmem:[%s1383_s1 + $0xf0] sm:$0xff]   ;;  %v1073_v30 = vld [vmem:[%s1383_s1 + $0xf8] sm:$0xff]   ;;  %v16_v36 = vld [vmem:[%s1384_s0 + $0x8] sm:$0xff]  ;;  %v1124_v9 = vmov 0.0  }
   0xc   :  { %930 = vmatprep.subr.bf16.mxu0 %v1055_v12  ;;  %v1070_v27 = vld [vmem:[%s1383_s1 + $0xb0] sm:$0xff]   ;;  %v1076_v34 = vld [vmem:[%s1383_s1 + $0xb8] sm:$0xff]   ;;  %667 = vmatprep.mubr.bf16.mxu0 %v844_v33  ;;  %v845_v37 = vcombine.low %v16_v36, %v16_v36  ;;  %v846_v38 = vcombine.high %v16_v36, %v16_v36  ;;  %v1080_v39 = vld [vmem:[%s1383_s1 + $0x100] sm:$0xff]  }
   0xd   :  { %951 = vmatpush3.bf16.msra.mxu1 %v1054_v11  ;;  %v1081_v40 = vld [vmem:[%s1383_s1 + $0x1c0] sm:$0xff]   ;;  %v1083_v42 = vld [vmem:[%s1383_s1 + $0x148] sm:$0xff]   ;;  %v1087_v46 = vld [vmem:[%s1383_s1 + $0x150] sm:$0xff]  }
   0xe   :  { %952 = vmatprep.subr.bf16.mxu1 %v1057_v14  ;;  %707 = vmatprep.mubr.bf16.mxu1 %v846_v38  ;;  %v1082_v41 = vld [vmem:[%s1383_s1 + $0x180] sm:$0xff]   ;;  %v1084_v43 = vld [vmem:[%s1383_s1 + $0x108] sm:$0xff]   ;;  %v1088_v47 = vld [vmem:[%s1383_s1 + $0x110] sm:$0xff]  }
   0xf   :  { %931 = vmatpush3.bf16.msra.mxu0 %v1056_v13  ;;  %v1085_v44 = vld [vmem:[%s1383_s1 + $0x1c8] sm:$0xff]   ;;  %v1089_v48 = vld [vmem:[%s1383_s1 + $0x1d0] sm:$0xff]   ;;  %v1091_v50 = vld [vmem:[%s1383_s1 + $0x158] sm:$0xff]  }
  0x10   :  { %932 = vmatprep.subr.bf16.mxu0 %v1059_v16  ;;  %v1086_v45 = vld [vmem:[%s1383_s1 + $0x188] sm:$0xff]   ;;  %v1090_v49 = vld [vmem:[%s1383_s1 + $0x190] sm:$0xff]   ;;  %v1092_v51 = vld [vmem:[%s1383_s1 + $0x118] sm:$0xff]  }
  0x11   :  { %953 = vmatpush3.bf16.msra.mxu1 %v1058_v15  ;;  %v1093_v52 = vld [vmem:[%s1383_s1 + $0x1d8] sm:$0xff]   ;;  %v1095_v54 = vld [vmem:[%s1383_s1 + $0x160] sm:$0xff]   ;;  %v1099_v58 = vld [vmem:[%s1383_s1 + $0x168] sm:$0xff]  }
  0x12   :  { %954 = vmatprep.subr.bf16.mxu1 %v1061_v18  ;;  %v1094_v53 = vld [vmem:[%s1383_s1 + $0x198] sm:$0xff]   ;;  %v1096_v55 = vld [vmem:[%s1383_s1 + $0x120] sm:$0xff]   ;;  %v1100_v59 = vld [vmem:[%s1383_s1 + $0x128] sm:$0xff]  }
  0x13   :  { %933 = vmatpush3.bf16.msra.mxu0 %v1060_v17  ;;  %v1097_v56 = vld [vmem:[%s1383_s1 + $0x1e0] sm:$0xff]   ;;  %v1101_v60 = vld [vmem:[%s1383_s1 + $0x1e8] sm:$0xff]   ;;  %v1103_v62 = vld [vmem:[%s1383_s1 + $0x170] sm:$0xff]  }
  0x14   :  { %934 = vmatprep.subr.bf16.mxu0 %v1063_v20  ;;  %v1098_v57 = vld [vmem:[%s1383_s1 + $0x1a0] sm:$0xff]   ;;  %v1102_v61 = vld [vmem:[%s1383_s1 + $0x1a8] sm:$0xff]   ;;  %v1104_v63 = vld [vmem:[%s1383_s1 + $0x130] sm:$0xff]  }
  0x15   :  { %955 = vmatpush3.bf16.msra.mxu1 %v1062_v19  ;;  %v1105_v0 = vld [vmem:[%s1383_s1 + $0x1f0] sm:$0xff]   ;;  %v1107_v2 = vld [vmem:[%s1383_s1 + $0x178] sm:$0xff]   ;;  %v1115_v13 = vld [vmem:[%s1383_s1 + $0x200] sm:$0xff]  }
  0x16   :  { %956 = vmatprep.subr.bf16.mxu1 %v1065_v22  ;;  %v1106_v1 = vld [vmem:[%s1383_s1 + $0x1b0] sm:$0xff]   ;;  %v1108_v3 = vld [vmem:[%s1383_s1 + $0x138] sm:$0xff]   ;;  %v1116_v14 = vld [vmem:[%s1383_s1 + $0x208] sm:$0xff]  }
  0x17   :  { %935 = vmatpush3.bf16.msra.mxu0 %v1064_v21  ;;  %v1109_v4 = vld [vmem:[%s1383_s1 + $0x1f8] sm:$0xff]   ;;  %v17_v5 = vld [vmem:[%s1384_s0 + $0x10] sm:$0xff]  ;;  %v1119_v17 = vld [vmem:[%s1383_s1 + $0x220] sm:$0xff]  }
  0x18   :  { %936 = vmatprep.subr.bf16.mxu0 %v1067_v24  ;;  %v847_v6 = vcombine.low %v17_v5, %v17_v5  ;;  %v848_v7 = vcombine.high %v17_v5, %v17_v5  ;;  %v1112_v8 = vld [vmem:[%s1383_s1 + $0x1b8] sm:$0xff]   ;;  %v1117_v15 = vld [vmem:[%s1383_s1 + $0x210] sm:$0xff]   ;;  %v1120_v18 = vld [vmem:[%s1383_s1 + $0x228] sm:$0xff]  }
  0x19   :  { %957 = vmatpush3.bf16.msra.mxu1 %v1066_v23  ;;  %v18_v10 = vld [vmem:[%s1384_s0 + $0x18] sm:$0xff]  ;;  %v1121_v19 = vld [vmem:[%s1383_s1 + $0x230] sm:$0xff]   ;;  %v1123_v21 = vld [vmem:[%s1384_s0 + $0x20] ss:$0 sps:$4 sm:$0xff]  }
  0x1a   :  { %958 = vmatprep.subr.bf16.mxu1 %v1069_v26  ;;  %v849_v11 = vcombine.low %v18_v10, %v18_v10  ;;  %v850_v12 = vcombine.high %v18_v10, %v18_v10  ;;  %v1118_v16 = vld [vmem:[%s1383_s1 + $0x218] sm:$0xff]   ;;  %v842_v23 = vld [vmem:[%s1385_s2] ss:$0 sm:$0xff] }
  0x1b   :  { %937 = vmatpush3.bf16.msra.mxu0 %v1068_v25  ;;  %v1122_v20 = vld [vmem:[%s1383_s1 + $0x238] sm:$0xff]  }
  0x1c   :  { %938 = vmatprep.subr.bf16.mxu0 %v1071_v28 }
  0x1d   :  { %959 = vmatpush3.bf16.msra.mxu1 %v1070_v27 }
  0x1e   :  { %960 = vmatprep.subr.bf16.mxu1 %v1073_v30 }
  0x1f   :  { %939 = vmatpush3.bf16.msra.mxu0 %v1072_v29 }
  0x20   :  { %968 = vmatprep.subr.bf16.mxu0 %v1077_v35 }
  0x21   :  { %961 = vmatpush3.bf16.msra.mxu1 %v1076_v34 }
  0x22   :  { %668 = vmatmul.mubr.bf16.vlgmr.msra.gmra.mrb[0].mxu0 %v843_v32  ;;  %990 = vmatprep.subr.bf16.mxu1 %v1081_v40 }
  0x23   :  { %969 = vmatpush3.bf16.msra.mxu0 %v1080_v39  ;;  %747 = vmatprep.mubr.bf16.mxu0 %v848_v7 }
  0x24   :  { %708 = vmatmul.mubr.bf16.vlgmr.msra.gmra.mrb[0].mxu1 %v845_v37  ;;  %970 = vmatprep.subr.bf16.mxu0 %v1083_v42 }
  0x25   :  { %991 = vmatpush3.bf16.msra.mxu1 %v1082_v41  ;;  %787 = vmatprep.mubr.bf16.mxu1 %v850_v12 }
  0x26   :  { %992 = vmatprep.subr.bf16.mxu1 %v1085_v44 }
  0x27   :  { %971 = vmatpush3.bf16.msra.mxu0 %v1084_v43 }
  0x28   :  { %972 = vmatprep.subr.bf16.mxu0 %v1087_v46 }
  0x29   :  { %993 = vmatpush3.bf16.msra.mxu1 %v1086_v45 }
  0x2a   :  { %994 = vmatprep.subr.bf16.mxu1 %v1089_v48 }
  0x2b   :  { %973 = vmatpush3.bf16.msra.mxu0 %v1088_v47 }
  0x2c   :  { %974 = vmatprep.subr.bf16.mxu0 %v1091_v50 }
  0x2d   :  { %995 = vmatpush3.bf16.msra.mxu1 %v1090_v49 }
  0x2e   :  { %996 = vmatprep.subr.bf16.mxu1 %v1093_v52 }
  0x2f   :  { %975 = vmatpush3.bf16.msra.mxu0 %v1092_v51 }
  0x30   :  { %976 = vmatprep.subr.bf16.mxu0 %v1095_v54 }
  0x31   :  { %997 = vmatpush3.bf16.msra.mxu1 %v1094_v53 }
  0x32   :  { %998 = vmatprep.subr.bf16.mxu1 %v1097_v56 }
  0x33   :  { %977 = vmatpush3.bf16.msra.mxu0 %v1096_v55 }
  0x34   :  { %978 = vmatprep.subr.bf16.mxu0 %v1099_v58 }
  0x35   :  { %999 = vmatpush3.bf16.msra.mxu1 %v1098_v57 }
  0x36   :  { %1000 = vmatprep.subr.bf16.mxu1 %v1101_v60 }
  0x37   :  { %979 = vmatpush3.bf16.msra.mxu0 %v1100_v59 }
  0x38   :  { %980 = vmatprep.subr.bf16.mxu0 %v1103_v62 }
  0x39   :  { %1001 = vmatpush3.bf16.msra.mxu1 %v1102_v61 }
  0x3a   :  { %1002 = vmatprep.subr.bf16.mxu1 %v1105_v0 }
  0x3b   :  { %981 = vmatpush3.bf16.msra.mxu0 %v1104_v63 }
  0x3c   :  { %982 = vmatprep.subr.bf16.mxu0 %v1107_v2 }
  0x3d   :  { %1003 = vmatpush3.bf16.msra.mxu1 %v1106_v1 }
  0x3e   :  { %1004 = vmatprep.subr.bf16.mxu1 %v1109_v4 }
  0x3f   :  { %983 = vmatpush3.bf16.msra.mxu0 %v1108_v3 }
  0x40   :  { %1021 = vmatprep.subr.bf16.mxu0 %v1124_v9 }
  0x41   :  { %1005 = vmatpush3.bf16.msra.mxu1 %v1112_v8 }
  0x42   :  { %748 = vmatmul.mubr.bf16.vlgmr.msra.gmra.mrb[4].mxu0 %v847_v6 }
  0x43   :  { %1022 = vmatpush3.bf16.msra.mxu0 %v1115_v13  ;;  %1037 = vmatprep.mubr.msk.bf16.mxu0 %vm1125_vm0, %v1124_v9 }
  0x44   :  { %788 = vmatmul.mubr.bf16.vlgmr.msra.gmra.mrb[4].mxu1 %v849_v11  ;;  %1023 = vmatprep.subr.bf16.mxu0 %v1124_v9 }
  0x47   :  { %1024 = vmatpush3.bf16.msra.mxu0 %v1116_v14 }
  0x48   :  { %1025 = vmatprep.subr.bf16.mxu0 %v1124_v9 }
  0x4b   :  { %1026 = vmatpush3.bf16.msra.mxu0 %v1117_v15 }
  0x4c   :  { %1027 = vmatprep.subr.bf16.mxu0 %v1124_v9 }
  0x4f   :  { %1028 = vmatpush3.bf16.msra.mxu0 %v1118_v16 }
  0x50   :  { %1029 = vmatprep.subr.bf16.mxu0 %v1124_v9 }
  0x53   :  { %1030 = vmatpush3.bf16.msra.mxu0 %v1119_v17 }
  0x54   :  { %1031 = vmatprep.subr.bf16.mxu0 %v1124_v9 }
  0x57   :  { %1032 = vmatpush3.bf16.msra.mxu0 %v1120_v18 }
  0x58   :  { %1033 = vmatprep.subr.bf16.mxu0 %v1124_v9 }
  0x5b   :  { %1034 = vmatpush3.bf16.msra.mxu0 %v1121_v19 }
  0x5c   :  { %1035 = vmatprep.subr.bf16.mxu0 %v1124_v9 }
  0x5f   :  { %1036 = vmatpush3.bf16.msra.mxu0 %v1122_v20 }
  0x62   :  { %1038 = vmatmul.mubr.bf16.vlgmr.msra.gmra.mrb[8].mxu0 %v1123_v21 }
  0xf5   :  { %v940_v22 = vpop.f32.mrb[0].mxu0 }
  0xf6   :  { %v941_v24 = vpop.f32.mrb[1].mxu0 }
  0xf7   :  { %v942_v25 = vadd.f32 %v941_v24, %v940_v22  ;;  %v943_v26 = vpop.f32.mrb[2].mxu0  ;;  %v962_v27 = vpop.f32.mrb[0].mxu1 }
  0xf8   :  { %v944_v28 = vpop.f32.mrb[3].mxu0  ;;  %v963_v29 = vpop.f32.mrb[1].mxu1 }
  0xf9   :  { %v670_v30 = vadd.f32 %v942_v25, %v842_v23  ;;  %v964_v31 = vadd.f32 %v963_v29, %v962_v27  ;;  %v965_v32 = vpop.f32.mrb[2].mxu1 }
  0xfa   :  { %v966_v33 = vpop.f32.mrb[3].mxu1 }
  0xfb   :  { %v710_v34 = vadd.f32 %v964_v31, %v670_v30 }
 0x115   :  { %v984_v35 = vpop.f32.mrb[4].mxu0 }
 0x116   :  { %v985_v36 = vpop.f32.mrb[5].mxu0 }
 0x117   :  { %v986_v37 = vadd.f32 %v985_v36, %v984_v35  ;;  %v987_v38 = vpop.f32.mrb[6].mxu0  ;;  %v1006_v39 = vpop.f32.mrb[4].mxu1 }
 0x118   :  { %v988_v40 = vpop.f32.mrb[7].mxu0  ;;  %v1007_v41 = vpop.f32.mrb[5].mxu1 }
 0x119   :  { %v750_v42 = vadd.f32 %v986_v37, %v710_v34  ;;  %v1008_v43 = vadd.f32 %v1007_v41, %v1006_v39  ;;  %v1009_v44 = vpop.f32.mrb[6].mxu1 }
 0x11a   :  { %v1010_v45 = vpop.f32.mrb[7].mxu1 }
 0x11b   :  { %v790_v46 = vadd.f32 %v1008_v43, %v750_v42 }
 0x135   :  { %v829_v47 = vpop.f32.mrb[8].mxu0 }
 0x136   :  { %v830_v48 = vadd.f32 %v829_v47, %v790_v46  ;;  %v1039_v49 = vpop.f32.mrb[9].mxu0 }
 0x137   :  { %v832_v50 = vpop.f32.mrb[10].mxu0 }
 0x138   :  { %v835_v51 = vmax.f32 %v830_v48, 0.0  ;;  %v1040_v52 = vpop.f32.mrb[11].mxu0 }
 0x13a   :  { %v836_v53 = vpack.c.bf16 %v835_v51, %v835_v51 }
 0x13c   :  { %837 = vst [vmem:[%s1386_s3] sm:$0xf] %v836_v53 }

// kernel: vqvae_forward.16
= control target key start
LH: loop header
LB: loop body
LE: loop exit
PB: predicated region body
PF: predicated region fallthrough
CT: control target
= control target key end

     0   :  { %s2336_s1 = inlined_call_operand.vmem [shape: bf16[2048,128], index: 1, kind: input, shape index: {}]   ;;  %s2337_s0 = inlined_call_operand.vmem [shape: bf16[8,2048], index: 0, kind: input, shape index: {}]   ;;  %s2338_s2 = inlined_call_operand.vmem [shape: f32[1,128], index: 2, kind: input, shape index: {}]   ;;  %s2339_s3 = inlined_call_operand.vmem [shape: bf16[8,128], index: 3, kind: output, shape index: {}]  }
   0x1   :  { %v1758_v0 = vld [vmem:[%s2336_s1 + $0x40] sm:$0xff]   ;;  %v1762_v4 = vld [vmem:[%s2336_s1 + $0x48] sm:$0xff]   ;;  %v1766_v8 = vld [vmem:[%s2336_s1 + $0x50] sm:$0xff]  }
   0x2   :  { %v1759_v1 = vld [vmem:[%s2336_s1 + $0xc0] sm:$0xff]   ;;  %1582 = vmatprep.subr.bf16.mxu0 %v1758_v0  ;;  %v1763_v5 = vld [vmem:[%s2336_s1 + $0xc8] sm:$0xff]   ;;  %v1767_v9 = vld [vmem:[%s2336_s1 + $0xd0] sm:$0xff]  }
   0x3   :  { %v1760_v2 = vld [vmem:[%s2336_s1] sm:$0xff]   ;;  %1604 = vmatprep.subr.bf16.mxu1 %v1759_v1  ;;  %v1764_v6 = vld [vmem:[%s2336_s1 + $0x8] sm:$0xff]   ;;  %v1768_v10 = vld [vmem:[%s2336_s1 + $0x10] sm:$0xff]  }
   0x4   :  { %v1761_v3 = vld [vmem:[%s2336_s1 + $0x80] sm:$0xff]   ;;  %1583 = vmatpush3.bf16.msra.mxu0 %v1760_v2  ;;  %v1765_v7 = vld [vmem:[%s2336_s1 + $0x88] sm:$0xff]   ;;  %v1769_v11 = vld [vmem:[%s2336_s1 + $0x90] sm:$0xff]  }
   0x5   :  { %1605 = vmatpush3.bf16.msra.mxu1 %v1761_v3  ;;  %1584 = vmatprep.subr.bf16.mxu0 %v1762_v4  ;;  %v1770_v12 = vld [vmem:[%s2336_s1 + $0x58] sm:$0xff]   ;;  %v1774_v16 = vld [vmem:[%s2336_s1 + $0x60] sm:$0xff]   ;;  %v1778_v20 = vld [vmem:[%s2336_s1 + $0x68] sm:$0xff]  }
   0x6   :  { %1606 = vmatprep.subr.bf16.mxu1 %v1763_v5  ;;  %v1771_v13 = vld [vmem:[%s2336_s1 + $0xd8] sm:$0xff]   ;;  %v1775_v17 = vld [vmem:[%s2336_s1 + $0xe0] sm:$0xff]   ;;  %v1779_v21 = vld [vmem:[%s2336_s1 + $0xe8] sm:$0xff]  }
   0x7   :  { %v1772_v14 = vld [vmem:[%s2336_s1 + $0x18] sm:$0xff]   ;;  %v1776_v18 = vld [vmem:[%s2336_s1 + $0x20] sm:$0xff]   ;;  %v1780_v22 = vld [vmem:[%s2336_s1 + $0x28] sm:$0xff]  }
   0x8   :  { %1585 = vmatpush3.bf16.msra.mxu0 %v1764_v6  ;;  %v1773_v15 = vld [vmem:[%s2336_s1 + $0x98] sm:$0xff]   ;;  %v1777_v19 = vld [vmem:[%s2336_s1 + $0xa0] sm:$0xff]   ;;  %v1781_v23 = vld [vmem:[%s2336_s1 + $0xa8] sm:$0xff]  }
   0x9   :  { %1607 = vmatpush3.bf16.msra.mxu1 %v1765_v7  ;;  %1586 = vmatprep.subr.bf16.mxu0 %v1766_v8  ;;  %v1782_v24 = vld [vmem:[%s2336_s1 + $0x70] sm:$0xff]   ;;  %v1786_v28 = vld [vmem:[%s2336_s1 + $0x78] sm:$0xff]   ;;  %v15_v32 = vld [vmem:[%s2337_s0] sm:$0xff] }
   0xa   :  { %1608 = vmatprep.subr.bf16.mxu1 %v1767_v9  ;;  %v1783_v25 = vld [vmem:[%s2336_s1 + $0xf0] sm:$0xff]   ;;  %v1787_v29 = vld [vmem:[%s2336_s1 + $0xf8] sm:$0xff]   ;;  %v16_v33 = vld [vmem:[%s2337_s0 + $0x8] sm:$0xff]  ;;  %v1438_v34 = vcombine.low %v15_v32, %v15_v32  ;;  %v1439_v35 = vcombine.high %v15_v32, %v15_v32 }
   0xb   :  { %v1784_v26 = vld [vmem:[%s2336_s1 + $0x30] sm:$0xff]   ;;  %v1788_v30 = vld [vmem:[%s2336_s1 + $0x38] sm:$0xff]   ;;  %v1440_v36 = vcombine.low %v16_v33, %v16_v33  ;;  %v1441_v37 = vcombine.high %v16_v33, %v16_v33  ;;  %v1794_v38 = vld [vmem:[%s2336_s1 + $0x140] sm:$0xff]  }
   0xc   :  { %1587 = vmatpush3.bf16.msra.mxu0 %v1768_v10  ;;  %v1785_v27 = vld [vmem:[%s2336_s1 + $0xb0] sm:$0xff]   ;;  %v1789_v31 = vld [vmem:[%s2336_s1 + $0xb8] sm:$0xff]   ;;  %v1795_v39 = vld [vmem:[%s2336_s1 + $0x1c0] sm:$0xff]   ;;  %1142 = vmatprep.mubr.bf16.mxu0 %v1439_v35 }
   0xd   :  { %1609 = vmatpush3.bf16.msra.mxu1 %v1769_v11  ;;  %1588 = vmatprep.subr.bf16.mxu0 %v1770_v12  ;;  %v1796_v40 = vld [vmem:[%s2336_s1 + $0x100] sm:$0xff]   ;;  %v1798_v42 = vld [vmem:[%s2336_s1 + $0x148] sm:$0xff]   ;;  %v1802_v46 = vld [vmem:[%s2336_s1 + $0x150] sm:$0xff]  }
   0xe   :  { %1610 = vmatprep.subr.bf16.mxu1 %v1771_v13  ;;  %1182 = vmatprep.mubr.bf16.mxu1 %v1441_v37  ;;  %v1797_v41 = vld [vmem:[%s2336_s1 + $0x180] sm:$0xff]   ;;  %v1799_v43 = vld [vmem:[%s2336_s1 + $0x1c8] sm:$0xff]   ;;  %v1803_v47 = vld [vmem:[%s2336_s1 + $0x1d0] sm:$0xff]  }
   0xf   :  { %v1800_v44 = vld [vmem:[%s2336_s1 + $0x108] sm:$0xff]   ;;  %v1804_v48 = vld [vmem:[%s2336_s1 + $0x110] sm:$0xff]   ;;  %v1806_v50 = vld [vmem:[%s2336_s1 + $0x158] sm:$0xff]  }
  0x10   :  { %1589 = vmatpush3.bf16.msra.mxu0 %v1772_v14  ;;  %v1801_v45 = vld [vmem:[%s2336_s1 + $0x188] sm:$0xff]   ;;  %v1805_v49 = vld [vmem:[%s2336_s1 + $0x190] sm:$0xff]   ;;  %v1807_v51 = vld [vmem:[%s2336_s1 + $0x1d8] sm:$0xff]  }
  0x11   :  { %1611 = vmatpush3.bf16.msra.mxu1 %v1773_v15  ;;  %1590 = vmatprep.subr.bf16.mxu0 %v1774_v16  ;;  %v1808_v52 = vld [vmem:[%s2336_s1 + $0x118] sm:$0xff]   ;;  %v1810_v54 = vld [vmem:[%s2336_s1 + $0x160] sm:$0xff]   ;;  %v1814_v58 = vld [vmem:[%s2336_s1 + $0x168] sm:$0xff]  }
  0x12   :  { %1612 = vmatprep.subr.bf16.mxu1 %v1775_v17  ;;  %v1809_v53 = vld [vmem:[%s2336_s1 + $0x198] sm:$0xff]   ;;  %v1811_v55 = vld [vmem:[%s2336_s1 + $0x1e0] sm:$0xff]   ;;  %v1815_v59 = vld [vmem:[%s2336_s1 + $0x1e8] sm:$0xff]  }
  0x13   :  { %v1812_v56 = vld [vmem:[%s2336_s1 + $0x120] sm:$0xff]   ;;  %v1816_v60 = vld [vmem:[%s2336_s1 + $0x128] sm:$0xff]   ;;  %v1818_v62 = vld [vmem:[%s2336_s1 + $0x170] sm:$0xff]  }
  0x14   :  { %1591 = vmatpush3.bf16.msra.mxu0 %v1776_v18  ;;  %v1813_v57 = vld [vmem:[%s2336_s1 + $0x1a0] sm:$0xff]   ;;  %v1817_v61 = vld [vmem:[%s2336_s1 + $0x1a8] sm:$0xff]   ;;  %v1819_v63 = vld [vmem:[%s2336_s1 + $0x1f0] sm:$0xff]  }
  0x15   :  { %1613 = vmatpush3.bf16.msra.mxu1 %v1777_v19  ;;  %1592 = vmatprep.subr.bf16.mxu0 %v1778_v20  ;;  %v1820_v0 = vld [vmem:[%s2336_s1 + $0x130] sm:$0xff]   ;;  %v1822_v2 = vld [vmem:[%s2336_s1 + $0x178] sm:$0xff]   ;;  %v1830_v12 = vld [vmem:[%s2336_s1 + $0x240] sm:$0xff]  }
  0x16   :  { %1614 = vmatprep.subr.bf16.mxu1 %v1779_v21  ;;  %v1821_v1 = vld [vmem:[%s2336_s1 + $0x1b0] sm:$0xff]   ;;  %v1823_v3 = vld [vmem:[%s2336_s1 + $0x1f8] sm:$0xff]   ;;  %v1831_v13 = vld [vmem:[%s2336_s1 + $0x2c0] sm:$0xff]  }
  0x17   :  { %v1824_v4 = vld [vmem:[%s2336_s1 + $0x138] sm:$0xff]   ;;  %v17_v6 = vld [vmem:[%s2337_s0 + $0x10] sm:$0xff]  ;;  %v1832_v14 = vld [vmem:[%s2336_s1 + $0x200] sm:$0xff]  }
  0x18   :  { %1593 = vmatpush3.bf16.msra.mxu0 %v1780_v22  ;;  %v1825_v5 = vld [vmem:[%s2336_s1 + $0x1b8] sm:$0xff]   ;;  %v1442_v7 = vcombine.low %v17_v6, %v17_v6  ;;  %v1443_v8 = vcombine.high %v17_v6, %v17_v6  ;;  %v1833_v15 = vld [vmem:[%s2336_s1 + $0x280] sm:$0xff]   ;;  %v1834_v16 = vld [vmem:[%s2336_s1 + $0x248] sm:$0xff]  }
  0x19   :  { %1615 = vmatpush3.bf16.msra.mxu1 %v1781_v23  ;;  %1594 = vmatprep.subr.bf16.mxu0 %v1782_v24  ;;  %v18_v9 = vld [vmem:[%s2337_s0 + $0x18] sm:$0xff]  ;;  %v1835_v17 = vld [vmem:[%s2336_s1 + $0x2c8] sm:$0xff]   ;;  %v1838_v20 = vld [vmem:[%s2336_s1 + $0x250] sm:$0xff]  }
  0x1a   :  { %1616 = vmatprep.subr.bf16.mxu1 %v1783_v25  ;;  %v1444_v10 = vcombine.low %v18_v9, %v18_v9  ;;  %v1445_v11 = vcombine.high %v18_v9, %v18_v9  ;;  %v1836_v18 = vld [vmem:[%s2336_s1 + $0x208] sm:$0xff]   ;;  %v1839_v21 = vld [vmem:[%s2336_s1 + $0x2d0] sm:$0xff]   ;;  %v1842_v24 = vld [vmem:[%s2336_s1 + $0x258] sm:$0xff]  }
  0x1b   :  { %v1837_v19 = vld [vmem:[%s2336_s1 + $0x288] sm:$0xff]   ;;  %v1840_v22 = vld [vmem:[%s2336_s1 + $0x210] sm:$0xff]   ;;  %v1843_v25 = vld [vmem:[%s2336_s1 + $0x2d8] sm:$0xff]  }
  0x1c   :  { %1595 = vmatpush3.bf16.msra.mxu0 %v1784_v26  ;;  %v1841_v23 = vld [vmem:[%s2336_s1 + $0x290] sm:$0xff]   ;;  %v1844_v26 = vld [vmem:[%s2336_s1 + $0x218] sm:$0xff]   ;;  %v1850_v32 = vld [vmem:[%s2336_s1 + $0x268] sm:$0xff]  }
  0x1d   :  { %1617 = vmatpush3.bf16.msra.mxu1 %v1785_v27  ;;  %1596 = vmatprep.subr.bf16.mxu0 %v1786_v28  ;;  %v1845_v27 = vld [vmem:[%s2336_s1 + $0x298] sm:$0xff]   ;;  %v1846_v28 = vld [vmem:[%s2336_s1 + $0x260] sm:$0xff]   ;;  %v1851_v33 = vld [vmem:[%s2336_s1 + $0x2e8] sm:$0xff]  }
  0x1e   :  { %1618 = vmatprep.subr.bf16.mxu1 %v1787_v29  ;;  %v1847_v29 = vld [vmem:[%s2336_s1 + $0x2e0] sm:$0xff]   ;;  %v1853_v35 = vld [vmem:[%s2336_s1 + $0x2a8] sm:$0xff]   ;;  %v1855_v37 = vld [vmem:[%s2336_s1 + $0x2f0] sm:$0xff]  }
  0x1f   :  { %v1886_v6 = vld [vmem:[%s2336_s1 + $0x368] sm:$0xff]  }
  0x20   :  { %1597 = vmatpush3.bf16.msra.mxu0 %v1788_v30  ;;  %v1848_v30 = vld [vmem:[%s2336_s1 + $0x220] sm:$0xff]   ;;  %v1889_v9 = vld [vmem:[%s2336_s1 + $0x3a8] sm:$0xff]  }
  0x21   :  { %1619 = vmatpush3.bf16.msra.mxu1 %v1789_v31  ;;  %1626 = vmatprep.subr.bf16.mxu0 %v1794_v38  ;;  %v1849_v31 = vld [vmem:[%s2336_s1 + $0x2a0] sm:$0xff]   ;;  %v1856_v38 = vld [vmem:[%s2336_s1 + $0x230] sm:$0xff]  }
  0x22   :  { %1648 = vmatprep.subr.bf16.mxu1 %v1795_v39  ;;  %v1857_v39 = vld [vmem:[%s2336_s1 + $0x2b0] sm:$0xff]  }
  0x23   :  { %1143 = vmatmul.mubr.bf16.vlgmr.msra.gmra.mrb[0].mxu0 %v1438_v34  ;;  %v1852_v34 = vld [vmem:[%s2336_s1 + $0x228] sm:$0xff]  }
  0x24   :  { %1183 = vmatmul.mubr.bf16.vlgmr.msra.gmra.mrb[0].mxu1 %v1440_v36  ;;  %1627 = vmatpush3.bf16.msra.mxu0 %v1796_v40  ;;  %v1854_v36 = vld [vmem:[%s2336_s1 + $0x270] sm:$0xff]   ;;  %v1858_v40 = vld [vmem:[%s2336_s1 + $0x278] sm:$0xff]  }
  0x25   :  { %1649 = vmatpush3.bf16.msra.mxu1 %v1797_v41  ;;  %1628 = vmatprep.subr.bf16.mxu0 %v1798_v42  ;;  %v1859_v41 = vld [vmem:[%s2336_s1 + $0x2f8] sm:$0xff]  }
  0x26   :  { %1650 = vmatprep.subr.bf16.mxu1 %v1799_v43  ;;  %1222 = vmatprep.mubr.bf16.mxu0 %v1443_v8  ;;  %v1860_v42 = vld [vmem:[%s2336_s1 + $0x238] sm:$0xff]   ;;  %v1888_v8 = vld [vmem:[%s2336_s1 + $0x328] sm:$0xff]  }
  0x27   :  { %1262 = vmatprep.mubr.bf16.mxu1 %v1445_v11  ;;  %v1861_v43 = vld [vmem:[%s2336_s1 + $0x2b8] sm:$0xff]   ;;  %v1891_v11 = vld [vmem:[%s2336_s1 + $0x3f0] sm:$0xff]  }
  0x28   :  { %1629 = vmatpush3.bf16.msra.mxu0 %v1800_v44  ;;  %v19_v44 = vld [vmem:[%s2337_s0 + $0x20] sm:$0xff] }
  0x29   :  { %1651 = vmatpush3.bf16.msra.mxu1 %v1801_v45  ;;  %1630 = vmatprep.subr.bf16.mxu0 %v1802_v46  ;;  %v20_v45 = vld [vmem:[%s2337_s0 + $0x28] sm:$0xff]  ;;  %v1446_v46 = vcombine.low %v19_v44, %v19_v44 }
  0x2a   :  { %1652 = vmatprep.subr.bf16.mxu1 %v1803_v47  ;;  %v1447_v47 = vcombine.high %v19_v44, %v19_v44 }
  0x2c   :  { %1631 = vmatpush3.bf16.msra.mxu0 %v1804_v48  ;;  %v1448_v48 = vcombine.low %v20_v45, %v20_v45 }
  0x2d   :  { %1653 = vmatpush3.bf16.msra.mxu1 %v1805_v49  ;;  %1632 = vmatprep.subr.bf16.mxu0 %v1806_v50  ;;  %v1449_v49 = vcombine.high %v20_v45, %v20_v45  ;;  %v1866_v50 = vld [vmem:[%s2336_s1 + $0x340] sm:$0xff]  }
  0x2e   :  { %1654 = vmatprep.subr.bf16.mxu1 %v1807_v51  ;;  %v1867_v51 = vld [vmem:[%s2336_s1 + $0x3c0] sm:$0xff]  }
  0x30   :  { %1633 = vmatpush3.bf16.msra.mxu0 %v1808_v52  ;;  %v1868_v52 = vld [vmem:[%s2336_s1 + $0x300] sm:$0xff]  }
  0x31   :  { %1655 = vmatpush3.bf16.msra.mxu1 %v1809_v53  ;;  %1634 = vmatprep.subr.bf16.mxu0 %v1810_v54  ;;  %v1869_v53 = vld [vmem:[%s2336_s1 + $0x380] sm:$0xff]   ;;  %v1870_v54 = vld [vmem:[%s2336_s1 + $0x348] sm:$0xff]  }
  0x32   :  { %1656 = vmatprep.subr.bf16.mxu1 %v1811_v55  ;;  %v1871_v55 = vld [vmem:[%s2336_s1 + $0x3c8] sm:$0xff]  }
  0x34   :  { %1635 = vmatpush3.bf16.msra.mxu0 %v1812_v56  ;;  %v1872_v56 = vld [vmem:[%s2336_s1 + $0x308] sm:$0xff]  }
  0x35   :  { %1657 = vmatpush3.bf16.msra.mxu1 %v1813_v57  ;;  %1636 = vmatprep.subr.bf16.mxu0 %v1814_v58  ;;  %v1873_v57 = vld [vmem:[%s2336_s1 + $0x388] sm:$0xff]   ;;  %v1874_v58 = vld [vmem:[%s2336_s1 + $0x350] sm:$0xff]  }
  0x36   :  { %1658 = vmatprep.subr.bf16.mxu1 %v1815_v59  ;;  %v1875_v59 = vld [vmem:[%s2336_s1 + $0x3d0] sm:$0xff]  }
  0x38   :  { %1637 = vmatpush3.bf16.msra.mxu0 %v1816_v60  ;;  %v1876_v60 = vld [vmem:[%s2336_s1 + $0x310] sm:$0xff]  }
  0x39   :  { %1659 = vmatpush3.bf16.msra.mxu1 %v1817_v61  ;;  %1638 = vmatprep.subr.bf16.mxu0 %v1818_v62  ;;  %v1877_v61 = vld [vmem:[%s2336_s1 + $0x390] sm:$0xff]   ;;  %v1878_v62 = vld [vmem:[%s2336_s1 + $0x358] sm:$0xff]  }
  0x3a   :  { %1660 = vmatprep.subr.bf16.mxu1 %v1819_v63  ;;  %v1879_v63 = vld [vmem:[%s2336_s1 + $0x3d8] sm:$0xff]  }
  0x3c   :  { %1639 = vmatpush3.bf16.msra.mxu0 %v1820_v0  ;;  %v1880_v0 = vld [vmem:[%s2336_s1 + $0x318] sm:$0xff]  }
  0x3d   :  { %1661 = vmatpush3.bf16.msra.mxu1 %v1821_v1  ;;  %1640 = vmatprep.subr.bf16.mxu0 %v1822_v2  ;;  %v1881_v1 = vld [vmem:[%s2336_s1 + $0x398] sm:$0xff]   ;;  %v1882_v2 = vld [vmem:[%s2336_s1 + $0x360] sm:$0xff]  }
  0x3e   :  { %1662 = vmatprep.subr.bf16.mxu1 %v1823_v3  ;;  %v1883_v3 = vld [vmem:[%s2336_s1 + $0x3e0] sm:$0xff]  }
  0x40   :  { %1641 = vmatpush3.bf16.msra.mxu0 %v1824_v4  ;;  %v1884_v4 = vld [vmem:[%s2336_s1 + $0x320] sm:$0xff]  }
  0x41   :  { %1663 = vmatpush3.bf16.msra.mxu1 %v1825_v5  ;;  %1670 = vmatprep.subr.bf16.mxu0 %v1830_v12  ;;  %v1885_v5 = vld [vmem:[%s2336_s1 + $0x3a0] sm:$0xff]   ;;  %v1892_v12 = vld [vmem:[%s2336_s1 + $0x330] sm:$0xff]  }
  0x42   :  { %1692 = vmatprep.subr.bf16.mxu1 %v1831_v13  ;;  %v1893_v13 = vld [vmem:[%s2336_s1 + $0x3b0] sm:$0xff]  }
  0x43   :  { %1223 = vmatmul.mubr.bf16.vlgmr.msra.gmra.mrb[4].mxu0 %v1442_v7  ;;  %v1887_v7 = vld [vmem:[%s2336_s1 + $0x3e8] sm:$0xff]  }
  0x44   :  { %1263 = vmatmul.mubr.bf16.vlgmr.msra.gmra.mrb[4].mxu1 %v1444_v10  ;;  %1671 = vmatpush3.bf16.msra.mxu0 %v1832_v14  ;;  %v1890_v10 = vld [vmem:[%s2336_s1 + $0x370] sm:$0xff]   ;;  %v1894_v14 = vld [vmem:[%s2336_s1 + $0x378] sm:$0xff]  }
  0x45   :  { %1693 = vmatpush3.bf16.msra.mxu1 %v1833_v15  ;;  %1672 = vmatprep.subr.bf16.mxu0 %v1834_v16  ;;  %v1895_v15 = vld [vmem:[%s2336_s1 + $0x3f8] sm:$0xff]  }
  0x46   :  { %1694 = vmatprep.subr.bf16.mxu1 %v1835_v17  ;;  %1302 = vmatprep.mubr.bf16.mxu0 %v1447_v47  ;;  %v1896_v16 = vld [vmem:[%s2336_s1 + $0x338] sm:$0xff]  }
  0x47   :  { %1342 = vmatprep.mubr.bf16.mxu1 %v1449_v49  ;;  %v1897_v17 = vld [vmem:[%s2336_s1 + $0x3b8] sm:$0xff]  }
  0x48   :  { %1673 = vmatpush3.bf16.msra.mxu0 %v1836_v18  ;;  %v21_v18 = vld [vmem:[%s2337_s0 + $0x30] sm:$0xff] }
  0x49   :  { %1695 = vmatpush3.bf16.msra.mxu1 %v1837_v19  ;;  %1674 = vmatprep.subr.bf16.mxu0 %v1838_v20  ;;  %v22_v19 = vld [vmem:[%s2337_s0 + $0x38] sm:$0xff]  ;;  %v1450_v20 = vcombine.low %v21_v18, %v21_v18 }
  0x4a   :  { %1696 = vmatprep.subr.bf16.mxu1 %v1839_v21  ;;  %v1451_v21 = vcombine.high %v21_v18, %v21_v18 }
  0x4c   :  { %1675 = vmatpush3.bf16.msra.mxu0 %v1840_v22  ;;  %v1452_v22 = vcombine.low %v22_v19, %v22_v19 }
  0x4d   :  { %1697 = vmatpush3.bf16.msra.mxu1 %v1841_v23  ;;  %1676 = vmatprep.subr.bf16.mxu0 %v1842_v24  ;;  %v1453_v23 = vcombine.high %v22_v19, %v22_v19 }
  0x4e   :  { %1698 = vmatprep.subr.bf16.mxu1 %v1843_v25 }
  0x50   :  { %1677 = vmatpush3.bf16.msra.mxu0 %v1844_v26  ;;  %v1437_v26 = vld [vmem:[%s2338_s2] ss:$0 sm:$0xff] }
  0x51   :  { %1699 = vmatpush3.bf16.msra.mxu1 %v1845_v27  ;;  %1678 = vmatprep.subr.bf16.mxu0 %v1846_v28 }
  0x52   :  { %1700 = vmatprep.subr.bf16.mxu1 %v1847_v29 }
  0x54   :  { %1679 = vmatpush3.bf16.msra.mxu0 %v1848_v30 }
  0x55   :  { %1701 = vmatpush3.bf16.msra.mxu1 %v1849_v31  ;;  %1680 = vmatprep.subr.bf16.mxu0 %v1850_v32 }
  0x56   :  { %1702 = vmatprep.subr.bf16.mxu1 %v1851_v33 }
  0x58   :  { %1681 = vmatpush3.bf16.msra.mxu0 %v1852_v34 }
  0x59   :  { %1703 = vmatpush3.bf16.msra.mxu1 %v1853_v35  ;;  %1682 = vmatprep.subr.bf16.mxu0 %v1854_v36 }
  0x5a   :  { %1704 = vmatprep.subr.bf16.mxu1 %v1855_v37 }
  0x5c   :  { %1683 = vmatpush3.bf16.msra.mxu0 %v1856_v38 }
  0x5d   :  { %1705 = vmatpush3.bf16.msra.mxu1 %v1857_v39  ;;  %1684 = vmatprep.subr.bf16.mxu0 %v1858_v40 }
  0x5e   :  { %1706 = vmatprep.subr.bf16.mxu1 %v1859_v41 }
  0x60   :  { %1685 = vmatpush3.bf16.msra.mxu0 %v1860_v42 }
  0x61   :  { %1707 = vmatpush3.bf16.msra.mxu1 %v1861_v43  ;;  %1714 = vmatprep.subr.bf16.mxu0 %v1866_v50 }
  0x62   :  { %1736 = vmatprep.subr.bf16.mxu1 %v1867_v51 }
  0x63   :  { %1303 = vmatmul.mubr.bf16.vlgmr.msra.gmra.mrb[8].mxu0 %v1446_v46 }
  0x64   :  { %1343 = vmatmul.mubr.bf16.vlgmr.msra.gmra.mrb[8].mxu1 %v1448_v48  ;;  %1715 = vmatpush3.bf16.msra.mxu0 %v1868_v52 }
  0x65   :  { %1737 = vmatpush3.bf16.msra.mxu1 %v1869_v53  ;;  %1716 = vmatprep.subr.bf16.mxu0 %v1870_v54 }
  0x66   :  { %1738 = vmatprep.subr.bf16.mxu1 %v1871_v55  ;;  %1382 = vmatprep.mubr.bf16.mxu0 %v1451_v21 }
  0x67   :  { %1422 = vmatprep.mubr.bf16.mxu1 %v1453_v23 }
  0x68   :  { %1717 = vmatpush3.bf16.msra.mxu0 %v1872_v56 }
  0x69   :  { %1739 = vmatpush3.bf16.msra.mxu1 %v1873_v57  ;;  %1718 = vmatprep.subr.bf16.mxu0 %v1874_v58 }
  0x6a   :  { %1740 = vmatprep.subr.bf16.mxu1 %v1875_v59 }
  0x6c   :  { %1719 = vmatpush3.bf16.msra.mxu0 %v1876_v60 }
  0x6d   :  { %1741 = vmatpush3.bf16.msra.mxu1 %v1877_v61  ;;  %1720 = vmatprep.subr.bf16.mxu0 %v1878_v62 }
  0x6e   :  { %1742 = vmatprep.subr.bf16.mxu1 %v1879_v63 }
  0x70   :  { %1721 = vmatpush3.bf16.msra.mxu0 %v1880_v0 }
  0x71   :  { %1743 = vmatpush3.bf16.msra.mxu1 %v1881_v1  ;;  %1722 = vmatprep.subr.bf16.mxu0 %v1882_v2 }
  0x72   :  { %1744 = vmatprep.subr.bf16.mxu1 %v1883_v3 }
  0x74   :  { %1723 = vmatpush3.bf16.msra.mxu0 %v1884_v4 }
  0x75   :  { %1745 = vmatpush3.bf16.msra.mxu1 %v1885_v5  ;;  %1724 = vmatprep.subr.bf16.mxu0 %v1886_v6 }
  0x76   :  { %1746 = vmatprep.subr.bf16.mxu1 %v1887_v7 }
  0x78   :  { %1725 = vmatpush3.bf16.msra.mxu0 %v1888_v8 }
  0x79   :  { %1747 = vmatpush3.bf16.msra.mxu1 %v1889_v9  ;;  %1726 = vmatprep.subr.bf16.mxu0 %v1890_v10 }
  0x7a   :  { %1748 = vmatprep.subr.bf16.mxu1 %v1891_v11 }
  0x7c   :  { %1727 = vmatpush3.bf16.msra.mxu0 %v1892_v12 }
  0x7d   :  { %1749 = vmatpush3.bf16.msra.mxu1 %v1893_v13  ;;  %1728 = vmatprep.subr.bf16.mxu0 %v1894_v14 }
  0x7e   :  { %1750 = vmatprep.subr.bf16.mxu1 %v1895_v15 }
  0x80   :  { %1729 = vmatpush3.bf16.msra.mxu0 %v1896_v16 }
  0x81   :  { %1751 = vmatpush3.bf16.msra.mxu1 %v1897_v17 }
  0x83   :  { %1383 = vmatmul.mubr.bf16.vlgmr.msra.gmra.mrb[12].mxu0 %v1450_v20 }
  0x84   :  { %1423 = vmatmul.mubr.bf16.vlgmr.msra.gmra.mrb[12].mxu1 %v1452_v22 }
  0xf6   :  { %v1598_v24 = vpop.f32.mrb[0].mxu0 }
  0xf7   :  { %v1620_v25 = vpop.f32.mrb[0].mxu1  ;;  %v1599_v27 = vpop.f32.mrb[1].mxu0 }
  0xf8   :  { %v1621_v28 = vpop.f32.mrb[1].mxu1  ;;  %v1600_v29 = vadd.f32 %v1599_v27, %v1598_v24  ;;  %v1601_v31 = vpop.f32.mrb[2].mxu0 }
  0xf9   :  { %v1622_v30 = vadd.f32 %v1621_v28, %v1620_v25  ;;  %v1623_v32 = vpop.f32.mrb[2].mxu1  ;;  %v1602_v33 = vpop.f32.mrb[3].mxu0 }
  0xfa   :  { %v1624_v34 = vpop.f32.mrb[3].mxu1  ;;  %v1145_v35 = vadd.f32 %v1600_v29, %v1437_v26 }
  0xfc   :  { %v1185_v36 = vadd.f32 %v1622_v30, %v1145_v35 }
 0x116   :  { %v1642_v37 = vpop.f32.mrb[4].mxu0 }
 0x117   :  { %v1664_v38 = vpop.f32.mrb[4].mxu1  ;;  %v1643_v39 = vpop.f32.mrb[5].mxu0 }
 0x118   :  { %v1665_v40 = vpop.f32.mrb[5].mxu1  ;;  %v1644_v41 = vadd.f32 %v1643_v39, %v1642_v37  ;;  %v1645_v43 = vpop.f32.mrb[6].mxu0 }
 0x119   :  { %v1666_v42 = vadd.f32 %v1665_v40, %v1664_v38  ;;  %v1667_v44 = vpop.f32.mrb[6].mxu1  ;;  %v1646_v45 = vpop.f32.mrb[7].mxu0 }
 0x11a   :  { %v1668_v46 = vpop.f32.mrb[7].mxu1  ;;  %v1225_v47 = vadd.f32 %v1644_v41, %v1185_v36 }
 0x11c   :  { %v1265_v48 = vadd.f32 %v1666_v42, %v1225_v47 }
 0x136   :  { %v1686_v49 = vpop.f32.mrb[8].mxu0 }
 0x137   :  { %v1708_v50 = vpop.f32.mrb[8].mxu1  ;;  %v1687_v51 = vpop.f32.mrb[9].mxu0 }
 0x138   :  { %v1688_v52 = vadd.f32 %v1687_v51, %v1686_v49  ;;  %v1709_v53 = vpop.f32.mrb[9].mxu1  ;;  %v1689_v54 = vpop.f32.mrb[10].mxu0 }
 0x139   :  { %v1710_v55 = vadd.f32 %v1709_v53, %v1708_v50  ;;  %v1711_v56 = vpop.f32.mrb[10].mxu1  ;;  %v1690_v57 = vpop.f32.mrb[11].mxu0 }
 0x13a   :  { %v1305_v58 = vadd.f32 %v1688_v52, %v1265_v48  ;;  %v1712_v59 = vpop.f32.mrb[11].mxu1 }
 0x13c   :  { %v1345_v60 = vadd.f32 %v1710_v55, %v1305_v58 }
 0x156   :  { %v1730_v61 = vpop.f32.mrb[12].mxu0 }
 0x157   :  { %v1752_v62 = vpop.f32.mrb[12].mxu1  ;;  %v1731_v63 = vpop.f32.mrb[13].mxu0 }
 0x158   :  { %v1732_v0 = vadd.f32 %v1731_v63, %v1730_v61  ;;  %v1753_v1 = vpop.f32.mrb[13].mxu1  ;;  %v1733_v2 = vpop.f32.mrb[14].mxu0 }
 0x159   :  { %v1754_v3 = vadd.f32 %v1753_v1, %v1752_v62  ;;  %v1755_v4 = vpop.f32.mrb[14].mxu1  ;;  %v1734_v5 = vpop.f32.mrb[15].mxu0 }
 0x15a   :  { %v1385_v6 = vadd.f32 %v1732_v0, %v1345_v60  ;;  %v1756_v7 = vpop.f32.mrb[15].mxu1 }
 0x15c   :  { %v1425_v8 = vadd.f32 %v1754_v3, %v1385_v6 }
 0x15e   :  { %v1430_v9 = vmax.f32 %v1425_v8, 0.0 }
 0x160   :  { %v1431_v10 = vpack.c.bf16 %v1430_v9, %v1430_v9 }
 0x162   :  { %1432 = vst [vmem:[%s2339_s3] sm:$0xf] %v1431_v10 }

// kernel: vqvae_forward.18
= control target key start
LH: loop header
LB: loop body
LE: loop exit
PB: predicated region body
PF: predicated region fallthrough
CT: control target
= control target key end

     0   :  { %vm1296_vm0 = vmmov 0   ;;  %s1599_s1 = inlined_call_operand.vmem [shape: bf16[1152,128], index: 1, kind: input, shape index: {}]   ;;  %s1600_s0 = inlined_call_operand.vmem [shape: bf16[8,1152], index: 0, kind: input, shape index: {}]   ;;  %s1601_s3 = inlined_call_operand.vmem [shape: bf16[128,128], index: 3, kind: input, shape index: {}]   ;;  %s1602_s2 = inlined_call_operand.vmem [shape: f32[1,128], index: 2, kind: input, shape index: {}]   ;;  %s1603_s5 = inlined_call_operand.vmem [shape: bf16[8,128], index: 5, kind: input, shape index: {}]   ;;  %s1604_s4 = inlined_call_operand.vmem [shape: f32[1,128], index: 4, kind: input, shape index: {}]   ;;  %s1605_s6 = inlined_call_operand.vmem [shape: bf16[8,128], index: 6, kind: output, shape index: {}]  }
   0x1   :  { %v1206_v0 = vld [vmem:[%s1599_s1 + $0x40] sm:$0xff]   ;;  %v1210_v4 = vld [vmem:[%s1599_s1 + $0x48] sm:$0xff]   ;;  %v1214_v8 = vld [vmem:[%s1599_s1 + $0x50] sm:$0xff]  }
   0x2   :  { %v1207_v1 = vld [vmem:[%s1599_s1] sm:$0xff]   ;;  %1058 = vmatprep.subr.bf16.mxu0 %v1206_v0  ;;  %v1211_v5 = vld [vmem:[%s1599_s1 + $0x8] sm:$0xff]   ;;  %v1215_v9 = vld [vmem:[%s1599_s1 + $0x10] sm:$0xff]  }
   0x3   :  { %v1208_v2 = vld [vmem:[%s1599_s1 + $0xc0] sm:$0xff]   ;;  %1059 = vmatpush3.bf16.msra.mxu0 %v1207_v1  ;;  %v1212_v6 = vld [vmem:[%s1599_s1 + $0xc8] sm:$0xff]   ;;  %v1216_v10 = vld [vmem:[%s1599_s1 + $0xd0] sm:$0xff]  }
   0x4   :  { %v1209_v3 = vld [vmem:[%s1599_s1 + $0x80] sm:$0xff]   ;;  %1080 = vmatprep.subr.bf16.mxu1 %v1208_v2  ;;  %1060 = vmatprep.subr.bf16.mxu0 %v1210_v4  ;;  %v1213_v7 = vld [vmem:[%s1599_s1 + $0x88] sm:$0xff]   ;;  %v1217_v11 = vld [vmem:[%s1599_s1 + $0x90] sm:$0xff]  }
   0x5   :  { %1081 = vmatpush3.bf16.msra.mxu1 %v1209_v3  ;;  %v1218_v12 = vld [vmem:[%s1599_s1 + $0x58] sm:$0xff]   ;;  %v1222_v16 = vld [vmem:[%s1599_s1 + $0x60] sm:$0xff]   ;;  %v1226_v20 = vld [vmem:[%s1599_s1 + $0x68] sm:$0xff]  }
   0x6   :  { %1082 = vmatprep.subr.bf16.mxu1 %v1212_v6  ;;  %v1219_v13 = vld [vmem:[%s1599_s1 + $0x18] sm:$0xff]   ;;  %v1223_v17 = vld [vmem:[%s1599_s1 + $0x20] sm:$0xff]   ;;  %v1227_v21 = vld [vmem:[%s1599_s1 + $0x28] sm:$0xff]  }
   0x7   :  { %1061 = vmatpush3.bf16.msra.mxu0 %v1211_v5  ;;  %v1220_v14 = vld [vmem:[%s1599_s1 + $0xd8] sm:$0xff]   ;;  %v1224_v18 = vld [vmem:[%s1599_s1 + $0xe0] sm:$0xff]   ;;  %v1228_v22 = vld [vmem:[%s1599_s1 + $0xe8] sm:$0xff]  }
   0x8   :  { %1062 = vmatprep.subr.bf16.mxu0 %v1214_v8  ;;  %v1221_v15 = vld [vmem:[%s1599_s1 + $0x98] sm:$0xff]   ;;  %v1225_v19 = vld [vmem:[%s1599_s1 + $0xa0] sm:$0xff]   ;;  %v1229_v23 = vld [vmem:[%s1599_s1 + $0xa8] sm:$0xff]  }
   0x9   :  { %1083 = vmatpush3.bf16.msra.mxu1 %v1213_v7  ;;  %v1230_v24 = vld [vmem:[%s1599_s1 + $0x70] sm:$0xff]   ;;  %v1234_v28 = vld [vmem:[%s1599_s1 + $0x78] sm:$0xff]   ;;  %v24_v31 = vld [vmem:[%s1600_s0] sm:$0xff] }
   0xa   :  { %1084 = vmatprep.subr.bf16.mxu1 %v1216_v10  ;;  %v1231_v25 = vld [vmem:[%s1599_s1 + $0x30] sm:$0xff]   ;;  %v1235_v29 = vld [vmem:[%s1599_s1 + $0x38] sm:$0xff]   ;;  %v968_v32 = vcombine.low %v24_v31, %v24_v31  ;;  %v969_v33 = vcombine.high %v24_v31, %v24_v31  ;;  %v1240_v35 = vld [vmem:[%s1599_s1 + $0x140] sm:$0xff]  }
   0xb   :  { %1063 = vmatpush3.bf16.msra.mxu0 %v1215_v9  ;;  %v1232_v26 = vld [vmem:[%s1599_s1 + $0xf0] sm:$0xff]   ;;  %v1236_v30 = vld [vmem:[%s1599_s1 + $0xf8] sm:$0xff]   ;;  %v25_v36 = vld [vmem:[%s1600_s0 + $0x8] sm:$0xff]  ;;  %v1295_v9 = vmov 0.0  }
   0xc   :  { %1064 = vmatprep.subr.bf16.mxu0 %v1218_v12  ;;  %v1233_v27 = vld [vmem:[%s1599_s1 + $0xb0] sm:$0xff]   ;;  %v1239_v34 = vld [vmem:[%s1599_s1 + $0xb8] sm:$0xff]   ;;  %676 = vmatprep.mubr.bf16.mxu0 %v969_v33  ;;  %v970_v37 = vcombine.low %v25_v36, %v25_v36  ;;  %v971_v38 = vcombine.high %v25_v36, %v25_v36  ;;  %v1243_v39 = vld [vmem:[%s1599_s1 + $0x100] sm:$0xff]  }
   0xd   :  { %1085 = vmatpush3.bf16.msra.mxu1 %v1217_v11  ;;  %v1244_v40 = vld [vmem:[%s1599_s1 + $0x1c0] sm:$0xff]   ;;  %v1246_v42 = vld [vmem:[%s1599_s1 + $0x148] sm:$0xff]   ;;  %v1250_v46 = vld [vmem:[%s1599_s1 + $0x150] sm:$0xff]  }
   0xe   :  { %1086 = vmatprep.subr.bf16.mxu1 %v1220_v14  ;;  %716 = vmatprep.mubr.bf16.mxu1 %v971_v38  ;;  %v1245_v41 = vld [vmem:[%s1599_s1 + $0x180] sm:$0xff]   ;;  %v1247_v43 = vld [vmem:[%s1599_s1 + $0x108] sm:$0xff]   ;;  %v1251_v47 = vld [vmem:[%s1599_s1 + $0x110] sm:$0xff]  }
   0xf   :  { %1065 = vmatpush3.bf16.msra.mxu0 %v1219_v13  ;;  %v1248_v44 = vld [vmem:[%s1599_s1 + $0x1c8] sm:$0xff]   ;;  %v1252_v48 = vld [vmem:[%s1599_s1 + $0x1d0] sm:$0xff]   ;;  %v1254_v50 = vld [vmem:[%s1599_s1 + $0x158] sm:$0xff]  }
  0x10   :  { %1066 = vmatprep.subr.bf16.mxu0 %v1222_v16  ;;  %v1249_v45 = vld [vmem:[%s1599_s1 + $0x188] sm:$0xff]   ;;  %v1253_v49 = vld [vmem:[%s1599_s1 + $0x190] sm:$0xff]   ;;  %v1255_v51 = vld [vmem:[%s1599_s1 + $0x118] sm:$0xff]  }
  0x11   :  { %1087 = vmatpush3.bf16.msra.mxu1 %v1221_v15  ;;  %v1256_v52 = vld [vmem:[%s1599_s1 + $0x1d8] sm:$0xff]   ;;  %v1258_v54 = vld [vmem:[%s1599_s1 + $0x160] sm:$0xff]   ;;  %v1262_v58 = vld [vmem:[%s1599_s1 + $0x168] sm:$0xff]  }
  0x12   :  { %1088 = vmatprep.subr.bf16.mxu1 %v1224_v18  ;;  %v1257_v53 = vld [vmem:[%s1599_s1 + $0x198] sm:$0xff]   ;;  %v1259_v55 = vld [vmem:[%s1599_s1 + $0x120] sm:$0xff]   ;;  %v1263_v59 = vld [vmem:[%s1599_s1 + $0x128] sm:$0xff]  }
  0x13   :  { %1067 = vmatpush3.bf16.msra.mxu0 %v1223_v17  ;;  %v1260_v56 = vld [vmem:[%s1599_s1 + $0x1e0] sm:$0xff]   ;;  %v1264_v60 = vld [vmem:[%s1599_s1 + $0x1e8] sm:$0xff]   ;;  %v1266_v62 = vld [vmem:[%s1599_s1 + $0x170] sm:$0xff]  }
  0x14   :  { %1068 = vmatprep.subr.bf16.mxu0 %v1226_v20  ;;  %v1261_v57 = vld [vmem:[%s1599_s1 + $0x1a0] sm:$0xff]   ;;  %v1265_v61 = vld [vmem:[%s1599_s1 + $0x1a8] sm:$0xff]   ;;  %v1267_v63 = vld [vmem:[%s1599_s1 + $0x130] sm:$0xff]  }
  0x15   :  { %1089 = vmatpush3.bf16.msra.mxu1 %v1225_v19  ;;  %v1268_v0 = vld [vmem:[%s1599_s1 + $0x1f0] sm:$0xff]   ;;  %v1270_v2 = vld [vmem:[%s1599_s1 + $0x178] sm:$0xff]   ;;  %v1278_v13 = vld [vmem:[%s1599_s1 + $0x200] sm:$0xff]  }
  0x16   :  { %1090 = vmatprep.subr.bf16.mxu1 %v1228_v22  ;;  %v1269_v1 = vld [vmem:[%s1599_s1 + $0x1b0] sm:$0xff]   ;;  %v1271_v3 = vld [vmem:[%s1599_s1 + $0x138] sm:$0xff]   ;;  %v1279_v14 = vld [vmem:[%s1599_s1 + $0x208] sm:$0xff]  }
  0x17   :  { %1069 = vmatpush3.bf16.msra.mxu0 %v1227_v21  ;;  %v1272_v4 = vld [vmem:[%s1599_s1 + $0x1f8] sm:$0xff]   ;;  %v26_v5 = vld [vmem:[%s1600_s0 + $0x10] sm:$0xff]  ;;  %v1282_v17 = vld [vmem:[%s1599_s1 + $0x220] sm:$0xff]  }
  0x18   :  { %1070 = vmatprep.subr.bf16.mxu0 %v1230_v24  ;;  %v972_v6 = vcombine.low %v26_v5, %v26_v5  ;;  %v973_v7 = vcombine.high %v26_v5, %v26_v5  ;;  %v1275_v8 = vld [vmem:[%s1599_s1 + $0x1b8] sm:$0xff]   ;;  %v1280_v15 = vld [vmem:[%s1599_s1 + $0x210] sm:$0xff]   ;;  %v1283_v18 = vld [vmem:[%s1599_s1 + $0x228] sm:$0xff]  }
  0x19   :  { %1091 = vmatpush3.bf16.msra.mxu1 %v1229_v23  ;;  %v27_v10 = vld [vmem:[%s1600_s0 + $0x18] sm:$0xff]  ;;  %v1284_v19 = vld [vmem:[%s1599_s1 + $0x230] sm:$0xff]   ;;  %v1286_v21 = vld [vmem:[%s1600_s0 + $0x20] ss:$0 sps:$4 sm:$0xff]  }
  0x1a   :  { %1092 = vmatprep.subr.bf16.mxu1 %v1232_v26  ;;  %v974_v11 = vcombine.low %v27_v10, %v27_v10  ;;  %v975_v12 = vcombine.high %v27_v10, %v27_v10  ;;  %v1281_v16 = vld [vmem:[%s1599_s1 + $0x218] sm:$0xff]   ;;  %v1287_v22 = vld [vmem:[%s1601_s3] sm:$0xff]   ;;  %v1288_v23 = vld [vmem:[%s1601_s3 + $0x8] sm:$0xff]  }
  0x1b   :  { %1071 = vmatpush3.bf16.msra.mxu0 %v1231_v25  ;;  %v1285_v20 = vld [vmem:[%s1599_s1 + $0x238] sm:$0xff]   ;;  %v1289_v24 = vld [vmem:[%s1601_s3 + $0x10] sm:$0xff]   ;;  %v1291_v26 = vld [vmem:[%s1601_s3 + $0x20] sm:$0xff]  }
  0x1c   :  { %1072 = vmatprep.subr.bf16.mxu0 %v1234_v28  ;;  %v1290_v25 = vld [vmem:[%s1601_s3 + $0x18] sm:$0xff]   ;;  %v1293_v28 = vld [vmem:[%s1601_s3 + $0x30] sm:$0xff]   ;;  %v967_v31 = vld [vmem:[%s1602_s2] ss:$0 sm:$0xff] }
  0x1d   :  { %1093 = vmatpush3.bf16.msra.mxu1 %v1233_v27  ;;  %v1292_v27 = vld [vmem:[%s1601_s3 + $0x28] sm:$0xff]  }
  0x1e   :  { %1094 = vmatprep.subr.bf16.mxu1 %v1236_v30 }
  0x1f   :  { %1073 = vmatpush3.bf16.msra.mxu0 %v1235_v29  ;;  %v1294_v29 = vld [vmem:[%s1601_s3 + $0x38] sm:$0xff]  }
  0x20   :  { %1102 = vmatprep.subr.bf16.mxu0 %v1240_v35 }
  0x21   :  { %1095 = vmatpush3.bf16.msra.mxu1 %v1239_v34 }
  0x22   :  { %677 = vmatmul.mubr.bf16.vlgmr.msra.gmra.mrb[0].mxu0 %v968_v32  ;;  %1124 = vmatprep.subr.bf16.mxu1 %v1244_v40 }
  0x23   :  { %1103 = vmatpush3.bf16.msra.mxu0 %v1243_v39  ;;  %756 = vmatprep.mubr.bf16.mxu0 %v973_v7 }
  0x24   :  { %717 = vmatmul.mubr.bf16.vlgmr.msra.gmra.mrb[0].mxu1 %v970_v37  ;;  %1104 = vmatprep.subr.bf16.mxu0 %v1246_v42 }
  0x25   :  { %1125 = vmatpush3.bf16.msra.mxu1 %v1245_v41  ;;  %796 = vmatprep.mubr.bf16.mxu1 %v975_v12 }
  0x26   :  { %1126 = vmatprep.subr.bf16.mxu1 %v1248_v44 }
  0x27   :  { %1105 = vmatpush3.bf16.msra.mxu0 %v1247_v43 }
  0x28   :  { %1106 = vmatprep.subr.bf16.mxu0 %v1250_v46 }
  0x29   :  { %1127 = vmatpush3.bf16.msra.mxu1 %v1249_v45 }
  0x2a   :  { %1128 = vmatprep.subr.bf16.mxu1 %v1252_v48 }
  0x2b   :  { %1107 = vmatpush3.bf16.msra.mxu0 %v1251_v47 }
  0x2c   :  { %1108 = vmatprep.subr.bf16.mxu0 %v1254_v50 }
  0x2d   :  { %1129 = vmatpush3.bf16.msra.mxu1 %v1253_v49 }
  0x2e   :  { %1130 = vmatprep.subr.bf16.mxu1 %v1256_v52 }
  0x2f   :  { %1109 = vmatpush3.bf16.msra.mxu0 %v1255_v51 }
  0x30   :  { %1110 = vmatprep.subr.bf16.mxu0 %v1258_v54 }
  0x31   :  { %1131 = vmatpush3.bf16.msra.mxu1 %v1257_v53 }
  0x32   :  { %1132 = vmatprep.subr.bf16.mxu1 %v1260_v56 }
  0x33   :  { %1111 = vmatpush3.bf16.msra.mxu0 %v1259_v55 }
  0x34   :  { %1112 = vmatprep.subr.bf16.mxu0 %v1262_v58 }
  0x35   :  { %1133 = vmatpush3.bf16.msra.mxu1 %v1261_v57 }
  0x36   :  { %1134 = vmatprep.subr.bf16.mxu1 %v1264_v60 }
  0x37   :  { %1113 = vmatpush3.bf16.msra.mxu0 %v1263_v59 }
  0x38   :  { %1114 = vmatprep.subr.bf16.mxu0 %v1266_v62  ;;  %v957_v62 = vld [vmem:[%s1603_s5] sm:$0xf] }
  0x39   :  { %1135 = vmatpush3.bf16.msra.mxu1 %v1265_v61 }
  0x3a   :  { %1136 = vmatprep.subr.bf16.mxu1 %v1268_v0  ;;  %v958_v0 = vunpack.c.l.bf16 %v957_v62 }
  0x3b   :  { %1115 = vmatpush3.bf16.msra.mxu0 %v1267_v63  ;;  %v1049_v63 = vld [vmem:[%s1604_s4] ss:$0 sm:$0xff] }
  0x3c   :  { %1116 = vmatprep.subr.bf16.mxu0 %v1270_v2 }
  0x3d   :  { %1137 = vmatpush3.bf16.msra.mxu1 %v1269_v1 }
  0x3e   :  { %1138 = vmatprep.subr.bf16.mxu1 %v1272_v4 }
  0x3f   :  { %1117 = vmatpush3.bf16.msra.mxu0 %v1271_v3 }
  0x40   :  { %1164 = vmatprep.subr.bf16.mxu0 %v1295_v9 }
  0x41   :  { %1139 = vmatpush3.bf16.msra.mxu1 %v1275_v8 }
  0x42   :  { %757 = vmatmul.mubr.bf16.vlgmr.msra.gmra.mrb[4].mxu0 %v972_v6  ;;  %1184 = vmatprep.subr.bf16.mxu1 %v1295_v9 }
  0x43   :  { %1165 = vmatpush3.bf16.msra.mxu0 %v1278_v13  ;;  %1180 = vmatprep.mubr.msk.bf16.mxu0 %vm1296_vm0, %v1295_v9 }
  0x44   :  { %797 = vmatmul.mubr.bf16.vlgmr.msra.gmra.mrb[4].mxu1 %v974_v11  ;;  %1166 = vmatprep.subr.bf16.mxu0 %v1295_v9 }
  0x45   :  { %1200 = vmatprep.mubr.msk.bf16.mxu1 %vm1296_vm0, %v1295_v9  ;;  %1185 = vmatpush3.bf16.msra.mxu1 %v1287_v22 }
  0x46   :  { %1186 = vmatprep.subr.bf16.mxu1 %v1295_v9 }
  0x47   :  { %1167 = vmatpush3.bf16.msra.mxu0 %v1279_v14 }
  0x48   :  { %1168 = vmatprep.subr.bf16.mxu0 %v1295_v9 }
  0x49   :  { %1187 = vmatpush3.bf16.msra.mxu1 %v1288_v23 }
  0x4a   :  { %1188 = vmatprep.subr.bf16.mxu1 %v1295_v9 }
  0x4b   :  { %1169 = vmatpush3.bf16.msra.mxu0 %v1280_v15 }
  0x4c   :  { %1170 = vmatprep.subr.bf16.mxu0 %v1295_v9 }
  0x4d   :  { %1189 = vmatpush3.bf16.msra.mxu1 %v1289_v24 }
  0x4e   :  { %1190 = vmatprep.subr.bf16.mxu1 %v1295_v9 }
  0x4f   :  { %1171 = vmatpush3.bf16.msra.mxu0 %v1281_v16 }
  0x50   :  { %1172 = vmatprep.subr.bf16.mxu0 %v1295_v9 }
  0x51   :  { %1191 = vmatpush3.bf16.msra.mxu1 %v1290_v25 }
  0x52   :  { %1192 = vmatprep.subr.bf16.mxu1 %v1295_v9 }
  0x53   :  { %1173 = vmatpush3.bf16.msra.mxu0 %v1282_v17 }
  0x54   :  { %1174 = vmatprep.subr.bf16.mxu0 %v1295_v9 }
  0x55   :  { %1193 = vmatpush3.bf16.msra.mxu1 %v1291_v26 }
  0x56   :  { %1194 = vmatprep.subr.bf16.mxu1 %v1295_v9 }
  0x57   :  { %1175 = vmatpush3.bf16.msra.mxu0 %v1283_v18 }
  0x58   :  { %1176 = vmatprep.subr.bf16.mxu0 %v1295_v9 }
  0x59   :  { %1195 = vmatpush3.bf16.msra.mxu1 %v1292_v27 }
  0x5a   :  { %1196 = vmatprep.subr.bf16.mxu1 %v1295_v9 }
  0x5b   :  { %1177 = vmatpush3.bf16.msra.mxu0 %v1284_v19 }
  0x5c   :  { %1178 = vmatprep.subr.bf16.mxu0 %v1295_v9 }
  0x5d   :  { %1197 = vmatpush3.bf16.msra.mxu1 %v1293_v28 }
  0x5e   :  { %1198 = vmatprep.subr.bf16.mxu1 %v1295_v9 }
  0x5f   :  { %1179 = vmatpush3.bf16.msra.mxu0 %v1285_v20 }
  0x61   :  { %1199 = vmatpush3.bf16.msra.mxu1 %v1294_v29 }
  0x62   :  { %1181 = vmatmul.mubr.bf16.vlgmr.msra.gmra.mrb[8].mxu0 %v1286_v21 }
  0xf5   :  { %v1074_v30 = vpop.f32.mrb[0].mxu0 }
  0xf6   :  { %v1075_v32 = vpop.f32.mrb[1].mxu0 }
  0xf7   :  { %v1076_v33 = vadd.f32 %v1075_v32, %v1074_v30  ;;  %v1077_v34 = vpop.f32.mrb[2].mxu0  ;;  %v1096_v35 = vpop.f32.mrb[0].mxu1 }
  0xf8   :  { %v1078_v36 = vpop.f32.mrb[3].mxu0  ;;  %v1097_v37 = vpop.f32.mrb[1].mxu1 }
  0xf9   :  { %v679_v38 = vadd.f32 %v1076_v33, %v967_v31  ;;  %v1098_v39 = vadd.f32 %v1097_v37, %v1096_v35  ;;  %v1099_v40 = vpop.f32.mrb[2].mxu1 }
  0xfa   :  { %v1100_v41 = vpop.f32.mrb[3].mxu1 }
  0xfb   :  { %v719_v42 = vadd.f32 %v1098_v39, %v679_v38 }
 0x115   :  { %v1118_v43 = vpop.f32.mrb[4].mxu0 }
 0x116   :  { %v1119_v44 = vpop.f32.mrb[5].mxu0 }
 0x117   :  { %v1120_v45 = vadd.f32 %v1119_v44, %v1118_v43  ;;  %v1121_v46 = vpop.f32.mrb[6].mxu0  ;;  %v1140_v47 = vpop.f32.mrb[4].mxu1 }
 0x118   :  { %v1122_v48 = vpop.f32.mrb[7].mxu0  ;;  %v1141_v49 = vpop.f32.mrb[5].mxu1 }
 0x119   :  { %v759_v50 = vadd.f32 %v1120_v45, %v719_v42  ;;  %v1142_v51 = vadd.f32 %v1141_v49, %v1140_v47  ;;  %v1143_v52 = vpop.f32.mrb[6].mxu1 }
 0x11a   :  { %v1144_v53 = vpop.f32.mrb[7].mxu1 }
 0x11b   :  { %v799_v54 = vadd.f32 %v1142_v51, %v759_v50 }
 0x135   :  { %v838_v55 = vpop.f32.mrb[8].mxu0 }
 0x136   :  { %v839_v56 = vadd.f32 %v838_v55, %v799_v54  ;;  %v1182_v57 = vpop.f32.mrb[9].mxu0 }
 0x137   :  { %v841_v58 = vpop.f32.mrb[10].mxu0 }
 0x138   :  { %v844_v59 = vmax.f32 %v839_v56, 0.0  ;;  %v1183_v60 = vpop.f32.mrb[11].mxu0 }
 0x13a   :  { %v845_v61 = vpack.c.bf16 %v844_v59, %v844_v59 }
 0x13c   :  { %1201 = vmatmul.mubr.bf16.vlgmr.msra.gmra.mrb[8].mxu1 %v845_v61 }
 0x20f   :  { %v951_v1 = vpop.f32.mrb[8].mxu1 }
 0x210   :  { %v952_v2 = vadd.f32 %v1049_v63, %v951_v1  ;;  %v1202_v3 = vpop.f32.mrb[9].mxu1 }
 0x211   :  { %v954_v4 = vpop.f32.mrb[10].mxu1 }
 0x212   :  { %v959_v5 = vadd.f32 %v958_v0, %v952_v2  ;;  %v1203_v6 = vpop.f32.mrb[11].mxu1 }
 0x214   :  { %v960_v7 = vmax.f32 %v959_v5, 0.0 }
 0x216   :  { %v961_v8 = vpack.c.bf16 %v960_v7, %v960_v7 }
 0x218   :  { %962 = vst [vmem:[%s1605_s6] sm:$0xf] %v961_v8 }

// kernel: vqvae_forward.21
= control target key start
LH: loop header
LB: loop body
LE: loop exit
PB: predicated region body
PF: predicated region fallthrough
CT: control target
= control target key end

     0   :  { %v134_v0 = vmov 0.0   ;;  %vm135_vm0 = vmmov 0   ;;  %vm55_vm1 = vcmask 523264   ;;  %s177_s1 = inlined_call_operand.vmem [shape: bf16[64,128], index: 1, kind: input, shape index: {}]   ;;  %s178_s0 = inlined_call_operand.vmem [shape: bf16[8,64], index: 0, kind: input, shape index: {}]   ;;  %s179_s2 = inlined_call_operand.vmem [shape: f32[1,128], index: 2, kind: input, shape index: {}]   ;;  %s180_s3 = inlined_call_operand.vmem [shape: bf16[8,128], index: 3, kind: output, shape index: {}]  }
   0x1   :  { %116 = vmatprep.subr.bf16.mxu0 %v134_v0  ;;  %v130_v1 = vld [vmem:[%s177_s1] sm:$0xff]   ;;  %124 = vmatprep.mubr.msk.bf16.mxu0 %vm135_vm0, %v134_v0  ;;  %v131_v2 = vld [vmem:[%s177_s1 + $0x8] sm:$0xff]   ;;  %v132_v3 = vld [vmem:[%s177_s1 + $0x10] sm:$0xff]  }
   0x2   :  { %117 = vmatpush3.bf16.msra.mxu0 %v130_v1  ;;  %v133_v4 = vld [vmem:[%s177_s1 + $0x18] sm:$0xff]   ;;  %v15_v5 = vld [vmem:[%s178_s0] sm:$0xf] }
   0x3   :  { %118 = vmatprep.subr.bf16.mxu0 %v134_v0  ;;  %v105_v6 = vld [vmem:[%s179_s2] ss:$0 sm:$0xff] }
   0x6   :  { %119 = vmatpush3.bf16.msra.mxu0 %v131_v2 }
   0x7   :  { %120 = vmatprep.subr.bf16.mxu0 %v134_v0 }
   0xa   :  { %121 = vmatpush3.bf16.msra.mxu0 %v132_v3 }
   0xb   :  { %122 = vmatprep.subr.bf16.mxu0 %v134_v0 }
   0xe   :  { %123 = vmatpush3.bf16.msra.mxu0 %v133_v4 }
  0x11   :  { %125 = vmatmul.mubr.msk.bf16.vlgmr.msra.gmra.mrb[0].mxu0 %vm55_vm1, %v15_v5 }
  0xe4   :  { %v93_v7 = vpop.f32.mrb[0].mxu0 }
  0xe5   :  { %v94_v8 = vadd.f32 %v105_v6, %v93_v7  ;;  %v126_v9 = vpop.f32.mrb[1].mxu0 }
  0xe6   :  { %v96_v10 = vpop.f32.mrb[2].mxu0 }
  0xe7   :  { %v99_v11 = vpack.c.bf16 %v94_v8, %v94_v8  ;;  %v127_v12 = vpop.f32.mrb[3].mxu0 }
  0xe9   :  { %100 = vst [vmem:[%s180_s3] sm:$0xf] %v99_v11 }

// kernel: vqvae_forward.25
= control target key start
LH: loop header
LB: loop body
LE: loop exit
PB: predicated region body
PF: predicated region fallthrough
CT: control target
= control target key end

     0   :  { %s3944_s1 = inlined_call_operand.vmem [shape: bf16[1152,512], index: 1, kind: input, shape index: {}]   ;;  %s3945_s0 = inlined_call_operand.vmem [shape: bf16[8,1152], index: 0, kind: input, shape index: {}]   ;;  %s3946_s2 = inlined_call_operand.vmem [shape: f32[1,512], index: 2, kind: input, shape index: {}]   ;;  %s3947_s3 = inlined_call_operand.vmem [shape: bf16[8,512], index: 3, kind: output, shape index: {}]  }
   0x1   :  { %v2576_v0 = vld [vmem:[%s3944_s1 + $0x4] ss:$16 sps:$4 sm:$0xff]   ;;  %v2578_v1 = vld [vmem:[%s3944_s1 + $0xc] ss:$16 sps:$4 sm:$0xff]   ;;  %v2580_v2 = vld [vmem:[%s3944_s1] ss:$16 sps:$4 sm:$0xff]  }
   0x2   :  { %1802 = vmatprep.subr.bf16.mxu0 %v2576_v0  ;;  %v2581_v3 = vld [vmem:[%s3944_s1 + $0x8] ss:$16 sps:$4 sm:$0xff]   ;;  %2007 = vmatprep.subr.bf16.mxu1 %v2578_v1  ;;  %v2582_v4 = vld [vmem:[%s3944_s1 + $0x24] ss:$16 sps:$4 sm:$0xff]   ;;  %v2584_v5 = vld [vmem:[%s3944_s1 + $0x2c] ss:$16 sps:$4 sm:$0xff]  }
   0x3   :  { %1803 = vmatpush1.bf16.msra.mxu0 %v2580_v2  ;;  %2008 = vmatpush1.bf16.msra.mxu1 %v2581_v3  ;;  %v2586_v6 = vld [vmem:[%s3944_s1 + $0x20] ss:$16 sps:$4 sm:$0xff]   ;;  %v2587_v7 = vld [vmem:[%s3944_s1 + $0x28] ss:$16 sps:$4 sm:$0xff]   ;;  %v2588_v8 = vld [vmem:[%s3944_s1 + $0x44] ss:$16 sps:$4 sm:$0xff]  }
   0x4   :  { %1804 = vmatprep.subr.bf16.mxu0 %v2582_v4  ;;  %2009 = vmatprep.subr.bf16.mxu1 %v2584_v5  ;;  %v2590_v9 = vld [vmem:[%s3944_s1 + $0x4c] ss:$16 sps:$4 sm:$0xff]   ;;  %v2592_v10 = vld [vmem:[%s3944_s1 + $0x40] ss:$16 sps:$4 sm:$0xff]   ;;  %v2593_v11 = vld [vmem:[%s3944_s1 + $0x48] ss:$16 sps:$4 sm:$0xff]  }
   0x5   :  { %v2594_v12 = vld [vmem:[%s3944_s1 + $0x64] ss:$16 sps:$4 sm:$0xff]   ;;  %v2596_v13 = vld [vmem:[%s3944_s1 + $0x6c] ss:$16 sps:$4 sm:$0xff]   ;;  %v2598_v14 = vld [vmem:[%s3944_s1 + $0x60] ss:$16 sps:$4 sm:$0xff]  }
   0x6   :  { %v2599_v15 = vld [vmem:[%s3944_s1 + $0x68] ss:$16 sps:$4 sm:$0xff]   ;;  %v2600_v16 = vld [vmem:[%s3944_s1 + $0x84] ss:$16 sps:$4 sm:$0xff]   ;;  %v2602_v17 = vld [vmem:[%s3944_s1 + $0x8c] ss:$16 sps:$4 sm:$0xff]  }
   0x7   :  { %1805 = vmatpush1.bf16.msra.mxu0 %v2586_v6  ;;  %2010 = vmatpush1.bf16.msra.mxu1 %v2587_v7  ;;  %v2604_v18 = vld [vmem:[%s3944_s1 + $0x80] ss:$16 sps:$4 sm:$0xff]   ;;  %v2605_v19 = vld [vmem:[%s3944_s1 + $0x88] ss:$16 sps:$4 sm:$0xff]   ;;  %v2606_v20 = vld [vmem:[%s3944_s1 + $0xa4] ss:$16 sps:$4 sm:$0xff]  }
   0x8   :  { %1806 = vmatprep.subr.bf16.mxu0 %v2588_v8  ;;  %2011 = vmatprep.subr.bf16.mxu1 %v2590_v9  ;;  %v2608_v21 = vld [vmem:[%s3944_s1 + $0xac] ss:$16 sps:$4 sm:$0xff]   ;;  %v2610_v22 = vld [vmem:[%s3944_s1 + $0xa0] ss:$16 sps:$4 sm:$0xff]   ;;  %v2611_v23 = vld [vmem:[%s3944_s1 + $0xa8] ss:$16 sps:$4 sm:$0xff]  }
   0x9   :  { %v2612_v24 = vld [vmem:[%s3944_s1 + $0xc4] ss:$16 sps:$4 sm:$0xff]   ;;  %v2614_v25 = vld [vmem:[%s3944_s1 + $0xcc] ss:$16 sps:$4 sm:$0xff]   ;;  %v2616_v26 = vld [vmem:[%s3944_s1 + $0xc0] ss:$16 sps:$4 sm:$0xff]  }
   0xa   :  { %v2617_v27 = vld [vmem:[%s3944_s1 + $0xc8] ss:$16 sps:$4 sm:$0xff]   ;;  %v2618_v28 = vld [vmem:[%s3944_s1 + $0xe4] ss:$16 sps:$4 sm:$0xff]   ;;  %v2620_v29 = vld [vmem:[%s3944_s1 + $0xec] ss:$16 sps:$4 sm:$0xff]  }
   0xb   :  { %1807 = vmatpush1.bf16.msra.mxu0 %v2592_v10  ;;  %2012 = vmatpush1.bf16.msra.mxu1 %v2593_v11  ;;  %v2622_v30 = vld [vmem:[%s3944_s1 + $0xe0] ss:$16 sps:$4 sm:$0xff]   ;;  %v2623_v31 = vld [vmem:[%s3944_s1 + $0xe8] ss:$16 sps:$4 sm:$0xff]   ;;  %v2624_v32 = vld [vmem:[%s3944_s1 + $0x104] ss:$16 sps:$4 sm:$0xff]  }
   0xc   :  { %1808 = vmatprep.subr.bf16.mxu0 %v2594_v12  ;;  %2013 = vmatprep.subr.bf16.mxu1 %v2596_v13  ;;  %v2626_v33 = vld [vmem:[%s3944_s1 + $0x10c] ss:$16 sps:$4 sm:$0xff]   ;;  %v2628_v34 = vld [vmem:[%s3944_s1 + $0x100] ss:$16 sps:$4 sm:$0xff]   ;;  %v2629_v35 = vld [vmem:[%s3944_s1 + $0x108] ss:$16 sps:$4 sm:$0xff]  }
   0xd   :  { %v2630_v36 = vld [vmem:[%s3944_s1 + $0x124] ss:$16 sps:$4 sm:$0xff]   ;;  %v2632_v37 = vld [vmem:[%s3944_s1 + $0x12c] ss:$16 sps:$4 sm:$0xff]   ;;  %v2634_v38 = vld [vmem:[%s3944_s1 + $0x120] ss:$16 sps:$4 sm:$0xff]  }
   0xe   :  { %v2635_v39 = vld [vmem:[%s3944_s1 + $0x128] ss:$16 sps:$4 sm:$0xff]   ;;  %v2636_v40 = vld [vmem:[%s3944_s1 + $0x144] ss:$16 sps:$4 sm:$0xff]   ;;  %v2638_v41 = vld [vmem:[%s3944_s1 + $0x14c] ss:$16 sps:$4 sm:$0xff]  }
   0xf   :  { %1809 = vmatpush1.bf16.msra.mxu0 %v2598_v14  ;;  %2014 = vmatpush1.bf16.msra.mxu1 %v2599_v15  ;;  %v2640_v42 = vld [vmem:[%s3944_s1 + $0x140] ss:$16 sps:$4 sm:$0xff]   ;;  %v2641_v43 = vld [vmem:[%s3944_s1 + $0x148] ss:$16 sps:$4 sm:$0xff]   ;;  %v2642_v44 = vld [vmem:[%s3944_s1 + $0x164] ss:$16 sps:$4 sm:$0xff]  }
  0x10   :  { %1810 = vmatprep.subr.bf16.mxu0 %v2600_v16  ;;  %2015 = vmatprep.subr.bf16.mxu1 %v2602_v17  ;;  %v2644_v45 = vld [vmem:[%s3944_s1 + $0x16c] ss:$16 sps:$4 sm:$0xff]   ;;  %v15_v46 = vld [vmem:[%s3945_s0] sm:$0xff]  ;;  %v2647_v49 = vld [vmem:[%s3944_s1 + $0x168] ss:$16 sps:$4 sm:$0xff]  }
  0x11   :  { %v2646_v47 = vld [vmem:[%s3944_s1 + $0x160] ss:$16 sps:$4 sm:$0xff]   ;;  %v2239_v48 = vcombine.high %v15_v46, %v15_v46  ;;  %v2648_v50 = vld [vmem:[%s3944_s1 + $0x184] ss:$16 sps:$4 sm:$0xff]   ;;  %v2650_v51 = vld [vmem:[%s3944_s1 + $0x18c] ss:$16 sps:$4 sm:$0xff]   ;;  %v2238_v4 = vcombine.low %v15_v46, %v15_v46 }
  0x12   :  { %v2652_v52 = vld [vmem:[%s3944_s1 + $0x180] ss:$16 sps:$4 sm:$0xff]   ;;  %v2653_v53 = vld [vmem:[%s3944_s1 + $0x188] ss:$16 sps:$4 sm:$0xff]   ;;  %v2654_v54 = vld [vmem:[%s3944_s1 + $0x1a4] ss:$16 sps:$4 sm:$0xff]  }
  0x13   :  { %1811 = vmatpush1.bf16.msra.mxu0 %v2604_v18  ;;  %2016 = vmatpush1.bf16.msra.mxu1 %v2605_v19  ;;  %v2656_v55 = vld [vmem:[%s3944_s1 + $0x1ac] ss:$16 sps:$4 sm:$0xff]   ;;  %v2658_v56 = vld [vmem:[%s3944_s1 + $0x1a0] ss:$16 sps:$4 sm:$0xff]   ;;  %v2659_v57 = vld [vmem:[%s3944_s1 + $0x1a8] ss:$16 sps:$4 sm:$0xff]  }
  0x14   :  { %1812 = vmatprep.subr.bf16.mxu0 %v2606_v20  ;;  %2017 = vmatprep.subr.bf16.mxu1 %v2608_v21  ;;  %v2660_v58 = vld [vmem:[%s3944_s1 + $0x1c4] ss:$16 sps:$4 sm:$0xff]   ;;  %v2662_v59 = vld [vmem:[%s3944_s1 + $0x1cc] ss:$16 sps:$4 sm:$0xff]   ;;  %v2664_v60 = vld [vmem:[%s3944_s1 + $0x1c0] ss:$16 sps:$4 sm:$0xff]  }
  0x15   :  { %1834 = vmatprep.mubr.bf16.mxu0 %v2239_v48  ;;  %2039 = vmatprep.mubr.bf16.mxu1 %v2239_v48  ;;  %v2665_v61 = vld [vmem:[%s3944_s1 + $0x1c8] ss:$16 sps:$4 sm:$0xff]   ;;  %v2666_v62 = vld [vmem:[%s3944_s1 + $0x1e4] ss:$16 sps:$4 sm:$0xff]   ;;  %v2668_v63 = vld [vmem:[%s3944_s1 + $0x1ec] ss:$16 sps:$4 sm:$0xff]  }
  0x16   :  { %v2670_v0 = vld [vmem:[%s3944_s1 + $0x1e0] ss:$16 sps:$4 sm:$0xff]   ;;  %v2671_v1 = vld [vmem:[%s3944_s1 + $0x1e8] ss:$16 sps:$4 sm:$0xff]   ;;  %v2676_v2 = vld [vmem:[%s3944_s1 + $0x204] ss:$16 sps:$4 sm:$0xff]  }
  0x17   :  { %1813 = vmatpush1.bf16.msra.mxu0 %v2610_v22  ;;  %2018 = vmatpush1.bf16.msra.mxu1 %v2611_v23  ;;  %v2679_v3 = vld [vmem:[%s3944_s1 + $0x20c] ss:$16 sps:$4 sm:$0xff]   ;;  %v2674_v5 = vld [vmem:[%s3944_s1 + $0x200] ss:$16 sps:$4 sm:$0xff]   ;;  %v2677_v6 = vld [vmem:[%s3944_s1 + $0x208] ss:$16 sps:$4 sm:$0xff]  }
  0x18   :  { %1814 = vmatprep.subr.bf16.mxu0 %v2612_v24  ;;  %2019 = vmatprep.subr.bf16.mxu1 %v2614_v25  ;;  %v2682_v7 = vld [vmem:[%s3944_s1 + $0x224] ss:$16 sps:$4 sm:$0xff]   ;;  %v2685_v8 = vld [vmem:[%s3944_s1 + $0x22c] ss:$16 sps:$4 sm:$0xff]   ;;  %v2680_v9 = vld [vmem:[%s3944_s1 + $0x220] ss:$16 sps:$4 sm:$0xff]  }
  0x19   :  { %v2683_v10 = vld [vmem:[%s3944_s1 + $0x228] ss:$16 sps:$4 sm:$0xff]   ;;  %v2688_v11 = vld [vmem:[%s3944_s1 + $0x244] ss:$16 sps:$4 sm:$0xff]   ;;  %v2691_v12 = vld [vmem:[%s3944_s1 + $0x24c] ss:$16 sps:$4 sm:$0xff]  }
  0x1a   :  { %v2686_v13 = vld [vmem:[%s3944_s1 + $0x240] ss:$16 sps:$4 sm:$0xff]   ;;  %v2689_v14 = vld [vmem:[%s3944_s1 + $0x248] ss:$16 sps:$4 sm:$0xff]   ;;  %v2694_v15 = vld [vmem:[%s3944_s1 + $0x264] ss:$16 sps:$4 sm:$0xff]  }
  0x1b   :  { %1815 = vmatpush1.bf16.msra.mxu0 %v2616_v26  ;;  %2020 = vmatpush1.bf16.msra.mxu1 %v2617_v27  ;;  %v2697_v16 = vld [vmem:[%s3944_s1 + $0x26c] ss:$16 sps:$4 sm:$0xff]   ;;  %v2692_v17 = vld [vmem:[%s3944_s1 + $0x260] ss:$16 sps:$4 sm:$0xff]   ;;  %v2695_v18 = vld [vmem:[%s3944_s1 + $0x268] ss:$16 sps:$4 sm:$0xff]  }
  0x1c   :  { %1816 = vmatprep.subr.bf16.mxu0 %v2618_v28  ;;  %2021 = vmatprep.subr.bf16.mxu1 %v2620_v29  ;;  %v2700_v19 = vld [vmem:[%s3944_s1 + $0x284] ss:$16 sps:$4 sm:$0xff]   ;;  %v2703_v20 = vld [vmem:[%s3944_s1 + $0x28c] ss:$16 sps:$4 sm:$0xff]   ;;  %v2698_v21 = vld [vmem:[%s3944_s1 + $0x280] ss:$16 sps:$4 sm:$0xff]  }
  0x1d   :  { %v2701_v22 = vld [vmem:[%s3944_s1 + $0x288] ss:$16 sps:$4 sm:$0xff]   ;;  %v2706_v23 = vld [vmem:[%s3944_s1 + $0x2a4] ss:$16 sps:$4 sm:$0xff]   ;;  %v2709_v24 = vld [vmem:[%s3944_s1 + $0x2ac] ss:$16 sps:$4 sm:$0xff]  }
  0x1e   :  { %v2704_v25 = vld [vmem:[%s3944_s1 + $0x2a0] ss:$16 sps:$4 sm:$0xff]   ;;  %v2707_v26 = vld [vmem:[%s3944_s1 + $0x2a8] ss:$16 sps:$4 sm:$0xff]   ;;  %v2712_v27 = vld [vmem:[%s3944_s1 + $0x2c4] ss:$16 sps:$4 sm:$0xff]  }
  0x1f   :  { %1817 = vmatpush1.bf16.msra.mxu0 %v2622_v30  ;;  %2022 = vmatpush1.bf16.msra.mxu1 %v2623_v31  ;;  %v2715_v28 = vld [vmem:[%s3944_s1 + $0x2cc] ss:$16 sps:$4 sm:$0xff]   ;;  %v2710_v31 = vld [vmem:[%s3944_s1 + $0x2c0] ss:$16 sps:$4 sm:$0xff]   ;;  %v2737_v48 = vld [vmem:[%s3944_s1 + $0x348] ss:$16 sps:$4 sm:$0xff]  }
  0x20   :  { %1818 = vmatprep.subr.bf16.mxu0 %v2624_v32  ;;  %2023 = vmatprep.subr.bf16.mxu1 %v2626_v33  ;;  %v3314_v29 = vld [vmem:[%s3945_s0 + $0x8] sm:$0xff]  ;;  %v2718_v33 = vld [vmem:[%s3944_s1 + $0x2e4] ss:$16 sps:$4 sm:$0xff]  }
  0x21   :  { %v2241_v30 = vcombine.high %v3314_v29, %v3314_v29  ;;  %v2713_v32 = vld [vmem:[%s3944_s1 + $0x2c8] ss:$16 sps:$4 sm:$0xff]   ;;  %v2739_v46 = vld [vmem:[%s3944_s1 + $0x34c] ss:$16 sps:$4 sm:$0xff]  }
  0x23   :  { %1819 = vmatpush1.bf16.msra.mxu0 %v2628_v34  ;;  %2024 = vmatpush1.bf16.msra.mxu1 %v2629_v35  ;;  %v2721_v34 = vld [vmem:[%s3944_s1 + $0x2ec] ss:$16 sps:$4 sm:$0xff]   ;;  %v2716_v35 = vld [vmem:[%s3944_s1 + $0x2e0] ss:$16 sps:$4 sm:$0xff]  }
  0x24   :  { %1820 = vmatprep.subr.bf16.mxu0 %v2630_v36  ;;  %2025 = vmatprep.subr.bf16.mxu1 %v2632_v37  ;;  %v2719_v36 = vld [vmem:[%s3944_s1 + $0x2e8] ss:$16 sps:$4 sm:$0xff]   ;;  %v2724_v37 = vld [vmem:[%s3944_s1 + $0x304] ss:$16 sps:$4 sm:$0xff]  }
  0x27   :  { %1821 = vmatpush1.bf16.msra.mxu0 %v2634_v38  ;;  %2026 = vmatpush1.bf16.msra.mxu1 %v2635_v39  ;;  %v2727_v38 = vld [vmem:[%s3944_s1 + $0x30c] ss:$16 sps:$4 sm:$0xff]   ;;  %v2722_v39 = vld [vmem:[%s3944_s1 + $0x300] ss:$16 sps:$4 sm:$0xff]  }
  0x28   :  { %1822 = vmatprep.subr.bf16.mxu0 %v2636_v40  ;;  %2027 = vmatprep.subr.bf16.mxu1 %v2638_v41  ;;  %v2725_v40 = vld [vmem:[%s3944_s1 + $0x308] ss:$16 sps:$4 sm:$0xff]   ;;  %v2730_v41 = vld [vmem:[%s3944_s1 + $0x324] ss:$16 sps:$4 sm:$0xff]  }
  0x2b   :  { %1823 = vmatpush1.bf16.msra.mxu0 %v2640_v42  ;;  %2028 = vmatpush1.bf16.msra.mxu1 %v2641_v43  ;;  %v2733_v42 = vld [vmem:[%s3944_s1 + $0x32c] ss:$16 sps:$4 sm:$0xff]   ;;  %v2728_v43 = vld [vmem:[%s3944_s1 + $0x320] ss:$16 sps:$4 sm:$0xff]  }
  0x2c   :  { %1824 = vmatprep.subr.bf16.mxu0 %v2642_v44  ;;  %2029 = vmatprep.subr.bf16.mxu1 %v2644_v45  ;;  %v2731_v44 = vld [vmem:[%s3944_s1 + $0x328] ss:$16 sps:$4 sm:$0xff]   ;;  %v2736_v45 = vld [vmem:[%s3944_s1 + $0x344] ss:$16 sps:$4 sm:$0xff]  }
  0x2f   :  { %1825 = vmatpush1.bf16.msra.mxu0 %v2646_v47  ;;  %2030 = vmatpush1.bf16.msra.mxu1 %v2647_v49  ;;  %v2734_v47 = vld [vmem:[%s3944_s1 + $0x340] ss:$16 sps:$4 sm:$0xff]   ;;  %v2742_v49 = vld [vmem:[%s3944_s1 + $0x364] ss:$16 sps:$4 sm:$0xff]  }
  0x30   :  { %1826 = vmatprep.subr.bf16.mxu0 %v2648_v50  ;;  %2031 = vmatprep.subr.bf16.mxu1 %v2650_v51  ;;  %v2745_v50 = vld [vmem:[%s3944_s1 + $0x36c] ss:$16 sps:$4 sm:$0xff]   ;;  %v2740_v51 = vld [vmem:[%s3944_s1 + $0x360] ss:$16 sps:$4 sm:$0xff]  }
  0x33   :  { %1827 = vmatpush1.bf16.msra.mxu0 %v2652_v52  ;;  %2032 = vmatpush1.bf16.msra.mxu1 %v2653_v53  ;;  %v2743_v52 = vld [vmem:[%s3944_s1 + $0x368] ss:$16 sps:$4 sm:$0xff]   ;;  %v2748_v53 = vld [vmem:[%s3944_s1 + $0x384] ss:$16 sps:$4 sm:$0xff]  }
  0x34   :  { %1828 = vmatprep.subr.bf16.mxu0 %v2654_v54  ;;  %2033 = vmatprep.subr.bf16.mxu1 %v2656_v55  ;;  %v2751_v54 = vld [vmem:[%s3944_s1 + $0x38c] ss:$16 sps:$4 sm:$0xff]   ;;  %v2746_v55 = vld [vmem:[%s3944_s1 + $0x380] ss:$16 sps:$4 sm:$0xff]  }
  0x37   :  { %1829 = vmatpush1.bf16.msra.mxu0 %v2658_v56  ;;  %2034 = vmatpush1.bf16.msra.mxu1 %v2659_v57  ;;  %v2749_v56 = vld [vmem:[%s3944_s1 + $0x388] ss:$16 sps:$4 sm:$0xff]   ;;  %v2754_v57 = vld [vmem:[%s3944_s1 + $0x3a4] ss:$16 sps:$4 sm:$0xff]  }
  0x38   :  { %1830 = vmatprep.subr.bf16.mxu0 %v2660_v58  ;;  %2035 = vmatprep.subr.bf16.mxu1 %v2662_v59  ;;  %v2757_v58 = vld [vmem:[%s3944_s1 + $0x3ac] ss:$16 sps:$4 sm:$0xff]   ;;  %v2752_v59 = vld [vmem:[%s3944_s1 + $0x3a0] ss:$16 sps:$4 sm:$0xff]  }
  0x3b   :  { %1831 = vmatpush1.bf16.msra.mxu0 %v2664_v60  ;;  %2036 = vmatpush1.bf16.msra.mxu1 %v2665_v61  ;;  %v2755_v60 = vld [vmem:[%s3944_s1 + $0x3a8] ss:$16 sps:$4 sm:$0xff]   ;;  %v2760_v61 = vld [vmem:[%s3944_s1 + $0x3c4] ss:$16 sps:$4 sm:$0xff]  }
  0x3c   :  { %1832 = vmatprep.subr.bf16.mxu0 %v2666_v62  ;;  %2037 = vmatprep.subr.bf16.mxu1 %v2668_v63  ;;  %v2763_v62 = vld [vmem:[%s3944_s1 + $0x3cc] ss:$16 sps:$4 sm:$0xff]   ;;  %v2758_v63 = vld [vmem:[%s3944_s1 + $0x3c0] ss:$16 sps:$4 sm:$0xff]  }
  0x3f   :  { %1833 = vmatpush1.bf16.msra.mxu0 %v2670_v0  ;;  %2038 = vmatpush1.bf16.msra.mxu1 %v2671_v1  ;;  %v2761_v0 = vld [vmem:[%s3944_s1 + $0x3c8] ss:$16 sps:$4 sm:$0xff]   ;;  %v2766_v1 = vld [vmem:[%s3944_s1 + $0x3e4] ss:$16 sps:$4 sm:$0xff]  }
  0x40   :  { %1843 = vmatprep.subr.bf16.mxu0 %v2676_v2  ;;  %2048 = vmatprep.subr.bf16.mxu1 %v2679_v3  ;;  %v2769_v2 = vld [vmem:[%s3944_s1 + $0x3ec] ss:$16 sps:$4 sm:$0xff]   ;;  %v2764_v3 = vld [vmem:[%s3944_s1 + $0x3e0] ss:$16 sps:$4 sm:$0xff]  }
  0x42   :  { %1835 = vmatmul.mubr.bf16.vlgmr.msra.gmra.mrb[0].mxu0 %v2238_v4  ;;  %2040 = vmatmul.mubr.bf16.vlgmr.msra.gmra.mrb[0].mxu1 %v2238_v4  ;;  %v2767_v4 = vld [vmem:[%s3944_s1 + $0x3e8] ss:$16 sps:$4 sm:$0xff]  }
  0x43   :  { %1844 = vmatpush1.bf16.msra.mxu0 %v2674_v5  ;;  %2049 = vmatpush1.bf16.msra.mxu1 %v2677_v6  ;;  %v2774_v5 = vld [vmem:[%s3944_s1 + $0x404] ss:$16 sps:$4 sm:$0xff]   ;;  %v2777_v6 = vld [vmem:[%s3944_s1 + $0x40c] ss:$16 sps:$4 sm:$0xff]  }
  0x44   :  { %1845 = vmatprep.subr.bf16.mxu0 %v2682_v7  ;;  %2050 = vmatprep.subr.bf16.mxu1 %v2685_v8  ;;  %v2240_v7 = vcombine.low %v3314_v29, %v3314_v29  ;;  %v2772_v8 = vld [vmem:[%s3944_s1 + $0x400] ss:$16 sps:$4 sm:$0xff]   ;;  %v2807_v29 = vld [vmem:[%s3944_s1 + $0x4ac] ss:$16 sps:$4 sm:$0xff]  }
  0x45   :  { %1875 = vmatprep.mubr.bf16.mxu0 %v2241_v30  ;;  %2080 = vmatprep.mubr.bf16.mxu1 %v2241_v30  ;;  %v2802_v30 = vld [vmem:[%s3944_s1 + $0x4a0] ss:$16 sps:$4 sm:$0xff]  }
  0x47   :  { %1846 = vmatpush1.bf16.msra.mxu0 %v2680_v9  ;;  %2051 = vmatpush1.bf16.msra.mxu1 %v2683_v10  ;;  %v2775_v9 = vld [vmem:[%s3944_s1 + $0x408] ss:$16 sps:$4 sm:$0xff]   ;;  %v2780_v10 = vld [vmem:[%s3944_s1 + $0x424] ss:$16 sps:$4 sm:$0xff]  }
  0x48   :  { %1847 = vmatprep.subr.bf16.mxu0 %v2688_v11  ;;  %2052 = vmatprep.subr.bf16.mxu1 %v2691_v12  ;;  %v3452_v11 = vld [vmem:[%s3945_s0 + $0x10] sm:$0xff]  ;;  %v2783_v12 = vld [vmem:[%s3944_s1 + $0x42c] ss:$16 sps:$4 sm:$0xff]  }
  0x4b   :  { %1848 = vmatpush1.bf16.msra.mxu0 %v2686_v13  ;;  %2053 = vmatpush1.bf16.msra.mxu1 %v2689_v14  ;;  %v2243_v13 = vcombine.high %v3452_v11, %v3452_v11  ;;  %v2778_v14 = vld [vmem:[%s3944_s1 + $0x420] ss:$16 sps:$4 sm:$0xff]  }
  0x4c   :  { %1849 = vmatprep.subr.bf16.mxu0 %v2694_v15  ;;  %2054 = vmatprep.subr.bf16.mxu1 %v2697_v16  ;;  %v2781_v15 = vld [vmem:[%s3944_s1 + $0x428] ss:$16 sps:$4 sm:$0xff]   ;;  %v2786_v16 = vld [vmem:[%s3944_s1 + $0x444] ss:$16 sps:$4 sm:$0xff]  }
  0x4f   :  { %1850 = vmatpush1.bf16.msra.mxu0 %v2692_v17  ;;  %2055 = vmatpush1.bf16.msra.mxu1 %v2695_v18  ;;  %v2789_v17 = vld [vmem:[%s3944_s1 + $0x44c] ss:$16 sps:$4 sm:$0xff]   ;;  %v2784_v18 = vld [vmem:[%s3944_s1 + $0x440] ss:$16 sps:$4 sm:$0xff]  }
  0x50   :  { %1851 = vmatprep.subr.bf16.mxu0 %v2700_v19  ;;  %2056 = vmatprep.subr.bf16.mxu1 %v2703_v20  ;;  %v2787_v19 = vld [vmem:[%s3944_s1 + $0x448] ss:$16 sps:$4 sm:$0xff]   ;;  %v2792_v20 = vld [vmem:[%s3944_s1 + $0x464] ss:$16 sps:$4 sm:$0xff]  }
  0x53   :  { %1852 = vmatpush1.bf16.msra.mxu0 %v2698_v21  ;;  %2057 = vmatpush1.bf16.msra.mxu1 %v2701_v22  ;;  %v2795_v21 = vld [vmem:[%s3944_s1 + $0x46c] ss:$16 sps:$4 sm:$0xff]   ;;  %v2790_v22 = vld [vmem:[%s3944_s1 + $0x460] ss:$16 sps:$4 sm:$0xff]  }
  0x54   :  { %1853 = vmatprep.subr.bf16.mxu0 %v2706_v23  ;;  %2058 = vmatprep.subr.bf16.mxu1 %v2709_v24  ;;  %v2793_v23 = vld [vmem:[%s3944_s1 + $0x468] ss:$16 sps:$4 sm:$0xff]   ;;  %v2798_v24 = vld [vmem:[%s3944_s1 + $0x484] ss:$16 sps:$4 sm:$0xff]  }
  0x57   :  { %1854 = vmatpush1.bf16.msra.mxu0 %v2704_v25  ;;  %2059 = vmatpush1.bf16.msra.mxu1 %v2707_v26  ;;  %v2801_v25 = vld [vmem:[%s3944_s1 + $0x48c] ss:$16 sps:$4 sm:$0xff]   ;;  %v2796_v26 = vld [vmem:[%s3944_s1 + $0x480] ss:$16 sps:$4 sm:$0xff]  }
  0x58   :  { %1855 = vmatprep.subr.bf16.mxu0 %v2712_v27  ;;  %2060 = vmatprep.subr.bf16.mxu1 %v2715_v28  ;;  %v2799_v27 = vld [vmem:[%s3944_s1 + $0x488] ss:$16 sps:$4 sm:$0xff]   ;;  %v2804_v28 = vld [vmem:[%s3944_s1 + $0x4a4] ss:$16 sps:$4 sm:$0xff]  }
  0x5b   :  { %1856 = vmatpush1.bf16.msra.mxu0 %v2710_v31  ;;  %2061 = vmatpush1.bf16.msra.mxu1 %v2713_v32  ;;  %v2805_v31 = vld [vmem:[%s3944_s1 + $0x4a8] ss:$16 sps:$4 sm:$0xff]   ;;  %v2810_v32 = vld [vmem:[%s3944_s1 + $0x4c4] ss:$16 sps:$4 sm:$0xff]  }
  0x5c   :  { %1857 = vmatprep.subr.bf16.mxu0 %v2718_v33  ;;  %2062 = vmatprep.subr.bf16.mxu1 %v2721_v34  ;;  %v2813_v33 = vld [vmem:[%s3944_s1 + $0x4cc] ss:$16 sps:$4 sm:$0xff]   ;;  %v2808_v34 = vld [vmem:[%s3944_s1 + $0x4c0] ss:$16 sps:$4 sm:$0xff]  }
  0x5f   :  { %1858 = vmatpush1.bf16.msra.mxu0 %v2716_v35  ;;  %2063 = vmatpush1.bf16.msra.mxu1 %v2719_v36  ;;  %v2811_v35 = vld [vmem:[%s3944_s1 + $0x4c8] ss:$16 sps:$4 sm:$0xff]   ;;  %v2816_v36 = vld [vmem:[%s3944_s1 + $0x4e4] ss:$16 sps:$4 sm:$0xff]  }
  0x60   :  { %1859 = vmatprep.subr.bf16.mxu0 %v2724_v37  ;;  %2064 = vmatprep.subr.bf16.mxu1 %v2727_v38  ;;  %v2819_v37 = vld [vmem:[%s3944_s1 + $0x4ec] ss:$16 sps:$4 sm:$0xff]   ;;  %v2814_v38 = vld [vmem:[%s3944_s1 + $0x4e0] ss:$16 sps:$4 sm:$0xff]  }
  0x63   :  { %1860 = vmatpush1.bf16.msra.mxu0 %v2722_v39  ;;  %2065 = vmatpush1.bf16.msra.mxu1 %v2725_v40  ;;  %v2817_v39 = vld [vmem:[%s3944_s1 + $0x4e8] ss:$16 sps:$4 sm:$0xff]   ;;  %v2822_v40 = vld [vmem:[%s3944_s1 + $0x504] ss:$16 sps:$4 sm:$0xff]  }
  0x64   :  { %1861 = vmatprep.subr.bf16.mxu0 %v2730_v41  ;;  %2066 = vmatprep.subr.bf16.mxu1 %v2733_v42  ;;  %v2825_v41 = vld [vmem:[%s3944_s1 + $0x50c] ss:$16 sps:$4 sm:$0xff]   ;;  %v2820_v42 = vld [vmem:[%s3944_s1 + $0x500] ss:$16 sps:$4 sm:$0xff]  }
  0x67   :  { %1862 = vmatpush1.bf16.msra.mxu0 %v2728_v43  ;;  %2067 = vmatpush1.bf16.msra.mxu1 %v2731_v44  ;;  %v2823_v43 = vld [vmem:[%s3944_s1 + $0x508] ss:$16 sps:$4 sm:$0xff]   ;;  %v2828_v44 = vld [vmem:[%s3944_s1 + $0x524] ss:$16 sps:$4 sm:$0xff]  }
  0x68   :  { %1863 = vmatprep.subr.bf16.mxu0 %v2736_v45  ;;  %2068 = vmatprep.subr.bf16.mxu1 %v2739_v46  ;;  %v2831_v45 = vld [vmem:[%s3944_s1 + $0x52c] ss:$16 sps:$4 sm:$0xff]   ;;  %v2826_v46 = vld [vmem:[%s3944_s1 + $0x520] ss:$16 sps:$4 sm:$0xff]  }
  0x6b   :  { %1864 = vmatpush1.bf16.msra.mxu0 %v2734_v47  ;;  %2069 = vmatpush1.bf16.msra.mxu1 %v2737_v48  ;;  %v2829_v47 = vld [vmem:[%s3944_s1 + $0x528] ss:$16 sps:$4 sm:$0xff]   ;;  %v2834_v48 = vld [vmem:[%s3944_s1 + $0x544] ss:$16 sps:$4 sm:$0xff]  }
  0x6c   :  { %1865 = vmatprep.subr.bf16.mxu0 %v2742_v49  ;;  %2070 = vmatprep.subr.bf16.mxu1 %v2745_v50  ;;  %v2837_v49 = vld [vmem:[%s3944_s1 + $0x54c] ss:$16 sps:$4 sm:$0xff]   ;;  %v2832_v50 = vld [vmem:[%s3944_s1 + $0x540] ss:$16 sps:$4 sm:$0xff]  }
  0x6f   :  { %1866 = vmatpush1.bf16.msra.mxu0 %v2740_v51  ;;  %2071 = vmatpush1.bf16.msra.mxu1 %v2743_v52  ;;  %v2835_v51 = vld [vmem:[%s3944_s1 + $0x548] ss:$16 sps:$4 sm:$0xff]   ;;  %v2840_v52 = vld [vmem:[%s3944_s1 + $0x564] ss:$16 sps:$4 sm:$0xff]  }
  0x70   :  { %1867 = vmatprep.subr.bf16.mxu0 %v2748_v53  ;;  %2072 = vmatprep.subr.bf16.mxu1 %v2751_v54  ;;  %v2843_v53 = vld [vmem:[%s3944_s1 + $0x56c] ss:$16 sps:$4 sm:$0xff]   ;;  %v2838_v54 = vld [vmem:[%s3944_s1 + $0x560] ss:$16 sps:$4 sm:$0xff]  }
  0x73   :  { %1868 = vmatpush1.bf16.msra.mxu0 %v2746_v55  ;;  %2073 = vmatpush1.bf16.msra.mxu1 %v2749_v56  ;;  %v2841_v55 = vld [vmem:[%s3944_s1 + $0x568] ss:$16 sps:$4 sm:$0xff]   ;;  %v2846_v56 = vld [vmem:[%s3944_s1 + $0x584] ss:$16 sps:$4 sm:$0xff]  }
  0x74   :  { %1869 = vmatprep.subr.bf16.mxu0 %v2754_v57  ;;  %2074 = vmatprep.subr.bf16.mxu1 %v2757_v58  ;;  %v2849_v57 = vld [vmem:[%s3944_s1 + $0x58c] ss:$16 sps:$4 sm:$0xff]   ;;  %v2844_v58 = vld [vmem:[%s3944_s1 + $0x580] ss:$16 sps:$4 sm:$0xff]  }
  0x77   :  { %1870 = vmatpush1.bf16.msra.mxu0 %v2752_v59  ;;  %2075 = vmatpush1.bf16.msra.mxu1 %v2755_v60  ;;  %v2847_v59 = vld [vmem:[%s3944_s1 + $0x588] ss:$16 sps:$4 sm:$0xff]   ;;  %v2852_v60 = vld [vmem:[%s3944_s1 + $0x5a4] ss:$16 sps:$4 sm:$0xff]  }
  0x78   :  { %1871 = vmatprep.subr.bf16.mxu0 %v2760_v61  ;;  %2076 = vmatprep.subr.bf16.mxu1 %v2763_v62  ;;  %v2855_v61 = vld [vmem:[%s3944_s1 + $0x5ac] ss:$16 sps:$4 sm:$0xff]   ;;  %v2850_v62 = vld [vmem:[%s3944_s1 + $0x5a0] ss:$16 sps:$4 sm:$0xff]  }
  0x7b   :  { %1872 = vmatpush1.bf16.msra.mxu0 %v2758_v63  ;;  %2077 = vmatpush1.bf16.msra.mxu1 %v2761_v0  ;;  %v2853_v63 = vld [vmem:[%s3944_s1 + $0x5a8] ss:$16 sps:$4 sm:$0xff]   ;;  %v2858_v0 = vld [vmem:[%s3944_s1 + $0x5c4] ss:$16 sps:$4 sm:$0xff]  }
  0x7c   :  { %1873 = vmatprep.subr.bf16.mxu0 %v2766_v1  ;;  %2078 = vmatprep.subr.bf16.mxu1 %v2769_v2  ;;  %v2861_v1 = vld [vmem:[%s3944_s1 + $0x5cc] ss:$16 sps:$4 sm:$0xff]   ;;  %v2856_v2 = vld [vmem:[%s3944_s1 + $0x5c0] ss:$16 sps:$4 sm:$0xff]  }
  0x7f   :  { %1874 = vmatpush1.bf16.msra.mxu0 %v2764_v3  ;;  %2079 = vmatpush1.bf16.msra.mxu1 %v2767_v4  ;;  %v2859_v3 = vld [vmem:[%s3944_s1 + $0x5c8] ss:$16 sps:$4 sm:$0xff]   ;;  %v2864_v4 = vld [vmem:[%s3944_s1 + $0x5e4] ss:$16 sps:$4 sm:$0xff]  }
  0x80   :  { %1884 = vmatprep.subr.bf16.mxu0 %v2774_v5  ;;  %2089 = vmatprep.subr.bf16.mxu1 %v2777_v6  ;;  %v2867_v5 = vld [vmem:[%s3944_s1 + $0x5ec] ss:$16 sps:$4 sm:$0xff]   ;;  %v2862_v6 = vld [vmem:[%s3944_s1 + $0x5e0] ss:$16 sps:$4 sm:$0xff]  }
  0x82   :  { %1876 = vmatmul.mubr.bf16.vlgmr.msra.gmra.mrb[0].mxu0 %v2240_v7  ;;  %2081 = vmatmul.mubr.bf16.vlgmr.msra.gmra.mrb[0].mxu1 %v2240_v7  ;;  %v2865_v7 = vld [vmem:[%s3944_s1 + $0x5e8] ss:$16 sps:$4 sm:$0xff]  }
  0x83   :  { %1885 = vmatpush1.bf16.msra.mxu0 %v2772_v8  ;;  %2090 = vmatpush1.bf16.msra.mxu1 %v2775_v9  ;;  %v2872_v8 = vld [vmem:[%s3944_s1 + $0x604] ss:$16 sps:$4 sm:$0xff]   ;;  %v2875_v9 = vld [vmem:[%s3944_s1 + $0x60c] ss:$16 sps:$4 sm:$0xff]  }
  0x84   :  { %1886 = vmatprep.subr.bf16.mxu0 %v2780_v10  ;;  %2091 = vmatprep.subr.bf16.mxu1 %v2783_v12  ;;  %v2242_v10 = vcombine.low %v3452_v11, %v3452_v11  ;;  %v2870_v12 = vld [vmem:[%s3944_s1 + $0x600] ss:$16 sps:$4 sm:$0xff]   ;;  %v2878_v11 = vld [vmem:[%s3944_s1 + $0x624] ss:$16 sps:$4 sm:$0xff]  }
  0x85   :  { %1916 = vmatprep.mubr.bf16.mxu0 %v2243_v13  ;;  %2121 = vmatprep.mubr.bf16.mxu1 %v2243_v13  ;;  %v3647_v13 = vld [vmem:[%s3945_s0 + $0x18] sm:$0xff] }
  0x87   :  { %1887 = vmatpush1.bf16.msra.mxu0 %v2778_v14  ;;  %2092 = vmatpush1.bf16.msra.mxu1 %v2781_v15  ;;  %v2873_v14 = vld [vmem:[%s3944_s1 + $0x608] ss:$16 sps:$4 sm:$0xff]   ;;  %v2881_v15 = vld [vmem:[%s3944_s1 + $0x62c] ss:$16 sps:$4 sm:$0xff]  }
  0x88   :  { %1888 = vmatprep.subr.bf16.mxu0 %v2786_v16  ;;  %2093 = vmatprep.subr.bf16.mxu1 %v2789_v17  ;;  %v2245_v16 = vcombine.high %v3647_v13, %v3647_v13  ;;  %v2876_v17 = vld [vmem:[%s3944_s1 + $0x620] ss:$16 sps:$4 sm:$0xff]  }
  0x8b   :  { %1889 = vmatpush1.bf16.msra.mxu0 %v2784_v18  ;;  %2094 = vmatpush1.bf16.msra.mxu1 %v2787_v19  ;;  %v2879_v18 = vld [vmem:[%s3944_s1 + $0x628] ss:$16 sps:$4 sm:$0xff]   ;;  %v2884_v19 = vld [vmem:[%s3944_s1 + $0x644] ss:$16 sps:$4 sm:$0xff]  }
  0x8c   :  { %1890 = vmatprep.subr.bf16.mxu0 %v2792_v20  ;;  %2095 = vmatprep.subr.bf16.mxu1 %v2795_v21  ;;  %v2887_v20 = vld [vmem:[%s3944_s1 + $0x64c] ss:$16 sps:$4 sm:$0xff]   ;;  %v2882_v21 = vld [vmem:[%s3944_s1 + $0x640] ss:$16 sps:$4 sm:$0xff]  }
  0x8f   :  { %1891 = vmatpush1.bf16.msra.mxu0 %v2790_v22  ;;  %2096 = vmatpush1.bf16.msra.mxu1 %v2793_v23  ;;  %v2885_v22 = vld [vmem:[%s3944_s1 + $0x648] ss:$16 sps:$4 sm:$0xff]   ;;  %v2890_v23 = vld [vmem:[%s3944_s1 + $0x664] ss:$16 sps:$4 sm:$0xff]  }
  0x90   :  { %1892 = vmatprep.subr.bf16.mxu0 %v2798_v24  ;;  %2097 = vmatprep.subr.bf16.mxu1 %v2801_v25  ;;  %v2893_v24 = vld [vmem:[%s3944_s1 + $0x66c] ss:$16 sps:$4 sm:$0xff]   ;;  %v2888_v25 = vld [vmem:[%s3944_s1 + $0x660] ss:$16 sps:$4 sm:$0xff]  }
  0x93   :  { %1893 = vmatpush1.bf16.msra.mxu0 %v2796_v26  ;;  %2098 = vmatpush1.bf16.msra.mxu1 %v2799_v27  ;;  %v2891_v26 = vld [vmem:[%s3944_s1 + $0x668] ss:$16 sps:$4 sm:$0xff]   ;;  %v2896_v27 = vld [vmem:[%s3944_s1 + $0x684] ss:$16 sps:$4 sm:$0xff]  }
  0x94   :  { %1894 = vmatprep.subr.bf16.mxu0 %v2804_v28  ;;  %2099 = vmatprep.subr.bf16.mxu1 %v2807_v29  ;;  %v2899_v28 = vld [vmem:[%s3944_s1 + $0x68c] ss:$16 sps:$4 sm:$0xff]   ;;  %v2894_v29 = vld [vmem:[%s3944_s1 + $0x680] ss:$16 sps:$4 sm:$0xff]  }
  0x97   :  { %1895 = vmatpush1.bf16.msra.mxu0 %v2802_v30  ;;  %2100 = vmatpush1.bf16.msra.mxu1 %v2805_v31  ;;  %v2897_v30 = vld [vmem:[%s3944_s1 + $0x688] ss:$16 sps:$4 sm:$0xff]   ;;  %v2902_v31 = vld [vmem:[%s3944_s1 + $0x6a4] ss:$16 sps:$4 sm:$0xff]  }
  0x98   :  { %1896 = vmatprep.subr.bf16.mxu0 %v2810_v32  ;;  %2101 = vmatprep.subr.bf16.mxu1 %v2813_v33  ;;  %v2905_v32 = vld [vmem:[%s3944_s1 + $0x6ac] ss:$16 sps:$4 sm:$0xff]   ;;  %v2900_v33 = vld [vmem:[%s3944_s1 + $0x6a0] ss:$16 sps:$4 sm:$0xff]  }
  0x9b   :  { %1897 = vmatpush1.bf16.msra.mxu0 %v2808_v34  ;;  %2102 = vmatpush1.bf16.msra.mxu1 %v2811_v35  ;;  %v2903_v34 = vld [vmem:[%s3944_s1 + $0x6a8] ss:$16 sps:$4 sm:$0xff]   ;;  %v2908_v35 = vld [vmem:[%s3944_s1 + $0x6c4] ss:$16 sps:$4 sm:$0xff]  }
  0x9c   :  { %1898 = vmatprep.subr.bf16.mxu0 %v2816_v36  ;;  %2103 = vmatprep.subr.bf16.mxu1 %v2819_v37  ;;  %v2911_v36 = vld [vmem:[%s3944_s1 + $0x6cc] ss:$16 sps:$4 sm:$0xff]   ;;  %v2906_v37 = vld [vmem:[%s3944_s1 + $0x6c0] ss:$16 sps:$4 sm:$0xff]  }
  0x9f   :  { %1899 = vmatpush1.bf16.msra.mxu0 %v2814_v38  ;;  %2104 = vmatpush1.bf16.msra.mxu1 %v2817_v39  ;;  %v2909_v38 = vld [vmem:[%s3944_s1 + $0x6c8] ss:$16 sps:$4 sm:$0xff]   ;;  %v2914_v39 = vld [vmem:[%s3944_s1 + $0x6e4] ss:$16 sps:$4 sm:$0xff]  }
  0xa0   :  { %1900 = vmatprep.subr.bf16.mxu0 %v2822_v40  ;;  %2105 = vmatprep.subr.bf16.mxu1 %v2825_v41  ;;  %v2917_v40 = vld [vmem:[%s3944_s1 + $0x6ec] ss:$16 sps:$4 sm:$0xff]   ;;  %v2912_v41 = vld [vmem:[%s3944_s1 + $0x6e0] ss:$16 sps:$4 sm:$0xff]  }
  0xa3   :  { %1901 = vmatpush1.bf16.msra.mxu0 %v2820_v42  ;;  %2106 = vmatpush1.bf16.msra.mxu1 %v2823_v43  ;;  %v2915_v42 = vld [vmem:[%s3944_s1 + $0x6e8] ss:$16 sps:$4 sm:$0xff]   ;;  %v2920_v43 = vld [vmem:[%s3944_s1 + $0x704] ss:$16 sps:$4 sm:$0xff]  }
  0xa4   :  { %1902 = vmatprep.subr.bf16.mxu0 %v2828_v44  ;;  %2107 = vmatprep.subr.bf16.mxu1 %v2831_v45  ;;  %v2923_v44 = vld [vmem:[%s3944_s1 + $0x70c] ss:$16 sps:$4 sm:$0xff]   ;;  %v2918_v45 = vld [vmem:[%s3944_s1 + $0x700] ss:$16 sps:$4 sm:$0xff]  }
  0xa7   :  { %1903 = vmatpush1.bf16.msra.mxu0 %v2826_v46  ;;  %2108 = vmatpush1.bf16.msra.mxu1 %v2829_v47  ;;  %v2921_v46 = vld [vmem:[%s3944_s1 + $0x708] ss:$16 sps:$4 sm:$0xff]   ;;  %v2926_v47 = vld [vmem:[%s3944_s1 + $0x724] ss:$16 sps:$4 sm:$0xff]  }
  0xa8   :  { %1904 = vmatprep.subr.bf16.mxu0 %v2834_v48  ;;  %2109 = vmatprep.subr.bf16.mxu1 %v2837_v49  ;;  %v2929_v48 = vld [vmem:[%s3944_s1 + $0x72c] ss:$16 sps:$4 sm:$0xff]   ;;  %v2924_v49 = vld [vmem:[%s3944_s1 + $0x720] ss:$16 sps:$4 sm:$0xff]  }
  0xab   :  { %1905 = vmatpush1.bf16.msra.mxu0 %v2832_v50  ;;  %2110 = vmatpush1.bf16.msra.mxu1 %v2835_v51  ;;  %v2927_v50 = vld [vmem:[%s3944_s1 + $0x728] ss:$16 sps:$4 sm:$0xff]   ;;  %v2932_v51 = vld [vmem:[%s3944_s1 + $0x744] ss:$16 sps:$4 sm:$0xff]  }
  0xac   :  { %1906 = vmatprep.subr.bf16.mxu0 %v2840_v52  ;;  %2111 = vmatprep.subr.bf16.mxu1 %v2843_v53  ;;  %v2935_v52 = vld [vmem:[%s3944_s1 + $0x74c] ss:$16 sps:$4 sm:$0xff]   ;;  %v2930_v53 = vld [vmem:[%s3944_s1 + $0x740] ss:$16 sps:$4 sm:$0xff]  }
  0xaf   :  { %1907 = vmatpush1.bf16.msra.mxu0 %v2838_v54  ;;  %2112 = vmatpush1.bf16.msra.mxu1 %v2841_v55  ;;  %v2933_v54 = vld [vmem:[%s3944_s1 + $0x748] ss:$16 sps:$4 sm:$0xff]   ;;  %v2938_v55 = vld [vmem:[%s3944_s1 + $0x764] ss:$16 sps:$4 sm:$0xff]  }
  0xb0   :  { %1908 = vmatprep.subr.bf16.mxu0 %v2846_v56  ;;  %2113 = vmatprep.subr.bf16.mxu1 %v2849_v57  ;;  %v2941_v56 = vld [vmem:[%s3944_s1 + $0x76c] ss:$16 sps:$4 sm:$0xff]   ;;  %v2936_v57 = vld [vmem:[%s3944_s1 + $0x760] ss:$16 sps:$4 sm:$0xff]  }
  0xb3   :  { %1909 = vmatpush1.bf16.msra.mxu0 %v2844_v58  ;;  %2114 = vmatpush1.bf16.msra.mxu1 %v2847_v59  ;;  %v2939_v58 = vld [vmem:[%s3944_s1 + $0x768] ss:$16 sps:$4 sm:$0xff]   ;;  %v2944_v59 = vld [vmem:[%s3944_s1 + $0x784] ss:$16 sps:$4 sm:$0xff]  }
  0xb4   :  { %1910 = vmatprep.subr.bf16.mxu0 %v2852_v60  ;;  %2115 = vmatprep.subr.bf16.mxu1 %v2855_v61  ;;  %v2947_v60 = vld [vmem:[%s3944_s1 + $0x78c] ss:$16 sps:$4 sm:$0xff]   ;;  %v2942_v61 = vld [vmem:[%s3944_s1 + $0x780] ss:$16 sps:$4 sm:$0xff]  }
  0xb7   :  { %1911 = vmatpush1.bf16.msra.mxu0 %v2850_v62  ;;  %2116 = vmatpush1.bf16.msra.mxu1 %v2853_v63  ;;  %v2945_v62 = vld [vmem:[%s3944_s1 + $0x788] ss:$16 sps:$4 sm:$0xff]   ;;  %v2950_v63 = vld [vmem:[%s3944_s1 + $0x7a4] ss:$16 sps:$4 sm:$0xff]  }
  0xb8   :  { %1912 = vmatprep.subr.bf16.mxu0 %v2858_v0  ;;  %2117 = vmatprep.subr.bf16.mxu1 %v2861_v1  ;;  %v2953_v0 = vld [vmem:[%s3944_s1 + $0x7ac] ss:$16 sps:$4 sm:$0xff]   ;;  %v2948_v1 = vld [vmem:[%s3944_s1 + $0x7a0] ss:$16 sps:$4 sm:$0xff]  }
  0xbb   :  { %1913 = vmatpush1.bf16.msra.mxu0 %v2856_v2  ;;  %2118 = vmatpush1.bf16.msra.mxu1 %v2859_v3  ;;  %v2951_v2 = vld [vmem:[%s3944_s1 + $0x7a8] ss:$16 sps:$4 sm:$0xff]   ;;  %v2956_v3 = vld [vmem:[%s3944_s1 + $0x7c4] ss:$16 sps:$4 sm:$0xff]  }
  0xbc   :  { %1914 = vmatprep.subr.bf16.mxu0 %v2864_v4  ;;  %2119 = vmatprep.subr.bf16.mxu1 %v2867_v5  ;;  %v2959_v4 = vld [vmem:[%s3944_s1 + $0x7cc] ss:$16 sps:$4 sm:$0xff]   ;;  %v2954_v5 = vld [vmem:[%s3944_s1 + $0x7c0] ss:$16 sps:$4 sm:$0xff]  }
  0xbf   :  { %1915 = vmatpush1.bf16.msra.mxu0 %v2862_v6  ;;  %2120 = vmatpush1.bf16.msra.mxu1 %v2865_v7  ;;  %v2957_v6 = vld [vmem:[%s3944_s1 + $0x7c8] ss:$16 sps:$4 sm:$0xff]   ;;  %v2962_v7 = vld [vmem:[%s3944_s1 + $0x7e4] ss:$16 sps:$4 sm:$0xff]  }
  0xc0   :  { %1925 = vmatprep.subr.bf16.mxu0 %v2872_v8  ;;  %2130 = vmatprep.subr.bf16.mxu1 %v2875_v9  ;;  %v2965_v8 = vld [vmem:[%s3944_s1 + $0x7ec] ss:$16 sps:$4 sm:$0xff]   ;;  %v2960_v9 = vld [vmem:[%s3944_s1 + $0x7e0] ss:$16 sps:$4 sm:$0xff]  }
  0xc2   :  { %1917 = vmatmul.mubr.bf16.vlgmr.msra.gmra.mrb[0].mxu0 %v2242_v10  ;;  %2122 = vmatmul.mubr.bf16.vlgmr.msra.gmra.mrb[0].mxu1 %v2242_v10  ;;  %v2963_v10 = vld [vmem:[%s3944_s1 + $0x7e8] ss:$16 sps:$4 sm:$0xff]  }
  0xc3   :  { %1926 = vmatpush1.bf16.msra.mxu0 %v2870_v12  ;;  %2131 = vmatpush1.bf16.msra.mxu1 %v2873_v14  ;;  %v2970_v12 = vld [vmem:[%s3944_s1 + $0x804] ss:$16 sps:$4 sm:$0xff]   ;;  %v2973_v14 = vld [vmem:[%s3944_s1 + $0x80c] ss:$16 sps:$4 sm:$0xff]  }
  0xc4   :  { %1927 = vmatprep.subr.bf16.mxu0 %v2878_v11  ;;  %2132 = vmatprep.subr.bf16.mxu1 %v2881_v15  ;;  %v2244_v11 = vcombine.low %v3647_v13, %v3647_v13  ;;  %v2968_v15 = vld [vmem:[%s3944_s1 + $0x800] ss:$16 sps:$4 sm:$0xff]   ;;  %v2979_v13 = vld [vmem:[%s3944_s1 + $0x82c] ss:$16 sps:$4 sm:$0xff]  }
  0xc5   :  { %1957 = vmatprep.mubr.bf16.mxu0 %v2245_v16  ;;  %2162 = vmatprep.mubr.bf16.mxu1 %v2245_v16  ;;  %v2971_v16 = vld [vmem:[%s3944_s1 + $0x808] ss:$16 sps:$4 sm:$0xff]  }
  0xc7   :  { %1928 = vmatpush1.bf16.msra.mxu0 %v2876_v17  ;;  %2133 = vmatpush1.bf16.msra.mxu1 %v2879_v18  ;;  %v2976_v17 = vld [vmem:[%s3944_s1 + $0x824] ss:$16 sps:$4 sm:$0xff]   ;;  %v2974_v18 = vld [vmem:[%s3944_s1 + $0x820] ss:$16 sps:$4 sm:$0xff]  }
  0xc8   :  { %1929 = vmatprep.subr.bf16.mxu0 %v2884_v19  ;;  %2134 = vmatprep.subr.bf16.mxu1 %v2887_v20  ;;  %v2977_v19 = vld [vmem:[%s3944_s1 + $0x828] ss:$16 sps:$4 sm:$0xff]   ;;  %v2982_v20 = vld [vmem:[%s3944_s1 + $0x844] ss:$16 sps:$4 sm:$0xff]  }
  0xcb   :  { %1930 = vmatpush1.bf16.msra.mxu0 %v2882_v21  ;;  %2135 = vmatpush1.bf16.msra.mxu1 %v2885_v22  ;;  %v2985_v21 = vld [vmem:[%s3944_s1 + $0x84c] ss:$16 sps:$4 sm:$0xff]   ;;  %v3017_v22 = vmov 0  }
  0xcc   :  { %1931 = vmatprep.subr.bf16.mxu0 %v2890_v23  ;;  %2136 = vmatprep.subr.bf16.mxu1 %v2893_v24  ;;  %v2980_v23 = vld [vmem:[%s3944_s1 + $0x840] ss:$16 sps:$4 sm:$0xff]   ;;  %v2983_v24 = vld [vmem:[%s3944_s1 + $0x848] ss:$16 sps:$4 sm:$0xff]  }
  0xcf   :  { %1932 = vmatpush1.bf16.msra.mxu0 %v2888_v25  ;;  %2137 = vmatpush1.bf16.msra.mxu1 %v2891_v26  ;;  %v2988_v25 = vld [vmem:[%s3944_s1 + $0x864] ss:$16 sps:$4 sm:$0xff]   ;;  %v2991_v26 = vld [vmem:[%s3944_s1 + $0x86c] ss:$16 sps:$4 sm:$0xff]  }
  0xd0   :  { %1933 = vmatprep.subr.bf16.mxu0 %v2896_v27  ;;  %2138 = vmatprep.subr.bf16.mxu1 %v2899_v28  ;;  %v2986_v27 = vld [vmem:[%s3944_s1 + $0x860] ss:$16 sps:$4 sm:$0xff]   ;;  %v2989_v28 = vld [vmem:[%s3944_s1 + $0x868] ss:$16 sps:$4 sm:$0xff]  }
  0xd3   :  { %1934 = vmatpush1.bf16.msra.mxu0 %v2894_v29  ;;  %2139 = vmatpush1.bf16.msra.mxu1 %v2897_v30  ;;  %v2994_v29 = vld [vmem:[%s3944_s1 + $0x884] ss:$16 sps:$4 sm:$0xff]   ;;  %v2997_v30 = vld [vmem:[%s3944_s1 + $0x88c] ss:$16 sps:$4 sm:$0xff]  }
  0xd4   :  { %1935 = vmatprep.subr.bf16.mxu0 %v2902_v31  ;;  %2140 = vmatprep.subr.bf16.mxu1 %v2905_v32  ;;  %v2992_v31 = vld [vmem:[%s3944_s1 + $0x880] ss:$16 sps:$4 sm:$0xff]   ;;  %v2995_v32 = vld [vmem:[%s3944_s1 + $0x888] ss:$16 sps:$4 sm:$0xff]  }
  0xd7   :  { %1936 = vmatpush1.bf16.msra.mxu0 %v2900_v33  ;;  %2141 = vmatpush1.bf16.msra.mxu1 %v2903_v34  ;;  %v3000_v33 = vld [vmem:[%s3944_s1 + $0x8a4] ss:$16 sps:$4 sm:$0xff]   ;;  %v3003_v34 = vld [vmem:[%s3944_s1 + $0x8ac] ss:$16 sps:$4 sm:$0xff]  }
  0xd8   :  { %1937 = vmatprep.subr.bf16.mxu0 %v2908_v35  ;;  %2142 = vmatprep.subr.bf16.mxu1 %v2911_v36  ;;  %v2998_v35 = vld [vmem:[%s3944_s1 + $0x8a0] ss:$16 sps:$4 sm:$0xff]   ;;  %v3001_v36 = vld [vmem:[%s3944_s1 + $0x8a8] ss:$16 sps:$4 sm:$0xff]  }
  0xdb   :  { %1938 = vmatpush1.bf16.msra.mxu0 %v2906_v37  ;;  %2143 = vmatpush1.bf16.msra.mxu1 %v2909_v38  ;;  %v3006_v37 = vld [vmem:[%s3944_s1 + $0x8c4] ss:$16 sps:$4 sm:$0xff]   ;;  %v3009_v38 = vld [vmem:[%s3944_s1 + $0x8cc] ss:$16 sps:$4 sm:$0xff]  }
  0xdc   :  { %1939 = vmatprep.subr.bf16.mxu0 %v2914_v39  ;;  %2144 = vmatprep.subr.bf16.mxu1 %v2917_v40  ;;  %v3004_v39 = vld [vmem:[%s3944_s1 + $0x8c0] ss:$16 sps:$4 sm:$0xff]   ;;  %v3007_v40 = vld [vmem:[%s3944_s1 + $0x8c8] ss:$16 sps:$4 sm:$0xff]  }
  0xdf   :  { %1940 = vmatpush1.bf16.msra.mxu0 %v2912_v41  ;;  %2145 = vmatpush1.bf16.msra.mxu1 %v2915_v42  ;;  %v3012_v41 = vld [vmem:[%s3944_s1 + $0x8e4] ss:$16 sps:$4 sm:$0xff]   ;;  %v3015_v42 = vld [vmem:[%s3944_s1 + $0x8ec] ss:$16 sps:$4 sm:$0xff]  }
  0xe0   :  { %1941 = vmatprep.subr.bf16.mxu0 %v2920_v43  ;;  %2146 = vmatprep.subr.bf16.mxu1 %v2923_v44  ;;  %v3010_v43 = vld [vmem:[%s3944_s1 + $0x8e0] ss:$16 sps:$4 sm:$0xff]   ;;  %v3013_v44 = vld [vmem:[%s3944_s1 + $0x8e8] ss:$16 sps:$4 sm:$0xff]  }
  0xe3   :  { %1942 = vmatpush1.bf16.msra.mxu0 %v2918_v45  ;;  %2147 = vmatpush1.bf16.msra.mxu1 %v2921_v46  ;;  %v3016_v45 = vld [vmem:[%s3945_s0 + $0x20] ss:$0 sps:$4 sm:$0xff]   ;;  %v310_v46 = vlaneseq }
  0xe4   :  { %1943 = vmatprep.subr.bf16.mxu0 %v2926_v47  ;;  %2148 = vmatprep.subr.bf16.mxu1 %v2929_v48 }
  0xe5   :  { %v311_v47 = vshrl.u32 %v310_v46, 7 }
  0xe7   :  { %1944 = vmatpush1.bf16.msra.mxu0 %v2924_v49  ;;  %2149 = vmatpush1.bf16.msra.mxu1 %v2927_v50  ;;  %v312_v48 = vsub.s32 0, %v311_v47  ;;  %v320_v49 = vsub.s32 2, %v311_v47  ;;  %v308_v50 = vld [vmem:[%s3946_s2] sm:$0xf] }
  0xe8   :  { %1945 = vmatprep.subr.bf16.mxu0 %v2932_v51  ;;  %2150 = vmatprep.subr.bf16.mxu1 %v2935_v52  ;;  %v316_v51 = vsub.s32 1, %v311_v47  ;;  %v324_v52 = vsub.s32 3, %v311_v47 }
  0xeb   :  { %1946 = vmatpush1.bf16.msra.mxu0 %v2930_v53  ;;  %2151 = vmatpush1.bf16.msra.mxu1 %v2933_v54  ;;  %v313_v53 = vrot.slane %v308_v50, %v312_v48  ;;  %v321_v54 = vrot.slane %v308_v50, %v320_v49 }
  0xec   :  { %1947 = vmatprep.subr.bf16.mxu0 %v2938_v55  ;;  %2152 = vmatprep.subr.bf16.mxu1 %v2941_v56  ;;  %v317_v55 = vrot.slane %v308_v50, %v316_v51  ;;  %v325_v56 = vrot.slane %v308_v50, %v324_v52 }
  0xef   :  { %1948 = vmatpush1.bf16.msra.mxu0 %v2936_v57  ;;  %2153 = vmatpush1.bf16.msra.mxu1 %v2939_v58 }
  0xf0   :  { %1949 = vmatprep.subr.bf16.mxu0 %v2944_v59  ;;  %2154 = vmatprep.subr.bf16.mxu1 %v2947_v60 }
  0xf3   :  { %1950 = vmatpush1.bf16.msra.mxu0 %v2942_v61  ;;  %2155 = vmatpush1.bf16.msra.mxu1 %v2945_v62 }
  0xf4   :  { %1951 = vmatprep.subr.bf16.mxu0 %v2950_v63  ;;  %2156 = vmatprep.subr.bf16.mxu1 %v2953_v0 }
  0xf7   :  { %1952 = vmatpush1.bf16.msra.mxu0 %v2948_v1  ;;  %2157 = vmatpush1.bf16.msra.mxu1 %v2951_v2 }
  0xf8   :  { %1953 = vmatprep.subr.bf16.mxu0 %v2956_v3  ;;  %2158 = vmatprep.subr.bf16.mxu1 %v2959_v4 }
  0xfb   :  { %1954 = vmatpush1.bf16.msra.mxu0 %v2954_v5  ;;  %2159 = vmatpush1.bf16.msra.mxu1 %v2957_v6 }
  0xfc   :  { %1955 = vmatprep.subr.bf16.mxu0 %v2962_v7  ;;  %2160 = vmatprep.subr.bf16.mxu1 %v2965_v8 }
  0xff   :  { %1956 = vmatpush1.bf16.msra.mxu0 %v2960_v9  ;;  %2161 = vmatpush1.bf16.msra.mxu1 %v2963_v10 }
 0x100   :  { %1966 = vmatprep.subr.bf16.mxu0 %v2970_v12  ;;  %2171 = vmatprep.subr.bf16.mxu1 %v2973_v14 }
 0x102   :  { %1958 = vmatmul.mubr.bf16.vlgmr.msra.gmra.mrb[0].mxu0 %v2244_v11  ;;  %2163 = vmatmul.mubr.bf16.vlgmr.msra.gmra.mrb[0].mxu1 %v2244_v11 }
 0x103   :  { %1967 = vmatpush1.bf16.msra.mxu0 %v2968_v15  ;;  %2172 = vmatpush1.bf16.msra.mxu1 %v2971_v16 }
 0x104   :  { %1968 = vmatprep.subr.bf16.mxu0 %v2976_v17  ;;  %2173 = vmatprep.subr.bf16.mxu1 %v2979_v13 }
 0x105   :  { %1998 = vmatprep.mubr.bf16.mxu0 %v3017_v22  ;;  %2203 = vmatprep.mubr.bf16.mxu1 %v3017_v22 }
 0x107   :  { %1969 = vmatpush1.bf16.msra.mxu0 %v2974_v18  ;;  %2174 = vmatpush1.bf16.msra.mxu1 %v2977_v19 }
 0x108   :  { %1970 = vmatprep.subr.bf16.mxu0 %v2982_v20  ;;  %2175 = vmatprep.subr.bf16.mxu1 %v2985_v21 }
 0x10b   :  { %1971 = vmatpush1.bf16.msra.mxu0 %v2980_v23  ;;  %2176 = vmatpush1.bf16.msra.mxu1 %v2983_v24 }
 0x10c   :  { %1972 = vmatprep.subr.bf16.mxu0 %v2988_v25  ;;  %2177 = vmatprep.subr.bf16.mxu1 %v2991_v26 }
 0x10f   :  { %1973 = vmatpush1.bf16.msra.mxu0 %v2986_v27  ;;  %2178 = vmatpush1.bf16.msra.mxu1 %v2989_v28 }
 0x110   :  { %1974 = vmatprep.subr.bf16.mxu0 %v2994_v29  ;;  %2179 = vmatprep.subr.bf16.mxu1 %v2997_v30 }
 0x113   :  { %1975 = vmatpush1.bf16.msra.mxu0 %v2992_v31  ;;  %2180 = vmatpush1.bf16.msra.mxu1 %v2995_v32 }
 0x114   :  { %1976 = vmatprep.subr.bf16.mxu0 %v3000_v33  ;;  %2181 = vmatprep.subr.bf16.mxu1 %v3003_v34 }
 0x117   :  { %1977 = vmatpush1.bf16.msra.mxu0 %v2998_v35  ;;  %2182 = vmatpush1.bf16.msra.mxu1 %v3001_v36 }
 0x118   :  { %1978 = vmatprep.subr.bf16.mxu0 %v3006_v37  ;;  %2183 = vmatprep.subr.bf16.mxu1 %v3009_v38 }
 0x11b   :  { %1979 = vmatpush1.bf16.msra.mxu0 %v3004_v39  ;;  %2184 = vmatpush1.bf16.msra.mxu1 %v3007_v40 }
 0x11c   :  { %1980 = vmatprep.subr.bf16.mxu0 %v3012_v41  ;;  %2185 = vmatprep.subr.bf16.mxu1 %v3015_v42 }
 0x11f   :  { %1981 = vmatpush1.bf16.msra.mxu0 %v3010_v43  ;;  %2186 = vmatpush1.bf16.msra.mxu1 %v3013_v44 }
 0x122   :  { %1999 = vmatmul.mubr.bf16.vlgmr.msra.gmra.mrb[0].mxu0 %v3016_v45  ;;  %2204 = vmatmul.mubr.bf16.vlgmr.msra.gmra.mrb[0].mxu1 %v3016_v45 }
 0x1f5   :  { %v2000_v57 = vpop.f32.mrb[0].mxu0  ;;  %v2205_v58 = vpop.f32.mrb[0].mxu1 }
 0x1f6   :  { %v2539_v59 = vadd.f32 %v2000_v57, %v313_v53  ;;  %v2541_v60 = vadd.f32 %v2205_v58, %v321_v54  ;;  %v2002_v61 = vpop.f32.mrb[1].mxu0  ;;  %v2207_v62 = vpop.f32.mrb[1].mxu1 }
 0x1f7   :  { %v2540_v63 = vadd.f32 %v2002_v61, %v317_v55  ;;  %v2542_v0 = vadd.f32 %v2207_v62, %v325_v56  ;;  %v2004_v1 = vpop.f32.mrb[2].mxu0  ;;  %v2209_v2 = vpop.f32.mrb[2].mxu1 }
 0x1f8   :  { %v2212_v3 = vmax.f32 %v2539_v59, 0.0  ;;  %v2214_v4 = vmax.f32 %v2541_v60, 0.0  ;;  %v2005_v5 = vpop.f32.mrb[3].mxu0  ;;  %v2210_v6 = vpop.f32.mrb[3].mxu1 }
 0x1f9   :  { %v2213_v7 = vmax.f32 %v2540_v63, 0.0  ;;  %v2215_v8 = vmax.f32 %v2542_v0, 0.0 }
 0x1fb   :  { %v2537_v9 = vpack.c.bf16 %v2213_v7, %v2212_v3  ;;  %v2538_v10 = vpack.c.bf16 %v2215_v8, %v2214_v4 }
 0x1fd   :  { %2232 = vst [vmem:[%s3947_s3] sm:$0xff] %v2537_v9  ;;  %2233 = vst [vmem:[%s3947_s3 + $0x8] sm:$0xff] %v2538_v10 }

// kernel: vqvae_forward.26
= control target key start
LH: loop header
LB: loop body
LE: loop exit
PB: predicated region body
PF: predicated region fallthrough
CT: control target
= control target key end

     0   :  { %s4310_s1 = inlined_call_operand.vmem [shape: bf16[1152,512], index: 1, kind: input, shape index: {}]   ;;  %s4311_s0 = inlined_call_operand.vmem [shape: bf16[32,1152], index: 0, kind: input, shape index: {}]   ;;  %s4312_s2 = inlined_call_operand.vmem [shape: f32[1,512], index: 2, kind: input, shape index: {}]   ;;  %s4313_s3 = inlined_call_operand.vmem [shape: bf16[32,512], index: 3, kind: output, shape index: {}]  }
   0x1   :  { %v2886_v0 = vld [vmem:[%s4310_s1 + $0x4] ss:$16 sps:$4 sm:$0xff]   ;;  %v2888_v1 = vld [vmem:[%s4310_s1 + $0xc] ss:$16 sps:$4 sm:$0xff]   ;;  %v2890_v2 = vld [vmem:[%s4310_s1] ss:$16 sps:$4 sm:$0xff]  }
   0x2   :  { %1877 = vmatprep.subr.bf16.mxu0 %v2886_v0  ;;  %v2891_v3 = vld [vmem:[%s4310_s1 + $0x8] ss:$16 sps:$4 sm:$0xff]   ;;  %2142 = vmatprep.subr.bf16.mxu1 %v2888_v1  ;;  %v2892_v4 = vld [vmem:[%s4310_s1 + $0x24] ss:$16 sps:$4 sm:$0xff]   ;;  %v2894_v5 = vld [vmem:[%s4310_s1 + $0x2c] ss:$16 sps:$4 sm:$0xff]  }
   0x3   :  { %1878 = vmatpush1.bf16.msra.mxu0 %v2890_v2  ;;  %2143 = vmatpush1.bf16.msra.mxu1 %v2891_v3  ;;  %v2896_v6 = vld [vmem:[%s4310_s1 + $0x20] ss:$16 sps:$4 sm:$0xff]   ;;  %v2897_v7 = vld [vmem:[%s4310_s1 + $0x28] ss:$16 sps:$4 sm:$0xff]   ;;  %v2898_v8 = vld [vmem:[%s4310_s1 + $0x44] ss:$16 sps:$4 sm:$0xff]  }
   0x4   :  { %1879 = vmatprep.subr.bf16.mxu0 %v2892_v4  ;;  %2144 = vmatprep.subr.bf16.mxu1 %v2894_v5  ;;  %v2900_v9 = vld [vmem:[%s4310_s1 + $0x4c] ss:$16 sps:$4 sm:$0xff]   ;;  %v2902_v10 = vld [vmem:[%s4310_s1 + $0x40] ss:$16 sps:$4 sm:$0xff]   ;;  %v2903_v11 = vld [vmem:[%s4310_s1 + $0x48] ss:$16 sps:$4 sm:$0xff]  }
   0x5   :  { %v2904_v12 = vld [vmem:[%s4310_s1 + $0x64] ss:$16 sps:$4 sm:$0xff]   ;;  %v2906_v13 = vld [vmem:[%s4310_s1 + $0x6c] ss:$16 sps:$4 sm:$0xff]   ;;  %v2908_v14 = vld [vmem:[%s4310_s1 + $0x60] ss:$16 sps:$4 sm:$0xff]  }
   0x6   :  { %v2909_v15 = vld [vmem:[%s4310_s1 + $0x68] ss:$16 sps:$4 sm:$0xff]   ;;  %v2910_v16 = vld [vmem:[%s4310_s1 + $0x84] ss:$16 sps:$4 sm:$0xff]   ;;  %v2912_v17 = vld [vmem:[%s4310_s1 + $0x8c] ss:$16 sps:$4 sm:$0xff]  }
   0x7   :  { %1880 = vmatpush1.bf16.msra.mxu0 %v2896_v6  ;;  %2145 = vmatpush1.bf16.msra.mxu1 %v2897_v7  ;;  %v2914_v18 = vld [vmem:[%s4310_s1 + $0x80] ss:$16 sps:$4 sm:$0xff]   ;;  %v2915_v19 = vld [vmem:[%s4310_s1 + $0x88] ss:$16 sps:$4 sm:$0xff]   ;;  %v2916_v20 = vld [vmem:[%s4310_s1 + $0xa4] ss:$16 sps:$4 sm:$0xff]  }
   0x8   :  { %1881 = vmatprep.subr.bf16.mxu0 %v2898_v8  ;;  %2146 = vmatprep.subr.bf16.mxu1 %v2900_v9  ;;  %v2918_v21 = vld [vmem:[%s4310_s1 + $0xac] ss:$16 sps:$4 sm:$0xff]   ;;  %v2920_v22 = vld [vmem:[%s4310_s1 + $0xa0] ss:$16 sps:$4 sm:$0xff]   ;;  %v2921_v23 = vld [vmem:[%s4310_s1 + $0xa8] ss:$16 sps:$4 sm:$0xff]  }
   0x9   :  { %v2922_v24 = vld [vmem:[%s4310_s1 + $0xc4] ss:$16 sps:$4 sm:$0xff]   ;;  %v2924_v25 = vld [vmem:[%s4310_s1 + $0xcc] ss:$16 sps:$4 sm:$0xff]   ;;  %v2926_v26 = vld [vmem:[%s4310_s1 + $0xc0] ss:$16 sps:$4 sm:$0xff]  }
   0xa   :  { %v2927_v27 = vld [vmem:[%s4310_s1 + $0xc8] ss:$16 sps:$4 sm:$0xff]   ;;  %v2928_v28 = vld [vmem:[%s4310_s1 + $0xe4] ss:$16 sps:$4 sm:$0xff]   ;;  %v2930_v29 = vld [vmem:[%s4310_s1 + $0xec] ss:$16 sps:$4 sm:$0xff]  }
   0xb   :  { %1882 = vmatpush1.bf16.msra.mxu0 %v2902_v10  ;;  %2147 = vmatpush1.bf16.msra.mxu1 %v2903_v11  ;;  %v2932_v30 = vld [vmem:[%s4310_s1 + $0xe0] ss:$16 sps:$4 sm:$0xff]   ;;  %v2933_v31 = vld [vmem:[%s4310_s1 + $0xe8] ss:$16 sps:$4 sm:$0xff]   ;;  %v2934_v32 = vld [vmem:[%s4310_s1 + $0x104] ss:$16 sps:$4 sm:$0xff]  }
   0xc   :  { %1883 = vmatprep.subr.bf16.mxu0 %v2904_v12  ;;  %2148 = vmatprep.subr.bf16.mxu1 %v2906_v13  ;;  %v2936_v33 = vld [vmem:[%s4310_s1 + $0x10c] ss:$16 sps:$4 sm:$0xff]   ;;  %v2938_v34 = vld [vmem:[%s4310_s1 + $0x100] ss:$16 sps:$4 sm:$0xff]   ;;  %v2939_v35 = vld [vmem:[%s4310_s1 + $0x108] ss:$16 sps:$4 sm:$0xff]  }
   0xd   :  { %v2940_v36 = vld [vmem:[%s4310_s1 + $0x124] ss:$16 sps:$4 sm:$0xff]   ;;  %v2942_v37 = vld [vmem:[%s4310_s1 + $0x12c] ss:$16 sps:$4 sm:$0xff]   ;;  %v2944_v38 = vld [vmem:[%s4310_s1 + $0x120] ss:$16 sps:$4 sm:$0xff]  }
   0xe   :  { %v2945_v39 = vld [vmem:[%s4310_s1 + $0x128] ss:$16 sps:$4 sm:$0xff]   ;;  %v2946_v40 = vld [vmem:[%s4310_s1 + $0x144] ss:$16 sps:$4 sm:$0xff]   ;;  %v2948_v41 = vld [vmem:[%s4310_s1 + $0x14c] ss:$16 sps:$4 sm:$0xff]  }
   0xf   :  { %1884 = vmatpush1.bf16.msra.mxu0 %v2908_v14  ;;  %2149 = vmatpush1.bf16.msra.mxu1 %v2909_v15  ;;  %v2950_v42 = vld [vmem:[%s4310_s1 + $0x140] ss:$16 sps:$4 sm:$0xff]   ;;  %v2951_v43 = vld [vmem:[%s4310_s1 + $0x148] ss:$16 sps:$4 sm:$0xff]   ;;  %v2952_v44 = vld [vmem:[%s4310_s1 + $0x164] ss:$16 sps:$4 sm:$0xff]  }
  0x10   :  { %1885 = vmatprep.subr.bf16.mxu0 %v2910_v16  ;;  %2150 = vmatprep.subr.bf16.mxu1 %v2912_v17  ;;  %v2954_v45 = vld [vmem:[%s4310_s1 + $0x16c] ss:$16 sps:$4 sm:$0xff]   ;;  %v2956_v46 = vld [vmem:[%s4310_s1 + $0x160] ss:$16 sps:$4 sm:$0xff]   ;;  %v2957_v47 = vld [vmem:[%s4310_s1 + $0x168] ss:$16 sps:$4 sm:$0xff]  }
  0x11   :  { %v2984_v48 = vld [vmem:[%s4311_s0 + $0x4] ss:$36 sps:$4 sm:$0xff]   ;;  %v2960_v50 = vld [vmem:[%s4310_s1 + $0x18c] ss:$16 sps:$4 sm:$0xff]   ;;  %v2962_v51 = vld [vmem:[%s4310_s1 + $0x180] ss:$16 sps:$4 sm:$0xff]  }
  0x12   :  { %v2958_v49 = vld [vmem:[%s4310_s1 + $0x184] ss:$16 sps:$4 sm:$0xff]   ;;  %1909 = vmatprep.mubr.bf16.mxu0 %v2984_v48  ;;  %2174 = vmatprep.mubr.bf16.mxu1 %v2984_v48  ;;  %v2963_v52 = vld [vmem:[%s4310_s1 + $0x188] ss:$16 sps:$4 sm:$0xff]   ;;  %v2966_v54 = vld [vmem:[%s4310_s1 + $0x1ac] ss:$16 sps:$4 sm:$0xff]  }
  0x13   :  { %1886 = vmatpush1.bf16.msra.mxu0 %v2914_v18  ;;  %2151 = vmatpush1.bf16.msra.mxu1 %v2915_v19  ;;  %v2964_v53 = vld [vmem:[%s4310_s1 + $0x1a4] ss:$16 sps:$4 sm:$0xff]   ;;  %v2968_v55 = vld [vmem:[%s4310_s1 + $0x1a0] ss:$16 sps:$4 sm:$0xff]   ;;  %v2969_v56 = vld [vmem:[%s4310_s1 + $0x1a8] ss:$16 sps:$4 sm:$0xff]  }
  0x14   :  { %1887 = vmatprep.subr.bf16.mxu0 %v2916_v20  ;;  %2152 = vmatprep.subr.bf16.mxu1 %v2918_v21  ;;  %v2970_v57 = vld [vmem:[%s4310_s1 + $0x1c4] ss:$16 sps:$4 sm:$0xff]   ;;  %v2972_v58 = vld [vmem:[%s4310_s1 + $0x1cc] ss:$16 sps:$4 sm:$0xff]   ;;  %v2974_v59 = vld [vmem:[%s4310_s1 + $0x1c0] ss:$16 sps:$4 sm:$0xff]  }
  0x15   :  { %v2975_v60 = vld [vmem:[%s4310_s1 + $0x1c8] ss:$16 sps:$4 sm:$0xff]   ;;  %v2976_v61 = vld [vmem:[%s4310_s1 + $0x1e4] ss:$16 sps:$4 sm:$0xff]   ;;  %v2978_v62 = vld [vmem:[%s4310_s1 + $0x1ec] ss:$16 sps:$4 sm:$0xff]  }
  0x16   :  { %v2980_v63 = vld [vmem:[%s4310_s1 + $0x1e0] ss:$16 sps:$4 sm:$0xff]   ;;  %v2981_v0 = vld [vmem:[%s4310_s1 + $0x1e8] ss:$16 sps:$4 sm:$0xff]   ;;  %v2987_v1 = vld [vmem:[%s4310_s1 + $0x204] ss:$16 sps:$4 sm:$0xff]  }
  0x17   :  { %1888 = vmatpush1.bf16.msra.mxu0 %v2920_v22  ;;  %2153 = vmatpush1.bf16.msra.mxu1 %v2921_v23  ;;  %v2990_v2 = vld [vmem:[%s4310_s1 + $0x20c] ss:$16 sps:$4 sm:$0xff]   ;;  %v2982_v3 = vld [vmem:[%s4311_s0] ss:$36 sps:$4 sm:$0xff]   ;;  %v2988_v5 = vld [vmem:[%s4310_s1 + $0x208] ss:$16 sps:$4 sm:$0xff]  }
  0x18   :  { %1889 = vmatprep.subr.bf16.mxu0 %v2922_v24  ;;  %2154 = vmatprep.subr.bf16.mxu1 %v2924_v25  ;;  %v2985_v4 = vld [vmem:[%s4310_s1 + $0x200] ss:$16 sps:$4 sm:$0xff]   ;;  %v2993_v6 = vld [vmem:[%s4310_s1 + $0x224] ss:$16 sps:$4 sm:$0xff]   ;;  %v2996_v7 = vld [vmem:[%s4310_s1 + $0x22c] ss:$16 sps:$4 sm:$0xff]  }
  0x19   :  { %v2991_v8 = vld [vmem:[%s4310_s1 + $0x220] ss:$16 sps:$4 sm:$0xff]   ;;  %v2994_v9 = vld [vmem:[%s4310_s1 + $0x228] ss:$16 sps:$4 sm:$0xff]   ;;  %v2999_v10 = vld [vmem:[%s4310_s1 + $0x244] ss:$16 sps:$4 sm:$0xff]  }
  0x1a   :  { %v3002_v11 = vld [vmem:[%s4310_s1 + $0x24c] ss:$16 sps:$4 sm:$0xff]   ;;  %v2997_v12 = vld [vmem:[%s4310_s1 + $0x240] ss:$16 sps:$4 sm:$0xff]   ;;  %v3000_v13 = vld [vmem:[%s4310_s1 + $0x248] ss:$16 sps:$4 sm:$0xff]  }
  0x1b   :  { %1890 = vmatpush1.bf16.msra.mxu0 %v2926_v26  ;;  %2155 = vmatpush1.bf16.msra.mxu1 %v2927_v27  ;;  %v3005_v14 = vld [vmem:[%s4310_s1 + $0x264] ss:$16 sps:$4 sm:$0xff]   ;;  %v3008_v15 = vld [vmem:[%s4310_s1 + $0x26c] ss:$16 sps:$4 sm:$0xff]   ;;  %v3003_v16 = vld [vmem:[%s4310_s1 + $0x260] ss:$16 sps:$4 sm:$0xff]  }
  0x1c   :  { %1891 = vmatprep.subr.bf16.mxu0 %v2928_v28  ;;  %2156 = vmatprep.subr.bf16.mxu1 %v2930_v29  ;;  %v3006_v17 = vld [vmem:[%s4310_s1 + $0x268] ss:$16 sps:$4 sm:$0xff]   ;;  %v3011_v18 = vld [vmem:[%s4310_s1 + $0x284] ss:$16 sps:$4 sm:$0xff]   ;;  %v3014_v19 = vld [vmem:[%s4310_s1 + $0x28c] ss:$16 sps:$4 sm:$0xff]  }
  0x1d   :  { %v3009_v20 = vld [vmem:[%s4310_s1 + $0x280] ss:$16 sps:$4 sm:$0xff]   ;;  %v3012_v21 = vld [vmem:[%s4310_s1 + $0x288] ss:$16 sps:$4 sm:$0xff]   ;;  %v3017_v22 = vld [vmem:[%s4310_s1 + $0x2a4] ss:$16 sps:$4 sm:$0xff]  }
  0x1e   :  { %v3020_v23 = vld [vmem:[%s4310_s1 + $0x2ac] ss:$16 sps:$4 sm:$0xff]   ;;  %v3015_v25 = vld [vmem:[%s4310_s1 + $0x2a0] ss:$16 sps:$4 sm:$0xff]   ;;  %v3018_v26 = vld [vmem:[%s4310_s1 + $0x2a8] ss:$16 sps:$4 sm:$0xff]  }
  0x1f   :  { %1892 = vmatpush1.bf16.msra.mxu0 %v2932_v30  ;;  %2157 = vmatpush1.bf16.msra.mxu1 %v2933_v31  ;;  %v3069_v24 = vld [vmem:[%s4311_s0 + $0x4c] ss:$36 sps:$4 sm:$0xff]   ;;  %v3023_v27 = vld [vmem:[%s4310_s1 + $0x2c4] ss:$16 sps:$4 sm:$0xff]   ;;  %v3024_v31 = vld [vmem:[%s4310_s1 + $0x2c8] ss:$16 sps:$4 sm:$0xff]  }
  0x20   :  { %1893 = vmatprep.subr.bf16.mxu0 %v2934_v32  ;;  %2158 = vmatprep.subr.bf16.mxu1 %v2936_v33  ;;  %v3026_v28 = vld [vmem:[%s4310_s1 + $0x2cc] ss:$16 sps:$4 sm:$0xff]   ;;  %v3021_v30 = vld [vmem:[%s4310_s1 + $0x2c0] ss:$16 sps:$4 sm:$0xff]   ;;  %v3029_v32 = vld [vmem:[%s4310_s1 + $0x2e4] ss:$16 sps:$4 sm:$0xff]  }
  0x21   :  { %v3077_v29 = vld [vmem:[%s4311_s0 + $0x48] ss:$36 sps:$4 sm:$0xff]  }
  0x22   :  { %v3032_v33 = vld [vmem:[%s4310_s1 + $0x2ec] ss:$16 sps:$4 sm:$0xff]   ;;  %v3048_v48 = vld [vmem:[%s4310_s1 + $0x348] ss:$16 sps:$4 sm:$0xff]  }
  0x23   :  { %1894 = vmatpush1.bf16.msra.mxu0 %v2938_v34  ;;  %2159 = vmatpush1.bf16.msra.mxu1 %v2939_v35  ;;  %v3086_v34 = vld [vmem:[%s4311_s0 + $0xc] ss:$36 sps:$4 sm:$0xff]  }
  0x24   :  { %1895 = vmatprep.subr.bf16.mxu0 %v2940_v36  ;;  %2160 = vmatprep.subr.bf16.mxu1 %v2942_v37  ;;  %v3027_v35 = vld [vmem:[%s4310_s1 + $0x2e0] ss:$16 sps:$4 sm:$0xff]   ;;  %v3030_v36 = vld [vmem:[%s4310_s1 + $0x2e8] ss:$16 sps:$4 sm:$0xff]   ;;  %v3035_v37 = vld [vmem:[%s4310_s1 + $0x304] ss:$16 sps:$4 sm:$0xff]  }
  0x27   :  { %1896 = vmatpush1.bf16.msra.mxu0 %v2944_v38  ;;  %2161 = vmatpush1.bf16.msra.mxu1 %v2945_v39  ;;  %v3038_v38 = vld [vmem:[%s4310_s1 + $0x30c] ss:$16 sps:$4 sm:$0xff]   ;;  %v3033_v39 = vld [vmem:[%s4310_s1 + $0x300] ss:$16 sps:$4 sm:$0xff]  }
  0x28   :  { %1897 = vmatprep.subr.bf16.mxu0 %v2946_v40  ;;  %2162 = vmatprep.subr.bf16.mxu1 %v2948_v41  ;;  %v3036_v40 = vld [vmem:[%s4310_s1 + $0x308] ss:$16 sps:$4 sm:$0xff]   ;;  %v3041_v41 = vld [vmem:[%s4310_s1 + $0x324] ss:$16 sps:$4 sm:$0xff]  }
  0x2b   :  { %1898 = vmatpush1.bf16.msra.mxu0 %v2950_v42  ;;  %2163 = vmatpush1.bf16.msra.mxu1 %v2951_v43  ;;  %v3044_v42 = vld [vmem:[%s4310_s1 + $0x32c] ss:$16 sps:$4 sm:$0xff]   ;;  %v3039_v43 = vld [vmem:[%s4310_s1 + $0x320] ss:$16 sps:$4 sm:$0xff]  }
  0x2c   :  { %1899 = vmatprep.subr.bf16.mxu0 %v2952_v44  ;;  %2164 = vmatprep.subr.bf16.mxu1 %v2954_v45  ;;  %v3042_v44 = vld [vmem:[%s4310_s1 + $0x328] ss:$16 sps:$4 sm:$0xff]   ;;  %v3047_v45 = vld [vmem:[%s4310_s1 + $0x344] ss:$16 sps:$4 sm:$0xff]  }
  0x2f   :  { %1900 = vmatpush1.bf16.msra.mxu0 %v2956_v46  ;;  %2165 = vmatpush1.bf16.msra.mxu1 %v2957_v47  ;;  %v3050_v46 = vld [vmem:[%s4310_s1 + $0x34c] ss:$16 sps:$4 sm:$0xff]   ;;  %v3045_v47 = vld [vmem:[%s4310_s1 + $0x340] ss:$16 sps:$4 sm:$0xff]  }
  0x30   :  { %1901 = vmatprep.subr.bf16.mxu0 %v2958_v49  ;;  %2166 = vmatprep.subr.bf16.mxu1 %v2960_v50  ;;  %v3053_v49 = vld [vmem:[%s4310_s1 + $0x364] ss:$16 sps:$4 sm:$0xff]   ;;  %v3056_v50 = vld [vmem:[%s4310_s1 + $0x36c] ss:$16 sps:$4 sm:$0xff]  }
  0x33   :  { %1902 = vmatpush1.bf16.msra.mxu0 %v2962_v51  ;;  %2167 = vmatpush1.bf16.msra.mxu1 %v2963_v52  ;;  %v3051_v51 = vld [vmem:[%s4310_s1 + $0x360] ss:$16 sps:$4 sm:$0xff]   ;;  %v3054_v52 = vld [vmem:[%s4310_s1 + $0x368] ss:$16 sps:$4 sm:$0xff]  }
  0x34   :  { %1903 = vmatprep.subr.bf16.mxu0 %v2964_v53  ;;  %2168 = vmatprep.subr.bf16.mxu1 %v2966_v54  ;;  %v3059_v53 = vld [vmem:[%s4310_s1 + $0x384] ss:$16 sps:$4 sm:$0xff]   ;;  %v3062_v54 = vld [vmem:[%s4310_s1 + $0x38c] ss:$16 sps:$4 sm:$0xff]  }
  0x37   :  { %1904 = vmatpush1.bf16.msra.mxu0 %v2968_v55  ;;  %2169 = vmatpush1.bf16.msra.mxu1 %v2969_v56  ;;  %v3057_v55 = vld [vmem:[%s4310_s1 + $0x380] ss:$16 sps:$4 sm:$0xff]   ;;  %v3060_v56 = vld [vmem:[%s4310_s1 + $0x388] ss:$16 sps:$4 sm:$0xff]  }
  0x38   :  { %1905 = vmatprep.subr.bf16.mxu0 %v2970_v57  ;;  %2170 = vmatprep.subr.bf16.mxu1 %v2972_v58  ;;  %v3065_v57 = vld [vmem:[%s4310_s1 + $0x3a4] ss:$16 sps:$4 sm:$0xff]   ;;  %v3068_v58 = vld [vmem:[%s4310_s1 + $0x3ac] ss:$16 sps:$4 sm:$0xff]  }
  0x3b   :  { %1906 = vmatpush1.bf16.msra.mxu0 %v2974_v59  ;;  %2171 = vmatpush1.bf16.msra.mxu1 %v2975_v60  ;;  %v3063_v59 = vld [vmem:[%s4310_s1 + $0x3a0] ss:$16 sps:$4 sm:$0xff]   ;;  %v3066_v60 = vld [vmem:[%s4310_s1 + $0x3a8] ss:$16 sps:$4 sm:$0xff]  }
  0x3c   :  { %1907 = vmatprep.subr.bf16.mxu0 %v2976_v61  ;;  %2172 = vmatprep.subr.bf16.mxu1 %v2978_v62  ;;  %v3073_v61 = vld [vmem:[%s4310_s1 + $0x3c4] ss:$16 sps:$4 sm:$0xff]   ;;  %v3076_v62 = vld [vmem:[%s4310_s1 + $0x3cc] ss:$16 sps:$4 sm:$0xff]  }
  0x3f   :  { %1908 = vmatpush1.bf16.msra.mxu0 %v2980_v63  ;;  %2173 = vmatpush1.bf16.msra.mxu1 %v2981_v0  ;;  %v3071_v63 = vld [vmem:[%s4310_s1 + $0x3c0] ss:$16 sps:$4 sm:$0xff]   ;;  %v3074_v0 = vld [vmem:[%s4310_s1 + $0x3c8] ss:$16 sps:$4 sm:$0xff]  }
  0x40   :  { %1930 = vmatprep.subr.bf16.mxu0 %v2987_v1  ;;  %2195 = vmatprep.subr.bf16.mxu1 %v2990_v2  ;;  %v3080_v1 = vld [vmem:[%s4310_s1 + $0x3e4] ss:$16 sps:$4 sm:$0xff]   ;;  %v3083_v2 = vld [vmem:[%s4310_s1 + $0x3ec] ss:$16 sps:$4 sm:$0xff]  }
  0x42   :  { %1910 = vmatmul.mubr.bf16.vlgmr.msra.gmra.mrb[0].mxu0 %v2982_v3  ;;  %2175 = vmatmul.mubr.bf16.vlgmr.msra.gmra.mrb[0].mxu1 %v2982_v3  ;;  %v3078_v3 = vld [vmem:[%s4310_s1 + $0x3e0] ss:$16 sps:$4 sm:$0xff]  }
  0x43   :  { %1931 = vmatpush1.bf16.msra.mxu0 %v2985_v4  ;;  %2196 = vmatpush1.bf16.msra.mxu1 %v2988_v5  ;;  %v3081_v4 = vld [vmem:[%s4310_s1 + $0x3e8] ss:$16 sps:$4 sm:$0xff]   ;;  %v3089_v5 = vld [vmem:[%s4310_s1 + $0x404] ss:$16 sps:$4 sm:$0xff]  }
  0x44   :  { %1932 = vmatprep.subr.bf16.mxu0 %v2993_v6  ;;  %2197 = vmatprep.subr.bf16.mxu1 %v2996_v7  ;;  %v3092_v6 = vld [vmem:[%s4310_s1 + $0x40c] ss:$16 sps:$4 sm:$0xff]  }
  0x45   :  { %1919 = vmatprep.mubr.bf16.mxu0 %v3069_v24  ;;  %2184 = vmatprep.mubr.bf16.mxu1 %v3069_v24  ;;  %v3084_v7 = vld [vmem:[%s4311_s0 + $0x8] ss:$36 sps:$4 sm:$0xff]  }
  0x46   :  { %v3108_v24 = vld [vmem:[%s4310_s1 + $0x468] ss:$16 sps:$4 sm:$0xff]  }
  0x47   :  { %1933 = vmatpush1.bf16.msra.mxu0 %v2991_v8  ;;  %2198 = vmatpush1.bf16.msra.mxu1 %v2994_v9  ;;  %v3087_v8 = vld [vmem:[%s4310_s1 + $0x400] ss:$16 sps:$4 sm:$0xff]   ;;  %v3090_v9 = vld [vmem:[%s4310_s1 + $0x408] ss:$16 sps:$4 sm:$0xff]  }
  0x48   :  { %1934 = vmatprep.subr.bf16.mxu0 %v2999_v10  ;;  %2199 = vmatprep.subr.bf16.mxu1 %v3002_v11  ;;  %v3095_v10 = vld [vmem:[%s4310_s1 + $0x424] ss:$16 sps:$4 sm:$0xff]   ;;  %v3098_v11 = vld [vmem:[%s4310_s1 + $0x42c] ss:$16 sps:$4 sm:$0xff]  }
  0x4a   :  { %1920 = vmatmul.mubr.bf16.gmra.mrb[4].mxu0 %v3077_v29  ;;  %2185 = vmatmul.mubr.bf16.gmra.mrb[4].mxu1 %v3077_v29  ;;  %v3119_v29 = vld [vmem:[%s4310_s1 + $0x4a4] ss:$16 sps:$4 sm:$0xff]  }
  0x4b   :  { %1935 = vmatpush1.bf16.msra.mxu0 %v2997_v12  ;;  %2200 = vmatpush1.bf16.msra.mxu1 %v3000_v13  ;;  %v3171_v12 = vld [vmem:[%s4311_s0 + $0x54] ss:$36 sps:$4 sm:$0xff]   ;;  %v3093_v13 = vld [vmem:[%s4310_s1 + $0x420] ss:$16 sps:$4 sm:$0xff]  }
  0x4c   :  { %1936 = vmatprep.subr.bf16.mxu0 %v3005_v14  ;;  %2201 = vmatprep.subr.bf16.mxu1 %v3008_v15  ;;  %v3096_v14 = vld [vmem:[%s4310_s1 + $0x428] ss:$16 sps:$4 sm:$0xff]   ;;  %v3101_v15 = vld [vmem:[%s4310_s1 + $0x444] ss:$16 sps:$4 sm:$0xff]  }
  0x4d   :  { %1962 = vmatprep.mubr.bf16.mxu0 %v3086_v34  ;;  %2227 = vmatprep.mubr.bf16.mxu1 %v3086_v34  ;;  %v3128_v34 = vld [vmem:[%s4310_s1 + $0x4cc] ss:$16 sps:$4 sm:$0xff]  }
  0x4f   :  { %1937 = vmatpush1.bf16.msra.mxu0 %v3003_v16  ;;  %2202 = vmatpush1.bf16.msra.mxu1 %v3006_v17  ;;  %v3104_v16 = vld [vmem:[%s4310_s1 + $0x44c] ss:$16 sps:$4 sm:$0xff]   ;;  %v3099_v17 = vld [vmem:[%s4310_s1 + $0x440] ss:$16 sps:$4 sm:$0xff]  }
  0x50   :  { %1938 = vmatprep.subr.bf16.mxu0 %v3011_v18  ;;  %2203 = vmatprep.subr.bf16.mxu1 %v3014_v19  ;;  %v3102_v18 = vld [vmem:[%s4310_s1 + $0x448] ss:$16 sps:$4 sm:$0xff]   ;;  %v3179_v19 = vld [vmem:[%s4311_s0 + $0x50] ss:$36 sps:$4 sm:$0xff]  }
  0x53   :  { %1939 = vmatpush1.bf16.msra.mxu0 %v3009_v20  ;;  %2204 = vmatpush1.bf16.msra.mxu1 %v3012_v21  ;;  %v3107_v20 = vld [vmem:[%s4310_s1 + $0x464] ss:$16 sps:$4 sm:$0xff]   ;;  %v3110_v21 = vld [vmem:[%s4310_s1 + $0x46c] ss:$16 sps:$4 sm:$0xff]  }
  0x54   :  { %1940 = vmatprep.subr.bf16.mxu0 %v3017_v22  ;;  %2205 = vmatprep.subr.bf16.mxu1 %v3020_v23  ;;  %v3188_v22 = vld [vmem:[%s4311_s0 + $0x14] ss:$36 sps:$4 sm:$0xff]   ;;  %v3105_v23 = vld [vmem:[%s4310_s1 + $0x460] ss:$16 sps:$4 sm:$0xff]  }
  0x57   :  { %1941 = vmatpush1.bf16.msra.mxu0 %v3015_v25  ;;  %2206 = vmatpush1.bf16.msra.mxu1 %v3018_v26  ;;  %v3113_v25 = vld [vmem:[%s4310_s1 + $0x484] ss:$16 sps:$4 sm:$0xff]   ;;  %v3116_v26 = vld [vmem:[%s4310_s1 + $0x48c] ss:$16 sps:$4 sm:$0xff]  }
  0x58   :  { %1942 = vmatprep.subr.bf16.mxu0 %v3023_v27  ;;  %2207 = vmatprep.subr.bf16.mxu1 %v3026_v28  ;;  %v3111_v27 = vld [vmem:[%s4310_s1 + $0x480] ss:$16 sps:$4 sm:$0xff]   ;;  %v3114_v28 = vld [vmem:[%s4310_s1 + $0x488] ss:$16 sps:$4 sm:$0xff]  }
  0x5b   :  { %1943 = vmatpush1.bf16.msra.mxu0 %v3021_v30  ;;  %2208 = vmatpush1.bf16.msra.mxu1 %v3024_v31  ;;  %v3122_v30 = vld [vmem:[%s4310_s1 + $0x4ac] ss:$16 sps:$4 sm:$0xff]   ;;  %v3117_v31 = vld [vmem:[%s4310_s1 + $0x4a0] ss:$16 sps:$4 sm:$0xff]  }
  0x5c   :  { %1944 = vmatprep.subr.bf16.mxu0 %v3029_v32  ;;  %2209 = vmatprep.subr.bf16.mxu1 %v3032_v33  ;;  %v3120_v32 = vld [vmem:[%s4310_s1 + $0x4a8] ss:$16 sps:$4 sm:$0xff]   ;;  %v3125_v33 = vld [vmem:[%s4310_s1 + $0x4c4] ss:$16 sps:$4 sm:$0xff]  }
  0x5f   :  { %1945 = vmatpush1.bf16.msra.mxu0 %v3027_v35  ;;  %2210 = vmatpush1.bf16.msra.mxu1 %v3030_v36  ;;  %v3123_v35 = vld [vmem:[%s4310_s1 + $0x4c0] ss:$16 sps:$4 sm:$0xff]   ;;  %v3126_v36 = vld [vmem:[%s4310_s1 + $0x4c8] ss:$16 sps:$4 sm:$0xff]  }
  0x60   :  { %1946 = vmatprep.subr.bf16.mxu0 %v3035_v37  ;;  %2211 = vmatprep.subr.bf16.mxu1 %v3038_v38  ;;  %v3131_v37 = vld [vmem:[%s4310_s1 + $0x4e4] ss:$16 sps:$4 sm:$0xff]   ;;  %v3134_v38 = vld [vmem:[%s4310_s1 + $0x4ec] ss:$16 sps:$4 sm:$0xff]  }
  0x63   :  { %1947 = vmatpush1.bf16.msra.mxu0 %v3033_v39  ;;  %2212 = vmatpush1.bf16.msra.mxu1 %v3036_v40  ;;  %v3129_v39 = vld [vmem:[%s4310_s1 + $0x4e0] ss:$16 sps:$4 sm:$0xff]   ;;  %v3132_v40 = vld [vmem:[%s4310_s1 + $0x4e8] ss:$16 sps:$4 sm:$0xff]  }
  0x64   :  { %1948 = vmatprep.subr.bf16.mxu0 %v3041_v41  ;;  %2213 = vmatprep.subr.bf16.mxu1 %v3044_v42  ;;  %v3137_v41 = vld [vmem:[%s4310_s1 + $0x504] ss:$16 sps:$4 sm:$0xff]   ;;  %v3140_v42 = vld [vmem:[%s4310_s1 + $0x50c] ss:$16 sps:$4 sm:$0xff]  }
  0x67   :  { %1949 = vmatpush1.bf16.msra.mxu0 %v3039_v43  ;;  %2214 = vmatpush1.bf16.msra.mxu1 %v3042_v44  ;;  %v3135_v43 = vld [vmem:[%s4310_s1 + $0x500] ss:$16 sps:$4 sm:$0xff]   ;;  %v3138_v44 = vld [vmem:[%s4310_s1 + $0x508] ss:$16 sps:$4 sm:$0xff]  }
  0x68   :  { %1950 = vmatprep.subr.bf16.mxu0 %v3047_v45  ;;  %2215 = vmatprep.subr.bf16.mxu1 %v3050_v46  ;;  %v3143_v45 = vld [vmem:[%s4310_s1 + $0x524] ss:$16 sps:$4 sm:$0xff]   ;;  %v3146_v46 = vld [vmem:[%s4310_s1 + $0x52c] ss:$16 sps:$4 sm:$0xff]  }
  0x6b   :  { %1951 = vmatpush1.bf16.msra.mxu0 %v3045_v47  ;;  %2216 = vmatpush1.bf16.msra.mxu1 %v3048_v48  ;;  %v3141_v47 = vld [vmem:[%s4310_s1 + $0x520] ss:$16 sps:$4 sm:$0xff]   ;;  %v3144_v48 = vld [vmem:[%s4310_s1 + $0x528] ss:$16 sps:$4 sm:$0xff]  }
  0x6c   :  { %1952 = vmatprep.subr.bf16.mxu0 %v3053_v49  ;;  %2217 = vmatprep.subr.bf16.mxu1 %v3056_v50  ;;  %v3149_v49 = vld [vmem:[%s4310_s1 + $0x544] ss:$16 sps:$4 sm:$0xff]   ;;  %v3152_v50 = vld [vmem:[%s4310_s1 + $0x54c] ss:$16 sps:$4 sm:$0xff]  }
  0x6f   :  { %1953 = vmatpush1.bf16.msra.mxu0 %v3051_v51  ;;  %2218 = vmatpush1.bf16.msra.mxu1 %v3054_v52  ;;  %v3147_v51 = vld [vmem:[%s4310_s1 + $0x540] ss:$16 sps:$4 sm:$0xff]   ;;  %v3150_v52 = vld [vmem:[%s4310_s1 + $0x548] ss:$16 sps:$4 sm:$0xff]  }
  0x70   :  { %1954 = vmatprep.subr.bf16.mxu0 %v3059_v53  ;;  %2219 = vmatprep.subr.bf16.mxu1 %v3062_v54  ;;  %v3155_v53 = vld [vmem:[%s4310_s1 + $0x564] ss:$16 sps:$4 sm:$0xff]   ;;  %v3158_v54 = vld [vmem:[%s4310_s1 + $0x56c] ss:$16 sps:$4 sm:$0xff]  }
  0x73   :  { %1955 = vmatpush1.bf16.msra.mxu0 %v3057_v55  ;;  %2220 = vmatpush1.bf16.msra.mxu1 %v3060_v56  ;;  %v3153_v55 = vld [vmem:[%s4310_s1 + $0x560] ss:$16 sps:$4 sm:$0xff]   ;;  %v3156_v56 = vld [vmem:[%s4310_s1 + $0x568] ss:$16 sps:$4 sm:$0xff]  }
  0x74   :  { %1956 = vmatprep.subr.bf16.mxu0 %v3065_v57  ;;  %2221 = vmatprep.subr.bf16.mxu1 %v3068_v58  ;;  %v3161_v57 = vld [vmem:[%s4310_s1 + $0x584] ss:$16 sps:$4 sm:$0xff]   ;;  %v3164_v58 = vld [vmem:[%s4310_s1 + $0x58c] ss:$16 sps:$4 sm:$0xff]  }
  0x77   :  { %1957 = vmatpush1.bf16.msra.mxu0 %v3063_v59  ;;  %2222 = vmatpush1.bf16.msra.mxu1 %v3066_v60  ;;  %v3159_v59 = vld [vmem:[%s4310_s1 + $0x580] ss:$16 sps:$4 sm:$0xff]   ;;  %v3162_v60 = vld [vmem:[%s4310_s1 + $0x588] ss:$16 sps:$4 sm:$0xff]  }
  0x78   :  { %1958 = vmatprep.subr.bf16.mxu0 %v3073_v61  ;;  %2223 = vmatprep.subr.bf16.mxu1 %v3076_v62  ;;  %v3167_v61 = vld [vmem:[%s4310_s1 + $0x5a4] ss:$16 sps:$4 sm:$0xff]   ;;  %v3170_v62 = vld [vmem:[%s4310_s1 + $0x5ac] ss:$16 sps:$4 sm:$0xff]  }
  0x7b   :  { %1959 = vmatpush1.bf16.msra.mxu0 %v3071_v63  ;;  %2224 = vmatpush1.bf16.msra.mxu1 %v3074_v0  ;;  %v3165_v63 = vld [vmem:[%s4310_s1 + $0x5a0] ss:$16 sps:$4 sm:$0xff]   ;;  %v3168_v0 = vld [vmem:[%s4310_s1 + $0x5a8] ss:$16 sps:$4 sm:$0xff]  }
  0x7c   :  { %1960 = vmatprep.subr.bf16.mxu0 %v3080_v1  ;;  %2225 = vmatprep.subr.bf16.mxu1 %v3083_v2  ;;  %v3175_v1 = vld [vmem:[%s4310_s1 + $0x5c4] ss:$16 sps:$4 sm:$0xff]   ;;  %v3178_v2 = vld [vmem:[%s4310_s1 + $0x5cc] ss:$16 sps:$4 sm:$0xff]  }
  0x7f   :  { %1961 = vmatpush1.bf16.msra.mxu0 %v3078_v3  ;;  %2226 = vmatpush1.bf16.msra.mxu1 %v3081_v4  ;;  %v3173_v3 = vld [vmem:[%s4310_s1 + $0x5c0] ss:$16 sps:$4 sm:$0xff]   ;;  %v3176_v4 = vld [vmem:[%s4310_s1 + $0x5c8] ss:$16 sps:$4 sm:$0xff]  }
  0x80   :  { %1983 = vmatprep.subr.bf16.mxu0 %v3089_v5  ;;  %2248 = vmatprep.subr.bf16.mxu1 %v3092_v6  ;;  %v3182_v5 = vld [vmem:[%s4310_s1 + $0x5e4] ss:$16 sps:$4 sm:$0xff]   ;;  %v3185_v6 = vld [vmem:[%s4310_s1 + $0x5ec] ss:$16 sps:$4 sm:$0xff]  }
  0x82   :  { %1963 = vmatmul.mubr.bf16.vlgmr.msra.gmra.mrb[0].mxu0 %v3084_v7  ;;  %2228 = vmatmul.mubr.bf16.vlgmr.msra.gmra.mrb[0].mxu1 %v3084_v7  ;;  %v3180_v7 = vld [vmem:[%s4310_s1 + $0x5e0] ss:$16 sps:$4 sm:$0xff]  }
  0x83   :  { %1984 = vmatpush1.bf16.msra.mxu0 %v3087_v8  ;;  %2249 = vmatpush1.bf16.msra.mxu1 %v3090_v9  ;;  %v3183_v8 = vld [vmem:[%s4310_s1 + $0x5e8] ss:$16 sps:$4 sm:$0xff]   ;;  %v3191_v9 = vld [vmem:[%s4310_s1 + $0x604] ss:$16 sps:$4 sm:$0xff]  }
  0x84   :  { %1985 = vmatprep.subr.bf16.mxu0 %v3095_v10  ;;  %2250 = vmatprep.subr.bf16.mxu1 %v3098_v11  ;;  %v3194_v10 = vld [vmem:[%s4310_s1 + $0x60c] ss:$16 sps:$4 sm:$0xff]   ;;  %v3186_v11 = vld [vmem:[%s4311_s0 + $0x10] ss:$36 sps:$4 sm:$0xff]  }
  0x85   :  { %1972 = vmatprep.mubr.bf16.mxu0 %v3171_v12  ;;  %2237 = vmatprep.mubr.bf16.mxu1 %v3171_v12  ;;  %v3189_v12 = vld [vmem:[%s4310_s1 + $0x600] ss:$16 sps:$4 sm:$0xff]  }
  0x87   :  { %1986 = vmatpush1.bf16.msra.mxu0 %v3093_v13  ;;  %2251 = vmatpush1.bf16.msra.mxu1 %v3096_v14  ;;  %v3192_v13 = vld [vmem:[%s4310_s1 + $0x608] ss:$16 sps:$4 sm:$0xff]   ;;  %v3197_v14 = vld [vmem:[%s4310_s1 + $0x624] ss:$16 sps:$4 sm:$0xff]  }
  0x88   :  { %1987 = vmatprep.subr.bf16.mxu0 %v3101_v15  ;;  %2252 = vmatprep.subr.bf16.mxu1 %v3104_v16  ;;  %v3200_v15 = vld [vmem:[%s4310_s1 + $0x62c] ss:$16 sps:$4 sm:$0xff]  }
  0x89   :  { %v3273_v16 = vld [vmem:[%s4311_s0 + $0x5c] ss:$36 sps:$4 sm:$0xff]  }
  0x8a   :  { %1973 = vmatmul.mubr.bf16.gmra.mrb[4].mxu0 %v3179_v19  ;;  %2238 = vmatmul.mubr.bf16.gmra.mrb[4].mxu1 %v3179_v19  ;;  %v3203_v19 = vld [vmem:[%s4310_s1 + $0x644] ss:$16 sps:$4 sm:$0xff]  }
  0x8b   :  { %1988 = vmatpush1.bf16.msra.mxu0 %v3099_v17  ;;  %2253 = vmatpush1.bf16.msra.mxu1 %v3102_v18  ;;  %v3195_v17 = vld [vmem:[%s4310_s1 + $0x620] ss:$16 sps:$4 sm:$0xff]   ;;  %v3198_v18 = vld [vmem:[%s4310_s1 + $0x628] ss:$16 sps:$4 sm:$0xff]  }
  0x8c   :  { %1989 = vmatprep.subr.bf16.mxu0 %v3107_v20  ;;  %2254 = vmatprep.subr.bf16.mxu1 %v3110_v21  ;;  %v3206_v20 = vld [vmem:[%s4310_s1 + $0x64c] ss:$16 sps:$4 sm:$0xff]   ;;  %v3201_v21 = vld [vmem:[%s4310_s1 + $0x640] ss:$16 sps:$4 sm:$0xff]  }
  0x8d   :  { %2015 = vmatprep.mubr.bf16.mxu0 %v3188_v22  ;;  %2280 = vmatprep.mubr.bf16.mxu1 %v3188_v22  ;;  %v3204_v22 = vld [vmem:[%s4310_s1 + $0x648] ss:$16 sps:$4 sm:$0xff]  }
  0x8f   :  { %1990 = vmatpush1.bf16.msra.mxu0 %v3105_v23  ;;  %2255 = vmatpush1.bf16.msra.mxu1 %v3108_v24  ;;  %v3281_v23 = vld [vmem:[%s4311_s0 + $0x58] ss:$36 sps:$4 sm:$0xff]   ;;  %v3209_v24 = vld [vmem:[%s4310_s1 + $0x664] ss:$16 sps:$4 sm:$0xff]  }
  0x90   :  { %1991 = vmatprep.subr.bf16.mxu0 %v3113_v25  ;;  %2256 = vmatprep.subr.bf16.mxu1 %v3116_v26  ;;  %v3212_v25 = vld [vmem:[%s4310_s1 + $0x66c] ss:$16 sps:$4 sm:$0xff]  }
  0x91   :  { %v3290_v26 = vld [vmem:[%s4311_s0 + $0x1c] ss:$36 sps:$4 sm:$0xff]  }
  0x93   :  { %1992 = vmatpush1.bf16.msra.mxu0 %v3111_v27  ;;  %2257 = vmatpush1.bf16.msra.mxu1 %v3114_v28  ;;  %v3207_v27 = vld [vmem:[%s4310_s1 + $0x660] ss:$16 sps:$4 sm:$0xff]   ;;  %v3210_v28 = vld [vmem:[%s4310_s1 + $0x668] ss:$16 sps:$4 sm:$0xff]  }
  0x94   :  { %1993 = vmatprep.subr.bf16.mxu0 %v3119_v29  ;;  %2258 = vmatprep.subr.bf16.mxu1 %v3122_v30  ;;  %v3215_v29 = vld [vmem:[%s4310_s1 + $0x684] ss:$16 sps:$4 sm:$0xff]   ;;  %v3218_v30 = vld [vmem:[%s4310_s1 + $0x68c] ss:$16 sps:$4 sm:$0xff]  }
  0x97   :  { %1994 = vmatpush1.bf16.msra.mxu0 %v3117_v31  ;;  %2259 = vmatpush1.bf16.msra.mxu1 %v3120_v32  ;;  %v3213_v31 = vld [vmem:[%s4310_s1 + $0x680] ss:$16 sps:$4 sm:$0xff]   ;;  %v3216_v32 = vld [vmem:[%s4310_s1 + $0x688] ss:$16 sps:$4 sm:$0xff]  }
  0x98   :  { %1995 = vmatprep.subr.bf16.mxu0 %v3125_v33  ;;  %2260 = vmatprep.subr.bf16.mxu1 %v3128_v34  ;;  %v3221_v33 = vld [vmem:[%s4310_s1 + $0x6a4] ss:$16 sps:$4 sm:$0xff]   ;;  %v3224_v34 = vld [vmem:[%s4310_s1 + $0x6ac] ss:$16 sps:$4 sm:$0xff]  }
  0x9b   :  { %1996 = vmatpush1.bf16.msra.mxu0 %v3123_v35  ;;  %2261 = vmatpush1.bf16.msra.mxu1 %v3126_v36  ;;  %v3219_v35 = vld [vmem:[%s4310_s1 + $0x6a0] ss:$16 sps:$4 sm:$0xff]   ;;  %v3222_v36 = vld [vmem:[%s4310_s1 + $0x6a8] ss:$16 sps:$4 sm:$0xff]  }
  0x9c   :  { %1997 = vmatprep.subr.bf16.mxu0 %v3131_v37  ;;  %2262 = vmatprep.subr.bf16.mxu1 %v3134_v38  ;;  %v3227_v37 = vld [vmem:[%s4310_s1 + $0x6c4] ss:$16 sps:$4 sm:$0xff]   ;;  %v3230_v38 = vld [vmem:[%s4310_s1 + $0x6cc] ss:$16 sps:$4 sm:$0xff]  }
  0x9f   :  { %1998 = vmatpush1.bf16.msra.mxu0 %v3129_v39  ;;  %2263 = vmatpush1.bf16.msra.mxu1 %v3132_v40  ;;  %v3225_v39 = vld [vmem:[%s4310_s1 + $0x6c0] ss:$16 sps:$4 sm:$0xff]   ;;  %v3228_v40 = vld [vmem:[%s4310_s1 + $0x6c8] ss:$16 sps:$4 sm:$0xff]  }
  0xa0   :  { %1999 = vmatprep.subr.bf16.mxu0 %v3137_v41  ;;  %2264 = vmatprep.subr.bf16.mxu1 %v3140_v42  ;;  %v3233_v41 = vld [vmem:[%s4310_s1 + $0x6e4] ss:$16 sps:$4 sm:$0xff]   ;;  %v3236_v42 = vld [vmem:[%s4310_s1 + $0x6ec] ss:$16 sps:$4 sm:$0xff]  }
  0xa3   :  { %2000 = vmatpush1.bf16.msra.mxu0 %v3135_v43  ;;  %2265 = vmatpush1.bf16.msra.mxu1 %v3138_v44  ;;  %v3231_v43 = vld [vmem:[%s4310_s1 + $0x6e0] ss:$16 sps:$4 sm:$0xff]   ;;  %v3234_v44 = vld [vmem:[%s4310_s1 + $0x6e8] ss:$16 sps:$4 sm:$0xff]  }
  0xa4   :  { %2001 = vmatprep.subr.bf16.mxu0 %v3143_v45  ;;  %2266 = vmatprep.subr.bf16.mxu1 %v3146_v46  ;;  %v3239_v45 = vld [vmem:[%s4310_s1 + $0x704] ss:$16 sps:$4 sm:$0xff]   ;;  %v3242_v46 = vld [vmem:[%s4310_s1 + $0x70c] ss:$16 sps:$4 sm:$0xff]  }
  0xa7   :  { %2002 = vmatpush1.bf16.msra.mxu0 %v3141_v47  ;;  %2267 = vmatpush1.bf16.msra.mxu1 %v3144_v48  ;;  %v3237_v47 = vld [vmem:[%s4310_s1 + $0x700] ss:$16 sps:$4 sm:$0xff]   ;;  %v3240_v48 = vld [vmem:[%s4310_s1 + $0x708] ss:$16 sps:$4 sm:$0xff]  }
  0xa8   :  { %2003 = vmatprep.subr.bf16.mxu0 %v3149_v49  ;;  %2268 = vmatprep.subr.bf16.mxu1 %v3152_v50  ;;  %v3245_v49 = vld [vmem:[%s4310_s1 + $0x724] ss:$16 sps:$4 sm:$0xff]   ;;  %v3248_v50 = vld [vmem:[%s4310_s1 + $0x72c] ss:$16 sps:$4 sm:$0xff]  }
  0xab   :  { %2004 = vmatpush1.bf16.msra.mxu0 %v3147_v51  ;;  %2269 = vmatpush1.bf16.msra.mxu1 %v3150_v52  ;;  %v3243_v51 = vld [vmem:[%s4310_s1 + $0x720] ss:$16 sps:$4 sm:$0xff]   ;;  %v3246_v52 = vld [vmem:[%s4310_s1 + $0x728] ss:$16 sps:$4 sm:$0xff]  }
  0xac   :  { %2005 = vmatprep.subr.bf16.mxu0 %v3155_v53  ;;  %2270 = vmatprep.subr.bf16.mxu1 %v3158_v54  ;;  %v3251_v53 = vld [vmem:[%s4310_s1 + $0x744] ss:$16 sps:$4 sm:$0xff]   ;;  %v3254_v54 = vld [vmem:[%s4310_s1 + $0x74c] ss:$16 sps:$4 sm:$0xff]  }
  0xaf   :  { %2006 = vmatpush1.bf16.msra.mxu0 %v3153_v55  ;;  %2271 = vmatpush1.bf16.msra.mxu1 %v3156_v56  ;;  %v3249_v55 = vld [vmem:[%s4310_s1 + $0x740] ss:$16 sps:$4 sm:$0xff]   ;;  %v3252_v56 = vld [vmem:[%s4310_s1 + $0x748] ss:$16 sps:$4 sm:$0xff]  }
  0xb0   :  { %2007 = vmatprep.subr.bf16.mxu0 %v3161_v57  ;;  %2272 = vmatprep.subr.bf16.mxu1 %v3164_v58  ;;  %v3257_v57 = vld [vmem:[%s4310_s1 + $0x764] ss:$16 sps:$4 sm:$0xff]   ;;  %v3260_v58 = vld [vmem:[%s4310_s1 + $0x76c] ss:$16 sps:$4 sm:$0xff]  }
  0xb3   :  { %2008 = vmatpush1.bf16.msra.mxu0 %v3159_v59  ;;  %2273 = vmatpush1.bf16.msra.mxu1 %v3162_v60  ;;  %v3255_v59 = vld [vmem:[%s4310_s1 + $0x760] ss:$16 sps:$4 sm:$0xff]   ;;  %v3258_v60 = vld [vmem:[%s4310_s1 + $0x768] ss:$16 sps:$4 sm:$0xff]  }
  0xb4   :  { %2009 = vmatprep.subr.bf16.mxu0 %v3167_v61  ;;  %2274 = vmatprep.subr.bf16.mxu1 %v3170_v62  ;;  %v3263_v61 = vld [vmem:[%s4310_s1 + $0x784] ss:$16 sps:$4 sm:$0xff]   ;;  %v3266_v62 = vld [vmem:[%s4310_s1 + $0x78c] ss:$16 sps:$4 sm:$0xff]  }
  0xb7   :  { %2010 = vmatpush1.bf16.msra.mxu0 %v3165_v63  ;;  %2275 = vmatpush1.bf16.msra.mxu1 %v3168_v0  ;;  %v3261_v63 = vld [vmem:[%s4310_s1 + $0x780] ss:$16 sps:$4 sm:$0xff]   ;;  %v3264_v0 = vld [vmem:[%s4310_s1 + $0x788] ss:$16 sps:$4 sm:$0xff]  }
  0xb8   :  { %2011 = vmatprep.subr.bf16.mxu0 %v3175_v1  ;;  %2276 = vmatprep.subr.bf16.mxu1 %v3178_v2  ;;  %v3269_v1 = vld [vmem:[%s4310_s1 + $0x7a4] ss:$16 sps:$4 sm:$0xff]   ;;  %v3272_v2 = vld [vmem:[%s4310_s1 + $0x7ac] ss:$16 sps:$4 sm:$0xff]  }
  0xbb   :  { %2012 = vmatpush1.bf16.msra.mxu0 %v3173_v3  ;;  %2277 = vmatpush1.bf16.msra.mxu1 %v3176_v4  ;;  %v3267_v3 = vld [vmem:[%s4310_s1 + $0x7a0] ss:$16 sps:$4 sm:$0xff]   ;;  %v3270_v4 = vld [vmem:[%s4310_s1 + $0x7a8] ss:$16 sps:$4 sm:$0xff]  }
  0xbc   :  { %2013 = vmatprep.subr.bf16.mxu0 %v3182_v5  ;;  %2278 = vmatprep.subr.bf16.mxu1 %v3185_v6  ;;  %v3277_v5 = vld [vmem:[%s4310_s1 + $0x7c4] ss:$16 sps:$4 sm:$0xff]   ;;  %v3280_v6 = vld [vmem:[%s4310_s1 + $0x7cc] ss:$16 sps:$4 sm:$0xff]  }
  0xbf   :  { %2014 = vmatpush1.bf16.msra.mxu0 %v3180_v7  ;;  %2279 = vmatpush1.bf16.msra.mxu1 %v3183_v8  ;;  %v3275_v7 = vld [vmem:[%s4310_s1 + $0x7c0] ss:$16 sps:$4 sm:$0xff]   ;;  %v3278_v8 = vld [vmem:[%s4310_s1 + $0x7c8] ss:$16 sps:$4 sm:$0xff]  }
  0xc0   :  { %2036 = vmatprep.subr.bf16.mxu0 %v3191_v9  ;;  %2301 = vmatprep.subr.bf16.mxu1 %v3194_v10  ;;  %v3284_v9 = vld [vmem:[%s4310_s1 + $0x7e4] ss:$16 sps:$4 sm:$0xff]   ;;  %v3287_v10 = vld [vmem:[%s4310_s1 + $0x7ec] ss:$16 sps:$4 sm:$0xff]  }
  0xc2   :  { %2016 = vmatmul.mubr.bf16.vlgmr.msra.gmra.mrb[0].mxu0 %v3186_v11  ;;  %2281 = vmatmul.mubr.bf16.vlgmr.msra.gmra.mrb[0].mxu1 %v3186_v11  ;;  %v3282_v11 = vld [vmem:[%s4310_s1 + $0x7e0] ss:$16 sps:$4 sm:$0xff]  }
  0xc3   :  { %2037 = vmatpush1.bf16.msra.mxu0 %v3189_v12  ;;  %2302 = vmatpush1.bf16.msra.mxu1 %v3192_v13  ;;  %v3285_v12 = vld [vmem:[%s4310_s1 + $0x7e8] ss:$16 sps:$4 sm:$0xff]   ;;  %v3293_v13 = vld [vmem:[%s4310_s1 + $0x804] ss:$16 sps:$4 sm:$0xff]  }
  0xc4   :  { %2038 = vmatprep.subr.bf16.mxu0 %v3197_v14  ;;  %2303 = vmatprep.subr.bf16.mxu1 %v3200_v15  ;;  %v3296_v14 = vld [vmem:[%s4310_s1 + $0x80c] ss:$16 sps:$4 sm:$0xff]  }
  0xc5   :  { %2025 = vmatprep.mubr.bf16.mxu0 %v3273_v16  ;;  %2290 = vmatprep.mubr.bf16.mxu1 %v3273_v16  ;;  %v3288_v15 = vld [vmem:[%s4311_s0 + $0x18] ss:$36 sps:$4 sm:$0xff]   ;;  %v3291_v16 = vld [vmem:[%s4310_s1 + $0x800] ss:$16 sps:$4 sm:$0xff]  }
  0xc7   :  { %2039 = vmatpush1.bf16.msra.mxu0 %v3195_v17  ;;  %2304 = vmatpush1.bf16.msra.mxu1 %v3198_v18  ;;  %v3294_v17 = vld [vmem:[%s4310_s1 + $0x808] ss:$16 sps:$4 sm:$0xff]   ;;  %v3299_v18 = vld [vmem:[%s4310_s1 + $0x824] ss:$16 sps:$4 sm:$0xff]  }
  0xc8   :  { %2040 = vmatprep.subr.bf16.mxu0 %v3203_v19  ;;  %2305 = vmatprep.subr.bf16.mxu1 %v3206_v20  ;;  %v3302_v19 = vld [vmem:[%s4310_s1 + $0x82c] ss:$16 sps:$4 sm:$0xff]   ;;  %v3327_v20 = vld [vmem:[%s4311_s0 + $0x64] ss:$36 sps:$4 sm:$0xff]  }
  0xca   :  { %2026 = vmatmul.mubr.bf16.gmra.mrb[4].mxu0 %v3281_v23  ;;  %2291 = vmatmul.mubr.bf16.gmra.mrb[4].mxu1 %v3281_v23  ;;  %v3305_v23 = vld [vmem:[%s4310_s1 + $0x844] ss:$16 sps:$4 sm:$0xff]  }
  0xcb   :  { %2041 = vmatpush1.bf16.msra.mxu0 %v3201_v21  ;;  %2306 = vmatpush1.bf16.msra.mxu1 %v3204_v22  ;;  %v3297_v21 = vld [vmem:[%s4310_s1 + $0x820] ss:$16 sps:$4 sm:$0xff]   ;;  %v3300_v22 = vld [vmem:[%s4310_s1 + $0x828] ss:$16 sps:$4 sm:$0xff]  }
  0xcc   :  { %2042 = vmatprep.subr.bf16.mxu0 %v3209_v24  ;;  %2307 = vmatprep.subr.bf16.mxu1 %v3212_v25  ;;  %v3308_v24 = vld [vmem:[%s4310_s1 + $0x84c] ss:$16 sps:$4 sm:$0xff]   ;;  %v3329_v25 = vld [vmem:[%s4311_s0 + $0x60] ss:$36 sps:$4 sm:$0xff]  }
  0xcd   :  { %2068 = vmatprep.mubr.bf16.mxu0 %v3290_v26  ;;  %2333 = vmatprep.mubr.bf16.mxu1 %v3290_v26  ;;  %v3303_v26 = vld [vmem:[%s4310_s1 + $0x840] ss:$16 sps:$4 sm:$0xff]  }
  0xcf   :  { %2043 = vmatpush1.bf16.msra.mxu0 %v3207_v27  ;;  %2308 = vmatpush1.bf16.msra.mxu1 %v3210_v28  ;;  %v3306_v27 = vld [vmem:[%s4310_s1 + $0x848] ss:$16 sps:$4 sm:$0xff]   ;;  %v3311_v28 = vld [vmem:[%s4310_s1 + $0x864] ss:$16 sps:$4 sm:$0xff]  }
  0xd0   :  { %2044 = vmatprep.subr.bf16.mxu0 %v3215_v29  ;;  %2309 = vmatprep.subr.bf16.mxu1 %v3218_v30  ;;  %v3314_v29 = vld [vmem:[%s4310_s1 + $0x86c] ss:$16 sps:$4 sm:$0xff]   ;;  %v3309_v30 = vld [vmem:[%s4310_s1 + $0x860] ss:$16 sps:$4 sm:$0xff]  }
  0xd3   :  { %2045 = vmatpush1.bf16.msra.mxu0 %v3213_v31  ;;  %2310 = vmatpush1.bf16.msra.mxu1 %v3216_v32  ;;  %v3312_v31 = vld [vmem:[%s4310_s1 + $0x868] ss:$16 sps:$4 sm:$0xff]   ;;  %v3317_v32 = vld [vmem:[%s4310_s1 + $0x884] ss:$16 sps:$4 sm:$0xff]  }
  0xd4   :  { %2046 = vmatprep.subr.bf16.mxu0 %v3221_v33  ;;  %2311 = vmatprep.subr.bf16.mxu1 %v3224_v34  ;;  %v3320_v33 = vld [vmem:[%s4310_s1 + $0x88c] ss:$16 sps:$4 sm:$0xff]   ;;  %v3344_v34 = vmov 0  }
  0xd7   :  { %2047 = vmatpush1.bf16.msra.mxu0 %v3219_v35  ;;  %2312 = vmatpush1.bf16.msra.mxu1 %v3222_v36  ;;  %v3315_v35 = vld [vmem:[%s4310_s1 + $0x880] ss:$16 sps:$4 sm:$0xff]   ;;  %v3318_v36 = vld [vmem:[%s4310_s1 + $0x888] ss:$16 sps:$4 sm:$0xff]  }
  0xd8   :  { %2048 = vmatprep.subr.bf16.mxu0 %v3227_v37  ;;  %2313 = vmatprep.subr.bf16.mxu1 %v3230_v38  ;;  %v3323_v37 = vld [vmem:[%s4310_s1 + $0x8a4] ss:$16 sps:$4 sm:$0xff]   ;;  %v3326_v38 = vld [vmem:[%s4310_s1 + $0x8ac] ss:$16 sps:$4 sm:$0xff]  }
  0xdb   :  { %2049 = vmatpush1.bf16.msra.mxu0 %v3225_v39  ;;  %2314 = vmatpush1.bf16.msra.mxu1 %v3228_v40  ;;  %v3321_v39 = vld [vmem:[%s4310_s1 + $0x8a0] ss:$16 sps:$4 sm:$0xff]   ;;  %v3324_v40 = vld [vmem:[%s4310_s1 + $0x8a8] ss:$16 sps:$4 sm:$0xff]  }
  0xdc   :  { %2050 = vmatprep.subr.bf16.mxu0 %v3233_v41  ;;  %2315 = vmatprep.subr.bf16.mxu1 %v3236_v42  ;;  %v3332_v41 = vld [vmem:[%s4310_s1 + $0x8c4] ss:$16 sps:$4 sm:$0xff]   ;;  %v3335_v42 = vld [vmem:[%s4310_s1 + $0x8cc] ss:$16 sps:$4 sm:$0xff]  }
  0xdf   :  { %2051 = vmatpush1.bf16.msra.mxu0 %v3231_v43  ;;  %2316 = vmatpush1.bf16.msra.mxu1 %v3234_v44  ;;  %v3330_v43 = vld [vmem:[%s4310_s1 + $0x8c0] ss:$16 sps:$4 sm:$0xff]   ;;  %v3333_v44 = vld [vmem:[%s4310_s1 + $0x8c8] ss:$16 sps:$4 sm:$0xff]  }
  0xe0   :  { %2052 = vmatprep.subr.bf16.mxu0 %v3239_v45  ;;  %2317 = vmatprep.subr.bf16.mxu1 %v3242_v46  ;;  %v3338_v45 = vld [vmem:[%s4310_s1 + $0x8e4] ss:$16 sps:$4 sm:$0xff]   ;;  %v3341_v46 = vld [vmem:[%s4310_s1 + $0x8ec] ss:$16 sps:$4 sm:$0xff]  }
  0xe3   :  { %2053 = vmatpush1.bf16.msra.mxu0 %v3237_v47  ;;  %2318 = vmatpush1.bf16.msra.mxu1 %v3240_v48  ;;  %v3336_v47 = vld [vmem:[%s4310_s1 + $0x8e0] ss:$16 sps:$4 sm:$0xff]   ;;  %v3339_v48 = vld [vmem:[%s4310_s1 + $0x8e8] ss:$16 sps:$4 sm:$0xff]  }
  0xe4   :  { %2054 = vmatprep.subr.bf16.mxu0 %v3245_v49  ;;  %2319 = vmatprep.subr.bf16.mxu1 %v3248_v50  ;;  %v3342_v49 = vld [vmem:[%s4311_s0 + $0x20] ss:$36 sps:$4 sm:$0xff]   ;;  %v3343_v50 = vld [vmem:[%s4311_s0 + $0x68] ss:$36 sps:$4 sm:$0xff]  }
  0xe7   :  { %2055 = vmatpush1.bf16.msra.mxu0 %v3243_v51  ;;  %2320 = vmatpush1.bf16.msra.mxu1 %v3246_v52  ;;  %v325_v51 = vlaneseq }
  0xe8   :  { %2056 = vmatprep.subr.bf16.mxu0 %v3251_v53  ;;  %2321 = vmatprep.subr.bf16.mxu1 %v3254_v54 }
  0xe9   :  { %v326_v52 = vshrl.u32 %v325_v51, 7 }
  0xeb   :  { %2057 = vmatpush1.bf16.msra.mxu0 %v3249_v55  ;;  %2322 = vmatpush1.bf16.msra.mxu1 %v3252_v56  ;;  %v327_v53 = vsub.s32 0, %v326_v52  ;;  %v335_v54 = vsub.s32 2, %v326_v52  ;;  %v323_v55 = vld [vmem:[%s4312_s2] sm:$0xf]  ;;  %v331_v56 = vsub.s32 1, %v326_v52 }
  0xec   :  { %2058 = vmatprep.subr.bf16.mxu0 %v3257_v57  ;;  %2323 = vmatprep.subr.bf16.mxu1 %v3260_v58  ;;  %v339_v57 = vsub.s32 3, %v326_v52 }
  0xed   :  { %v328_v58 = vrot.slane %v323_v55, %v327_v53 }
  0xef   :  { %2059 = vmatpush1.bf16.msra.mxu0 %v3255_v59  ;;  %2324 = vmatpush1.bf16.msra.mxu1 %v3258_v60  ;;  %v336_v59 = vrot.slane %v323_v55, %v335_v54  ;;  %v332_v60 = vrot.slane %v323_v55, %v331_v56 }
  0xf0   :  { %2060 = vmatprep.subr.bf16.mxu0 %v3263_v61  ;;  %2325 = vmatprep.subr.bf16.mxu1 %v3266_v62  ;;  %v340_v61 = vrot.slane %v323_v55, %v339_v57 }
  0xf3   :  { %2061 = vmatpush1.bf16.msra.mxu0 %v3261_v63  ;;  %2326 = vmatpush1.bf16.msra.mxu1 %v3264_v0 }
  0xf4   :  { %2062 = vmatprep.subr.bf16.mxu0 %v3269_v1  ;;  %2327 = vmatprep.subr.bf16.mxu1 %v3272_v2 }
  0xf7   :  { %2063 = vmatpush1.bf16.msra.mxu0 %v3267_v3  ;;  %2328 = vmatpush1.bf16.msra.mxu1 %v3270_v4 }
  0xf8   :  { %2064 = vmatprep.subr.bf16.mxu0 %v3277_v5  ;;  %2329 = vmatprep.subr.bf16.mxu1 %v3280_v6 }
  0xfb   :  { %2065 = vmatpush1.bf16.msra.mxu0 %v3275_v7  ;;  %2330 = vmatpush1.bf16.msra.mxu1 %v3278_v8 }
  0xfc   :  { %2066 = vmatprep.subr.bf16.mxu0 %v3284_v9  ;;  %2331 = vmatprep.subr.bf16.mxu1 %v3287_v10 }
  0xff   :  { %2067 = vmatpush1.bf16.msra.mxu0 %v3282_v11  ;;  %2332 = vmatpush1.bf16.msra.mxu1 %v3285_v12 }
 0x100   :  { %2089 = vmatprep.subr.bf16.mxu0 %v3293_v13  ;;  %2354 = vmatprep.subr.bf16.mxu1 %v3296_v14 }
 0x102   :  { %2069 = vmatmul.mubr.bf16.vlgmr.msra.gmra.mrb[0].mxu0 %v3288_v15  ;;  %2334 = vmatmul.mubr.bf16.vlgmr.msra.gmra.mrb[0].mxu1 %v3288_v15 }
 0x103   :  { %2090 = vmatpush1.bf16.msra.mxu0 %v3291_v16  ;;  %2355 = vmatpush1.bf16.msra.mxu1 %v3294_v17 }
 0x104   :  { %2091 = vmatprep.subr.bf16.mxu0 %v3299_v18  ;;  %2356 = vmatprep.subr.bf16.mxu1 %v3302_v19 }
 0x105   :  { %2078 = vmatprep.mubr.bf16.mxu0 %v3327_v20  ;;  %2343 = vmatprep.mubr.bf16.mxu1 %v3327_v20 }
 0x107   :  { %2092 = vmatpush1.bf16.msra.mxu0 %v3297_v21  ;;  %2357 = vmatpush1.bf16.msra.mxu1 %v3300_v22 }
 0x108   :  { %2093 = vmatprep.subr.bf16.mxu0 %v3305_v23  ;;  %2358 = vmatprep.subr.bf16.mxu1 %v3308_v24 }
 0x10a   :  { %2079 = vmatmul.mubr.bf16.gmra.mrb[4].mxu0 %v3329_v25  ;;  %2344 = vmatmul.mubr.bf16.gmra.mrb[4].mxu1 %v3329_v25 }
 0x10b   :  { %2094 = vmatpush1.bf16.msra.mxu0 %v3303_v26  ;;  %2359 = vmatpush1.bf16.msra.mxu1 %v3306_v27 }
 0x10c   :  { %2095 = vmatprep.subr.bf16.mxu0 %v3311_v28  ;;  %2360 = vmatprep.subr.bf16.mxu1 %v3314_v29 }
 0x10d   :  { %2121 = vmatprep.mubr.bf16.mxu0 %v3344_v34  ;;  %2386 = vmatprep.mubr.bf16.mxu1 %v3344_v34 }
 0x10f   :  { %2096 = vmatpush1.bf16.msra.mxu0 %v3309_v30  ;;  %2361 = vmatpush1.bf16.msra.mxu1 %v3312_v31 }
 0x110   :  { %2097 = vmatprep.subr.bf16.mxu0 %v3317_v32  ;;  %2362 = vmatprep.subr.bf16.mxu1 %v3320_v33 }
 0x113   :  { %2098 = vmatpush1.bf16.msra.mxu0 %v3315_v35  ;;  %2363 = vmatpush1.bf16.msra.mxu1 %v3318_v36 }
 0x114   :  { %2099 = vmatprep.subr.bf16.mxu0 %v3323_v37  ;;  %2364 = vmatprep.subr.bf16.mxu1 %v3326_v38 }
 0x117   :  { %2100 = vmatpush1.bf16.msra.mxu0 %v3321_v39  ;;  %2365 = vmatpush1.bf16.msra.mxu1 %v3324_v40 }
 0x118   :  { %2101 = vmatprep.subr.bf16.mxu0 %v3332_v41  ;;  %2366 = vmatprep.subr.bf16.mxu1 %v3335_v42 }
 0x11b   :  { %2102 = vmatpush1.bf16.msra.mxu0 %v3330_v43  ;;  %2367 = vmatpush1.bf16.msra.mxu1 %v3333_v44 }
 0x11c   :  { %2103 = vmatprep.subr.bf16.mxu0 %v3338_v45  ;;  %2368 = vmatprep.subr.bf16.mxu1 %v3341_v46 }
 0x11f   :  { %2104 = vmatpush1.bf16.msra.mxu0 %v3336_v47  ;;  %2369 = vmatpush1.bf16.msra.mxu1 %v3339_v48 }
 0x122   :  { %2122 = vmatmul.mubr.bf16.vlgmr.msra.gmra.mrb[0].mxu0 %v3342_v49  ;;  %2387 = vmatmul.mubr.bf16.vlgmr.msra.gmra.mrb[0].mxu1 %v3342_v49 }
 0x123   :  { %2131 = vmatprep.mubr.bf16.mxu0 %v3344_v34  ;;  %2396 = vmatprep.mubr.bf16.mxu1 %v3344_v34 }
 0x12a   :  { %2132 = vmatmul.mubr.bf16.gmra.mrb[4].mxu0 %v3343_v50  ;;  %2397 = vmatmul.mubr.bf16.gmra.mrb[4].mxu1 %v3343_v50 }
 0x1f5   :  { %v2123_v62 = vpop.f32.mrb[0].mxu0  ;;  %v2388_v63 = vpop.f32.mrb[0].mxu1 }
 0x1f6   :  { %v2805_v0 = vadd.f32 %v2123_v62, %v328_v58  ;;  %v2813_v1 = vadd.f32 %v2388_v63, %v336_v59  ;;  %v2125_v2 = vpop.f32.mrb[1].mxu0  ;;  %v2390_v3 = vpop.f32.mrb[1].mxu1 }
 0x1f7   :  { %v2806_v4 = vadd.f32 %v2125_v2, %v332_v60  ;;  %v2814_v5 = vadd.f32 %v2390_v3, %v340_v61  ;;  %v2127_v6 = vpop.f32.mrb[2].mxu0  ;;  %v2392_v7 = vpop.f32.mrb[2].mxu1 }
 0x1f8   :  { %v2407_v8 = vmax.f32 %v2805_v0, 0.0  ;;  %v2409_v9 = vmax.f32 %v2813_v1, 0.0  ;;  %v2807_v10 = vadd.f32 %v2127_v6, %v328_v58  ;;  %v2815_v11 = vadd.f32 %v2392_v7, %v336_v59  ;;  %v2129_v12 = vpop.f32.mrb[3].mxu0  ;;  %v2394_v13 = vpop.f32.mrb[3].mxu1 }
 0x1f9   :  { %v2408_v14 = vmax.f32 %v2806_v4, 0.0  ;;  %v2410_v15 = vmax.f32 %v2814_v5, 0.0  ;;  %v2808_v16 = vadd.f32 %v2129_v12, %v332_v60  ;;  %v2816_v17 = vadd.f32 %v2394_v13, %v340_v61 }
 0x1fa   :  { %v2411_v18 = vmax.f32 %v2807_v10, 0.0  ;;  %v2413_v19 = vmax.f32 %v2815_v11, 0.0 }
 0x1fb   :  { %v2797_v20 = vpack.c.bf16 %v2408_v14, %v2407_v8  ;;  %v2798_v21 = vpack.c.bf16 %v2410_v15, %v2409_v9  ;;  %v2412_v22 = vmax.f32 %v2808_v16, 0.0  ;;  %v2414_v23 = vmax.f32 %v2816_v17, 0.0 }
 0x1fd   :  { %2471 = vst [vmem:[%s4313_s3] sm:$0xff] %v2797_v20  ;;  %2472 = vst [vmem:[%s4313_s3 + $0x8] sm:$0xff] %v2798_v21  ;;  %v2799_v24 = vpack.c.bf16 %v2412_v22, %v2411_v18  ;;  %v2800_v25 = vpack.c.bf16 %v2414_v23, %v2413_v19  ;;  %v2133_v26 = vpop.f32.mrb[4].mxu0  ;;  %v2398_v27 = vpop.f32.mrb[4].mxu1 }
 0x1fe   :  { %v2809_v28 = vadd.f32 %v2133_v26, %v328_v58  ;;  %v2817_v29 = vadd.f32 %v2398_v27, %v336_v59  ;;  %v2135_v30 = vpop.f32.mrb[5].mxu0  ;;  %v2400_v31 = vpop.f32.mrb[5].mxu1 }
 0x1ff   :  { %2473 = vst [vmem:[%s4313_s3 + $0x10] sm:$0xff] %v2799_v24  ;;  %2474 = vst [vmem:[%s4313_s3 + $0x18] sm:$0xff] %v2800_v25  ;;  %v2810_v32 = vadd.f32 %v2135_v30, %v332_v60  ;;  %v2818_v33 = vadd.f32 %v2400_v31, %v340_v61  ;;  %v2137_v34 = vpop.f32.mrb[6].mxu0  ;;  %v2402_v35 = vpop.f32.mrb[6].mxu1 }
 0x200   :  { %v2415_v36 = vmax.f32 %v2809_v28, 0.0  ;;  %v2417_v37 = vmax.f32 %v2817_v29, 0.0  ;;  %v2811_v38 = vadd.f32 %v2137_v34, %v328_v58  ;;  %v2819_v39 = vadd.f32 %v2402_v35, %v336_v59  ;;  %v2139_v40 = vpop.f32.mrb[7].mxu0  ;;  %v2404_v41 = vpop.f32.mrb[7].mxu1 }
 0x201   :  { %v2416_v42 = vmax.f32 %v2810_v32, 0.0  ;;  %v2418_v43 = vmax.f32 %v2818_v33, 0.0  ;;  %v2812_v44 = vadd.f32 %v2139_v40, %v332_v60  ;;  %v2820_v45 = vadd.f32 %v2404_v41, %v340_v61 }
 0x202   :  { %v2419_v46 = vmax.f32 %v2811_v38, 0.0  ;;  %v2421_v47 = vmax.f32 %v2819_v39, 0.0 }
 0x203   :  { %v2801_v48 = vpack.c.bf16 %v2416_v42, %v2415_v36  ;;  %v2802_v49 = vpack.c.bf16 %v2418_v43, %v2417_v37  ;;  %v2420_v50 = vmax.f32 %v2812_v44, 0.0  ;;  %v2422_v51 = vmax.f32 %v2820_v45, 0.0 }
 0x205   :  { %2475 = vst [vmem:[%s4313_s3 + $0x20] sm:$0xff] %v2801_v48  ;;  %2476 = vst [vmem:[%s4313_s3 + $0x28] sm:$0xff] %v2802_v49  ;;  %v2803_v52 = vpack.c.bf16 %v2420_v50, %v2419_v46  ;;  %v2804_v53 = vpack.c.bf16 %v2422_v51, %v2421_v47 }
 0x207   :  { %2477 = vst [vmem:[%s4313_s3 + $0x30] sm:$0xff] %v2803_v52  ;;  %2478 = vst [vmem:[%s4313_s3 + $0x38] sm:$0xff] %v2804_v53 }

// kernel: vqvae_forward.27
= control target key start
LH: loop header
LB: loop body
LE: loop exit
PB: predicated region body
PF: predicated region fallthrough
CT: control target
= control target key end

     0   :  { %s6316_s1 = inlined_call_operand.vmem [shape: bf16[1152,512], index: 1, kind: input, shape index: {}]   ;;  %s6317_s0 = inlined_call_operand.vmem [shape: bf16[128,1152], index: 0, kind: input, shape index: {}]   ;;  %s6318_s2 = inlined_call_operand.vmem [shape: f32[1,512], index: 2, kind: input, shape index: {}]   ;;  %s6319_s3 = inlined_call_operand.vmem [shape: bf16[128,512], index: 3, kind: output, shape index: {}]  }
   0x1   :  { %v4380_v0 = vld [vmem:[%s6316_s1 + $0x4] ss:$16 sps:$4 sm:$0xff]   ;;  %v4382_v1 = vld [vmem:[%s6316_s1 + $0xc] ss:$16 sps:$4 sm:$0xff]   ;;  %v4384_v2 = vld [vmem:[%s6316_s1] ss:$16 sps:$4 sm:$0xff]  }
   0x2   :  { %2213 = vmatprep.subr.bf16.mxu0 %v4380_v0  ;;  %v4385_v3 = vld [vmem:[%s6316_s1 + $0x8] ss:$16 sps:$4 sm:$0xff]   ;;  %2778 = vmatprep.subr.bf16.mxu1 %v4382_v1  ;;  %v4386_v4 = vld [vmem:[%s6316_s1 + $0x24] ss:$16 sps:$4 sm:$0xff]   ;;  %v4388_v5 = vld [vmem:[%s6316_s1 + $0x2c] ss:$16 sps:$4 sm:$0xff]  }
   0x3   :  { %2214 = vmatpush1.bf16.msra.mxu0 %v4384_v2  ;;  %2779 = vmatpush1.bf16.msra.mxu1 %v4385_v3  ;;  %v4390_v6 = vld [vmem:[%s6316_s1 + $0x20] ss:$16 sps:$4 sm:$0xff]   ;;  %v4391_v7 = vld [vmem:[%s6316_s1 + $0x28] ss:$16 sps:$4 sm:$0xff]   ;;  %v4392_v8 = vld [vmem:[%s6316_s1 + $0x44] ss:$16 sps:$4 sm:$0xff]  }
   0x4   :  { %2215 = vmatprep.subr.bf16.mxu0 %v4386_v4  ;;  %2780 = vmatprep.subr.bf16.mxu1 %v4388_v5  ;;  %v4394_v9 = vld [vmem:[%s6316_s1 + $0x4c] ss:$16 sps:$4 sm:$0xff]   ;;  %v4396_v10 = vld [vmem:[%s6316_s1 + $0x40] ss:$16 sps:$4 sm:$0xff]   ;;  %v4397_v11 = vld [vmem:[%s6316_s1 + $0x48] ss:$16 sps:$4 sm:$0xff]  }
   0x5   :  { %v4398_v12 = vld [vmem:[%s6316_s1 + $0x64] ss:$16 sps:$4 sm:$0xff]   ;;  %v4400_v13 = vld [vmem:[%s6316_s1 + $0x6c] ss:$16 sps:$4 sm:$0xff]   ;;  %v4402_v14 = vld [vmem:[%s6316_s1 + $0x60] ss:$16 sps:$4 sm:$0xff]  }
   0x6   :  { %v4403_v15 = vld [vmem:[%s6316_s1 + $0x68] ss:$16 sps:$4 sm:$0xff]   ;;  %v4404_v16 = vld [vmem:[%s6316_s1 + $0x84] ss:$16 sps:$4 sm:$0xff]   ;;  %v4406_v17 = vld [vmem:[%s6316_s1 + $0x8c] ss:$16 sps:$4 sm:$0xff]  }
   0x7   :  { %2216 = vmatpush1.bf16.msra.mxu0 %v4390_v6  ;;  %2781 = vmatpush1.bf16.msra.mxu1 %v4391_v7  ;;  %v4408_v18 = vld [vmem:[%s6316_s1 + $0x80] ss:$16 sps:$4 sm:$0xff]   ;;  %v4409_v19 = vld [vmem:[%s6316_s1 + $0x88] ss:$16 sps:$4 sm:$0xff]   ;;  %v4410_v20 = vld [vmem:[%s6316_s1 + $0xa4] ss:$16 sps:$4 sm:$0xff]  }
   0x8   :  { %2217 = vmatprep.subr.bf16.mxu0 %v4392_v8  ;;  %2782 = vmatprep.subr.bf16.mxu1 %v4394_v9  ;;  %v4412_v21 = vld [vmem:[%s6316_s1 + $0xac] ss:$16 sps:$4 sm:$0xff]   ;;  %v4414_v22 = vld [vmem:[%s6316_s1 + $0xa0] ss:$16 sps:$4 sm:$0xff]   ;;  %v4415_v23 = vld [vmem:[%s6316_s1 + $0xa8] ss:$16 sps:$4 sm:$0xff]  }
   0x9   :  { %v4416_v24 = vld [vmem:[%s6316_s1 + $0xc4] ss:$16 sps:$4 sm:$0xff]   ;;  %v4418_v25 = vld [vmem:[%s6316_s1 + $0xcc] ss:$16 sps:$4 sm:$0xff]   ;;  %v4420_v26 = vld [vmem:[%s6316_s1 + $0xc0] ss:$16 sps:$4 sm:$0xff]  }
   0xa   :  { %v4421_v27 = vld [vmem:[%s6316_s1 + $0xc8] ss:$16 sps:$4 sm:$0xff]   ;;  %v4422_v28 = vld [vmem:[%s6316_s1 + $0xe4] ss:$16 sps:$4 sm:$0xff]   ;;  %v4424_v29 = vld [vmem:[%s6316_s1 + $0xec] ss:$16 sps:$4 sm:$0xff]  }
   0xb   :  { %2218 = vmatpush1.bf16.msra.mxu0 %v4396_v10  ;;  %2783 = vmatpush1.bf16.msra.mxu1 %v4397_v11  ;;  %v4426_v30 = vld [vmem:[%s6316_s1 + $0xe0] ss:$16 sps:$4 sm:$0xff]   ;;  %v4427_v31 = vld [vmem:[%s6316_s1 + $0xe8] ss:$16 sps:$4 sm:$0xff]   ;;  %v4428_v32 = vld [vmem:[%s6316_s1 + $0x104] ss:$16 sps:$4 sm:$0xff]  }
   0xc   :  { %2219 = vmatprep.subr.bf16.mxu0 %v4398_v12  ;;  %2784 = vmatprep.subr.bf16.mxu1 %v4400_v13  ;;  %v4430_v33 = vld [vmem:[%s6316_s1 + $0x10c] ss:$16 sps:$4 sm:$0xff]   ;;  %v4432_v34 = vld [vmem:[%s6316_s1 + $0x100] ss:$16 sps:$4 sm:$0xff]   ;;  %v4433_v35 = vld [vmem:[%s6316_s1 + $0x108] ss:$16 sps:$4 sm:$0xff]  }
   0xd   :  { %v4434_v36 = vld [vmem:[%s6316_s1 + $0x124] ss:$16 sps:$4 sm:$0xff]   ;;  %v4436_v37 = vld [vmem:[%s6316_s1 + $0x12c] ss:$16 sps:$4 sm:$0xff]   ;;  %v4438_v38 = vld [vmem:[%s6316_s1 + $0x120] ss:$16 sps:$4 sm:$0xff]  }
   0xe   :  { %v4439_v39 = vld [vmem:[%s6316_s1 + $0x128] ss:$16 sps:$4 sm:$0xff]   ;;  %v4440_v40 = vld [vmem:[%s6316_s1 + $0x144] ss:$16 sps:$4 sm:$0xff]   ;;  %v4442_v41 = vld [vmem:[%s6316_s1 + $0x14c] ss:$16 sps:$4 sm:$0xff]  }
   0xf   :  { %2220 = vmatpush1.bf16.msra.mxu0 %v4402_v14  ;;  %2785 = vmatpush1.bf16.msra.mxu1 %v4403_v15  ;;  %v4444_v42 = vld [vmem:[%s6316_s1 + $0x140] ss:$16 sps:$4 sm:$0xff]   ;;  %v4445_v43 = vld [vmem:[%s6316_s1 + $0x148] ss:$16 sps:$4 sm:$0xff]   ;;  %v4446_v44 = vld [vmem:[%s6316_s1 + $0x164] ss:$16 sps:$4 sm:$0xff]  }
  0x10   :  { %2221 = vmatprep.subr.bf16.mxu0 %v4404_v16  ;;  %2786 = vmatprep.subr.bf16.mxu1 %v4406_v17  ;;  %v4448_v45 = vld [vmem:[%s6316_s1 + $0x16c] ss:$16 sps:$4 sm:$0xff]   ;;  %v4450_v46 = vld [vmem:[%s6316_s1 + $0x160] ss:$16 sps:$4 sm:$0xff]   ;;  %v4451_v47 = vld [vmem:[%s6316_s1 + $0x168] ss:$16 sps:$4 sm:$0xff]  }
  0x11   :  { %v4478_v48 = vld [vmem:[%s6317_s0 + $0x4] ss:$36 sps:$4 sm:$0xff]   ;;  %v4454_v50 = vld [vmem:[%s6316_s1 + $0x18c] ss:$16 sps:$4 sm:$0xff]   ;;  %v4456_v51 = vld [vmem:[%s6316_s1 + $0x180] ss:$16 sps:$4 sm:$0xff]  }
  0x12   :  { %v4452_v49 = vld [vmem:[%s6316_s1 + $0x184] ss:$16 sps:$4 sm:$0xff]   ;;  %2245 = vmatprep.mubr.bf16.mxu0 %v4478_v48  ;;  %2810 = vmatprep.mubr.bf16.mxu1 %v4478_v48  ;;  %v4457_v52 = vld [vmem:[%s6316_s1 + $0x188] ss:$16 sps:$4 sm:$0xff]   ;;  %v4460_v54 = vld [vmem:[%s6316_s1 + $0x1ac] ss:$16 sps:$4 sm:$0xff]  }
  0x13   :  { %2222 = vmatpush1.bf16.msra.mxu0 %v4408_v18  ;;  %2787 = vmatpush1.bf16.msra.mxu1 %v4409_v19  ;;  %v4458_v53 = vld [vmem:[%s6316_s1 + $0x1a4] ss:$16 sps:$4 sm:$0xff]   ;;  %v4462_v55 = vld [vmem:[%s6316_s1 + $0x1a0] ss:$16 sps:$4 sm:$0xff]   ;;  %v4463_v56 = vld [vmem:[%s6316_s1 + $0x1a8] ss:$16 sps:$4 sm:$0xff]  }
  0x14   :  { %2223 = vmatprep.subr.bf16.mxu0 %v4410_v20  ;;  %2788 = vmatprep.subr.bf16.mxu1 %v4412_v21  ;;  %v4464_v57 = vld [vmem:[%s6316_s1 + $0x1c4] ss:$16 sps:$4 sm:$0xff]   ;;  %v4466_v58 = vld [vmem:[%s6316_s1 + $0x1cc] ss:$16 sps:$4 sm:$0xff]   ;;  %v4468_v59 = vld [vmem:[%s6316_s1 + $0x1c0] ss:$16 sps:$4 sm:$0xff]  }
  0x15   :  { %v4469_v60 = vld [vmem:[%s6316_s1 + $0x1c8] ss:$16 sps:$4 sm:$0xff]   ;;  %v4470_v61 = vld [vmem:[%s6316_s1 + $0x1e4] ss:$16 sps:$4 sm:$0xff]   ;;  %v4472_v62 = vld [vmem:[%s6316_s1 + $0x1ec] ss:$16 sps:$4 sm:$0xff]  }
  0x16   :  { %v4474_v63 = vld [vmem:[%s6316_s1 + $0x1e0] ss:$16 sps:$4 sm:$0xff]   ;;  %v4475_v0 = vld [vmem:[%s6316_s1 + $0x1e8] ss:$16 sps:$4 sm:$0xff]   ;;  %v4481_v1 = vld [vmem:[%s6316_s1 + $0x204] ss:$16 sps:$4 sm:$0xff]  }
  0x17   :  { %2224 = vmatpush1.bf16.msra.mxu0 %v4414_v22  ;;  %2789 = vmatpush1.bf16.msra.mxu1 %v4415_v23  ;;  %v4484_v2 = vld [vmem:[%s6316_s1 + $0x20c] ss:$16 sps:$4 sm:$0xff]   ;;  %v4476_v3 = vld [vmem:[%s6317_s0] ss:$36 sps:$4 sm:$0xff]   ;;  %v4482_v5 = vld [vmem:[%s6316_s1 + $0x208] ss:$16 sps:$4 sm:$0xff]  }
  0x18   :  { %2225 = vmatprep.subr.bf16.mxu0 %v4416_v24  ;;  %2790 = vmatprep.subr.bf16.mxu1 %v4418_v25  ;;  %v4479_v4 = vld [vmem:[%s6316_s1 + $0x200] ss:$16 sps:$4 sm:$0xff]   ;;  %v4487_v6 = vld [vmem:[%s6316_s1 + $0x224] ss:$16 sps:$4 sm:$0xff]   ;;  %v4490_v7 = vld [vmem:[%s6316_s1 + $0x22c] ss:$16 sps:$4 sm:$0xff]  }
  0x19   :  { %v4491_v8 = vld [vmem:[%s6317_s0 + $0x4c] ss:$36 sps:$4 sm:$0xff]   ;;  %v4488_v10 = vld [vmem:[%s6316_s1 + $0x228] ss:$16 sps:$4 sm:$0xff]   ;;  %v4496_v11 = vld [vmem:[%s6316_s1 + $0x244] ss:$16 sps:$4 sm:$0xff]  }
  0x1a   :  { %v4485_v9 = vld [vmem:[%s6316_s1 + $0x220] ss:$16 sps:$4 sm:$0xff]   ;;  %v4499_v12 = vld [vmem:[%s6316_s1 + $0x24c] ss:$16 sps:$4 sm:$0xff]   ;;  %v4497_v15 = vld [vmem:[%s6316_s1 + $0x248] ss:$16 sps:$4 sm:$0xff]  }
  0x1b   :  { %2226 = vmatpush1.bf16.msra.mxu0 %v4420_v26  ;;  %2791 = vmatpush1.bf16.msra.mxu1 %v4421_v27  ;;  %v4493_v13 = vld [vmem:[%s6317_s0 + $0x48] ss:$36 sps:$4 sm:$0xff]   ;;  %v4494_v14 = vld [vmem:[%s6316_s1 + $0x240] ss:$16 sps:$4 sm:$0xff]   ;;  %v4502_v16 = vld [vmem:[%s6316_s1 + $0x264] ss:$16 sps:$4 sm:$0xff]  }
  0x1c   :  { %2227 = vmatprep.subr.bf16.mxu0 %v4422_v28  ;;  %2792 = vmatprep.subr.bf16.mxu1 %v4424_v29  ;;  %v4505_v17 = vld [vmem:[%s6316_s1 + $0x26c] ss:$16 sps:$4 sm:$0xff]   ;;  %v4506_v18 = vld [vmem:[%s6317_s0 + $0x94] ss:$36 sps:$4 sm:$0xff]   ;;  %v4500_v19 = vld [vmem:[%s6316_s1 + $0x260] ss:$16 sps:$4 sm:$0xff]  }
  0x1d   :  { %v4503_v20 = vld [vmem:[%s6316_s1 + $0x268] ss:$16 sps:$4 sm:$0xff]   ;;  %v4511_v21 = vld [vmem:[%s6316_s1 + $0x284] ss:$16 sps:$4 sm:$0xff]   ;;  %v4514_v22 = vld [vmem:[%s6316_s1 + $0x28c] ss:$16 sps:$4 sm:$0xff]  }
  0x1e   :  { %v4508_v23 = vld [vmem:[%s6317_s0 + $0x90] ss:$36 sps:$4 sm:$0xff]   ;;  %v4512_v25 = vld [vmem:[%s6316_s1 + $0x288] ss:$16 sps:$4 sm:$0xff]   ;;  %v4520_v27 = vld [vmem:[%s6316_s1 + $0x2ac] ss:$16 sps:$4 sm:$0xff]  }
  0x1f   :  { %2228 = vmatpush1.bf16.msra.mxu0 %v4426_v30  ;;  %2793 = vmatpush1.bf16.msra.mxu1 %v4427_v31  ;;  %v4509_v24 = vld [vmem:[%s6316_s1 + $0x280] ss:$16 sps:$4 sm:$0xff]   ;;  %v4517_v26 = vld [vmem:[%s6316_s1 + $0x2a4] ss:$16 sps:$4 sm:$0xff]   ;;  %v4518_v30 = vld [vmem:[%s6316_s1 + $0x2a8] ss:$16 sps:$4 sm:$0xff]  }
  0x20   :  { %2229 = vmatprep.subr.bf16.mxu0 %v4428_v32  ;;  %2794 = vmatprep.subr.bf16.mxu1 %v4430_v33  ;;  %v4521_v28 = vld [vmem:[%s6317_s0 + $0xdc] ss:$36 sps:$4 sm:$0xff]   ;;  %v4526_v31 = vld [vmem:[%s6316_s1 + $0x2c4] ss:$16 sps:$4 sm:$0xff]   ;;  %v4551_v48 = vld [vmem:[%s6317_s0 + $0x16c] ss:$36 sps:$4 sm:$0xff]  }
  0x21   :  { %v4515_v29 = vld [vmem:[%s6316_s1 + $0x2a0] ss:$16 sps:$4 sm:$0xff]   ;;  %v4529_v32 = vld [vmem:[%s6316_s1 + $0x2cc] ss:$16 sps:$4 sm:$0xff]  }
  0x22   :  { %v4523_v33 = vld [vmem:[%s6317_s0 + $0xd8] ss:$36 sps:$4 sm:$0xff]  }
  0x23   :  { %2230 = vmatpush1.bf16.msra.mxu0 %v4432_v34  ;;  %2795 = vmatpush1.bf16.msra.mxu1 %v4433_v35  ;;  %v4524_v34 = vld [vmem:[%s6316_s1 + $0x2c0] ss:$16 sps:$4 sm:$0xff]   ;;  %v4527_v35 = vld [vmem:[%s6316_s1 + $0x2c8] ss:$16 sps:$4 sm:$0xff]  }
  0x24   :  { %2231 = vmatprep.subr.bf16.mxu0 %v4434_v36  ;;  %2796 = vmatprep.subr.bf16.mxu1 %v4436_v37  ;;  %v4532_v36 = vld [vmem:[%s6316_s1 + $0x2e4] ss:$16 sps:$4 sm:$0xff]   ;;  %v4535_v37 = vld [vmem:[%s6316_s1 + $0x2ec] ss:$16 sps:$4 sm:$0xff]  }
  0x27   :  { %2232 = vmatpush1.bf16.msra.mxu0 %v4438_v38  ;;  %2797 = vmatpush1.bf16.msra.mxu1 %v4439_v39  ;;  %v4536_v38 = vld [vmem:[%s6317_s0 + $0x124] ss:$36 sps:$4 sm:$0xff]   ;;  %v4530_v39 = vld [vmem:[%s6316_s1 + $0x2e0] ss:$16 sps:$4 sm:$0xff]  }
  0x28   :  { %2233 = vmatprep.subr.bf16.mxu0 %v4440_v40  ;;  %2798 = vmatprep.subr.bf16.mxu1 %v4442_v41  ;;  %v4533_v40 = vld [vmem:[%s6316_s1 + $0x2e8] ss:$16 sps:$4 sm:$0xff]   ;;  %v4541_v41 = vld [vmem:[%s6316_s1 + $0x304] ss:$16 sps:$4 sm:$0xff]  }
  0x2b   :  { %2234 = vmatpush1.bf16.msra.mxu0 %v4444_v42  ;;  %2799 = vmatpush1.bf16.msra.mxu1 %v4445_v43  ;;  %v4544_v42 = vld [vmem:[%s6316_s1 + $0x30c] ss:$16 sps:$4 sm:$0xff]   ;;  %v4538_v43 = vld [vmem:[%s6317_s0 + $0x120] ss:$36 sps:$4 sm:$0xff]  }
  0x2c   :  { %2235 = vmatprep.subr.bf16.mxu0 %v4446_v44  ;;  %2800 = vmatprep.subr.bf16.mxu1 %v4448_v45  ;;  %v4539_v44 = vld [vmem:[%s6316_s1 + $0x300] ss:$16 sps:$4 sm:$0xff]   ;;  %v4542_v45 = vld [vmem:[%s6316_s1 + $0x308] ss:$16 sps:$4 sm:$0xff]  }
  0x2f   :  { %2236 = vmatpush1.bf16.msra.mxu0 %v4450_v46  ;;  %2801 = vmatpush1.bf16.msra.mxu1 %v4451_v47  ;;  %v4547_v46 = vld [vmem:[%s6316_s1 + $0x324] ss:$16 sps:$4 sm:$0xff]   ;;  %v4550_v47 = vld [vmem:[%s6316_s1 + $0x32c] ss:$16 sps:$4 sm:$0xff]  }
  0x30   :  { %2237 = vmatprep.subr.bf16.mxu0 %v4452_v49  ;;  %2802 = vmatprep.subr.bf16.mxu1 %v4454_v50  ;;  %v4545_v49 = vld [vmem:[%s6316_s1 + $0x320] ss:$16 sps:$4 sm:$0xff]   ;;  %v4548_v50 = vld [vmem:[%s6316_s1 + $0x328] ss:$16 sps:$4 sm:$0xff]  }
  0x33   :  { %2238 = vmatpush1.bf16.msra.mxu0 %v4456_v51  ;;  %2803 = vmatpush1.bf16.msra.mxu1 %v4457_v52  ;;  %v4556_v51 = vld [vmem:[%s6316_s1 + $0x344] ss:$16 sps:$4 sm:$0xff]   ;;  %v4559_v52 = vld [vmem:[%s6316_s1 + $0x34c] ss:$16 sps:$4 sm:$0xff]  }
  0x34   :  { %2239 = vmatprep.subr.bf16.mxu0 %v4458_v53  ;;  %2804 = vmatprep.subr.bf16.mxu1 %v4460_v54  ;;  %v4553_v53 = vld [vmem:[%s6317_s0 + $0x168] ss:$36 sps:$4 sm:$0xff]   ;;  %v4554_v54 = vld [vmem:[%s6316_s1 + $0x340] ss:$16 sps:$4 sm:$0xff]  }
  0x37   :  { %2240 = vmatpush1.bf16.msra.mxu0 %v4462_v55  ;;  %2805 = vmatpush1.bf16.msra.mxu1 %v4463_v56  ;;  %v4557_v55 = vld [vmem:[%s6316_s1 + $0x348] ss:$16 sps:$4 sm:$0xff]   ;;  %v4562_v56 = vld [vmem:[%s6316_s1 + $0x364] ss:$16 sps:$4 sm:$0xff]  }
  0x38   :  { %2241 = vmatprep.subr.bf16.mxu0 %v4464_v57  ;;  %2806 = vmatprep.subr.bf16.mxu1 %v4466_v58  ;;  %v4565_v57 = vld [vmem:[%s6316_s1 + $0x36c] ss:$16 sps:$4 sm:$0xff]   ;;  %v4566_v58 = vld [vmem:[%s6317_s0 + $0x1b4] ss:$36 sps:$4 sm:$0xff]  }
  0x3b   :  { %2242 = vmatpush1.bf16.msra.mxu0 %v4468_v59  ;;  %2807 = vmatpush1.bf16.msra.mxu1 %v4469_v60  ;;  %v4560_v59 = vld [vmem:[%s6316_s1 + $0x360] ss:$16 sps:$4 sm:$0xff]   ;;  %v4563_v60 = vld [vmem:[%s6316_s1 + $0x368] ss:$16 sps:$4 sm:$0xff]  }
  0x3c   :  { %2243 = vmatprep.subr.bf16.mxu0 %v4470_v61  ;;  %2808 = vmatprep.subr.bf16.mxu1 %v4472_v62  ;;  %v4571_v61 = vld [vmem:[%s6316_s1 + $0x384] ss:$16 sps:$4 sm:$0xff]   ;;  %v4574_v62 = vld [vmem:[%s6316_s1 + $0x38c] ss:$16 sps:$4 sm:$0xff]  }
  0x3f   :  { %2244 = vmatpush1.bf16.msra.mxu0 %v4474_v63  ;;  %2809 = vmatpush1.bf16.msra.mxu1 %v4475_v0  ;;  %v4568_v63 = vld [vmem:[%s6317_s0 + $0x1b0] ss:$36 sps:$4 sm:$0xff]  }
  0x40   :  { %2326 = vmatprep.subr.bf16.mxu0 %v4481_v1  ;;  %2891 = vmatprep.subr.bf16.mxu1 %v4484_v2  ;;  %v4569_v0 = vld [vmem:[%s6316_s1 + $0x380] ss:$16 sps:$4 sm:$0xff]   ;;  %v4572_v1 = vld [vmem:[%s6316_s1 + $0x388] ss:$16 sps:$4 sm:$0xff]   ;;  %v4577_v2 = vld [vmem:[%s6316_s1 + $0x3a4] ss:$16 sps:$4 sm:$0xff]  }
  0x42   :  { %2246 = vmatmul.mubr.bf16.vlgmr.msra.gmra.mrb[0].mxu0 %v4476_v3  ;;  %2811 = vmatmul.mubr.bf16.vlgmr.msra.gmra.mrb[0].mxu1 %v4476_v3  ;;  %v4580_v3 = vld [vmem:[%s6316_s1 + $0x3ac] ss:$16 sps:$4 sm:$0xff]  }
  0x43   :  { %2327 = vmatpush1.bf16.msra.mxu0 %v4479_v4  ;;  %2892 = vmatpush1.bf16.msra.mxu1 %v4482_v5  ;;  %v4581_v4 = vld [vmem:[%s6317_s0 + $0x1fc] ss:$36 sps:$4 sm:$0xff]  }
  0x44   :  { %2328 = vmatprep.subr.bf16.mxu0 %v4487_v6  ;;  %2893 = vmatprep.subr.bf16.mxu1 %v4490_v7  ;;  %v4575_v5 = vld [vmem:[%s6316_s1 + $0x3a0] ss:$16 sps:$4 sm:$0xff]   ;;  %v4578_v6 = vld [vmem:[%s6316_s1 + $0x3a8] ss:$16 sps:$4 sm:$0xff]   ;;  %v4586_v7 = vld [vmem:[%s6316_s1 + $0x3c4] ss:$16 sps:$4 sm:$0xff]  }
  0x45   :  { %2255 = vmatprep.mubr.bf16.mxu0 %v4491_v8  ;;  %2820 = vmatprep.mubr.bf16.mxu1 %v4491_v8  ;;  %v4589_v8 = vld [vmem:[%s6316_s1 + $0x3cc] ss:$16 sps:$4 sm:$0xff]  }
  0x47   :  { %2329 = vmatpush1.bf16.msra.mxu0 %v4485_v9  ;;  %2894 = vmatpush1.bf16.msra.mxu1 %v4488_v10  ;;  %v4583_v9 = vld [vmem:[%s6317_s0 + $0x1f8] ss:$36 sps:$4 sm:$0xff]   ;;  %v4584_v10 = vld [vmem:[%s6316_s1 + $0x3c0] ss:$16 sps:$4 sm:$0xff]  }
  0x48   :  { %2330 = vmatprep.subr.bf16.mxu0 %v4496_v11  ;;  %2895 = vmatprep.subr.bf16.mxu1 %v4499_v12  ;;  %v4587_v11 = vld [vmem:[%s6316_s1 + $0x3c8] ss:$16 sps:$4 sm:$0xff]   ;;  %v4592_v12 = vld [vmem:[%s6316_s1 + $0x3e4] ss:$16 sps:$4 sm:$0xff]  }
  0x4a   :  { %2256 = vmatmul.mubr.bf16.gmra.mrb[4].mxu0 %v4493_v13  ;;  %2821 = vmatmul.mubr.bf16.gmra.mrb[4].mxu1 %v4493_v13  ;;  %v4595_v13 = vld [vmem:[%s6316_s1 + $0x3ec] ss:$16 sps:$4 sm:$0xff]  }
  0x4b   :  { %2331 = vmatpush1.bf16.msra.mxu0 %v4494_v14  ;;  %2896 = vmatpush1.bf16.msra.mxu1 %v4497_v15  ;;  %v4598_v14 = vld [vmem:[%s6317_s0 + $0xc] ss:$36 sps:$4 sm:$0xff]  }
  0x4c   :  { %2332 = vmatprep.subr.bf16.mxu0 %v4502_v16  ;;  %2897 = vmatprep.subr.bf16.mxu1 %v4505_v17  ;;  %v4590_v15 = vld [vmem:[%s6316_s1 + $0x3e0] ss:$16 sps:$4 sm:$0xff]   ;;  %v4593_v16 = vld [vmem:[%s6316_s1 + $0x3e8] ss:$16 sps:$4 sm:$0xff]   ;;  %v4601_v17 = vld [vmem:[%s6316_s1 + $0x404] ss:$16 sps:$4 sm:$0xff]  }
  0x4d   :  { %2265 = vmatprep.mubr.bf16.mxu0 %v4506_v18  ;;  %2830 = vmatprep.mubr.bf16.mxu1 %v4506_v18  ;;  %v4604_v18 = vld [vmem:[%s6316_s1 + $0x40c] ss:$16 sps:$4 sm:$0xff]  }
  0x4f   :  { %2333 = vmatpush1.bf16.msra.mxu0 %v4500_v19  ;;  %2898 = vmatpush1.bf16.msra.mxu1 %v4503_v20  ;;  %v4596_v19 = vld [vmem:[%s6317_s0 + $0x8] ss:$36 sps:$4 sm:$0xff]   ;;  %v4599_v20 = vld [vmem:[%s6316_s1 + $0x400] ss:$16 sps:$4 sm:$0xff]  }
  0x50   :  { %2334 = vmatprep.subr.bf16.mxu0 %v4511_v21  ;;  %2899 = vmatprep.subr.bf16.mxu1 %v4514_v22  ;;  %v4602_v21 = vld [vmem:[%s6316_s1 + $0x408] ss:$16 sps:$4 sm:$0xff]   ;;  %v4607_v22 = vld [vmem:[%s6316_s1 + $0x424] ss:$16 sps:$4 sm:$0xff]  }
  0x52   :  { %2266 = vmatmul.mubr.bf16.gmra.mrb[8].mxu0 %v4508_v23  ;;  %2831 = vmatmul.mubr.bf16.gmra.mrb[8].mxu1 %v4508_v23  ;;  %v4610_v23 = vld [vmem:[%s6316_s1 + $0x42c] ss:$16 sps:$4 sm:$0xff]  }
  0x53   :  { %2335 = vmatpush1.bf16.msra.mxu0 %v4509_v24  ;;  %2900 = vmatpush1.bf16.msra.mxu1 %v4512_v25  ;;  %v4611_v24 = vld [vmem:[%s6317_s0 + $0x54] ss:$36 sps:$4 sm:$0xff]   ;;  %v4605_v25 = vld [vmem:[%s6316_s1 + $0x420] ss:$16 sps:$4 sm:$0xff]  }
  0x54   :  { %2336 = vmatprep.subr.bf16.mxu0 %v4517_v26  ;;  %2901 = vmatprep.subr.bf16.mxu1 %v4520_v27  ;;  %v4608_v26 = vld [vmem:[%s6316_s1 + $0x428] ss:$16 sps:$4 sm:$0xff]   ;;  %v4616_v27 = vld [vmem:[%s6316_s1 + $0x444] ss:$16 sps:$4 sm:$0xff]  }
  0x55   :  { %2275 = vmatprep.mubr.bf16.mxu0 %v4521_v28  ;;  %2840 = vmatprep.mubr.bf16.mxu1 %v4521_v28  ;;  %v4619_v28 = vld [vmem:[%s6316_s1 + $0x44c] ss:$16 sps:$4 sm:$0xff]  }
  0x57   :  { %2337 = vmatpush1.bf16.msra.mxu0 %v4515_v29  ;;  %2902 = vmatpush1.bf16.msra.mxu1 %v4518_v30  ;;  %v4613_v29 = vld [vmem:[%s6317_s0 + $0x50] ss:$36 sps:$4 sm:$0xff]  }
  0x58   :  { %2338 = vmatprep.subr.bf16.mxu0 %v4526_v31  ;;  %2903 = vmatprep.subr.bf16.mxu1 %v4529_v32  ;;  %v4614_v30 = vld [vmem:[%s6316_s1 + $0x440] ss:$16 sps:$4 sm:$0xff]   ;;  %v4617_v31 = vld [vmem:[%s6316_s1 + $0x448] ss:$16 sps:$4 sm:$0xff]   ;;  %v4622_v32 = vld [vmem:[%s6316_s1 + $0x464] ss:$16 sps:$4 sm:$0xff]  }
  0x5a   :  { %2276 = vmatmul.mubr.bf16.gmra.mrb[12].mxu0 %v4523_v33  ;;  %2841 = vmatmul.mubr.bf16.gmra.mrb[12].mxu1 %v4523_v33  ;;  %v4625_v33 = vld [vmem:[%s6316_s1 + $0x46c] ss:$16 sps:$4 sm:$0xff]  }
  0x5b   :  { %2339 = vmatpush1.bf16.msra.mxu0 %v4524_v34  ;;  %2904 = vmatpush1.bf16.msra.mxu1 %v4527_v35  ;;  %v4626_v34 = vld [vmem:[%s6317_s0 + $0x9c] ss:$36 sps:$4 sm:$0xff]  }
  0x5c   :  { %2340 = vmatprep.subr.bf16.mxu0 %v4532_v36  ;;  %2905 = vmatprep.subr.bf16.mxu1 %v4535_v37  ;;  %v4620_v35 = vld [vmem:[%s6316_s1 + $0x460] ss:$16 sps:$4 sm:$0xff]   ;;  %v4623_v36 = vld [vmem:[%s6316_s1 + $0x468] ss:$16 sps:$4 sm:$0xff]   ;;  %v4631_v37 = vld [vmem:[%s6316_s1 + $0x484] ss:$16 sps:$4 sm:$0xff]  }
  0x5d   :  { %2285 = vmatprep.mubr.bf16.mxu0 %v4536_v38  ;;  %2850 = vmatprep.mubr.bf16.mxu1 %v4536_v38  ;;  %v4634_v38 = vld [vmem:[%s6316_s1 + $0x48c] ss:$16 sps:$4 sm:$0xff]  }
  0x5f   :  { %2341 = vmatpush1.bf16.msra.mxu0 %v4530_v39  ;;  %2906 = vmatpush1.bf16.msra.mxu1 %v4533_v40  ;;  %v4628_v39 = vld [vmem:[%s6317_s0 + $0x98] ss:$36 sps:$4 sm:$0xff]   ;;  %v4629_v40 = vld [vmem:[%s6316_s1 + $0x480] ss:$16 sps:$4 sm:$0xff]  }
  0x60   :  { %2342 = vmatprep.subr.bf16.mxu0 %v4541_v41  ;;  %2907 = vmatprep.subr.bf16.mxu1 %v4544_v42  ;;  %v4632_v41 = vld [vmem:[%s6316_s1 + $0x488] ss:$16 sps:$4 sm:$0xff]   ;;  %v4637_v42 = vld [vmem:[%s6316_s1 + $0x4a4] ss:$16 sps:$4 sm:$0xff]  }
  0x62   :  { %2286 = vmatmul.mubr.bf16.gmra.mrb[16].mxu0 %v4538_v43  ;;  %2851 = vmatmul.mubr.bf16.gmra.mrb[16].mxu1 %v4538_v43  ;;  %v4640_v43 = vld [vmem:[%s6316_s1 + $0x4ac] ss:$16 sps:$4 sm:$0xff]  }
  0x63   :  { %2343 = vmatpush1.bf16.msra.mxu0 %v4539_v44  ;;  %2908 = vmatpush1.bf16.msra.mxu1 %v4542_v45  ;;  %v4641_v44 = vld [vmem:[%s6317_s0 + $0xe4] ss:$36 sps:$4 sm:$0xff]   ;;  %v4635_v45 = vld [vmem:[%s6316_s1 + $0x4a0] ss:$16 sps:$4 sm:$0xff]  }
  0x64   :  { %2344 = vmatprep.subr.bf16.mxu0 %v4547_v46  ;;  %2909 = vmatprep.subr.bf16.mxu1 %v4550_v47  ;;  %v4638_v46 = vld [vmem:[%s6316_s1 + $0x4a8] ss:$16 sps:$4 sm:$0xff]   ;;  %v4646_v47 = vld [vmem:[%s6316_s1 + $0x4c4] ss:$16 sps:$4 sm:$0xff]  }
  0x65   :  { %2295 = vmatprep.mubr.bf16.mxu0 %v4551_v48  ;;  %2860 = vmatprep.mubr.bf16.mxu1 %v4551_v48  ;;  %v4649_v48 = vld [vmem:[%s6316_s1 + $0x4cc] ss:$16 sps:$4 sm:$0xff]  }
  0x67   :  { %2345 = vmatpush1.bf16.msra.mxu0 %v4545_v49  ;;  %2910 = vmatpush1.bf16.msra.mxu1 %v4548_v50  ;;  %v4643_v49 = vld [vmem:[%s6317_s0 + $0xe0] ss:$36 sps:$4 sm:$0xff]  }
  0x68   :  { %2346 = vmatprep.subr.bf16.mxu0 %v4556_v51  ;;  %2911 = vmatprep.subr.bf16.mxu1 %v4559_v52  ;;  %v4644_v50 = vld [vmem:[%s6316_s1 + $0x4c0] ss:$16 sps:$4 sm:$0xff]   ;;  %v4647_v51 = vld [vmem:[%s6316_s1 + $0x4c8] ss:$16 sps:$4 sm:$0xff]   ;;  %v4652_v52 = vld [vmem:[%s6316_s1 + $0x4e4] ss:$16 sps:$4 sm:$0xff]  }
  0x6a   :  { %2296 = vmatmul.mubr.bf16.gmra.mrb[20].mxu0 %v4553_v53  ;;  %2861 = vmatmul.mubr.bf16.gmra.mrb[20].mxu1 %v4553_v53  ;;  %v4655_v53 = vld [vmem:[%s6316_s1 + $0x4ec] ss:$16 sps:$4 sm:$0xff]  }
  0x6b   :  { %2347 = vmatpush1.bf16.msra.mxu0 %v4554_v54  ;;  %2912 = vmatpush1.bf16.msra.mxu1 %v4557_v55  ;;  %v4656_v54 = vld [vmem:[%s6317_s0 + $0x12c] ss:$36 sps:$4 sm:$0xff]  }
  0x6c   :  { %2348 = vmatprep.subr.bf16.mxu0 %v4562_v56  ;;  %2913 = vmatprep.subr.bf16.mxu1 %v4565_v57  ;;  %v4650_v55 = vld [vmem:[%s6316_s1 + $0x4e0] ss:$16 sps:$4 sm:$0xff]   ;;  %v4653_v56 = vld [vmem:[%s6316_s1 + $0x4e8] ss:$16 sps:$4 sm:$0xff]   ;;  %v4661_v57 = vld [vmem:[%s6316_s1 + $0x504] ss:$16 sps:$4 sm:$0xff]  }
  0x6d   :  { %2305 = vmatprep.mubr.bf16.mxu0 %v4566_v58  ;;  %2870 = vmatprep.mubr.bf16.mxu1 %v4566_v58  ;;  %v4664_v58 = vld [vmem:[%s6316_s1 + $0x50c] ss:$16 sps:$4 sm:$0xff]  }
  0x6f   :  { %2349 = vmatpush1.bf16.msra.mxu0 %v4560_v59  ;;  %2914 = vmatpush1.bf16.msra.mxu1 %v4563_v60  ;;  %v4658_v59 = vld [vmem:[%s6317_s0 + $0x128] ss:$36 sps:$4 sm:$0xff]   ;;  %v4659_v60 = vld [vmem:[%s6316_s1 + $0x500] ss:$16 sps:$4 sm:$0xff]  }
  0x70   :  { %2350 = vmatprep.subr.bf16.mxu0 %v4571_v61  ;;  %2915 = vmatprep.subr.bf16.mxu1 %v4574_v62  ;;  %v4662_v61 = vld [vmem:[%s6316_s1 + $0x508] ss:$16 sps:$4 sm:$0xff]   ;;  %v4667_v62 = vld [vmem:[%s6316_s1 + $0x524] ss:$16 sps:$4 sm:$0xff]  }
  0x72   :  { %2306 = vmatmul.mubr.bf16.gmra.mrb[24].mxu0 %v4568_v63  ;;  %2871 = vmatmul.mubr.bf16.gmra.mrb[24].mxu1 %v4568_v63  ;;  %v4670_v63 = vld [vmem:[%s6316_s1 + $0x52c] ss:$16 sps:$4 sm:$0xff]  }
  0x73   :  { %2351 = vmatpush1.bf16.msra.mxu0 %v4569_v0  ;;  %2916 = vmatpush1.bf16.msra.mxu1 %v4572_v1  ;;  %v4671_v0 = vld [vmem:[%s6317_s0 + $0x174] ss:$36 sps:$4 sm:$0xff]   ;;  %v4665_v1 = vld [vmem:[%s6316_s1 + $0x520] ss:$16 sps:$4 sm:$0xff]  }
  0x74   :  { %2352 = vmatprep.subr.bf16.mxu0 %v4577_v2  ;;  %2917 = vmatprep.subr.bf16.mxu1 %v4580_v3  ;;  %v4668_v2 = vld [vmem:[%s6316_s1 + $0x528] ss:$16 sps:$4 sm:$0xff]   ;;  %v4676_v3 = vld [vmem:[%s6316_s1 + $0x544] ss:$16 sps:$4 sm:$0xff]  }
  0x75   :  { %2315 = vmatprep.mubr.bf16.mxu0 %v4581_v4  ;;  %2880 = vmatprep.mubr.bf16.mxu1 %v4581_v4  ;;  %v4679_v4 = vld [vmem:[%s6316_s1 + $0x54c] ss:$16 sps:$4 sm:$0xff]  }
  0x77   :  { %2353 = vmatpush1.bf16.msra.mxu0 %v4575_v5  ;;  %2918 = vmatpush1.bf16.msra.mxu1 %v4578_v6  ;;  %v4673_v5 = vld [vmem:[%s6317_s0 + $0x170] ss:$36 sps:$4 sm:$0xff]  }
  0x78   :  { %2354 = vmatprep.subr.bf16.mxu0 %v4586_v7  ;;  %2919 = vmatprep.subr.bf16.mxu1 %v4589_v8  ;;  %v4674_v6 = vld [vmem:[%s6316_s1 + $0x540] ss:$16 sps:$4 sm:$0xff]   ;;  %v4677_v7 = vld [vmem:[%s6316_s1 + $0x548] ss:$16 sps:$4 sm:$0xff]   ;;  %v4682_v8 = vld [vmem:[%s6316_s1 + $0x564] ss:$16 sps:$4 sm:$0xff]  }
  0x7a   :  { %2316 = vmatmul.mubr.bf16.gmra.mrb[28].mxu0 %v4583_v9  ;;  %2881 = vmatmul.mubr.bf16.gmra.mrb[28].mxu1 %v4583_v9  ;;  %v4685_v9 = vld [vmem:[%s6316_s1 + $0x56c] ss:$16 sps:$4 sm:$0xff]  }
  0x7b   :  { %2355 = vmatpush1.bf16.msra.mxu0 %v4584_v10  ;;  %2920 = vmatpush1.bf16.msra.mxu1 %v4587_v11  ;;  %v4686_v10 = vld [vmem:[%s6317_s0 + $0x1bc] ss:$36 sps:$4 sm:$0xff]  }
  0x7c   :  { %2356 = vmatprep.subr.bf16.mxu0 %v4592_v12  ;;  %2921 = vmatprep.subr.bf16.mxu1 %v4595_v13  ;;  %v4680_v11 = vld [vmem:[%s6316_s1 + $0x560] ss:$16 sps:$4 sm:$0xff]   ;;  %v4683_v12 = vld [vmem:[%s6316_s1 + $0x568] ss:$16 sps:$4 sm:$0xff]   ;;  %v4691_v13 = vld [vmem:[%s6316_s1 + $0x584] ss:$16 sps:$4 sm:$0xff]  }
  0x7d   :  { %2358 = vmatprep.mubr.bf16.mxu0 %v4598_v14  ;;  %2923 = vmatprep.mubr.bf16.mxu1 %v4598_v14  ;;  %v4694_v14 = vld [vmem:[%s6316_s1 + $0x58c] ss:$16 sps:$4 sm:$0xff]  }
  0x7f   :  { %2357 = vmatpush1.bf16.msra.mxu0 %v4590_v15  ;;  %2922 = vmatpush1.bf16.msra.mxu1 %v4593_v16  ;;  %v4688_v15 = vld [vmem:[%s6317_s0 + $0x1b8] ss:$36 sps:$4 sm:$0xff]   ;;  %v4689_v16 = vld [vmem:[%s6316_s1 + $0x580] ss:$16 sps:$4 sm:$0xff]  }
  0x80   :  { %2439 = vmatprep.subr.bf16.mxu0 %v4601_v17  ;;  %3004 = vmatprep.subr.bf16.mxu1 %v4604_v18  ;;  %v4692_v17 = vld [vmem:[%s6316_s1 + $0x588] ss:$16 sps:$4 sm:$0xff]   ;;  %v4697_v18 = vld [vmem:[%s6316_s1 + $0x5a4] ss:$16 sps:$4 sm:$0xff]  }
  0x82   :  { %2359 = vmatmul.mubr.bf16.vlgmr.msra.gmra.mrb[0].mxu0 %v4596_v19  ;;  %2924 = vmatmul.mubr.bf16.vlgmr.msra.gmra.mrb[0].mxu1 %v4596_v19  ;;  %v4700_v19 = vld [vmem:[%s6316_s1 + $0x5ac] ss:$16 sps:$4 sm:$0xff]  }
  0x83   :  { %2440 = vmatpush1.bf16.msra.mxu0 %v4599_v20  ;;  %3005 = vmatpush1.bf16.msra.mxu1 %v4602_v21  ;;  %v4701_v20 = vld [vmem:[%s6317_s0 + $0x204] ss:$36 sps:$4 sm:$0xff]   ;;  %v4695_v21 = vld [vmem:[%s6316_s1 + $0x5a0] ss:$16 sps:$4 sm:$0xff]  }
  0x84   :  { %2441 = vmatprep.subr.bf16.mxu0 %v4607_v22  ;;  %3006 = vmatprep.subr.bf16.mxu1 %v4610_v23  ;;  %v4698_v22 = vld [vmem:[%s6316_s1 + $0x5a8] ss:$16 sps:$4 sm:$0xff]   ;;  %v4706_v23 = vld [vmem:[%s6316_s1 + $0x5c4] ss:$16 sps:$4 sm:$0xff]  }
  0x85   :  { %2368 = vmatprep.mubr.bf16.mxu0 %v4611_v24  ;;  %2933 = vmatprep.mubr.bf16.mxu1 %v4611_v24  ;;  %v4709_v24 = vld [vmem:[%s6316_s1 + $0x5cc] ss:$16 sps:$4 sm:$0xff]  }
  0x87   :  { %2442 = vmatpush1.bf16.msra.mxu0 %v4605_v25  ;;  %3007 = vmatpush1.bf16.msra.mxu1 %v4608_v26  ;;  %v4703_v25 = vld [vmem:[%s6317_s0 + $0x200] ss:$36 sps:$4 sm:$0xff]  }
  0x88   :  { %2443 = vmatprep.subr.bf16.mxu0 %v4616_v27  ;;  %3008 = vmatprep.subr.bf16.mxu1 %v4619_v28  ;;  %v4704_v26 = vld [vmem:[%s6316_s1 + $0x5c0] ss:$16 sps:$4 sm:$0xff]   ;;  %v4707_v27 = vld [vmem:[%s6316_s1 + $0x5c8] ss:$16 sps:$4 sm:$0xff]   ;;  %v4712_v28 = vld [vmem:[%s6316_s1 + $0x5e4] ss:$16 sps:$4 sm:$0xff]  }
  0x8a   :  { %2369 = vmatmul.mubr.bf16.gmra.mrb[4].mxu0 %v4613_v29  ;;  %2934 = vmatmul.mubr.bf16.gmra.mrb[4].mxu1 %v4613_v29  ;;  %v4715_v29 = vld [vmem:[%s6316_s1 + $0x5ec] ss:$16 sps:$4 sm:$0xff]  }
  0x8b   :  { %2444 = vmatpush1.bf16.msra.mxu0 %v4614_v30  ;;  %3009 = vmatpush1.bf16.msra.mxu1 %v4617_v31  ;;  %v4718_v30 = vld [vmem:[%s6317_s0 + $0x14] ss:$36 sps:$4 sm:$0xff]   ;;  %v4710_v31 = vld [vmem:[%s6316_s1 + $0x5e0] ss:$16 sps:$4 sm:$0xff]  }
  0x8c   :  { %2445 = vmatprep.subr.bf16.mxu0 %v4622_v32  ;;  %3010 = vmatprep.subr.bf16.mxu1 %v4625_v33  ;;  %v4713_v32 = vld [vmem:[%s6316_s1 + $0x5e8] ss:$16 sps:$4 sm:$0xff]   ;;  %v4721_v33 = vld [vmem:[%s6316_s1 + $0x604] ss:$16 sps:$4 sm:$0xff]  }
  0x8d   :  { %2378 = vmatprep.mubr.bf16.mxu0 %v4626_v34  ;;  %2943 = vmatprep.mubr.bf16.mxu1 %v4626_v34  ;;  %v4724_v34 = vld [vmem:[%s6316_s1 + $0x60c] ss:$16 sps:$4 sm:$0xff]  }
  0x8f   :  { %2446 = vmatpush1.bf16.msra.mxu0 %v4620_v35  ;;  %3011 = vmatpush1.bf16.msra.mxu1 %v4623_v36  ;;  %v4716_v35 = vld [vmem:[%s6317_s0 + $0x10] ss:$36 sps:$4 sm:$0xff]  }
  0x90   :  { %2447 = vmatprep.subr.bf16.mxu0 %v4631_v37  ;;  %3012 = vmatprep.subr.bf16.mxu1 %v4634_v38  ;;  %v4719_v36 = vld [vmem:[%s6316_s1 + $0x600] ss:$16 sps:$4 sm:$0xff]   ;;  %v4722_v37 = vld [vmem:[%s6316_s1 + $0x608] ss:$16 sps:$4 sm:$0xff]   ;;  %v4727_v38 = vld [vmem:[%s6316_s1 + $0x624] ss:$16 sps:$4 sm:$0xff]  }
  0x92   :  { %2379 = vmatmul.mubr.bf16.gmra.mrb[8].mxu0 %v4628_v39  ;;  %2944 = vmatmul.mubr.bf16.gmra.mrb[8].mxu1 %v4628_v39  ;;  %v4730_v39 = vld [vmem:[%s6316_s1 + $0x62c] ss:$16 sps:$4 sm:$0xff]  }
  0x93   :  { %2448 = vmatpush1.bf16.msra.mxu0 %v4629_v40  ;;  %3013 = vmatpush1.bf16.msra.mxu1 %v4632_v41  ;;  %v4731_v40 = vld [vmem:[%s6317_s0 + $0x5c] ss:$36 sps:$4 sm:$0xff]  }
  0x94   :  { %2449 = vmatprep.subr.bf16.mxu0 %v4637_v42  ;;  %3014 = vmatprep.subr.bf16.mxu1 %v4640_v43  ;;  %v4725_v41 = vld [vmem:[%s6316_s1 + $0x620] ss:$16 sps:$4 sm:$0xff]   ;;  %v4728_v42 = vld [vmem:[%s6316_s1 + $0x628] ss:$16 sps:$4 sm:$0xff]   ;;  %v4736_v43 = vld [vmem:[%s6316_s1 + $0x644] ss:$16 sps:$4 sm:$0xff]  }
  0x95   :  { %2388 = vmatprep.mubr.bf16.mxu0 %v4641_v44  ;;  %2953 = vmatprep.mubr.bf16.mxu1 %v4641_v44  ;;  %v4739_v44 = vld [vmem:[%s6316_s1 + $0x64c] ss:$16 sps:$4 sm:$0xff]  }
  0x97   :  { %2450 = vmatpush1.bf16.msra.mxu0 %v4635_v45  ;;  %3015 = vmatpush1.bf16.msra.mxu1 %v4638_v46  ;;  %v4733_v45 = vld [vmem:[%s6317_s0 + $0x58] ss:$36 sps:$4 sm:$0xff]   ;;  %v4734_v46 = vld [vmem:[%s6316_s1 + $0x640] ss:$16 sps:$4 sm:$0xff]  }
  0x98   :  { %2451 = vmatprep.subr.bf16.mxu0 %v4646_v47  ;;  %3016 = vmatprep.subr.bf16.mxu1 %v4649_v48  ;;  %v4737_v47 = vld [vmem:[%s6316_s1 + $0x648] ss:$16 sps:$4 sm:$0xff]   ;;  %v4742_v48 = vld [vmem:[%s6316_s1 + $0x664] ss:$16 sps:$4 sm:$0xff]  }
  0x9a   :  { %2389 = vmatmul.mubr.bf16.gmra.mrb[12].mxu0 %v4643_v49  ;;  %2954 = vmatmul.mubr.bf16.gmra.mrb[12].mxu1 %v4643_v49  ;;  %v4745_v49 = vld [vmem:[%s6316_s1 + $0x66c] ss:$16 sps:$4 sm:$0xff]  }
  0x9b   :  { %2452 = vmatpush1.bf16.msra.mxu0 %v4644_v50  ;;  %3017 = vmatpush1.bf16.msra.mxu1 %v4647_v51  ;;  %v4746_v50 = vld [vmem:[%s6317_s0 + $0xa4] ss:$36 sps:$4 sm:$0xff]   ;;  %v4740_v51 = vld [vmem:[%s6316_s1 + $0x660] ss:$16 sps:$4 sm:$0xff]  }
  0x9c   :  { %2453 = vmatprep.subr.bf16.mxu0 %v4652_v52  ;;  %3018 = vmatprep.subr.bf16.mxu1 %v4655_v53  ;;  %v4743_v52 = vld [vmem:[%s6316_s1 + $0x668] ss:$16 sps:$4 sm:$0xff]   ;;  %v4751_v53 = vld [vmem:[%s6316_s1 + $0x684] ss:$16 sps:$4 sm:$0xff]  }
  0x9d   :  { %2398 = vmatprep.mubr.bf16.mxu0 %v4656_v54  ;;  %2963 = vmatprep.mubr.bf16.mxu1 %v4656_v54  ;;  %v4754_v54 = vld [vmem:[%s6316_s1 + $0x68c] ss:$16 sps:$4 sm:$0xff]  }
  0x9f   :  { %2454 = vmatpush1.bf16.msra.mxu0 %v4650_v55  ;;  %3019 = vmatpush1.bf16.msra.mxu1 %v4653_v56  ;;  %v4748_v55 = vld [vmem:[%s6317_s0 + $0xa0] ss:$36 sps:$4 sm:$0xff]  }
  0xa0   :  { %2455 = vmatprep.subr.bf16.mxu0 %v4661_v57  ;;  %3020 = vmatprep.subr.bf16.mxu1 %v4664_v58  ;;  %v4749_v56 = vld [vmem:[%s6316_s1 + $0x680] ss:$16 sps:$4 sm:$0xff]   ;;  %v4752_v57 = vld [vmem:[%s6316_s1 + $0x688] ss:$16 sps:$4 sm:$0xff]   ;;  %v4757_v58 = vld [vmem:[%s6316_s1 + $0x6a4] ss:$16 sps:$4 sm:$0xff]  }
  0xa2   :  { %2399 = vmatmul.mubr.bf16.gmra.mrb[16].mxu0 %v4658_v59  ;;  %2964 = vmatmul.mubr.bf16.gmra.mrb[16].mxu1 %v4658_v59  ;;  %v4760_v59 = vld [vmem:[%s6316_s1 + $0x6ac] ss:$16 sps:$4 sm:$0xff]  }
  0xa3   :  { %2456 = vmatpush1.bf16.msra.mxu0 %v4659_v60  ;;  %3021 = vmatpush1.bf16.msra.mxu1 %v4662_v61  ;;  %v4761_v60 = vld [vmem:[%s6317_s0 + $0xec] ss:$36 sps:$4 sm:$0xff]  }
  0xa4   :  { %2457 = vmatprep.subr.bf16.mxu0 %v4667_v62  ;;  %3022 = vmatprep.subr.bf16.mxu1 %v4670_v63  ;;  %v4755_v61 = vld [vmem:[%s6316_s1 + $0x6a0] ss:$16 sps:$4 sm:$0xff]   ;;  %v4758_v62 = vld [vmem:[%s6316_s1 + $0x6a8] ss:$16 sps:$4 sm:$0xff]   ;;  %v4766_v63 = vld [vmem:[%s6316_s1 + $0x6c4] ss:$16 sps:$4 sm:$0xff]  }
  0xa5   :  { %2408 = vmatprep.mubr.bf16.mxu0 %v4671_v0  ;;  %2973 = vmatprep.mubr.bf16.mxu1 %v4671_v0  ;;  %v4769_v0 = vld [vmem:[%s6316_s1 + $0x6cc] ss:$16 sps:$4 sm:$0xff]  }
  0xa7   :  { %2458 = vmatpush1.bf16.msra.mxu0 %v4665_v1  ;;  %3023 = vmatpush1.bf16.msra.mxu1 %v4668_v2  ;;  %v4763_v1 = vld [vmem:[%s6317_s0 + $0xe8] ss:$36 sps:$4 sm:$0xff]   ;;  %v4764_v2 = vld [vmem:[%s6316_s1 + $0x6c0] ss:$16 sps:$4 sm:$0xff]  }
  0xa8   :  { %2459 = vmatprep.subr.bf16.mxu0 %v4676_v3  ;;  %3024 = vmatprep.subr.bf16.mxu1 %v4679_v4  ;;  %v4767_v3 = vld [vmem:[%s6316_s1 + $0x6c8] ss:$16 sps:$4 sm:$0xff]   ;;  %v4772_v4 = vld [vmem:[%s6316_s1 + $0x6e4] ss:$16 sps:$4 sm:$0xff]  }
  0xaa   :  { %2409 = vmatmul.mubr.bf16.gmra.mrb[20].mxu0 %v4673_v5  ;;  %2974 = vmatmul.mubr.bf16.gmra.mrb[20].mxu1 %v4673_v5  ;;  %v4775_v5 = vld [vmem:[%s6316_s1 + $0x6ec] ss:$16 sps:$4 sm:$0xff]  }
  0xab   :  { %2460 = vmatpush1.bf16.msra.mxu0 %v4674_v6  ;;  %3025 = vmatpush1.bf16.msra.mxu1 %v4677_v7  ;;  %v4776_v6 = vld [vmem:[%s6317_s0 + $0x134] ss:$36 sps:$4 sm:$0xff]   ;;  %v4770_v7 = vld [vmem:[%s6316_s1 + $0x6e0] ss:$16 sps:$4 sm:$0xff]  }
  0xac   :  { %2461 = vmatprep.subr.bf16.mxu0 %v4682_v8  ;;  %3026 = vmatprep.subr.bf16.mxu1 %v4685_v9  ;;  %v4773_v8 = vld [vmem:[%s6316_s1 + $0x6e8] ss:$16 sps:$4 sm:$0xff]   ;;  %v4781_v9 = vld [vmem:[%s6316_s1 + $0x704] ss:$16 sps:$4 sm:$0xff]  }
  0xad   :  { %2418 = vmatprep.mubr.bf16.mxu0 %v4686_v10  ;;  %2983 = vmatprep.mubr.bf16.mxu1 %v4686_v10  ;;  %v4784_v10 = vld [vmem:[%s6316_s1 + $0x70c] ss:$16 sps:$4 sm:$0xff]  }
  0xaf   :  { %2462 = vmatpush1.bf16.msra.mxu0 %v4680_v11  ;;  %3027 = vmatpush1.bf16.msra.mxu1 %v4683_v12  ;;  %v4778_v11 = vld [vmem:[%s6317_s0 + $0x130] ss:$36 sps:$4 sm:$0xff]  }
  0xb0   :  { %2463 = vmatprep.subr.bf16.mxu0 %v4691_v13  ;;  %3028 = vmatprep.subr.bf16.mxu1 %v4694_v14  ;;  %v4779_v12 = vld [vmem:[%s6316_s1 + $0x700] ss:$16 sps:$4 sm:$0xff]   ;;  %v4782_v13 = vld [vmem:[%s6316_s1 + $0x708] ss:$16 sps:$4 sm:$0xff]   ;;  %v4787_v14 = vld [vmem:[%s6316_s1 + $0x724] ss:$16 sps:$4 sm:$0xff]  }
  0xb2   :  { %2419 = vmatmul.mubr.bf16.gmra.mrb[24].mxu0 %v4688_v15  ;;  %2984 = vmatmul.mubr.bf16.gmra.mrb[24].mxu1 %v4688_v15  ;;  %v4790_v15 = vld [vmem:[%s6316_s1 + $0x72c] ss:$16 sps:$4 sm:$0xff]  }
  0xb3   :  { %2464 = vmatpush1.bf16.msra.mxu0 %v4689_v16  ;;  %3029 = vmatpush1.bf16.msra.mxu1 %v4692_v17  ;;  %v4791_v16 = vld [vmem:[%s6317_s0 + $0x17c] ss:$36 sps:$4 sm:$0xff]  }
  0xb4   :  { %2465 = vmatprep.subr.bf16.mxu0 %v4697_v18  ;;  %3030 = vmatprep.subr.bf16.mxu1 %v4700_v19  ;;  %v4785_v17 = vld [vmem:[%s6316_s1 + $0x720] ss:$16 sps:$4 sm:$0xff]   ;;  %v4788_v18 = vld [vmem:[%s6316_s1 + $0x728] ss:$16 sps:$4 sm:$0xff]   ;;  %v4796_v19 = vld [vmem:[%s6316_s1 + $0x744] ss:$16 sps:$4 sm:$0xff]  }
  0xb5   :  { %2428 = vmatprep.mubr.bf16.mxu0 %v4701_v20  ;;  %2993 = vmatprep.mubr.bf16.mxu1 %v4701_v20  ;;  %v4799_v20 = vld [vmem:[%s6316_s1 + $0x74c] ss:$16 sps:$4 sm:$0xff]  }
  0xb7   :  { %2466 = vmatpush1.bf16.msra.mxu0 %v4695_v21  ;;  %3031 = vmatpush1.bf16.msra.mxu1 %v4698_v22  ;;  %v4793_v21 = vld [vmem:[%s6317_s0 + $0x178] ss:$36 sps:$4 sm:$0xff]   ;;  %v4794_v22 = vld [vmem:[%s6316_s1 + $0x740] ss:$16 sps:$4 sm:$0xff]  }
  0xb8   :  { %2467 = vmatprep.subr.bf16.mxu0 %v4706_v23  ;;  %3032 = vmatprep.subr.bf16.mxu1 %v4709_v24  ;;  %v4797_v23 = vld [vmem:[%s6316_s1 + $0x748] ss:$16 sps:$4 sm:$0xff]   ;;  %v4802_v24 = vld [vmem:[%s6316_s1 + $0x764] ss:$16 sps:$4 sm:$0xff]  }
  0xba   :  { %2429 = vmatmul.mubr.bf16.gmra.mrb[28].mxu0 %v4703_v25  ;;  %2994 = vmatmul.mubr.bf16.gmra.mrb[28].mxu1 %v4703_v25  ;;  %v4805_v25 = vld [vmem:[%s6316_s1 + $0x76c] ss:$16 sps:$4 sm:$0xff]  }
  0xbb   :  { %2468 = vmatpush1.bf16.msra.mxu0 %v4704_v26  ;;  %3033 = vmatpush1.bf16.msra.mxu1 %v4707_v27  ;;  %v4800_v26 = vld [vmem:[%s6316_s1 + $0x760] ss:$16 sps:$4 sm:$0xff]   ;;  %v4806_v27 = vld [vmem:[%s6317_s0 + $0x1c4] ss:$36 sps:$4 sm:$0xff]  }
  0xbc   :  { %2469 = vmatprep.subr.bf16.mxu0 %v4712_v28  ;;  %3034 = vmatprep.subr.bf16.mxu1 %v4715_v29  ;;  %v4803_v28 = vld [vmem:[%s6316_s1 + $0x768] ss:$16 sps:$4 sm:$0xff]   ;;  %v4811_v29 = vld [vmem:[%s6316_s1 + $0x784] ss:$16 sps:$4 sm:$0xff]  }
  0xbd   :  { %2471 = vmatprep.mubr.bf16.mxu0 %v4718_v30  ;;  %3036 = vmatprep.mubr.bf16.mxu1 %v4718_v30  ;;  %v4808_v30 = vld [vmem:[%s6317_s0 + $0x1c0] ss:$36 sps:$4 sm:$0xff]  }
  0xbf   :  { %2470 = vmatpush1.bf16.msra.mxu0 %v4710_v31  ;;  %3035 = vmatpush1.bf16.msra.mxu1 %v4713_v32  ;;  %v4814_v31 = vld [vmem:[%s6316_s1 + $0x78c] ss:$16 sps:$4 sm:$0xff]   ;;  %v4809_v32 = vld [vmem:[%s6316_s1 + $0x780] ss:$16 sps:$4 sm:$0xff]  }
  0xc0   :  { %2552 = vmatprep.subr.bf16.mxu0 %v4721_v33  ;;  %3117 = vmatprep.subr.bf16.mxu1 %v4724_v34  ;;  %v4812_v33 = vld [vmem:[%s6316_s1 + $0x788] ss:$16 sps:$4 sm:$0xff]   ;;  %v4817_v34 = vld [vmem:[%s6316_s1 + $0x7a4] ss:$16 sps:$4 sm:$0xff]  }
  0xc2   :  { %2472 = vmatmul.mubr.bf16.vlgmr.msra.gmra.mrb[0].mxu0 %v4716_v35  ;;  %3037 = vmatmul.mubr.bf16.vlgmr.msra.gmra.mrb[0].mxu1 %v4716_v35  ;;  %v4820_v35 = vld [vmem:[%s6316_s1 + $0x7ac] ss:$16 sps:$4 sm:$0xff]  }
  0xc3   :  { %2553 = vmatpush1.bf16.msra.mxu0 %v4719_v36  ;;  %3118 = vmatpush1.bf16.msra.mxu1 %v4722_v37  ;;  %v4821_v36 = vld [vmem:[%s6317_s0 + $0x20c] ss:$36 sps:$4 sm:$0xff]  }
  0xc4   :  { %2554 = vmatprep.subr.bf16.mxu0 %v4727_v38  ;;  %3119 = vmatprep.subr.bf16.mxu1 %v4730_v39  ;;  %v4815_v37 = vld [vmem:[%s6316_s1 + $0x7a0] ss:$16 sps:$4 sm:$0xff]   ;;  %v4818_v38 = vld [vmem:[%s6316_s1 + $0x7a8] ss:$16 sps:$4 sm:$0xff]   ;;  %v4826_v39 = vld [vmem:[%s6316_s1 + $0x7c4] ss:$16 sps:$4 sm:$0xff]  }
  0xc5   :  { %2481 = vmatprep.mubr.bf16.mxu0 %v4731_v40  ;;  %3046 = vmatprep.mubr.bf16.mxu1 %v4731_v40  ;;  %v4829_v40 = vld [vmem:[%s6316_s1 + $0x7cc] ss:$16 sps:$4 sm:$0xff]  }
  0xc7   :  { %2555 = vmatpush1.bf16.msra.mxu0 %v4725_v41  ;;  %3120 = vmatpush1.bf16.msra.mxu1 %v4728_v42  ;;  %v4823_v41 = vld [vmem:[%s6317_s0 + $0x208] ss:$36 sps:$4 sm:$0xff]   ;;  %v4824_v42 = vld [vmem:[%s6316_s1 + $0x7c0] ss:$16 sps:$4 sm:$0xff]  }
  0xc8   :  { %2556 = vmatprep.subr.bf16.mxu0 %v4736_v43  ;;  %3121 = vmatprep.subr.bf16.mxu1 %v4739_v44  ;;  %v4827_v43 = vld [vmem:[%s6316_s1 + $0x7c8] ss:$16 sps:$4 sm:$0xff]   ;;  %v4832_v44 = vld [vmem:[%s6316_s1 + $0x7e4] ss:$16 sps:$4 sm:$0xff]  }
  0xca   :  { %2482 = vmatmul.mubr.bf16.gmra.mrb[4].mxu0 %v4733_v45  ;;  %3047 = vmatmul.mubr.bf16.gmra.mrb[4].mxu1 %v4733_v45  ;;  %v4835_v45 = vld [vmem:[%s6316_s1 + $0x7ec] ss:$16 sps:$4 sm:$0xff]  }
  0xcb   :  { %2557 = vmatpush1.bf16.msra.mxu0 %v4734_v46  ;;  %3122 = vmatpush1.bf16.msra.mxu1 %v4737_v47  ;;  %v4838_v46 = vld [vmem:[%s6317_s0 + $0x1c] ss:$36 sps:$4 sm:$0xff]  }
  0xcc   :  { %2558 = vmatprep.subr.bf16.mxu0 %v4742_v48  ;;  %3123 = vmatprep.subr.bf16.mxu1 %v4745_v49  ;;  %v4830_v47 = vld [vmem:[%s6316_s1 + $0x7e0] ss:$16 sps:$4 sm:$0xff]   ;;  %v4833_v48 = vld [vmem:[%s6316_s1 + $0x7e8] ss:$16 sps:$4 sm:$0xff]   ;;  %v4841_v49 = vld [vmem:[%s6316_s1 + $0x804] ss:$16 sps:$4 sm:$0xff]  }
  0xcd   :  { %2491 = vmatprep.mubr.bf16.mxu0 %v4746_v50  ;;  %3056 = vmatprep.mubr.bf16.mxu1 %v4746_v50  ;;  %v4844_v50 = vld [vmem:[%s6316_s1 + $0x80c] ss:$16 sps:$4 sm:$0xff]  }
  0xcf   :  { %2559 = vmatpush1.bf16.msra.mxu0 %v4740_v51  ;;  %3124 = vmatpush1.bf16.msra.mxu1 %v4743_v52  ;;  %v4836_v51 = vld [vmem:[%s6317_s0 + $0x18] ss:$36 sps:$4 sm:$0xff]   ;;  %v4839_v52 = vld [vmem:[%s6316_s1 + $0x800] ss:$16 sps:$4 sm:$0xff]  }
  0xd0   :  { %2560 = vmatprep.subr.bf16.mxu0 %v4751_v53  ;;  %3125 = vmatprep.subr.bf16.mxu1 %v4754_v54  ;;  %v4842_v53 = vld [vmem:[%s6316_s1 + $0x808] ss:$16 sps:$4 sm:$0xff]  }
  0xd1   :  { %v4845_v54 = vld [vmem:[%s6317_s0 + $0x64] ss:$36 sps:$4 sm:$0xff]  }
  0xd2   :  { %2492 = vmatmul.mubr.bf16.gmra.mrb[8].mxu0 %v4748_v55  ;;  %3057 = vmatmul.mubr.bf16.gmra.mrb[8].mxu1 %v4748_v55  ;;  %v4850_v55 = vld [vmem:[%s6316_s1 + $0x824] ss:$16 sps:$4 sm:$0xff]  }
  0xd3   :  { %2561 = vmatpush1.bf16.msra.mxu0 %v4749_v56  ;;  %3126 = vmatpush1.bf16.msra.mxu1 %v4752_v57  ;;  %v4853_v56 = vld [vmem:[%s6316_s1 + $0x82c] ss:$16 sps:$4 sm:$0xff]   ;;  %v4848_v57 = vld [vmem:[%s6316_s1 + $0x820] ss:$16 sps:$4 sm:$0xff]  }
  0xd4   :  { %2562 = vmatprep.subr.bf16.mxu0 %v4757_v58  ;;  %3127 = vmatprep.subr.bf16.mxu1 %v4760_v59  ;;  %v4851_v58 = vld [vmem:[%s6316_s1 + $0x828] ss:$16 sps:$4 sm:$0xff]   ;;  %v4859_v59 = vld [vmem:[%s6316_s1 + $0x844] ss:$16 sps:$4 sm:$0xff]  }
  0xd5   :  { %2501 = vmatprep.mubr.bf16.mxu0 %v4761_v60  ;;  %3066 = vmatprep.mubr.bf16.mxu1 %v4761_v60  ;;  %v4862_v60 = vld [vmem:[%s6316_s1 + $0x84c] ss:$16 sps:$4 sm:$0xff]  }
  0xd7   :  { %2563 = vmatpush1.bf16.msra.mxu0 %v4755_v61  ;;  %3128 = vmatpush1.bf16.msra.mxu1 %v4758_v62  ;;  %v4847_v61 = vld [vmem:[%s6317_s0 + $0x60] ss:$36 sps:$4 sm:$0xff]   ;;  %v4854_v62 = vld [vmem:[%s6317_s0 + $0xac] ss:$36 sps:$4 sm:$0xff]  }
  0xd8   :  { %2564 = vmatprep.subr.bf16.mxu0 %v4766_v63  ;;  %3129 = vmatprep.subr.bf16.mxu1 %v4769_v0  ;;  %v4857_v63 = vld [vmem:[%s6316_s1 + $0x840] ss:$16 sps:$4 sm:$0xff]   ;;  %v4860_v0 = vld [vmem:[%s6316_s1 + $0x848] ss:$16 sps:$4 sm:$0xff]  }
  0xda   :  { %2502 = vmatmul.mubr.bf16.gmra.mrb[12].mxu0 %v4763_v1  ;;  %3067 = vmatmul.mubr.bf16.gmra.mrb[12].mxu1 %v4763_v1  ;;  %v4868_v1 = vld [vmem:[%s6316_s1 + $0x864] ss:$16 sps:$4 sm:$0xff]  }
  0xdb   :  { %2565 = vmatpush1.bf16.msra.mxu0 %v4764_v2  ;;  %3130 = vmatpush1.bf16.msra.mxu1 %v4767_v3  ;;  %v4871_v2 = vld [vmem:[%s6316_s1 + $0x86c] ss:$16 sps:$4 sm:$0xff]   ;;  %v4866_v3 = vld [vmem:[%s6316_s1 + $0x860] ss:$16 sps:$4 sm:$0xff]  }
  0xdc   :  { %2566 = vmatprep.subr.bf16.mxu0 %v4772_v4  ;;  %3131 = vmatprep.subr.bf16.mxu1 %v4775_v5  ;;  %v4869_v4 = vld [vmem:[%s6316_s1 + $0x868] ss:$16 sps:$4 sm:$0xff]   ;;  %v4877_v5 = vld [vmem:[%s6316_s1 + $0x884] ss:$16 sps:$4 sm:$0xff]  }
  0xdd   :  { %2511 = vmatprep.mubr.bf16.mxu0 %v4776_v6  ;;  %3076 = vmatprep.mubr.bf16.mxu1 %v4776_v6  ;;  %v4880_v6 = vld [vmem:[%s6316_s1 + $0x88c] ss:$16 sps:$4 sm:$0xff]  }
  0xdf   :  { %2567 = vmatpush1.bf16.msra.mxu0 %v4770_v7  ;;  %3132 = vmatpush1.bf16.msra.mxu1 %v4773_v8  ;;  %v4856_v7 = vld [vmem:[%s6317_s0 + $0xa8] ss:$36 sps:$4 sm:$0xff]   ;;  %v4863_v8 = vld [vmem:[%s6317_s0 + $0xf4] ss:$36 sps:$4 sm:$0xff]  }
  0xe0   :  { %2568 = vmatprep.subr.bf16.mxu0 %v4781_v9  ;;  %3133 = vmatprep.subr.bf16.mxu1 %v4784_v10  ;;  %v4875_v9 = vld [vmem:[%s6316_s1 + $0x880] ss:$16 sps:$4 sm:$0xff]   ;;  %v4878_v10 = vld [vmem:[%s6316_s1 + $0x888] ss:$16 sps:$4 sm:$0xff]  }
  0xe2   :  { %2512 = vmatmul.mubr.bf16.gmra.mrb[16].mxu0 %v4778_v11  ;;  %3077 = vmatmul.mubr.bf16.gmra.mrb[16].mxu1 %v4778_v11  ;;  %v4886_v11 = vld [vmem:[%s6316_s1 + $0x8a4] ss:$16 sps:$4 sm:$0xff]  }
  0xe3   :  { %2569 = vmatpush1.bf16.msra.mxu0 %v4779_v12  ;;  %3134 = vmatpush1.bf16.msra.mxu1 %v4782_v13  ;;  %v4889_v12 = vld [vmem:[%s6316_s1 + $0x8ac] ss:$16 sps:$4 sm:$0xff]   ;;  %v4884_v13 = vld [vmem:[%s6316_s1 + $0x8a0] ss:$16 sps:$4 sm:$0xff]  }
  0xe4   :  { %2570 = vmatprep.subr.bf16.mxu0 %v4787_v14  ;;  %3135 = vmatprep.subr.bf16.mxu1 %v4790_v15  ;;  %v4887_v14 = vld [vmem:[%s6316_s1 + $0x8a8] ss:$16 sps:$4 sm:$0xff]   ;;  %v4895_v15 = vld [vmem:[%s6316_s1 + $0x8c4] ss:$16 sps:$4 sm:$0xff]  }
  0xe5   :  { %2521 = vmatprep.mubr.bf16.mxu0 %v4791_v16  ;;  %3086 = vmatprep.mubr.bf16.mxu1 %v4791_v16  ;;  %v4898_v16 = vld [vmem:[%s6316_s1 + $0x8cc] ss:$16 sps:$4 sm:$0xff]  }
  0xe7   :  { %2571 = vmatpush1.bf16.msra.mxu0 %v4785_v17  ;;  %3136 = vmatpush1.bf16.msra.mxu1 %v4788_v18  ;;  %v4865_v17 = vld [vmem:[%s6317_s0 + $0xf0] ss:$36 sps:$4 sm:$0xff]   ;;  %v4872_v18 = vld [vmem:[%s6317_s0 + $0x13c] ss:$36 sps:$4 sm:$0xff]  }
  0xe8   :  { %2572 = vmatprep.subr.bf16.mxu0 %v4796_v19  ;;  %3137 = vmatprep.subr.bf16.mxu1 %v4799_v20  ;;  %v4893_v19 = vld [vmem:[%s6316_s1 + $0x8c0] ss:$16 sps:$4 sm:$0xff]   ;;  %v4896_v20 = vld [vmem:[%s6316_s1 + $0x8c8] ss:$16 sps:$4 sm:$0xff]  }
  0xea   :  { %2522 = vmatmul.mubr.bf16.gmra.mrb[20].mxu0 %v4793_v21  ;;  %3087 = vmatmul.mubr.bf16.gmra.mrb[20].mxu1 %v4793_v21  ;;  %v4904_v21 = vld [vmem:[%s6316_s1 + $0x8e4] ss:$16 sps:$4 sm:$0xff]  }
  0xeb   :  { %2573 = vmatpush1.bf16.msra.mxu0 %v4794_v22  ;;  %3138 = vmatpush1.bf16.msra.mxu1 %v4797_v23  ;;  %v4907_v22 = vld [vmem:[%s6316_s1 + $0x8ec] ss:$16 sps:$4 sm:$0xff]   ;;  %v4902_v23 = vld [vmem:[%s6316_s1 + $0x8e0] ss:$16 sps:$4 sm:$0xff]  }
  0xec   :  { %2574 = vmatprep.subr.bf16.mxu0 %v4802_v24  ;;  %3139 = vmatprep.subr.bf16.mxu1 %v4805_v25  ;;  %v4905_v24 = vld [vmem:[%s6316_s1 + $0x8e8] ss:$16 sps:$4 sm:$0xff]  }
  0xed   :  { %2531 = vmatprep.mubr.bf16.mxu0 %v4806_v27  ;;  %3096 = vmatprep.mubr.bf16.mxu1 %v4806_v27  ;;  %v4874_v25 = vld [vmem:[%s6317_s0 + $0x138] ss:$36 sps:$4 sm:$0xff]   ;;  %v4883_v27 = vld [vmem:[%s6317_s0 + $0x180] ss:$36 sps:$4 sm:$0xff]  }
  0xef   :  { %2575 = vmatpush1.bf16.msra.mxu0 %v4800_v26  ;;  %3140 = vmatpush1.bf16.msra.mxu1 %v4803_v28  ;;  %v4881_v26 = vld [vmem:[%s6317_s0 + $0x184] ss:$36 sps:$4 sm:$0xff]   ;;  %v4890_v28 = vld [vmem:[%s6317_s0 + $0x1cc] ss:$36 sps:$4 sm:$0xff]  }
  0xf0   :  { %2576 = vmatprep.subr.bf16.mxu0 %v4811_v29  ;;  %3141 = vmatprep.subr.bf16.mxu1 %v4814_v31  ;;  %v4892_v29 = vld [vmem:[%s6317_s0 + $0x1c8] ss:$36 sps:$4 sm:$0xff]   ;;  %v4901_v31 = vld [vmem:[%s6317_s0 + $0x210] ss:$36 sps:$4 sm:$0xff]  }
  0xf2   :  { %2532 = vmatmul.mubr.bf16.gmra.mrb[24].mxu0 %v4808_v30  ;;  %3097 = vmatmul.mubr.bf16.gmra.mrb[24].mxu1 %v4808_v30  ;;  %v4899_v30 = vld [vmem:[%s6317_s0 + $0x214] ss:$36 sps:$4 sm:$0xff]  }
  0xf3   :  { %2577 = vmatpush1.bf16.msra.mxu0 %v4809_v32  ;;  %3142 = vmatpush1.bf16.msra.mxu1 %v4812_v33  ;;  %v5044_v32 = vmov 0   ;;  %v4908_v33 = vld [vmem:[%s6317_s0 + $0x20] ss:$36 sps:$4 sm:$0xff]  }
  0xf4   :  { %2578 = vmatprep.subr.bf16.mxu0 %v4817_v34  ;;  %3143 = vmatprep.subr.bf16.mxu1 %v4820_v35  ;;  %v4909_v34 = vld [vmem:[%s6317_s0 + $0x68] ss:$36 sps:$4 sm:$0xff]   ;;  %v4910_v35 = vld [vmem:[%s6317_s0 + $0xb0] ss:$36 sps:$4 sm:$0xff]  }
  0xf5   :  { %2541 = vmatprep.mubr.bf16.mxu0 %v4821_v36  ;;  %3106 = vmatprep.mubr.bf16.mxu1 %v4821_v36  ;;  %v4911_v36 = vld [vmem:[%s6317_s0 + $0xf8] ss:$36 sps:$4 sm:$0xff]  }
  0xf7   :  { %2579 = vmatpush1.bf16.msra.mxu0 %v4815_v37  ;;  %3144 = vmatpush1.bf16.msra.mxu1 %v4818_v38  ;;  %v4912_v37 = vld [vmem:[%s6317_s0 + $0x140] ss:$36 sps:$4 sm:$0xff]   ;;  %v4913_v38 = vld [vmem:[%s6317_s0 + $0x188] ss:$36 sps:$4 sm:$0xff]  }
  0xf8   :  { %2580 = vmatprep.subr.bf16.mxu0 %v4826_v39  ;;  %3145 = vmatprep.subr.bf16.mxu1 %v4829_v40  ;;  %v4914_v39 = vld [vmem:[%s6317_s0 + $0x1d0] ss:$36 sps:$4 sm:$0xff]   ;;  %v4915_v40 = vld [vmem:[%s6317_s0 + $0x218] ss:$36 sps:$4 sm:$0xff]  }
  0xfa   :  { %2542 = vmatmul.mubr.bf16.gmra.mrb[28].mxu0 %v4823_v41  ;;  %3107 = vmatmul.mubr.bf16.gmra.mrb[28].mxu1 %v4823_v41  ;;  %v385_v41 = vlaneseq }
  0xfb   :  { %2581 = vmatpush1.bf16.msra.mxu0 %v4824_v42  ;;  %3146 = vmatpush1.bf16.msra.mxu1 %v4827_v43 }
  0xfc   :  { %2582 = vmatprep.subr.bf16.mxu0 %v4832_v44  ;;  %3147 = vmatprep.subr.bf16.mxu1 %v4835_v45  ;;  %v386_v42 = vshrl.u32 %v385_v41, 7  ;;  %v383_v45 = vld [vmem:[%s6318_s2] sm:$0xf] }
  0xfd   :  { %2584 = vmatprep.mubr.bf16.mxu0 %v4838_v46  ;;  %3149 = vmatprep.mubr.bf16.mxu1 %v4838_v46 }
  0xfe   :  { %v387_v43 = vsub.s32 0, %v386_v42  ;;  %v395_v44 = vsub.s32 2, %v386_v42  ;;  %v391_v46 = vsub.s32 1, %v386_v42 }
  0xff   :  { %2583 = vmatpush1.bf16.msra.mxu0 %v4830_v47  ;;  %3148 = vmatpush1.bf16.msra.mxu1 %v4833_v48  ;;  %v399_v47 = vsub.s32 3, %v386_v42 }
 0x100   :  { %2665 = vmatprep.subr.bf16.mxu0 %v4841_v49  ;;  %3230 = vmatprep.subr.bf16.mxu1 %v4844_v50  ;;  %v6148_v48 = vrot.slane %v383_v45, %v387_v43  ;;  %v6150_v49 = vrot.slane %v383_v45, %v395_v44  ;;  %v6152_v50 = vrot.slane %v383_v45, %v391_v46 }
 0x102   :  { %2585 = vmatmul.mubr.bf16.vlgmr.msra.gmra.mrb[0].mxu0 %v4836_v51  ;;  %3150 = vmatmul.mubr.bf16.vlgmr.msra.gmra.mrb[0].mxu1 %v4836_v51  ;;  %v6154_v51 = vrot.slane %v383_v45, %v399_v47 }
 0x103   :  { %2666 = vmatpush1.bf16.msra.mxu0 %v4839_v52  ;;  %3231 = vmatpush1.bf16.msra.mxu1 %v4842_v53 }
 0x104   :  { %2594 = vmatprep.mubr.bf16.mxu0 %v4845_v54  ;;  %3159 = vmatprep.mubr.bf16.mxu1 %v4845_v54 }
 0x105   :  { %2667 = vmatprep.subr.bf16.mxu0 %v4850_v55  ;;  %3232 = vmatprep.subr.bf16.mxu1 %v4853_v56 }
 0x107   :  { %2668 = vmatpush1.bf16.msra.mxu0 %v4848_v57  ;;  %3233 = vmatpush1.bf16.msra.mxu1 %v4851_v58 }
 0x108   :  { %2669 = vmatprep.subr.bf16.mxu0 %v4859_v59  ;;  %3234 = vmatprep.subr.bf16.mxu1 %v4862_v60 }
 0x10a   :  { %2595 = vmatmul.mubr.bf16.gmra.mrb[4].mxu0 %v4847_v61  ;;  %3160 = vmatmul.mubr.bf16.gmra.mrb[4].mxu1 %v4847_v61 }
 0x10b   :  { %2604 = vmatprep.mubr.bf16.mxu0 %v4854_v62  ;;  %3169 = vmatprep.mubr.bf16.mxu1 %v4854_v62 }
 0x10c   :  { %2670 = vmatpush1.bf16.msra.mxu0 %v4857_v63  ;;  %3235 = vmatpush1.bf16.msra.mxu1 %v4860_v0 }
 0x10d   :  { %2671 = vmatprep.subr.bf16.mxu0 %v4868_v1  ;;  %3236 = vmatprep.subr.bf16.mxu1 %v4871_v2 }
 0x110   :  { %2672 = vmatpush1.bf16.msra.mxu0 %v4866_v3  ;;  %3237 = vmatpush1.bf16.msra.mxu1 %v4869_v4 }
 0x111   :  { %2673 = vmatprep.subr.bf16.mxu0 %v4877_v5  ;;  %3238 = vmatprep.subr.bf16.mxu1 %v4880_v6 }
 0x112   :  { %2605 = vmatmul.mubr.bf16.gmra.mrb[8].mxu0 %v4856_v7  ;;  %3170 = vmatmul.mubr.bf16.gmra.mrb[8].mxu1 %v4856_v7 }
 0x113   :  { %2614 = vmatprep.mubr.bf16.mxu0 %v4863_v8  ;;  %3179 = vmatprep.mubr.bf16.mxu1 %v4863_v8 }
 0x114   :  { %2674 = vmatpush1.bf16.msra.mxu0 %v4875_v9  ;;  %3239 = vmatpush1.bf16.msra.mxu1 %v4878_v10 }
 0x115   :  { %2675 = vmatprep.subr.bf16.mxu0 %v4886_v11  ;;  %3240 = vmatprep.subr.bf16.mxu1 %v4889_v12 }
 0x118   :  { %2676 = vmatpush1.bf16.msra.mxu0 %v4884_v13  ;;  %3241 = vmatpush1.bf16.msra.mxu1 %v4887_v14 }
 0x119   :  { %2677 = vmatprep.subr.bf16.mxu0 %v4895_v15  ;;  %3242 = vmatprep.subr.bf16.mxu1 %v4898_v16 }
 0x11a   :  { %2615 = vmatmul.mubr.bf16.gmra.mrb[12].mxu0 %v4865_v17  ;;  %3180 = vmatmul.mubr.bf16.gmra.mrb[12].mxu1 %v4865_v17 }
 0x11b   :  { %2624 = vmatprep.mubr.bf16.mxu0 %v4872_v18  ;;  %3189 = vmatprep.mubr.bf16.mxu1 %v4872_v18 }
 0x11c   :  { %2678 = vmatpush1.bf16.msra.mxu0 %v4893_v19  ;;  %3243 = vmatpush1.bf16.msra.mxu1 %v4896_v20 }
 0x11d   :  { %2679 = vmatprep.subr.bf16.mxu0 %v4904_v21  ;;  %3244 = vmatprep.subr.bf16.mxu1 %v4907_v22 }
 0x120   :  { %2680 = vmatpush1.bf16.msra.mxu0 %v4902_v23  ;;  %3245 = vmatpush1.bf16.msra.mxu1 %v4905_v24 }
 0x122   :  { %2625 = vmatmul.mubr.bf16.gmra.mrb[16].mxu0 %v4874_v25  ;;  %3190 = vmatmul.mubr.bf16.gmra.mrb[16].mxu1 %v4874_v25 }
 0x123   :  { %2634 = vmatprep.mubr.bf16.mxu0 %v4881_v26  ;;  %3199 = vmatprep.mubr.bf16.mxu1 %v4881_v26 }
 0x12a   :  { %2635 = vmatmul.mubr.bf16.gmra.mrb[20].mxu0 %v4883_v27  ;;  %3200 = vmatmul.mubr.bf16.gmra.mrb[20].mxu1 %v4883_v27 }
 0x12b   :  { %2644 = vmatprep.mubr.bf16.mxu0 %v4890_v28  ;;  %3209 = vmatprep.mubr.bf16.mxu1 %v4890_v28 }
 0x132   :  { %2645 = vmatmul.mubr.bf16.gmra.mrb[24].mxu0 %v4892_v29  ;;  %3210 = vmatmul.mubr.bf16.gmra.mrb[24].mxu1 %v4892_v29 }
 0x133   :  { %2654 = vmatprep.mubr.bf16.mxu0 %v4899_v30  ;;  %3219 = vmatprep.mubr.bf16.mxu1 %v4899_v30 }
 0x13a   :  { %2655 = vmatmul.mubr.bf16.gmra.mrb[28].mxu0 %v4901_v31  ;;  %3220 = vmatmul.mubr.bf16.gmra.mrb[28].mxu1 %v4901_v31 }
 0x13b   :  { %2697 = vmatprep.mubr.bf16.mxu0 %v5044_v32  ;;  %3262 = vmatprep.mubr.bf16.mxu1 %v5044_v32 }
 0x142   :  { %2698 = vmatmul.mubr.bf16.vlgmr.msra.gmra.mrb[0].mxu0 %v4908_v33  ;;  %3263 = vmatmul.mubr.bf16.vlgmr.msra.gmra.mrb[0].mxu1 %v4908_v33 }
 0x143   :  { %2707 = vmatprep.mubr.bf16.mxu0 %v5044_v32  ;;  %3272 = vmatprep.mubr.bf16.mxu1 %v5044_v32 }
 0x14a   :  { %2708 = vmatmul.mubr.bf16.gmra.mrb[4].mxu0 %v4909_v34  ;;  %3273 = vmatmul.mubr.bf16.gmra.mrb[4].mxu1 %v4909_v34 }
 0x14b   :  { %2717 = vmatprep.mubr.bf16.mxu0 %v5044_v32  ;;  %3282 = vmatprep.mubr.bf16.mxu1 %v5044_v32 }
 0x152   :  { %2718 = vmatmul.mubr.bf16.gmra.mrb[8].mxu0 %v4910_v35  ;;  %3283 = vmatmul.mubr.bf16.gmra.mrb[8].mxu1 %v4910_v35 }
 0x153   :  { %2727 = vmatprep.mubr.bf16.mxu0 %v5044_v32  ;;  %3292 = vmatprep.mubr.bf16.mxu1 %v5044_v32 }
 0x15a   :  { %2728 = vmatmul.mubr.bf16.gmra.mrb[12].mxu0 %v4911_v36  ;;  %3293 = vmatmul.mubr.bf16.gmra.mrb[12].mxu1 %v4911_v36 }
 0x15b   :  { %2737 = vmatprep.mubr.bf16.mxu0 %v5044_v32  ;;  %3302 = vmatprep.mubr.bf16.mxu1 %v5044_v32 }
 0x162   :  { %2738 = vmatmul.mubr.bf16.gmra.mrb[16].mxu0 %v4912_v37  ;;  %3303 = vmatmul.mubr.bf16.gmra.mrb[16].mxu1 %v4912_v37 }
 0x163   :  { %2747 = vmatprep.mubr.bf16.mxu0 %v5044_v32  ;;  %3312 = vmatprep.mubr.bf16.mxu1 %v5044_v32 }
 0x16a   :  { %2748 = vmatmul.mubr.bf16.gmra.mrb[20].mxu0 %v4913_v38  ;;  %3313 = vmatmul.mubr.bf16.gmra.mrb[20].mxu1 %v4913_v38 }
 0x16b   :  { %2757 = vmatprep.mubr.bf16.mxu0 %v5044_v32  ;;  %3322 = vmatprep.mubr.bf16.mxu1 %v5044_v32 }
 0x172   :  { %2758 = vmatmul.mubr.bf16.gmra.mrb[24].mxu0 %v4914_v39  ;;  %3323 = vmatmul.mubr.bf16.gmra.mrb[24].mxu1 %v4914_v39 }
 0x173   :  { %2767 = vmatprep.mubr.bf16.mxu0 %v5044_v32  ;;  %3332 = vmatprep.mubr.bf16.mxu1 %v5044_v32 }
 0x17a   :  { %2768 = vmatmul.mubr.bf16.gmra.mrb[28].mxu0 %v4915_v40  ;;  %3333 = vmatmul.mubr.bf16.gmra.mrb[28].mxu1 %v4915_v40 }
 0x215   :  { %v2699_v52 = vpop.f32.mrb[0].mxu0  ;;  %v3264_v53 = vpop.f32.mrb[0].mxu1 }
 0x216   :  { %v4059_v54 = vadd.f32 %v2699_v52, %v6148_v48  ;;  %v4091_v55 = vadd.f32 %v3264_v53, %v6150_v49  ;;  %v2701_v56 = vpop.f32.mrb[1].mxu0  ;;  %v3266_v57 = vpop.f32.mrb[1].mxu1 }
 0x217   :  { %v4060_v58 = vadd.f32 %v2701_v56, %v6152_v50  ;;  %v4092_v59 = vadd.f32 %v3266_v57, %v6154_v51  ;;  %v2703_v60 = vpop.f32.mrb[2].mxu0  ;;  %v3268_v61 = vpop.f32.mrb[2].mxu1 }
 0x218   :  { %4916 = vtanh.f32 %v4059_v54  ;;  %v4061_v62 = vadd.f32 %v2703_v60, %v6148_v48  ;;  %v2705_v63 = vpop.f32.mrb[3].mxu0  ;;  %v3270_v0 = vpop.f32.mrb[3].mxu1  ;;  %v4093_v1 = vadd.f32 %v3268_v61, %v6150_v49 }
 0x219   :  { %4918 = vtanh.f32 %v4091_v55  ;;  %v4062_v2 = vadd.f32 %v2705_v63, %v6152_v50  ;;  %v4094_v3 = vadd.f32 %v3270_v0, %v6154_v51 }
 0x21a   :  { %4920 = vtanh.f32 %v4060_v58 }
 0x21b   :  { %4922 = vtanh.f32 %v4092_v59 }
 0x21c   :  { %4924 = vtanh.f32 %v4061_v62 }
 0x21d   :  { %4926 = vtanh.f32 %v4093_v1  ;;  %v2709_v4 = vpop.f32.mrb[4].mxu0  ;;  %v3274_v5 = vpop.f32.mrb[4].mxu1 }
 0x21e   :  { %4928 = vtanh.f32 %v4062_v2  ;;  %v4063_v6 = vadd.f32 %v2709_v4, %v6148_v48  ;;  %v4095_v7 = vadd.f32 %v3274_v5, %v6150_v49  ;;  %v2711_v8 = vpop.f32.mrb[5].mxu0  ;;  %v3276_v9 = vpop.f32.mrb[5].mxu1 }
 0x21f   :  { %4930 = vtanh.f32 %v4094_v3  ;;  %v4064_v10 = vadd.f32 %v2711_v8, %v6152_v50  ;;  %v4096_v11 = vadd.f32 %v3276_v9, %v6154_v51  ;;  %v2713_v12 = vpop.f32.mrb[6].mxu0  ;;  %v3278_v13 = vpop.f32.mrb[6].mxu1 }
 0x220   :  { %4932 = vtanh.f32 %v4063_v6  ;;  %v4065_v14 = vadd.f32 %v2713_v12, %v6148_v48  ;;  %v2715_v15 = vpop.f32.mrb[7].mxu0  ;;  %v3280_v16 = vpop.f32.mrb[7].mxu1  ;;  %v4097_v17 = vadd.f32 %v3278_v13, %v6150_v49 }
 0x221   :  { %4934 = vtanh.f32 %v4095_v7  ;;  %v4066_v19 = vadd.f32 %v2715_v15, %v6152_v50  ;;  %v4098_v21 = vadd.f32 %v3280_v16, %v6154_v51 }
 0x222   :  { %v4917_v18 = vpop.eup %4916  ;;  %4936 = vtanh.f32 %v4064_v10 }
 0x223   :  { %v4919_v20 = vpop.eup %4918  ;;  %4938 = vtanh.f32 %v4096_v11 }
 0x224   :  { %v4921_v22 = vpop.eup %4920  ;;  %4940 = vtanh.f32 %v4065_v14 }
 0x225   :  { %v4923_v23 = vpop.eup %4922  ;;  %v4027_v24 = vpack.c.bf16 %v4921_v22, %v4917_v18  ;;  %4942 = vtanh.f32 %v4097_v17  ;;  %v2719_v25 = vpop.f32.mrb[8].mxu0 }
 0x226   :  { %v3284_v26 = vpop.f32.mrb[8].mxu1  ;;  %v4925_v27 = vpop.eup %4924  ;;  %v4028_v28 = vpack.c.bf16 %v4923_v23, %v4919_v20  ;;  %4944 = vtanh.f32 %v4066_v19  ;;  %v4067_v29 = vadd.f32 %v2719_v25, %v6148_v48 }
 0x227   :  { %v4099_v30 = vadd.f32 %v3284_v26, %v6150_v49  ;;  %v2721_v31 = vpop.f32.mrb[9].mxu0  ;;  %v3286_v32 = vpop.f32.mrb[9].mxu1  ;;  %3599 = vst [vmem:[%s6319_s3] sm:$0xff] %v4027_v24  ;;  %4946 = vtanh.f32 %v4098_v21 }
 0x228   :  { %v4927_v33 = vpop.eup %4926  ;;  %v4068_v34 = vadd.f32 %v2721_v31, %v6152_v50  ;;  %v4100_v35 = vadd.f32 %v3286_v32, %v6154_v51  ;;  %v2723_v36 = vpop.f32.mrb[10].mxu0  ;;  %3600 = vst [vmem:[%s6319_s3 + $0x8] sm:$0xff] %v4028_v28  ;;  %4948 = vtanh.f32 %v4067_v29 }
 0x229   :  { %v3288_v37 = vpop.f32.mrb[10].mxu1  ;;  %v4929_v38 = vpop.eup %4928  ;;  %v4069_v39 = vadd.f32 %v2723_v36, %v6148_v48  ;;  %4950 = vtanh.f32 %v4099_v30 }
 0x22a   :  { %v2725_v40 = vpop.f32.mrb[11].mxu0  ;;  %v3290_v41 = vpop.f32.mrb[11].mxu1  ;;  %v4029_v43 = vpack.c.bf16 %v4929_v38, %v4925_v27  ;;  %v4101_v44 = vadd.f32 %v3288_v37, %v6150_v49  ;;  %4952 = vtanh.f32 %v4068_v34 }
 0x22b   :  { %v4931_v42 = vpop.eup %4930  ;;  %v4070_v47 = vadd.f32 %v2725_v40, %v6152_v50  ;;  %4954 = vtanh.f32 %v4100_v35  ;;  %v4102_v53 = vadd.f32 %v3290_v41, %v6154_v51 }
 0x22c   :  { %v4933_v45 = vpop.eup %4932  ;;  %v4030_v46 = vpack.c.bf16 %v4931_v42, %v4927_v33  ;;  %3601 = vst [vmem:[%s6319_s3 + $0x10] sm:$0xff] %v4029_v43  ;;  %4956 = vtanh.f32 %v4069_v39 }
 0x22d   :  { %v4935_v52 = vpop.eup %4934  ;;  %4958 = vtanh.f32 %v4101_v44  ;;  %v2729_v57 = vpop.f32.mrb[12].mxu0 }
 0x22e   :  { %v4937_v54 = vpop.eup %4936  ;;  %3602 = vst [vmem:[%s6319_s3 + $0x18] sm:$0xff] %v4030_v46  ;;  %v3294_v58 = vpop.f32.mrb[12].mxu1  ;;  %4960 = vtanh.f32 %v4070_v47  ;;  %v4071_v61 = vadd.f32 %v2729_v57, %v6148_v48 }
 0x22f   :  { %v4939_v55 = vpop.eup %4938  ;;  %v4031_v56 = vpack.c.bf16 %v4937_v54, %v4933_v45  ;;  %v4103_v62 = vadd.f32 %v3294_v58, %v6150_v49  ;;  %v2731_v63 = vpop.f32.mrb[13].mxu0  ;;  %4962 = vtanh.f32 %v4102_v53 }
 0x230   :  { %v4941_v59 = vpop.eup %4940  ;;  %v4032_v60 = vpack.c.bf16 %v4939_v55, %v4935_v52  ;;  %v3296_v0 = vpop.f32.mrb[13].mxu1  ;;  %v4072_v2 = vadd.f32 %v2731_v63, %v6152_v50  ;;  %4964 = vtanh.f32 %v4071_v61 }
 0x231   :  { %v4943_v1 = vpop.eup %4942  ;;  %3603 = vst [vmem:[%s6319_s3 + $0x20] sm:$0xff] %v4031_v56  ;;  %v4104_v3 = vadd.f32 %v3296_v0, %v6154_v51  ;;  %v2733_v4 = vpop.f32.mrb[14].mxu0  ;;  %4966 = vtanh.f32 %v4103_v62 }
 0x232   :  { %v3298_v5 = vpop.f32.mrb[14].mxu1  ;;  %v4945_v6 = vpop.eup %4944  ;;  %3604 = vst [vmem:[%s6319_s3 + $0x28] sm:$0xff] %v4032_v60  ;;  %v4073_v7 = vadd.f32 %v2733_v4, %v6148_v48  ;;  %4968 = vtanh.f32 %v4072_v2 }
 0x233   :  { %v2735_v8 = vpop.f32.mrb[15].mxu0  ;;  %v3300_v9 = vpop.f32.mrb[15].mxu1  ;;  %v4033_v11 = vpack.c.bf16 %v4945_v6, %v4941_v59  ;;  %v4105_v12 = vadd.f32 %v3298_v5, %v6150_v49  ;;  %4970 = vtanh.f32 %v4104_v3 }
 0x234   :  { %v4947_v10 = vpop.eup %4946  ;;  %v4074_v15 = vadd.f32 %v2735_v8, %v6152_v50  ;;  %v4106_v17 = vadd.f32 %v3300_v9, %v6154_v51  ;;  %4972 = vtanh.f32 %v4073_v7 }
 0x235   :  { %v4949_v13 = vpop.eup %4948  ;;  %v4034_v14 = vpack.c.bf16 %v4947_v10, %v4943_v1  ;;  %3605 = vst [vmem:[%s6319_s3 + $0x30] sm:$0xff] %v4033_v11  ;;  %4974 = vtanh.f32 %v4105_v12  ;;  %v2739_v21 = vpop.f32.mrb[16].mxu0 }
 0x236   :  { %v4951_v16 = vpop.eup %4950  ;;  %v3304_v22 = vpop.f32.mrb[16].mxu1  ;;  %4976 = vtanh.f32 %v4074_v15  ;;  %v4075_v25 = vadd.f32 %v2739_v21, %v6148_v48 }
 0x237   :  { %v4953_v18 = vpop.eup %4952  ;;  %3606 = vst [vmem:[%s6319_s3 + $0x38] sm:$0xff] %v4034_v14  ;;  %v4107_v26 = vadd.f32 %v3304_v22, %v6150_v49  ;;  %v2741_v27 = vpop.f32.mrb[17].mxu0  ;;  %4978 = vtanh.f32 %v4106_v17 }
 0x238   :  { %v4955_v19 = vpop.eup %4954  ;;  %v4035_v20 = vpack.c.bf16 %v4953_v18, %v4949_v13  ;;  %v3306_v28 = vpop.f32.mrb[17].mxu1  ;;  %v4076_v30 = vadd.f32 %v2741_v27, %v6152_v50  ;;  %4980 = vtanh.f32 %v4075_v25 }
 0x239   :  { %v4957_v23 = vpop.eup %4956  ;;  %v4036_v24 = vpack.c.bf16 %v4955_v19, %v4951_v16  ;;  %v4108_v31 = vadd.f32 %v3306_v28, %v6154_v51  ;;  %v2743_v32 = vpop.f32.mrb[18].mxu0  ;;  %4982 = vtanh.f32 %v4107_v26 }
 0x23a   :  { %v4959_v29 = vpop.eup %4958  ;;  %3607 = vst [vmem:[%s6319_s3 + $0x40] sm:$0xff] %v4035_v20  ;;  %v3308_v33 = vpop.f32.mrb[18].mxu1  ;;  %v4077_v35 = vadd.f32 %v2743_v32, %v6148_v48  ;;  %4984 = vtanh.f32 %v4076_v30 }
 0x23b   :  { %v4961_v34 = vpop.eup %4960  ;;  %3608 = vst [vmem:[%s6319_s3 + $0x48] sm:$0xff] %v4036_v24  ;;  %v2745_v36 = vpop.f32.mrb[19].mxu0  ;;  %v4109_v40 = vadd.f32 %v3308_v33, %v6150_v49  ;;  %4986 = vtanh.f32 %v4108_v31 }
 0x23c   :  { %v3310_v37 = vpop.f32.mrb[19].mxu1  ;;  %v4963_v38 = vpop.eup %4962  ;;  %v4037_v39 = vpack.c.bf16 %v4961_v34, %v4957_v23  ;;  %v4078_v43 = vadd.f32 %v2745_v36, %v6152_v50  ;;  %4988 = vtanh.f32 %v4077_v35 }
 0x23d   :  { %v4965_v41 = vpop.eup %4964  ;;  %v4038_v42 = vpack.c.bf16 %v4963_v38, %v4959_v29  ;;  %v4110_v45 = vadd.f32 %v3310_v37, %v6154_v51  ;;  %4990 = vtanh.f32 %v4109_v40  ;;  %v2749_v53 = vpop.f32.mrb[20].mxu0 }
 0x23e   :  { %v4967_v44 = vpop.eup %4966  ;;  %3609 = vst [vmem:[%s6319_s3 + $0x50] sm:$0xff] %v4037_v39  ;;  %v3314_v54 = vpop.f32.mrb[20].mxu1  ;;  %4992 = vtanh.f32 %v4078_v43  ;;  %v4079_v57 = vadd.f32 %v2749_v53, %v6148_v48 }
 0x23f   :  { %v4969_v46 = vpop.eup %4968  ;;  %3610 = vst [vmem:[%s6319_s3 + $0x58] sm:$0xff] %v4038_v42  ;;  %v4111_v58 = vadd.f32 %v3314_v54, %v6150_v49  ;;  %v2751_v59 = vpop.f32.mrb[21].mxu0  ;;  %4994 = vtanh.f32 %v4110_v45 }
 0x240   :  { %v4971_v47 = vpop.eup %4970  ;;  %v4039_v52 = vpack.c.bf16 %v4969_v46, %v4965_v41  ;;  %v3316_v60 = vpop.f32.mrb[21].mxu1  ;;  %v4080_v62 = vadd.f32 %v2751_v59, %v6152_v50  ;;  %4996 = vtanh.f32 %v4079_v57 }
 0x241   :  { %v4973_v55 = vpop.eup %4972  ;;  %v4040_v56 = vpack.c.bf16 %v4971_v47, %v4967_v44  ;;  %v4112_v63 = vadd.f32 %v3316_v60, %v6154_v51  ;;  %v2753_v0 = vpop.f32.mrb[22].mxu0  ;;  %4998 = vtanh.f32 %v4111_v58 }
 0x242   :  { %v4975_v61 = vpop.eup %4974  ;;  %3611 = vst [vmem:[%s6319_s3 + $0x60] sm:$0xff] %v4039_v52  ;;  %v3318_v1 = vpop.f32.mrb[22].mxu1  ;;  %v4081_v3 = vadd.f32 %v2753_v0, %v6148_v48  ;;  %5000 = vtanh.f32 %v4080_v62 }
 0x243   :  { %v4977_v2 = vpop.eup %4976  ;;  %3612 = vst [vmem:[%s6319_s3 + $0x68] sm:$0xff] %v4040_v56  ;;  %v2755_v4 = vpop.f32.mrb[23].mxu0  ;;  %v4113_v8 = vadd.f32 %v3318_v1, %v6150_v49  ;;  %5002 = vtanh.f32 %v4112_v63 }
 0x244   :  { %v3320_v5 = vpop.f32.mrb[23].mxu1  ;;  %v4979_v6 = vpop.eup %4978  ;;  %v4041_v7 = vpack.c.bf16 %v4977_v2, %v4973_v55  ;;  %v4082_v11 = vadd.f32 %v2755_v4, %v6152_v50  ;;  %5004 = vtanh.f32 %v4081_v3 }
 0x245   :  { %v4981_v9 = vpop.eup %4980  ;;  %v4042_v10 = vpack.c.bf16 %v4979_v6, %v4975_v61  ;;  %v4114_v13 = vadd.f32 %v3320_v5, %v6154_v51  ;;  %5006 = vtanh.f32 %v4113_v8  ;;  %v2759_v17 = vpop.f32.mrb[24].mxu0 }
 0x246   :  { %v4983_v12 = vpop.eup %4982  ;;  %3613 = vst [vmem:[%s6319_s3 + $0x70] sm:$0xff] %v4041_v7  ;;  %v3324_v18 = vpop.f32.mrb[24].mxu1  ;;  %5008 = vtanh.f32 %v4082_v11  ;;  %v4083_v21 = vadd.f32 %v2759_v17, %v6148_v48 }
 0x247   :  { %v4985_v14 = vpop.eup %4984  ;;  %3614 = vst [vmem:[%s6319_s3 + $0x78] sm:$0xff] %v4042_v10  ;;  %v4115_v22 = vadd.f32 %v3324_v18, %v6150_v49  ;;  %v2761_v23 = vpop.f32.mrb[25].mxu0  ;;  %5010 = vtanh.f32 %v4114_v13 }
 0x248   :  { %v4987_v15 = vpop.eup %4986  ;;  %v4043_v16 = vpack.c.bf16 %v4985_v14, %v4981_v9  ;;  %v3326_v24 = vpop.f32.mrb[25].mxu1  ;;  %v4084_v26 = vadd.f32 %v2761_v23, %v6152_v50  ;;  %5012 = vtanh.f32 %v4083_v21 }
 0x249   :  { %v4989_v19 = vpop.eup %4988  ;;  %v4044_v20 = vpack.c.bf16 %v4987_v15, %v4983_v12  ;;  %v4116_v27 = vadd.f32 %v3326_v24, %v6154_v51  ;;  %v2763_v28 = vpop.f32.mrb[26].mxu0  ;;  %5014 = vtanh.f32 %v4115_v22 }
 0x24a   :  { %v4991_v25 = vpop.eup %4990  ;;  %3615 = vst [vmem:[%s6319_s3 + $0x80] sm:$0xff] %v4043_v16  ;;  %v3328_v29 = vpop.f32.mrb[26].mxu1  ;;  %v4085_v31 = vadd.f32 %v2763_v28, %v6148_v48  ;;  %5016 = vtanh.f32 %v4084_v26 }
 0x24b   :  { %v4993_v30 = vpop.eup %4992  ;;  %3616 = vst [vmem:[%s6319_s3 + $0x88] sm:$0xff] %v4044_v20  ;;  %v2765_v32 = vpop.f32.mrb[27].mxu0  ;;  %v4117_v36 = vadd.f32 %v3328_v29, %v6150_v49  ;;  %5018 = vtanh.f32 %v4116_v27 }
 0x24c   :  { %v3330_v33 = vpop.f32.mrb[27].mxu1  ;;  %v4995_v34 = vpop.eup %4994  ;;  %v4045_v35 = vpack.c.bf16 %v4993_v30, %v4989_v19  ;;  %v4086_v39 = vadd.f32 %v2765_v32, %v6152_v50  ;;  %5020 = vtanh.f32 %v4085_v31 }
 0x24d   :  { %v4997_v37 = vpop.eup %4996  ;;  %v4046_v38 = vpack.c.bf16 %v4995_v34, %v4991_v25  ;;  %v4118_v41 = vadd.f32 %v3330_v33, %v6154_v51  ;;  %5022 = vtanh.f32 %v4117_v36  ;;  %v2769_v45 = vpop.f32.mrb[28].mxu0 }
 0x24e   :  { %v4999_v40 = vpop.eup %4998  ;;  %3617 = vst [vmem:[%s6319_s3 + $0x90] sm:$0xff] %v4045_v35  ;;  %v3334_v46 = vpop.f32.mrb[28].mxu1  ;;  %5024 = vtanh.f32 %v4086_v39  ;;  %v4087_v53 = vadd.f32 %v2769_v45, %v6148_v48 }
 0x24f   :  { %v5001_v42 = vpop.eup %5000  ;;  %3618 = vst [vmem:[%s6319_s3 + $0x98] sm:$0xff] %v4046_v38  ;;  %v4119_v54 = vadd.f32 %v3334_v46, %v6150_v49  ;;  %v2771_v55 = vpop.f32.mrb[29].mxu0  ;;  %5026 = vtanh.f32 %v4118_v41 }
 0x250   :  { %v5003_v43 = vpop.eup %5002  ;;  %v4047_v44 = vpack.c.bf16 %v5001_v42, %v4997_v37  ;;  %v3336_v56 = vpop.f32.mrb[29].mxu1  ;;  %v4088_v58 = vadd.f32 %v2771_v55, %v6152_v50  ;;  %5028 = vtanh.f32 %v4087_v53 }
 0x251   :  { %v5005_v47 = vpop.eup %5004  ;;  %v4048_v52 = vpack.c.bf16 %v5003_v43, %v4999_v40  ;;  %v4120_v59 = vadd.f32 %v3336_v56, %v6154_v51  ;;  %v2773_v60 = vpop.f32.mrb[30].mxu0  ;;  %5030 = vtanh.f32 %v4119_v54 }
 0x252   :  { %v5007_v57 = vpop.eup %5006  ;;  %3619 = vst [vmem:[%s6319_s3 + $0xa0] sm:$0xff] %v4047_v44  ;;  %v3338_v61 = vpop.f32.mrb[30].mxu1  ;;  %v4089_v63 = vadd.f32 %v2773_v60, %v6148_v48  ;;  %5032 = vtanh.f32 %v4088_v58 }
 0x253   :  { %v5009_v62 = vpop.eup %5008  ;;  %3620 = vst [vmem:[%s6319_s3 + $0xa8] sm:$0xff] %v4048_v52  ;;  %v2775_v0 = vpop.f32.mrb[31].mxu0  ;;  %v4121_v4 = vadd.f32 %v3338_v61, %v6150_v49  ;;  %5034 = vtanh.f32 %v4120_v59 }
 0x254   :  { %v3340_v1 = vpop.f32.mrb[31].mxu1  ;;  %v5011_v2 = vpop.eup %5010  ;;  %v4049_v3 = vpack.c.bf16 %v5009_v62, %v5005_v47  ;;  %v4090_v7 = vadd.f32 %v2775_v0, %v6152_v50  ;;  %5036 = vtanh.f32 %v4089_v63 }
 0x255   :  { %v5013_v5 = vpop.eup %5012  ;;  %v4050_v6 = vpack.c.bf16 %v5011_v2, %v5007_v57  ;;  %v4122_v48 = vadd.f32 %v3340_v1, %v6154_v51  ;;  %5038 = vtanh.f32 %v4121_v4 }
 0x256   :  { %v5015_v8 = vpop.eup %5014  ;;  %3621 = vst [vmem:[%s6319_s3 + $0xb0] sm:$0xff] %v4049_v3  ;;  %5040 = vtanh.f32 %v4090_v7 }
 0x257   :  { %v5017_v9 = vpop.eup %5016  ;;  %3622 = vst [vmem:[%s6319_s3 + $0xb8] sm:$0xff] %v4050_v6  ;;  %5042 = vtanh.f32 %v4122_v48 }
 0x258   :  { %v5019_v49 = vpop.eup %5018  ;;  %v4051_v10 = vpack.c.bf16 %v5017_v9, %v5013_v5 }
 0x259   :  { %v5021_v11 = vpop.eup %5020  ;;  %v4052_v12 = vpack.c.bf16 %v5019_v49, %v5015_v8 }
 0x25a   :  { %v5023_v50 = vpop.eup %5022  ;;  %3623 = vst [vmem:[%s6319_s3 + $0xc0] sm:$0xff] %v4051_v10 }
 0x25b   :  { %v5025_v13 = vpop.eup %5024  ;;  %3624 = vst [vmem:[%s6319_s3 + $0xc8] sm:$0xff] %v4052_v12 }
 0x25c   :  { %v5027_v51 = vpop.eup %5026  ;;  %v4053_v14 = vpack.c.bf16 %v5025_v13, %v5021_v11 }
 0x25d   :  { %v5029_v15 = vpop.eup %5028  ;;  %v4054_v16 = vpack.c.bf16 %v5027_v51, %v5023_v50 }
 0x25e   :  { %v5031_v17 = vpop.eup %5030  ;;  %3625 = vst [vmem:[%s6319_s3 + $0xd0] sm:$0xff] %v4053_v14 }
 0x25f   :  { %v5033_v18 = vpop.eup %5032  ;;  %3626 = vst [vmem:[%s6319_s3 + $0xd8] sm:$0xff] %v4054_v16 }
 0x260   :  { %v5035_v19 = vpop.eup %5034  ;;  %v4055_v20 = vpack.c.bf16 %v5033_v18, %v5029_v15 }
 0x261   :  { %v5037_v21 = vpop.eup %5036  ;;  %v4056_v22 = vpack.c.bf16 %v5035_v19, %v5031_v17 }
 0x262   :  { %v5039_v23 = vpop.eup %5038  ;;  %3627 = vst [vmem:[%s6319_s3 + $0xe0] sm:$0xff] %v4055_v20 }
 0x263   :  { %v5041_v24 = vpop.eup %5040  ;;  %3628 = vst [vmem:[%s6319_s3 + $0xe8] sm:$0xff] %v4056_v22 }
 0x264   :  { %v5043_v25 = vpop.eup %5042  ;;  %v4057_v26 = vpack.c.bf16 %v5041_v24, %v5037_v21 }
 0x265   :  { %v4058_v27 = vpack.c.bf16 %v5043_v25, %v5039_v23 }
 0x266   :  { %3629 = vst [vmem:[%s6319_s3 + $0xf0] sm:$0xff] %v4057_v26 }
 0x267   :  { %3630 = vst [vmem:[%s6319_s3 + $0xf8] sm:$0xff] %v4058_v27 }

</bundles_post_ra>
